<compile_context>
chip_gen: v5e
topology: v5e:2x2
jax: 0.10.0
libtpu: 0.0.40
codegen_flags: <defaults>
</compile_context>

<pallas_src>
import jax
import jax.numpy as jnp
import numpy as np
from jax.experimental import pallas as pl
from jax.experimental.pallas import tpu as pltpu

EPS = 1e-5
_HIGH = jax.lax.Precision.HIGHEST            # only used by the XLA reference
_PHASES = ((0, 0), (0, 1), (1, 0), (1, 1))   # output parity (qy, qx), qy-major
_TAPS = ((0, 0), (0, 1), (1, 0), (1, 1))     # 2x2 window offsets (j, i)
_VMEM_LIMIT = 64 * 1024 * 1024               # <= physical VMEM on v5e/v6e/v7x


# ---------------------------------------------------------------------------
# Kernels.
# ---------------------------------------------------------------------------
def _stem_kernel(z_ref, w_ref, y_ref, stats_ref):
    """Layer 1: ConvT(k=2, s=1, p=0) on a 1x1 input == one GEMM per phase.

    Writes raw (pre-BN) bf16 phase slabs plus per-channel [sum, sumsq] partials
    (from the f32 accumulator) for the two-pass BatchNorm.
    """
    c1 = w_ref.shape[-1]
    z = z_ref[...].astype(jnp.bfloat16)
    s = jnp.zeros((1, c1), jnp.float32)
    ss = jnp.zeros((1, c1), jnp.float32)
    for p in range(4):
        acc = jnp.dot(z, w_ref[p], preferred_element_type=jnp.float32)
        y_ref[p] = acc.astype(jnp.bfloat16)
        s = s + acc.sum(axis=0, keepdims=True)
        ss = ss + (acc * acc).sum(axis=0, keepdims=True)
    stats_ref[...] = jnp.concatenate([s, ss], axis=0)[None]


def _apply_prev_bn_into_pad(x_ref, scale_ref, shift_ref, xpad_ref):
    """Previous layer's BN affine + ReLU, written into a zero-bordered scratch.

    The zero border is exactly the ConvT's p=1 padding in *post-activation*
    space, so the window GEMMs below see the correct boundary values.
    """
    tn, hi, wi, _ = x_ref.shape
    xpad_ref[...] = jnp.zeros_like(xpad_ref)
    act = jnp.maximum(
        x_ref[...].astype(jnp.float32) * scale_ref[...] + shift_ref[...], 0.0)
    xpad_ref[:, 1:hi + 1, 1:wi + 1, :] = act


def _up_kernel(x_ref, scale_ref, shift_ref, w_ref, y_ref, stats_ref, xpad_ref):
    """ConvT(k=4, s=2, p=1) as 4 phases x 4 accumulating tap GEMMs + BN stats.

    x_ref : (tn, Hi, Wi, Cin) bf16 raw (pre-BN) activation of the prev layer.
    w_ref : (4, 4, Cin, Cout) bf16 per-phase / per-tap weight matrices.
    y_ref : (4, tn*Hi*Wi, Cout) bf16 raw output slabs for this batch tile.
    stats_ref: (1, 2, Cout) f32 per-tile [sum; sumsq] of the f32 conv output.
    """
    tn, hi, wi, cin = x_ref.shape
    cout = w_ref.shape[-1]
    rows = tn * hi * wi
    _apply_prev_bn_into_pad(x_ref, scale_ref, shift_ref, xpad_ref)
    s = jnp.zeros((1, cout), jnp.float32)
    ss = jnp.zeros((1, cout), jnp.float32)
    for p, (qy, qx) in enumerate(_PHASES):
        acc = jnp.zeros((rows, cout), jnp.float32)
        for t, (j, i) in enumerate(_TAPS):
            win = xpad_ref[:, qy + j:qy + j + hi, qx + i:qx + i + wi, :]
            win = win.reshape(rows, cin).astype(jnp.bfloat16)
            acc = acc + jnp.dot(win, w_ref[p, t],
                                preferred_element_type=jnp.float32)
        # Store each raw slab immediately -> only one phase accumulator live.
        y_ref[p] = acc.astype(jnp.bfloat16)
        s = s + acc.sum(axis=0, keepdims=True)
        ss = ss + (acc * acc).sum(axis=0, keepdims=True)
    stats_ref[...] = jnp.concatenate([s, ss], axis=0)[None]


def _final_kernel(x_ref, scale_ref, shift_ref, w_ref, o_ref, xpad_ref):
    """Last ConvT + Tanh; output stored transposed as (4, 8, rows) f32."""
    tn, hi, wi, cin = x_ref.shape
    cpad = w_ref.shape[-1]                   # 8 (3 real channels + 5 zero pad)
    rows = tn * hi * wi
    _apply_prev_bn_into_pad(x_ref, scale_ref, shift_ref, xpad_ref)
    for p, (qy, qx) in enumerate(_PHASES):
        acc = jnp.zeros((rows, cpad), jnp.float32)
        for t, (j, i) in enumerate(_TAPS):
            win = xpad_ref[:, qy + j:qy + j + hi, qx + i:qx + i + wi, :]
            win = win.reshape(rows, cin).astype(jnp.bfloat16)
            acc = acc + jnp.dot(win, w_ref[p, t],
                                preferred_element_type=jnp.float32)
        # Rows (multiple of 128) on the lane axis -> lane-dense tanh + stores.
        o_ref[p] = jnp.tanh(acc.T)


# ---------------------------------------------------------------------------
# Tiling / call helpers.
# ---------------------------------------------------------------------------
def _choose_tn(n, hi, wi, cin, cout, budget_bytes=4 * 2 ** 20):
    """Largest batch tile under a per-tile VMEM budget, preferring >=2 tiles."""
    per_img = (hi * wi * cin * 2 * 2                 # input tile (bf16, x2 buf)
               + (hi + 2) * (wi + 2) * cin * 4       # padded f32 scratch
               + 4 * hi * wi * cout * 2 * 2          # raw output slabs (x2 buf)
               + hi * wi * (cin + cout) * 4 * 2)     # live f32 act / accumulator
    divisors = [d for d in range(1, n + 1) if n % d == 0]
    # (8,128) rule for the slab BlockSpec: tn*Hi*Wi must be a multiple of 8,
    # unless the block equals the full array (tn == n).
    valid = [d for d in divisors if (d * hi * wi) % 8 == 0] or [n]
    fitting = [d for d in valid if d * per_img <= budget_bytes] or [min(valid)]
    multi = [d for d in fitting if n // d >= 2]
    return max(multi) if multi else max(fitting)


def _stem_call(z, w1ph):
    n, latent = z.shape
    c1 = w1ph.shape[-1]
    return pl.pallas_call(
        _stem_kernel,
        out_shape=(jax.ShapeDtypeStruct((4, n, c1), jnp.bfloat16),
                   jax.ShapeDtypeStruct((1, 2, c1), jnp.float32)),
        grid=(1,),
        in_specs=[pl.BlockSpec((n, latent), lambda i: (0, 0)),
                  pl.BlockSpec((4, latent, c1), lambda i: (0, 0, 0))],
        out_specs=(pl.BlockSpec((4, n, c1), lambda i: (0, 0, 0)),
                   pl.BlockSpec((1, 2, c1), lambda i: (0, 0, 0))),
        compiler_params=pltpu.CompilerParams(
            dimension_semantics=("arbitrary",),
            vmem_limit_bytes=_VMEM_LIMIT),
    )(z, w1ph)


def _up_call(x_raw, scale, shift, wtaps):
    n, hi, wi, cin = x_raw.shape
    cout = wtaps.shape[-1]
    tn = _choose_tn(n, hi, wi, cin, cout)
    nt = n // tn
    rows_t = tn * hi * wi
    rows = n * hi * wi
    return pl.pallas_call(
        _up_kernel,
        out_shape=(jax.ShapeDtypeStruct((4, rows, cout), jnp.bfloat16),
                   jax.ShapeDtypeStruct((nt, 2, cout), jnp.float32)),
        grid=(nt,),
        in_specs=[
            pl.BlockSpec((tn, hi, wi, cin), lambda i: (i, 0, 0, 0)),
            pl.BlockSpec((1, cin), lambda i: (0, 0)),
            pl.BlockSpec((1, cin), lambda i: (0, 0)),
            pl.BlockSpec((4, 4, cin, cout), lambda i: (0, 0, 0, 0)),
        ],
        out_specs=(
            pl.BlockSpec((4, rows_t, cout), lambda i: (0, i, 0)),
            pl.BlockSpec((1, 2, cout), lambda i: (i, 0, 0)),
        ),
        scratch_shapes=[pltpu.VMEM((tn, hi + 2, wi + 2, cin), jnp.float32)],
        compiler_params=pltpu.CompilerParams(
            dimension_semantics=("parallel",),
            vmem_limit_bytes=_VMEM_LIMIT),
    )(x_raw, scale, shift, wtaps)


def _final_call(x_raw, scale, shift, wtaps_padded):
    n, hi, wi, cin = x_raw.shape
    cpad = wtaps_padded.shape[-1]
    tn = _choose_tn(n, hi, wi, cin, cpad)
    nt = n // tn
    rows_t = tn * hi * wi
    rows = n * hi * wi
    return pl.pallas_call(
        _final_kernel,
        out_shape=jax.ShapeDtypeStruct((4, cpad, rows), jnp.float32),
        grid=(nt,),
        in_specs=[
            pl.BlockSpec((tn, hi, wi, cin), lambda i: (i, 0, 0, 0)),
            pl.BlockSpec((1, cin), lambda i: (0, 0)),
            pl.BlockSpec((1, cin), lambda i: (0, 0)),
            pl.BlockSpec((4, 4, cin, cpad), lambda i: (0, 0, 0, 0)),
        ],
        out_specs=pl.BlockSpec((4, cpad, rows_t), lambda i: (0, 0, i)),
        scratch_shapes=[pltpu.VMEM((tn, hi + 2, wi + 2, cin), jnp.float32)],
        compiler_params=pltpu.CompilerParams(
            dimension_semantics=("parallel",),
            vmem_limit_bytes=_VMEM_LIMIT),
    )(x_raw, scale, shift, wtaps_padded)


# ---------------------------------------------------------------------------
# Tiny XLA glue: weight re-layout, BN stat reduction, phase interleave.
# ---------------------------------------------------------------------------
def _tap_weights(w):
    """(Cin, Cout, 4, 4) ConvT weight -> (4, 4, Cin, Cout) phase/tap matrices."""
    phase_mats = []
    for qy, qx in _PHASES:
        taps = [w[:, :, 3 - 2 * j - qy, 3 - 2 * i - qx] for (j, i) in _TAPS]
        phase_mats.append(jnp.stack(taps, axis=0))
    return jnp.stack(phase_mats, axis=0).astype(jnp.bfloat16)


def _bn_affine(stats, gamma, beta, count):
    """Per-tile [sum, sumsq] partials -> per-channel BN scale / shift (f32)."""
    s = jnp.sum(stats[:, 0, :], axis=0)
    ss = jnp.sum(stats[:, 1, :], axis=0)
    mean = s / count
    var = jnp.maximum(ss / count - mean * mean, 0.0)     # biased variance
    scale = gamma * jax.lax.rsqrt(var + EPS)
    shift = beta - mean * scale
    return scale.reshape(1, -1), shift.reshape(1, -1)


def _interleave(yph, n, h, w):
    """(4, n*h*w, c) phase slabs -> (n, 2h, 2w, c) NHWC activation (layout only)."""
    c = yph.shape[-1]
    y = yph.reshape(2, 2, n, h, w, c)
    y = jnp.transpose(y, (2, 3, 0, 4, 1, 5))
    return y.reshape(n, 2 * h, 2 * w, c)


# ---------------------------------------------------------------------------
# Forward pass.
# ---------------------------------------------------------------------------
@jax.jit
def generator_forward(params, x_nchw):
    (w1, g1, b1), (w2, g2, b2), (w3, g3, b3), (w4, g4, b4), (w5,) = params
    n = x_nchw.shape[0]
    z = x_nchw.reshape(n, -1)                            # (N, latent)

    # Layer 1 (stem): raw phase slabs + BN stats; BN applied in layer 2's kernel.
    w1ph = jnp.stack([w1[:, :, qy, qx] for qy, qx in _PHASES],
                     axis=0).astype(jnp.bfloat16)        # (4, latent, 8nf)
    y1, st1 = _stem_call(z, w1ph)
    sc1, sh1 = _bn_affine(st1, g1, b1, 4.0 * n)
    a1 = _interleave(y1, n, 1, 1)                        # (N, 2, 2, 8nf) raw bf16

    # Layers 2-4: conv + stats in-kernel; previous BN+ReLU fused in-kernel.
    y2, st2 = _up_call(a1, sc1, sh1, _tap_weights(w2))
    sc2, sh2 = _bn_affine(st2, g2, b2, 4.0 * n * 4)
    a2 = _interleave(y2, n, 2, 2)                        # (N, 4, 4, 4nf)

    y3, st3 = _up_call(a2, sc2, sh2, _tap_weights(w3))
    sc3, sh3 = _bn_affine(st3, g3, b3, 4.0 * n * 16)
    a3 = _interleave(y3, n, 4, 4)                        # (N, 8, 8, 2nf)

    y4, st4 = _up_call(a3, sc3, sh3, _tap_weights(w4))
    sc4, sh4 = _bn_affine(st4, g4, b4, 4.0 * n * 64)
    a4 = _interleave(y4, n, 8, 8)                        # (N, 16, 16, nf)

    # Layer 5 + Tanh: channels padded only to 8 sublanes, rows on the lane axis.
    c5 = w5.shape[1]                                     # 3
    w5ph = jnp.pad(_tap_weights(w5), ((0, 0), (0, 0), (0, 0), (0, 8 - c5)))
    y5 = _final_call(a4, sc4, sh4, w5ph)                 # (4, 8, N*256) f32

    out = y5[:, :c5, :].reshape(2, 2, c5, n, 16, 16)     # (qy, qx, c, n, y, x)
    out = jnp.transpose(out, (3, 2, 4, 0, 5, 1))         # (n, c, y, qy, x, qx)
    return out.reshape(n, c5, 32, 32)                    # NCHW


# ---------------------------------------------------------------------------
# Pure-XLA reference (correctness oracle for the Pallas path).
# ---------------------------------------------------------------------------
def _conv_transpose_ref(x_nchw, w, stride, pad):
    k = w.shape[2]
    wp = jnp.transpose(w[:, :, ::-1, ::-1], (1, 0, 2, 3))   # (Cout, Cin, k, k)
    return jax.lax.conv_general_dilated(
        x_nchw, wp, window_strides=(1, 1),
        padding=[(k - 1 - pad, k - 1 - pad)] * 2,
        lhs_dilation=(stride, stride),
        dimension_numbers=("NCHW", "OIHW", "NCHW"),
        precision=_HIGH)


def _bn_relu_ref(y, gamma, beta):
    mean = y.mean(axis=(0, 2, 3), keepdims=True)
    var = jnp.square(y - mean).mean(axis=(0, 2, 3), keepdims=True)
    y_hat = (y - mean) * jax.lax.rsqrt(var + EPS)
    return jnp.maximum(
        y_hat * gamma.reshape(1, -1, 1, 1) + beta.reshape(1, -1, 1, 1), 0.0)


def generator_reference(params, x_nchw):
    (w1, g1, b1), (w2, g2, b2), (w3, g3, b3), (w4, g4, b4), (w5,) = params
    x = _bn_relu_ref(_conv_transpose_ref(x_nchw, w1, 1, 0), g1, b1)
    x = _bn_relu_ref(_conv_transpose_ref(x, w2, 2, 1), g2, b2)
    x = _bn_relu_ref(_conv_transpose_ref(x, w3, 2, 1), g3, b3)
    x = _bn_relu_ref(_conv_transpose_ref(x, w4, 2, 1), g4, b4)
    return jnp.tanh(_conv_transpose_ref(x, w5, 2, 1))


# ---------------------------------------------------------------------------
# Deterministic parameter init (shapes follow the module __init__).
# ---------------------------------------------------------------------------
def init_params(key, latent_dim, nf):
    shapes = [
        (latent_dim, nf * 8, 2, 2),
        (nf * 8, nf * 4, 4, 4),
        (nf * 4, nf * 2, 4, 4),
        (nf * 2, nf, 4, 4),
        (nf, 3, 4, 4),
    ]
    params = []
    for i, s in enumerate(shapes):
        key, kw, kg, kb = jax.random.split(key, 4)
        w = 0.02 * jax.random.normal(kw, s, jnp.float32)
        if i < len(shapes) - 1:
            cout = s[1]
            gamma = 1.0 + 0.02 * jax.random.normal(kg, (cout,), jnp.float32)
            beta = 0.02 * jax.random.normal(kb, (cout,), jnp.float32)
            params.append((w, gamma, beta))
        else:
            params.append((w,))
    return params


if __name__ == "__main__":
    latent_dim, nf, batch = 8, 8, 2
    key = jax.random.PRNGKey(0)
    kx, kp = jax.random.split(key)
    # PyTorch-convention latent input: (N, latent_dim, 1, 1), NCHW.
    x = jax.random.normal(kx, (batch, latent_dim, 1, 1), jnp.float32)
    params = init_params(kp, latent_dim, nf)

    out = jax.block_until_ready(generator_forward(params, x))
    assert out.shape == (batch, 3, 32, 32), out.shape
    assert out.dtype == jnp.float32

    ref = jax.block_until_ready(generator_reference(params, x))
    np.testing.assert_allclose(np.asarray(out), np.asarray(ref),
                               atol=2e-2, rtol=2e-2)
    print("KERNEL_OK")
</pallas_src>

<mosaic_0001>
module attributes {stable_mosaic.version = 11 : i64} {
  func.func @_stem_kernel(%arg0: i32, %arg1: memref<2x8xf32, #tpu.memory_space<vmem>>, %arg2: memref<4x8x64xbf16, #tpu.memory_space<vmem>>, %arg3: memref<4x2x64xbf16, #tpu.memory_space<vmem>>, %arg4: memref<1x2x64xf32, #tpu.memory_space<vmem>>) attributes {dimension_semantics = [#tpu.dimension_semantics<arbitrary>], iteration_bounds = array<i64: 1>, scalar_prefetch = 0 : i64, scratch_operands = 0 : i64, tpu.core_type = #tpu.core_type<tc>, window_params = [{pipeline_mode = #tpu.pipeline_mode<synchronous>, transform_indices = @transform_0, window_bounds = array<i64: 2, 8>}, {pipeline_mode = #tpu.pipeline_mode<synchronous>, transform_indices = @transform_1, window_bounds = array<i64: 4, 8, 64>}, {pipeline_mode = #tpu.pipeline_mode<synchronous>, transform_indices = @transform_2, window_bounds = array<i64: 4, 2, 64>}, {pipeline_mode = #tpu.pipeline_mode<synchronous>, transform_indices = @transform_3, window_bounds = array<i64: 1, 2, 64>}]} {
    %c0 = arith.constant 0 : index
    %c0_0 = arith.constant 0 : index
    %0 = vector.load %arg1[%c0, %c0_0] : memref<2x8xf32, #tpu.memory_space<vmem>>, vector<2x8xf32>
    %1 = arith.truncf %0 : vector<2x8xf32> to vector<2x8xbf16>
    %cst = arith.constant 0.000000e+00 : f32
    %2 = vector.broadcast %cst : f32 to vector<1x64xf32>
    %cst_1 = arith.constant 0.000000e+00 : f32
    %3 = vector.broadcast %cst_1 : f32 to vector<1x64xf32>
    %c0_2 = arith.constant 0 : index
    %c0_3 = arith.constant 0 : index
    %c0_4 = arith.constant 0 : index
    %4 = vector.load %arg2[%c0_2, %c0_3, %c0_4] : memref<4x8x64xbf16, #tpu.memory_space<vmem>>, vector<1x8x64xbf16>
    %5 = vector.shape_cast %4 : vector<1x8x64xbf16> to vector<8x64xbf16>
    %cst_5 = arith.constant dense<0.000000e+00> : vector<2x64xf32>
    %6 = tpu.matmul %1, %5, %cst_5 {dimension_numbers = #tpu.dot_dimension_numbers<[1], [0], [0], [1], [0, 0, 1, 1], [], []>} : vector<2x8xbf16>, vector<8x64xbf16>, vector<2x64xf32> -> vector<2x64xf32>
    %7 = arith.truncf %6 : vector<2x64xf32> to vector<2x64xbf16>
    %c0_6 = arith.constant 0 : index
    %c0_7 = arith.constant 0 : index
    %c0_8 = arith.constant 0 : index
    %8 = vector.load %arg3[%c0_6, %c0_7, %c0_8] : memref<4x2x64xbf16, #tpu.memory_space<vmem>>, vector<1x2x64xbf16>
    %9 = vector.shape_cast %8 : vector<1x2x64xbf16> to vector<2x64xbf16>
    %10 = vector.shape_cast %7 : vector<2x64xbf16> to vector<1x2x64xbf16>
    tpu.vector_store %arg3[%c0_6, %c0_7, %c0_8], %10 {strides = array<i32>} : memref<4x2x64xbf16, #tpu.memory_space<vmem>>, vector<1x2x64xbf16>,
    %cst_9 = arith.constant dense<0.000000e+00> : vector<64xf32>
    %11 = vector.multi_reduction <add>, %6, %cst_9 [0] : vector<2x64xf32> to vector<64xf32>
    %12 = vector.shape_cast %11 : vector<64xf32> to vector<1x64xf32>
    %13 = arith.addf %2, %12 : vector<1x64xf32>
    %14 = arith.mulf %6, %6 : vector<2x64xf32>
    %cst_10 = arith.constant dense<0.000000e+00> : vector<64xf32>
    %15 = vector.multi_reduction <add>, %14, %cst_10 [0] : vector<2x64xf32> to vector<64xf32>
    %16 = vector.shape_cast %15 : vector<64xf32> to vector<1x64xf32>
    %17 = arith.addf %3, %16 : vector<1x64xf32>
    %c1 = arith.constant 1 : index
    %c0_11 = arith.constant 0 : index
    %c0_12 = arith.constant 0 : index
    %18 = vector.load %arg2[%c1, %c0_11, %c0_12] : memref<4x8x64xbf16, #tpu.memory_space<vmem>>, vector<1x8x64xbf16>
    %19 = vector.shape_cast %18 : vector<1x8x64xbf16> to vector<8x64xbf16>
    %cst_13 = arith.constant dense<0.000000e+00> : vector<2x64xf32>
    %20 = tpu.matmul %1, %19, %cst_13 {dimension_numbers = #tpu.dot_dimension_numbers<[1], [0], [0], [1], [0, 0, 1, 1], [], []>} : vector<2x8xbf16>, vector<8x64xbf16>, vector<2x64xf32> -> vector<2x64xf32>
    %21 = arith.truncf %20 : vector<2x64xf32> to vector<2x64xbf16>
    %c1_14 = arith.constant 1 : index
    %c0_15 = arith.constant 0 : index
    %c0_16 = arith.constant 0 : index
    %22 = vector.load %arg3[%c1_14, %c0_15, %c0_16] : memref<4x2x64xbf16, #tpu.memory_space<vmem>>, vector<1x2x64xbf16>
    %23 = vector.shape_cast %22 : vector<1x2x64xbf16> to vector<2x64xbf16>
    %24 = vector.shape_cast %21 : vector<2x64xbf16> to vector<1x2x64xbf16>
    tpu.vector_store %arg3[%c1_14, %c0_15, %c0_16], %24 {strides = array<i32>} : memref<4x2x64xbf16, #tpu.memory_space<vmem>>, vector<1x2x64xbf16>,
    %cst_17 = arith.constant dense<0.000000e+00> : vector<64xf32>
    %25 = vector.multi_reduction <add>, %20, %cst_17 [0] : vector<2x64xf32> to vector<64xf32>
    %26 = vector.shape_cast %25 : vector<64xf32> to vector<1x64xf32>
    %27 = arith.addf %13, %26 : vector<1x64xf32>
    %28 = arith.mulf %20, %20 : vector<2x64xf32>
    %cst_18 = arith.constant dense<0.000000e+00> : vector<64xf32>
    %29 = vector.multi_reduction <add>, %28, %cst_18 [0] : vector<2x64xf32> to vector<64xf32>
    %30 = vector.shape_cast %29 : vector<64xf32> to vector<1x64xf32>
    %31 = arith.addf %17, %30 : vector<1x64xf32>
    %c2 = arith.constant 2 : index
    %c0_19 = arith.constant 0 : index
    %c0_20 = arith.constant 0 : index
    %32 = vector.load %arg2[%c2, %c0_19, %c0_20] : memref<4x8x64xbf16, #tpu.memory_space<vmem>>, vector<1x8x64xbf16>
    %33 = vector.shape_cast %32 : vector<1x8x64xbf16> to vector<8x64xbf16>
    %cst_21 = arith.constant dense<0.000000e+00> : vector<2x64xf32>
    %34 = tpu.matmul %1, %33, %cst_21 {dimension_numbers = #tpu.dot_dimension_numbers<[1], [0], [0], [1], [0, 0, 1, 1], [], []>} : vector<2x8xbf16>, vector<8x64xbf16>, vector<2x64xf32> -> vector<2x64xf32>
    %35 = arith.truncf %34 : vector<2x64xf32> to vector<2x64xbf16>
    %c2_22 = arith.constant 2 : index
    %c0_23 = arith.constant 0 : index
    %c0_24 = arith.constant 0 : index
    %36 = vector.load %arg3[%c2_22, %c0_23, %c0_24] : memref<4x2x64xbf16, #tpu.memory_space<vmem>>, vector<1x2x64xbf16>
    %37 = vector.shape_cast %36 : vector<1x2x64xbf16> to vector<2x64xbf16>
    %38 = vector.shape_cast %35 : vector<2x64xbf16> to vector<1x2x64xbf16>
    tpu.vector_store %arg3[%c2_22, %c0_23, %c0_24], %38 {strides = array<i32>} : memref<4x2x64xbf16, #tpu.memory_space<vmem>>, vector<1x2x64xbf16>,
    %cst_25 = arith.constant dense<0.000000e+00> : vector<64xf32>
    %39 = vector.multi_reduction <add>, %34, %cst_25 [0] : vector<2x64xf32> to vector<64xf32>
    %40 = vector.shape_cast %39 : vector<64xf32> to vector<1x64xf32>
    %41 = arith.addf %27, %40 : vector<1x64xf32>
    %42 = arith.mulf %34, %34 : vector<2x64xf32>
    %cst_26 = arith.constant dense<0.000000e+00> : vector<64xf32>
    %43 = vector.multi_reduction <add>, %42, %cst_26 [0] : vector<2x64xf32> to vector<64xf32>
    %44 = vector.shape_cast %43 : vector<64xf32> to vector<1x64xf32>
    %45 = arith.addf %31, %44 : vector<1x64xf32>
    %c3 = arith.constant 3 : index
    %c0_27 = arith.constant 0 : index
    %c0_28 = arith.constant 0 : index
    %46 = vector.load %arg2[%c3, %c0_27, %c0_28] : memref<4x8x64xbf16, #tpu.memory_space<vmem>>, vector<1x8x64xbf16>
    %47 = vector.shape_cast %46 : vector<1x8x64xbf16> to vector<8x64xbf16>
    %cst_29 = arith.constant dense<0.000000e+00> : vector<2x64xf32>
    %48 = tpu.matmul %1, %47, %cst_29 {dimension_numbers = #tpu.dot_dimension_numbers<[1], [0], [0], [1], [0, 0, 1, 1], [], []>} : vector<2x8xbf16>, vector<8x64xbf16>, vector<2x64xf32> -> vector<2x64xf32>
    %49 = arith.truncf %48 : vector<2x64xf32> to vector<2x64xbf16>
    %c3_30 = arith.constant 3 : index
    %c0_31 = arith.constant 0 : index
    %c0_32 = arith.constant 0 : index
    %50 = vector.load %arg3[%c3_30, %c0_31, %c0_32] : memref<4x2x64xbf16, #tpu.memory_space<vmem>>, vector<1x2x64xbf16>
    %51 = vector.shape_cast %50 : vector<1x2x64xbf16> to vector<2x64xbf16>
    %52 = vector.shape_cast %49 : vector<2x64xbf16> to vector<1x2x64xbf16>
    tpu.vector_store %arg3[%c3_30, %c0_31, %c0_32], %52 {strides = array<i32>} : memref<4x2x64xbf16, #tpu.memory_space<vmem>>, vector<1x2x64xbf16>,
    %cst_33 = arith.constant dense<0.000000e+00> : vector<64xf32>
    %53 = vector.multi_reduction <add>, %48, %cst_33 [0] : vector<2x64xf32> to vector<64xf32>
    %54 = vector.shape_cast %53 : vector<64xf32> to vector<1x64xf32>
    %55 = arith.addf %41, %54 : vector<1x64xf32>
    %56 = arith.mulf %48, %48 : vector<2x64xf32>
    %cst_34 = arith.constant dense<0.000000e+00> : vector<64xf32>
    %57 = vector.multi_reduction <add>, %56, %cst_34 [0] : vector<2x64xf32> to vector<64xf32>
    %58 = vector.shape_cast %57 : vector<64xf32> to vector<1x64xf32>
    %59 = arith.addf %45, %58 : vector<1x64xf32>
    %60 = tpu.concatenate %55, %59 in 0 : vector<1x64xf32>, vector<1x64xf32> -> vector<2x64xf32>
    %61 = vector.shape_cast %60 : vector<2x64xf32> to vector<1x2x64xf32>
    %c0_35 = arith.constant 0 : index
    %c0_36 = arith.constant 0 : index
    %c0_37 = arith.constant 0 : index
    %62 = vector.load %arg4[%c0_35, %c0_36, %c0_37] : memref<1x2x64xf32, #tpu.memory_space<vmem>>, vector<1x2x64xf32>
    tpu.vector_store %arg4[%c0_35, %c0_36, %c0_37], %61 {strides = array<i32>} : memref<1x2x64xf32, #tpu.memory_space<vmem>>, vector<1x2x64xf32>,
    return
  }
  func.func @transform_0(%arg0: i32) -> (i32, i32) {
    %c0_i32 = arith.constant 0 : i32
    %c0_i32_0 = arith.constant 0 : i32
    %c0_i32_1 = arith.constant 0 : i32
    return %c0_i32, %c0_i32_0 : i32, i32
  }
  func.func @transform_1(%arg0: i32) -> (i32, i32, i32) {
    %c0_i32 = arith.constant 0 : i32
    %c0_i32_0 = arith.constant 0 : i32
    %c0_i32_1 = arith.constant 0 : i32
    %c0_i32_2 = arith.constant 0 : i32
    return %c0_i32, %c0_i32_0, %c0_i32_1 : i32, i32, i32
  }
  func.func @transform_2(%arg0: i32) -> (i32, i32, i32) {
    %c0_i32 = arith.constant 0 : i32
    %c0_i32_0 = arith.constant 0 : i32
    %c0_i32_1 = arith.constant 0 : i32
    %c0_i32_2 = arith.constant 0 : i32
    return %c0_i32, %c0_i32_0, %c0_i32_1 : i32, i32, i32
  }
  func.func @transform_3(%arg0: i32) -> (i32, i32, i32) {
    %c0_i32 = arith.constant 0 : i32
    %c0_i32_0 = arith.constant 0 : i32
    %c0_i32_1 = arith.constant 0 : i32
    %c0_i32_2 = arith.constant 0 : i32
    return %c0_i32, %c0_i32_0, %c0_i32_1 : i32, i32, i32
  }
}

module attributes {stable_mosaic.version = 11 : i64} {
  func.func @_up_kernel(%arg0: i32, %arg1: memref<2x2x2x64xbf16, #tpu.memory_space<vmem>>, %arg2: memref<1x64xf32, #tpu.memory_space<vmem>>, %arg3: memref<1x64xf32, #tpu.memory_space<vmem>>, %arg4: memref<4x4x64x32xbf16, #tpu.memory_space<vmem>>, %arg5: memref<4x8x32xbf16, #tpu.memory_space<vmem>>, %arg6: memref<1x2x32xf32, #tpu.memory_space<vmem>>, %arg7: memref<2x4x4x64xf32, #tpu.memory_space<vmem>>) attributes {dimension_semantics = [#tpu.dimension_semantics<parallel>], iteration_bounds = array<i64: 1>, scalar_prefetch = 0 : i64, scratch_operands = 1 : i64, tpu.core_type = #tpu.core_type<tc>, window_params = [{transform_indices = @transform_0, window_bounds = array<i64: 2, 2, 2, 64>}, {pipeline_mode = #tpu.pipeline_mode<synchronous>, transform_indices = @transform_1, window_bounds = array<i64: 1, 64>}, {pipeline_mode = #tpu.pipeline_mode<synchronous>, transform_indices = @transform_2, window_bounds = array<i64: 1, 64>}, {pipeline_mode = #tpu.pipeline_mode<synchronous>, transform_indices = @transform_3, window_bounds = array<i64: 4, 4, 64, 32>}, {transform_indices = @transform_4, window_bounds = array<i64: 4, 8, 32>}, {transform_indices = @transform_5, window_bounds = array<i64: 1, 2, 32>}]} {
    %cst = arith.constant 0.000000e+00 : f32
    %0 = vector.broadcast %cst : f32 to vector<2x4x4x64xf32>
    %c0 = arith.constant 0 : index
    %c0_0 = arith.constant 0 : index
    %c0_1 = arith.constant 0 : index
    %c0_2 = arith.constant 0 : index
    %1 = vector.load %arg7[%c0, %c0_0, %c0_1, %c0_2] : memref<2x4x4x64xf32, #tpu.memory_space<vmem>>, vector<2x4x4x64xf32>
    tpu.vector_store %arg7[%c0, %c0_0, %c0_1, %c0_2], %0 {strides = array<i32>} : memref<2x4x4x64xf32, #tpu.memory_space<vmem>>, vector<2x4x4x64xf32>,
    %c0_3 = arith.constant 0 : index
    %c0_4 = arith.constant 0 : index
    %c0_5 = arith.constant 0 : index
    %c0_6 = arith.constant 0 : index
    %2 = vector.load %arg1[%c0_3, %c0_4, %c0_5, %c0_6] : memref<2x2x2x64xbf16, #tpu.memory_space<vmem>>, vector<2x2x2x64xbf16>
    %3 = arith.extf %2 : vector<2x2x2x64xbf16> to vector<2x2x2x64xf32>
    %c0_7 = arith.constant 0 : index
    %c0_8 = arith.constant 0 : index
    %4 = vector.load %arg2[%c0_7, %c0_8] : memref<1x64xf32, #tpu.memory_space<vmem>>, vector<1x64xf32>
    %5 = vector.shape_cast %4 : vector<1x64xf32> to vector<1x1x1x64xf32>
    %6 = vector.broadcast %5 : vector<1x1x1x64xf32> to vector<2x2x2x64xf32>
    %7 = arith.mulf %3, %6 : vector<2x2x2x64xf32>
    %c0_9 = arith.constant 0 : index
    %c0_10 = arith.constant 0 : index
    %8 = vector.load %arg3[%c0_9, %c0_10] : memref<1x64xf32, #tpu.memory_space<vmem>>, vector<1x64xf32>
    %9 = vector.shape_cast %8 : vector<1x64xf32> to vector<1x1x1x64xf32>
    %10 = vector.broadcast %9 : vector<1x1x1x64xf32> to vector<2x2x2x64xf32>
    %11 = arith.addf %7, %10 : vector<2x2x2x64xf32>
    %cst_11 = arith.constant 0.000000e+00 : f32
    %12 = vector.broadcast %cst_11 : f32 to vector<2x2x2x64xf32>
    %13 = arith.maximumf %11, %12 : vector<2x2x2x64xf32>
    %c0_12 = arith.constant 0 : index
    %c1 = arith.constant 1 : index
    %c1_13 = arith.constant 1 : index
    %c0_14 = arith.constant 0 : index
    %14 = vector.load %arg7[%c0_12, %c1, %c1_13, %c0_14] : memref<2x4x4x64xf32, #tpu.memory_space<vmem>>, vector<2x2x2x64xf32>
    tpu.vector_store %arg7[%c0_12, %c1, %c1_13, %c0_14], %13 {strides = array<i32>} : memref<2x4x4x64xf32, #tpu.memory_space<vmem>>, vector<2x2x2x64xf32>,
    %cst_15 = arith.constant 0.000000e+00 : f32
    %15 = vector.broadcast %cst_15 : f32 to vector<1x32xf32>
    %cst_16 = arith.constant 0.000000e+00 : f32
    %16 = vector.broadcast %cst_16 : f32 to vector<1x32xf32>
    %cst_17 = arith.constant 0.000000e+00 : f32
    %17 = vector.broadcast %cst_17 : f32 to vector<8x32xf32>
    %c0_18 = arith.constant 0 : index
    %c0_19 = arith.constant 0 : index
    %c0_20 = arith.constant 0 : index
    %c0_21 = arith.constant 0 : index
    %18 = vector.load %arg7[%c0_18, %c0_19, %c0_20, %c0_21] : memref<2x4x4x64xf32, #tpu.memory_space<vmem>>, vector<2x2x2x64xf32>
    %19 = vector.shape_cast %18 : vector<2x2x2x64xf32> to vector<8x64xf32>
    %20 = arith.truncf %19 : vector<8x64xf32> to vector<8x64xbf16>
    %c0_22 = arith.constant 0 : index
    %c0_23 = arith.constant 0 : index
    %c0_24 = arith.constant 0 : index
    %c0_25 = arith.constant 0 : index
    %21 = vector.load %arg4[%c0_22, %c0_23, %c0_24, %c0_25] : memref<4x4x64x32xbf16, #tpu.memory_space<vmem>>, vector<1x1x64x32xbf16>
    %22 = vector.shape_cast %21 : vector<1x1x64x32xbf16> to vector<64x32xbf16>
    %cst_26 = arith.constant dense<0.000000e+00> : vector<8x32xf32>
    %23 = tpu.matmul %20, %22, %cst_26 {dimension_numbers = #tpu.dot_dimension_numbers<[1], [0], [0], [1], [0, 0, 1, 1], [], []>} : vector<8x64xbf16>, vector<64x32xbf16>, vector<8x32xf32> -> vector<8x32xf32>
    %24 = arith.addf %17, %23 : vector<8x32xf32>
    %c0_27 = arith.constant 0 : index
    %c0_28 = arith.constant 0 : index
    %c1_29 = arith.constant 1 : index
    %c0_30 = arith.constant 0 : index
    %25 = vector.load %arg7[%c0_27, %c0_28, %c1_29, %c0_30] : memref<2x4x4x64xf32, #tpu.memory_space<vmem>>, vector<2x2x2x64xf32>
    %26 = vector.shape_cast %25 : vector<2x2x2x64xf32> to vector<8x64xf32>
    %27 = arith.truncf %26 : vector<8x64xf32> to vector<8x64xbf16>
    %c0_31 = arith.constant 0 : index
    %c1_32 = arith.constant 1 : index
    %c0_33 = arith.constant 0 : index
    %c0_34 = arith.constant 0 : index
    %28 = vector.load %arg4[%c0_31, %c1_32, %c0_33, %c0_34] : memref<4x4x64x32xbf16, #tpu.memory_space<vmem>>, vector<1x1x64x32xbf16>
    %29 = vector.shape_cast %28 : vector<1x1x64x32xbf16> to vector<64x32xbf16>
    %cst_35 = arith.constant dense<0.000000e+00> : vector<8x32xf32>
    %30 = tpu.matmul %27, %29, %cst_35 {dimension_numbers = #tpu.dot_dimension_numbers<[1], [0], [0], [1], [0, 0, 1, 1], [], []>} : vector<8x64xbf16>, vector<64x32xbf16>, vector<8x32xf32> -> vector<8x32xf32>
    %31 = arith.addf %24, %30 : vector<8x32xf32>
    %c0_36 = arith.constant 0 : index
    %c1_37 = arith.constant 1 : index
    %c0_38 = arith.constant 0 : index
    %c0_39 = arith.constant 0 : index
    %32 = vector.load %arg7[%c0_36, %c1_37, %c0_38, %c0_39] : memref<2x4x4x64xf32, #tpu.memory_space<vmem>>, vector<2x2x2x64xf32>
    %33 = vector.shape_cast %32 : vector<2x2x2x64xf32> to vector<8x64xf32>
    %34 = arith.truncf %33 : vector<8x64xf32> to vector<8x64xbf16>
    %c0_40 = arith.constant 0 : index
    %c2 = arith.constant 2 : index
    %c0_41 = arith.constant 0 : index
    %c0_42 = arith.constant 0 : index
    %35 = vector.load %arg4[%c0_40, %c2, %c0_41, %c0_42] : memref<4x4x64x32xbf16, #tpu.memory_space<vmem>>, vector<1x1x64x32xbf16>
    %36 = vector.shape_cast %35 : vector<1x1x64x32xbf16> to vector<64x32xbf16>
    %cst_43 = arith.constant dense<0.000000e+00> : vector<8x32xf32>
    %37 = tpu.matmul %34, %36, %cst_43 {dimension_numbers = #tpu.dot_dimension_numbers<[1], [0], [0], [1], [0, 0, 1, 1], [], []>} : vector<8x64xbf16>, vector<64x32xbf16>, vector<8x32xf32> -> vector<8x32xf32>
    %38 = arith.addf %31, %37 : vector<8x32xf32>
    %c0_44 = arith.constant 0 : index
    %c1_45 = arith.constant 1 : index
    %c1_46 = arith.constant 1 : index
    %c0_47 = arith.constant 0 : index
    %39 = vector.load %arg7[%c0_44, %c1_45, %c1_46, %c0_47] : memref<2x4x4x64xf32, #tpu.memory_space<vmem>>, vector<2x2x2x64xf32>
    %40 = vector.shape_cast %39 : vector<2x2x2x64xf32> to vector<8x64xf32>
    %41 = arith.truncf %40 : vector<8x64xf32> to vector<8x64xbf16>
    %c0_48 = arith.constant 0 : index
    %c3 = arith.constant 3 : index
    %c0_49 = arith.constant 0 : index
    %c0_50 = arith.constant 0 : index
    %42 = vector.load %arg4[%c0_48, %c3, %c0_49, %c0_50] : memref<4x4x64x32xbf16, #tpu.memory_space<vmem>>, vector<1x1x64x32xbf16>
    %43 = vector.shape_cast %42 : vector<1x1x64x32xbf16> to vector<64x32xbf16>
    %cst_51 = arith.constant dense<0.000000e+00> : vector<8x32xf32>
    %44 = tpu.matmul %41, %43, %cst_51 {dimension_numbers = #tpu.dot_dimension_numbers<[1], [0], [0], [1], [0, 0, 1, 1], [], []>} : vector<8x64xbf16>, vector<64x32xbf16>, vector<8x32xf32> -> vector<8x32xf32>
    %45 = arith.addf %38, %44 : vector<8x32xf32>
    %46 = arith.truncf %45 : vector<8x32xf32> to vector<8x32xbf16>
    %c0_52 = arith.constant 0 : index
    %c0_53 = arith.constant 0 : index
    %c0_54 = arith.constant 0 : index
    %47 = vector.load %arg5[%c0_52, %c0_53, %c0_54] : memref<4x8x32xbf16, #tpu.memory_space<vmem>>, vector<1x8x32xbf16>
    %48 = vector.shape_cast %47 : vector<1x8x32xbf16> to vector<8x32xbf16>
    %49 = vector.shape_cast %46 : vector<8x32xbf16> to vector<1x8x32xbf16>
    tpu.vector_store %arg5[%c0_52, %c0_53, %c0_54], %49 {strides = array<i32>} : memref<4x8x32xbf16, #tpu.memory_space<vmem>>, vector<1x8x32xbf16>,
    %cst_55 = arith.constant dense<0.000000e+00> : vector<32xf32>
    %50 = vector.multi_reduction <add>, %45, %cst_55 [0] : vector<8x32xf32> to vector<32xf32>
    %51 = vector.shape_cast %50 : vector<32xf32> to vector<1x32xf32>
    %52 = arith.addf %15, %51 : vector<1x32xf32>
    %53 = arith.mulf %45, %45 : vector<8x32xf32>
    %cst_56 = arith.constant dense<0.000000e+00> : vector<32xf32>
    %54 = vector.multi_reduction <add>, %53, %cst_56 [0] : vector<8x32xf32> to vector<32xf32>
    %55 = vector.shape_cast %54 : vector<32xf32> to vector<1x32xf32>
    %56 = arith.addf %16, %55 : vector<1x32xf32>
    %cst_57 = arith.constant 0.000000e+00 : f32
    %57 = vector.broadcast %cst_57 : f32 to vector<8x32xf32>
    %c0_58 = arith.constant 0 : index
    %c0_59 = arith.constant 0 : index
    %c1_60 = arith.constant 1 : index
    %c0_61 = arith.constant 0 : index
    %58 = vector.load %arg7[%c0_58, %c0_59, %c1_60, %c0_61] : memref<2x4x4x64xf32, #tpu.memory_space<vmem>>, vector<2x2x2x64xf32>
    %59 = vector.shape_cast %58 : vector<2x2x2x64xf32> to vector<8x64xf32>
    %60 = arith.truncf %59 : vector<8x64xf32> to vector<8x64xbf16>
    %c1_62 = arith.constant 1 : index
    %c0_63 = arith.constant 0 : index
    %c0_64 = arith.constant 0 : index
    %c0_65 = arith.constant 0 : index
    %61 = vector.load %arg4[%c1_62, %c0_63, %c0_64, %c0_65] : memref<4x4x64x32xbf16, #tpu.memory_space<vmem>>, vector<1x1x64x32xbf16>
    %62 = vector.shape_cast %61 : vector<1x1x64x32xbf16> to vector<64x32xbf16>
    %cst_66 = arith.constant dense<0.000000e+00> : vector<8x32xf32>
    %63 = tpu.matmul %60, %62, %cst_66 {dimension_numbers = #tpu.dot_dimension_numbers<[1], [0], [0], [1], [0, 0, 1, 1], [], []>} : vector<8x64xbf16>, vector<64x32xbf16>, vector<8x32xf32> -> vector<8x32xf32>
    %64 = arith.addf %57, %63 : vector<8x32xf32>
    %c0_67 = arith.constant 0 : index
    %c0_68 = arith.constant 0 : index
    %c2_69 = arith.constant 2 : index
    %c0_70 = arith.constant 0 : index
    %65 = vector.load %arg7[%c0_67, %c0_68, %c2_69, %c0_70] : memref<2x4x4x64xf32, #tpu.memory_space<vmem>>, vector<2x2x2x64xf32>
    %66 = vector.shape_cast %65 : vector<2x2x2x64xf32> to vector<8x64xf32>
    %67 = arith.truncf %66 : vector<8x64xf32> to vector<8x64xbf16>
    %c1_71 = arith.constant 1 : index
    %c1_72 = arith.constant 1 : index
    %c0_73 = arith.constant 0 : index
    %c0_74 = arith.constant 0 : index
    %68 = vector.load %arg4[%c1_71, %c1_72, %c0_73, %c0_74] : memref<4x4x64x32xbf16, #tpu.memory_space<vmem>>, vector<1x1x64x32xbf16>
    %69 = vector.shape_cast %68 : vector<1x1x64x32xbf16> to vector<64x32xbf16>
    %cst_75 = arith.constant dense<0.000000e+00> : vector<8x32xf32>
    %70 = tpu.matmul %67, %69, %cst_75 {dimension_numbers = #tpu.dot_dimension_numbers<[1], [0], [0], [1], [0, 0, 1, 1], [], []>} : vector<8x64xbf16>, vector<64x32xbf16>, vector<8x32xf32> -> vector<8x32xf32>
    %71 = arith.addf %64, %70 : vector<8x32xf32>
    %c0_76 = arith.constant 0 : index
    %c1_77 = arith.constant 1 : index
    %c1_78 = arith.constant 1 : index
    %c0_79 = arith.constant 0 : index
    %72 = vector.load %arg7[%c0_76, %c1_77, %c1_78, %c0_79] : memref<2x4x4x64xf32, #tpu.memory_space<vmem>>, vector<2x2x2x64xf32>
    %73 = vector.shape_cast %72 : vector<2x2x2x64xf32> to vector<8x64xf32>
    %74 = arith.truncf %73 : vector<8x64xf32> to vector<8x64xbf16>
    %c1_80 = arith.constant 1 : index
    %c2_81 = arith.constant 2 : index
    %c0_82 = arith.constant 0 : index
    %c0_83 = arith.constant 0 : index
    %75 = vector.load %arg4[%c1_80, %c2_81, %c0_82, %c0_83] : memref<4x4x64x32xbf16, #tpu.memory_space<vmem>>, vector<1x1x64x32xbf16>
    %76 = vector.shape_cast %75 : vector<1x1x64x32xbf16> to vector<64x32xbf16>
    %cst_84 = arith.constant dense<0.000000e+00> : vector<8x32xf32>
    %77 = tpu.matmul %74, %76, %cst_84 {dimension_numbers = #tpu.dot_dimension_numbers<[1], [0], [0], [1], [0, 0, 1, 1], [], []>} : vector<8x64xbf16>, vector<64x32xbf16>, vector<8x32xf32> -> vector<8x32xf32>
    %78 = arith.addf %71, %77 : vector<8x32xf32>
    %c0_85 = arith.constant 0 : index
    %c1_86 = arith.constant 1 : index
    %c2_87 = arith.constant 2 : index
    %c0_88 = arith.constant 0 : index
    %79 = vector.load %arg7[%c0_85, %c1_86, %c2_87, %c0_88] : memref<2x4x4x64xf32, #tpu.memory_space<vmem>>, vector<2x2x2x64xf32>
    %80 = vector.shape_cast %79 : vector<2x2x2x64xf32> to vector<8x64xf32>
    %81 = arith.truncf %80 : vector<8x64xf32> to vector<8x64xbf16>
    %c1_89 = arith.constant 1 : index
    %c3_90 = arith.constant 3 : index
    %c0_91 = arith.constant 0 : index
    %c0_92 = arith.constant 0 : index
    %82 = vector.load %arg4[%c1_89, %c3_90, %c0_91, %c0_92] : memref<4x4x64x32xbf16, #tpu.memory_space<vmem>>, vector<1x1x64x32xbf16>
    %83 = vector.shape_cast %82 : vector<1x1x64x32xbf16> to vector<64x32xbf16>
    %cst_93 = arith.constant dense<0.000000e+00> : vector<8x32xf32>
    %84 = tpu.matmul %81, %83, %cst_93 {dimension_numbers = #tpu.dot_dimension_numbers<[1], [0], [0], [1], [0, 0, 1, 1], [], []>} : vector<8x64xbf16>, vector<64x32xbf16>, vector<8x32xf32> -> vector<8x32xf32>
    %85 = arith.addf %78, %84 : vector<8x32xf32>
    %86 = arith.truncf %85 : vector<8x32xf32> to vector<8x32xbf16>
    %c1_94 = arith.constant 1 : index
    %c0_95 = arith.constant 0 : index
    %c0_96 = arith.constant 0 : index
    %87 = vector.load %arg5[%c1_94, %c0_95, %c0_96] : memref<4x8x32xbf16, #tpu.memory_space<vmem>>, vector<1x8x32xbf16>
    %88 = vector.shape_cast %87 : vector<1x8x32xbf16> to vector<8x32xbf16>
    %89 = vector.shape_cast %86 : vector<8x32xbf16> to vector<1x8x32xbf16>
    tpu.vector_store %arg5[%c1_94, %c0_95, %c0_96], %89 {strides = array<i32>} : memref<4x8x32xbf16, #tpu.memory_space<vmem>>, vector<1x8x32xbf16>,
    %cst_97 = arith.constant dense<0.000000e+00> : vector<32xf32>
    %90 = vector.multi_reduction <add>, %85, %cst_97 [0] : vector<8x32xf32> to vector<32xf32>
    %91 = vector.shape_cast %90 : vector<32xf32> to vector<1x32xf32>
    %92 = arith.addf %52, %91 : vector<1x32xf32>
    %93 = arith.mulf %85, %85 : vector<8x32xf32>
    %cst_98 = arith.constant dense<0.000000e+00> : vector<32xf32>
    %94 = vector.multi_reduction <add>, %93, %cst_98 [0] : vector<8x32xf32> to vector<32xf32>
    %95 = vector.shape_cast %94 : vector<32xf32> to vector<1x32xf32>
    %96 = arith.addf %56, %95 : vector<1x32xf32>
    %cst_99 = arith.constant 0.000000e+00 : f32
    %97 = vector.broadcast %cst_99 : f32 to vector<8x32xf32>
    %c0_100 = arith.constant 0 : index
    %c1_101 = arith.constant 1 : index
    %c0_102 = arith.constant 0 : index
    %c0_103 = arith.constant 0 : index
    %98 = vector.load %arg7[%c0_100, %c1_101, %c0_102, %c0_103] : memref<2x4x4x64xf32, #tpu.memory_space<vmem>>, vector<2x2x2x64xf32>
    %99 = vector.shape_cast %98 : vector<2x2x2x64xf32> to vector<8x64xf32>
    %100 = arith.truncf %99 : vector<8x64xf32> to vector<8x64xbf16>
    %c2_104 = arith.constant 2 : index
    %c0_105 = arith.constant 0 : index
    %c0_106 = arith.constant 0 : index
    %c0_107 = arith.constant 0 : index
    %101 = vector.load %arg4[%c2_104, %c0_105, %c0_106, %c0_107] : memref<4x4x64x32xbf16, #tpu.memory_space<vmem>>, vector<1x1x64x32xbf16>
    %102 = vector.shape_cast %101 : vector<1x1x64x32xbf16> to vector<64x32xbf16>
    %cst_108 = arith.constant dense<0.000000e+00> : vector<8x32xf32>
    %103 = tpu.matmul %100, %102, %cst_108 {dimension_numbers = #tpu.dot_dimension_numbers<[1], [0], [0], [1], [0, 0, 1, 1], [], []>} : vector<8x64xbf16>, vector<64x32xbf16>, vector<8x32xf32> -> vector<8x32xf32>
    %104 = arith.addf %97, %103 : vector<8x32xf32>
    %c0_109 = arith.constant 0 : index
    %c1_110 = arith.constant 1 : index
    %c1_111 = arith.constant 1 : index
    %c0_112 = arith.constant 0 : index
    %105 = vector.load %arg7[%c0_109, %c1_110, %c1_111, %c0_112] : memref<2x4x4x64xf32, #tpu.memory_space<vmem>>, vector<2x2x2x64xf32>
    %106 = vector.shape_cast %105 : vector<2x2x2x64xf32> to vector<8x64xf32>
    %107 = arith.truncf %106 : vector<8x64xf32> to vector<8x64xbf16>
    %c2_113 = arith.constant 2 : index
    %c1_114 = arith.constant 1 : index
    %c0_115 = arith.constant 0 : index
    %c0_116 = arith.constant 0 : index
    %108 = vector.load %arg4[%c2_113, %c1_114, %c0_115, %c0_116] : memref<4x4x64x32xbf16, #tpu.memory_space<vmem>>, vector<1x1x64x32xbf16>
    %109 = vector.shape_cast %108 : vector<1x1x64x32xbf16> to vector<64x32xbf16>
    %cst_117 = arith.constant dense<0.000000e+00> : vector<8x32xf32>
    %110 = tpu.matmul %107, %109, %cst_117 {dimension_numbers = #tpu.dot_dimension_numbers<[1], [0], [0], [1], [0, 0, 1, 1], [], []>} : vector<8x64xbf16>, vector<64x32xbf16>, vector<8x32xf32> -> vector<8x32xf32>
    %111 = arith.addf %104, %110 : vector<8x32xf32>
    %c0_118 = arith.constant 0 : index
    %c2_119 = arith.constant 2 : index
    %c0_120 = arith.constant 0 : index
    %c0_121 = arith.constant 0 : index
    %112 = vector.load %arg7[%c0_118, %c2_119, %c0_120, %c0_121] : memref<2x4x4x64xf32, #tpu.memory_space<vmem>>, vector<2x2x2x64xf32>
    %113 = vector.shape_cast %112 : vector<2x2x2x64xf32> to vector<8x64xf32>
    %114 = arith.truncf %113 : vector<8x64xf32> to vector<8x64xbf16>
    %c2_122 = arith.constant 2 : index
    %c2_123 = arith.constant 2 : index
    %c0_124 = arith.constant 0 : index
    %c0_125 = arith.constant 0 : index
    %115 = vector.load %arg4[%c2_122, %c2_123, %c0_124, %c0_125] : memref<4x4x64x32xbf16, #tpu.memory_space<vmem>>, vector<1x1x64x32xbf16>
    %116 = vector.shape_cast %115 : vector<1x1x64x32xbf16> to vector<64x32xbf16>
    %cst_126 = arith.constant dense<0.000000e+00> : vector<8x32xf32>
    %117 = tpu.matmul %114, %116, %cst_126 {dimension_numbers = #tpu.dot_dimension_numbers<[1], [0], [0], [1], [0, 0, 1, 1], [], []>} : vector<8x64xbf16>, vector<64x32xbf16>, vector<8x32xf32> -> vector<8x32xf32>
    %118 = arith.addf %111, %117 : vector<8x32xf32>
    %c0_127 = arith.constant 0 : index
    %c2_128 = arith.constant 2 : index
    %c1_129 = arith.constant 1 : index
    %c0_130 = arith.constant 0 : index
    %119 = vector.load %arg7[%c0_127, %c2_128, %c1_129, %c0_130] : memref<2x4x4x64xf32, #tpu.memory_space<vmem>>, vector<2x2x2x64xf32>
    %120 = vector.shape_cast %119 : vector<2x2x2x64xf32> to vector<8x64xf32>
    %121 = arith.truncf %120 : vector<8x64xf32> to vector<8x64xbf16>
    %c2_131 = arith.constant 2 : index
    %c3_132 = arith.constant 3 : index
    %c0_133 = arith.constant 0 : index
    %c0_134 = arith.constant 0 : index
    %122 = vector.load %arg4[%c2_131, %c3_132, %c0_133, %c0_134] : memref<4x4x64x32xbf16, #tpu.memory_space<vmem>>, vector<1x1x64x32xbf16>
    %123 = vector.shape_cast %122 : vector<1x1x64x32xbf16> to vector<64x32xbf16>
    %cst_135 = arith.constant dense<0.000000e+00> : vector<8x32xf32>
    %124 = tpu.matmul %121, %123, %cst_135 {dimension_numbers = #tpu.dot_dimension_numbers<[1], [0], [0], [1], [0, 0, 1, 1], [], []>} : vector<8x64xbf16>, vector<64x32xbf16>, vector<8x32xf32> -> vector<8x32xf32>
    %125 = arith.addf %118, %124 : vector<8x32xf32>
    %126 = arith.truncf %125 : vector<8x32xf32> to vector<8x32xbf16>
    %c2_136 = arith.constant 2 : index
    %c0_137 = arith.constant 0 : index
    %c0_138 = arith.constant 0 : index
    %127 = vector.load %arg5[%c2_136, %c0_137, %c0_138] : memref<4x8x32xbf16, #tpu.memory_space<vmem>>, vector<1x8x32xbf16>
    %128 = vector.shape_cast %127 : vector<1x8x32xbf16> to vector<8x32xbf16>
    %129 = vector.shape_cast %126 : vector<8x32xbf16> to vector<1x8x32xbf16>
    tpu.vector_store %arg5[%c2_136, %c0_137, %c0_138], %129 {strides = array<i32>} : memref<4x8x32xbf16, #tpu.memory_space<vmem>>, vector<1x8x32xbf16>,
    %cst_139 = arith.constant dense<0.000000e+00> : vector<32xf32>
    %130 = vector.multi_reduction <add>, %125, %cst_139 [0] : vector<8x32xf32> to vector<32xf32>
    %131 = vector.shape_cast %130 : vector<32xf32> to vector<1x32xf32>
    %132 = arith.addf %92, %131 : vector<1x32xf32>
    %133 = arith.mulf %125, %125 : vector<8x32xf32>
    %cst_140 = arith.constant dense<0.000000e+00> : vector<32xf32>
    %134 = vector.multi_reduction <add>, %133, %cst_140 [0] : vector<8x32xf32> to vector<32xf32>
    %135 = vector.shape_cast %134 : vector<32xf32> to vector<1x32xf32>
    %136 = arith.addf %96, %135 : vector<1x32xf32>
    %cst_141 = arith.constant 0.000000e+00 : f32
    %137 = vector.broadcast %cst_141 : f32 to vector<8x32xf32>
    %c0_142 = arith.constant 0 : index
    %c1_143 = arith.constant 1 : index
    %c1_144 = arith.constant 1 : index
    %c0_145 = arith.constant 0 : index
    %138 = vector.load %arg7[%c0_142, %c1_143, %c1_144, %c0_145] : memref<2x4x4x64xf32, #tpu.memory_space<vmem>>, vector<2x2x2x64xf32>
    %139 = vector.shape_cast %138 : vector<2x2x2x64xf32> to vector<8x64xf32>
    %140 = arith.truncf %139 : vector<8x64xf32> to vector<8x64xbf16>
    %c3_146 = arith.constant 3 : index
    %c0_147 = arith.constant 0 : index
    %c0_148 = arith.constant 0 : index
    %c0_149 = arith.constant 0 : index
    %141 = vector.load %arg4[%c3_146, %c0_147, %c0_148, %c0_149] : memref<4x4x64x32xbf16, #tpu.memory_space<vmem>>, vector<1x1x64x32xbf16>
    %142 = vector.shape_cast %141 : vector<1x1x64x32xbf16> to vector<64x32xbf16>
    %cst_150 = arith.constant dense<0.000000e+00> : vector<8x32xf32>
    %143 = tpu.matmul %140, %142, %cst_150 {dimension_numbers = #tpu.dot_dimension_numbers<[1], [0], [0], [1], [0, 0, 1, 1], [], []>} : vector<8x64xbf16>, vector<64x32xbf16>, vector<8x32xf32> -> vector<8x32xf32>
    %144 = arith.addf %137, %143 : vector<8x32xf32>
    %c0_151 = arith.constant 0 : index
    %c1_152 = arith.constant 1 : index
    %c2_153 = arith.constant 2 : index
    %c0_154 = arith.constant 0 : index
    %145 = vector.load %arg7[%c0_151, %c1_152, %c2_153, %c0_154] : memref<2x4x4x64xf32, #tpu.memory_space<vmem>>, vector<2x2x2x64xf32>
    %146 = vector.shape_cast %145 : vector<2x2x2x64xf32> to vector<8x64xf32>
    %147 = arith.truncf %146 : vector<8x64xf32> to vector<8x64xbf16>
    %c3_155 = arith.constant 3 : index
    %c1_156 = arith.constant 1 : index
    %c0_157 = arith.constant 0 : index
    %c0_158 = arith.constant 0 : index
    %148 = vector.load %arg4[%c3_155, %c1_156, %c0_157, %c0_158] : memref<4x4x64x32xbf16, #tpu.memory_space<vmem>>, vector<1x1x64x32xbf16>
    %149 = vector.shape_cast %148 : vector<1x1x64x32xbf16> to vector<64x32xbf16>
    %cst_159 = arith.constant dense<0.000000e+00> : vector<8x32xf32>
    %150 = tpu.matmul %147, %149, %cst_159 {dimension_numbers = #tpu.dot_dimension_numbers<[1], [0], [0], [1], [0, 0, 1, 1], [], []>} : vector<8x64xbf16>, vector<64x32xbf16>, vector<8x32xf32> -> vector<8x32xf32>
    %151 = arith.addf %144, %150 : vector<8x32xf32>
    %c0_160 = arith.constant 0 : index
    %c2_161 = arith.constant 2 : index
    %c1_162 = arith.constant 1 : index
    %c0_163 = arith.constant 0 : index
    %152 = vector.load %arg7[%c0_160, %c2_161, %c1_162, %c0_163] : memref<2x4x4x64xf32, #tpu.memory_space<vmem>>, vector<2x2x2x64xf32>
    %153 = vector.shape_cast %152 : vector<2x2x2x64xf32> to vector<8x64xf32>
    %154 = arith.truncf %153 : vector<8x64xf32> to vector<8x64xbf16>
    %c3_164 = arith.constant 3 : index
    %c2_165 = arith.constant 2 : index
    %c0_166 = arith.constant 0 : index
    %c0_167 = arith.constant 0 : index
    %155 = vector.load %arg4[%c3_164, %c2_165, %c0_166, %c0_167] : memref<4x4x64x32xbf16, #tpu.memory_space<vmem>>, vector<1x1x64x32xbf16>
    %156 = vector.shape_cast %155 : vector<1x1x64x32xbf16> to vector<64x32xbf16>
    %cst_168 = arith.constant dense<0.000000e+00> : vector<8x32xf32>
    %157 = tpu.matmul %154, %156, %cst_168 {dimension_numbers = #tpu.dot_dimension_numbers<[1], [0], [0], [1], [0, 0, 1, 1], [], []>} : vector<8x64xbf16>, vector<64x32xbf16>, vector<8x32xf32> -> vector<8x32xf32>
    %158 = arith.addf %151, %157 : vector<8x32xf32>
    %c0_169 = arith.constant 0 : index
    %c2_170 = arith.constant 2 : index
    %c2_171 = arith.constant 2 : index
    %c0_172 = arith.constant 0 : index
    %159 = vector.load %arg7[%c0_169, %c2_170, %c2_171, %c0_172] : memref<2x4x4x64xf32, #tpu.memory_space<vmem>>, vector<2x2x2x64xf32>
    %160 = vector.shape_cast %159 : vector<2x2x2x64xf32> to vector<8x64xf32>
    %161 = arith.truncf %160 : vector<8x64xf32> to vector<8x64xbf16>
    %c3_173 = arith.constant 3 : index
    %c3_174 = arith.constant 3 : index
    %c0_175 = arith.constant 0 : index
    %c0_176 = arith.constant 0 : index
    %162 = vector.load %arg4[%c3_173, %c3_174, %c0_175, %c0_176] : memref<4x4x64x32xbf16, #tpu.memory_space<vmem>>, vector<1x1x64x32xbf16>
    %163 = vector.shape_cast %162 : vector<1x1x64x32xbf16> to vector<64x32xbf16>
    %cst_177 = arith.constant dense<0.000000e+00> : vector<8x32xf32>
    %164 = tpu.matmul %161, %163, %cst_177 {dimension_numbers = #tpu.dot_dimension_numbers<[1], [0], [0], [1], [0, 0, 1, 1], [], []>} : vector<8x64xbf16>, vector<64x32xbf16>, vector<8x32xf32> -> vector<8x32xf32>
    %165 = arith.addf %158, %164 : vector<8x32xf32>
    %166 = arith.truncf %165 : vector<8x32xf32> to vector<8x32xbf16>
    %c3_178 = arith.constant 3 : index
    %c0_179 = arith.constant 0 : index
    %c0_180 = arith.constant 0 : index
    %167 = vector.load %arg5[%c3_178, %c0_179, %c0_180] : memref<4x8x32xbf16, #tpu.memory_space<vmem>>, vector<1x8x32xbf16>
    %168 = vector.shape_cast %167 : vector<1x8x32xbf16> to vector<8x32xbf16>
    %169 = vector.shape_cast %166 : vector<8x32xbf16> to vector<1x8x32xbf16>
    tpu.vector_store %arg5[%c3_178, %c0_179, %c0_180], %169 {strides = array<i32>} : memref<4x8x32xbf16, #tpu.memory_space<vmem>>, vector<1x8x32xbf16>,
    %cst_181 = arith.constant dense<0.000000e+00> : vector<32xf32>
    %170 = vector.multi_reduction <add>, %165, %cst_181 [0] : vector<8x32xf32> to vector<32xf32>
    %171 = vector.shape_cast %170 : vector<32xf32> to vector<1x32xf32>
    %172 = arith.addf %132, %171 : vector<1x32xf32>
    %173 = arith.mulf %165, %165 : vector<8x32xf32>
    %cst_182 = arith.constant dense<0.000000e+00> : vector<32xf32>
    %174 = vector.multi_reduction <add>, %173, %cst_182 [0] : vector<8x32xf32> to vector<32xf32>
    %175 = vector.shape_cast %174 : vector<32xf32> to vector<1x32xf32>
    %176 = arith.addf %136, %175 : vector<1x32xf32>
    %177 = tpu.concatenate %172, %176 in 0 : vector<1x32xf32>, vector<1x32xf32> -> vector<2x32xf32>
    %178 = vector.shape_cast %177 : vector<2x32xf32> to vector<1x2x32xf32>
    %c0_183 = arith.constant 0 : index
    %c0_184 = arith.constant 0 : index
    %c0_185 = arith.constant 0 : index
    %179 = vector.load %arg6[%c0_183, %c0_184, %c0_185] : memref<1x2x32xf32, #tpu.memory_space<vmem>>, vector<1x2x32xf32>
    tpu.vector_store %arg6[%c0_183, %c0_184, %c0_185], %178 {strides = array<i32>} : memref<1x2x32xf32, #tpu.memory_space<vmem>>, vector<1x2x32xf32>,
    return
  }
  func.func @transform_0(%arg0: i32) -> (i32, i32, i32, i32) {
    %c0_i32 = arith.constant 0 : i32
    %c0_i32_0 = arith.constant 0 : i32
    %c0_i32_1 = arith.constant 0 : i32
    %c0_i32_2 = arith.constant 0 : i32
    return %arg0, %c0_i32, %c0_i32_0, %c0_i32_1 : i32, i32, i32, i32
  }
  func.func @transform_1(%arg0: i32) -> (i32, i32) {
    %c0_i32 = arith.constant 0 : i32
    %c0_i32_0 = arith.constant 0 : i32
    %c0_i32_1 = arith.constant 0 : i32
    return %c0_i32, %c0_i32_0 : i32, i32
  }
  func.func @transform_2(%arg0: i32) -> (i32, i32) {
    %c0_i32 = arith.constant 0 : i32
    %c0_i32_0 = arith.constant 0 : i32
    %c0_i32_1 = arith.constant 0 : i32
    return %c0_i32, %c0_i32_0 : i32, i32
  }
  func.func @transform_3(%arg0: i32) -> (i32, i32, i32, i32) {
    %c0_i32 = arith.constant 0 : i32
    %c0_i32_0 = arith.constant 0 : i32
    %c0_i32_1 = arith.constant 0 : i32
    %c0_i32_2 = arith.constant 0 : i32
    %c0_i32_3 = arith.constant 0 : i32
    return %c0_i32, %c0_i32_0, %c0_i32_1, %c0_i32_2 : i32, i32, i32, i32
  }
  func.func @transform_4(%arg0: i32) -> (i32, i32, i32) {
    %c0_i32 = arith.constant 0 : i32
    %c0_i32_0 = arith.constant 0 : i32
    %c0_i32_1 = arith.constant 0 : i32
    return %c0_i32, %arg0, %c0_i32_0 : i32, i32, i32
  }
  func.func @transform_5(%arg0: i32) -> (i32, i32, i32) {
    %c0_i32 = arith.constant 0 : i32
    %c0_i32_0 = arith.constant 0 : i32
    %c0_i32_1 = arith.constant 0 : i32
    return %arg0, %c0_i32, %c0_i32_0 : i32, i32, i32
  }
}

module attributes {stable_mosaic.version = 11 : i64} {
  func.func @_up_kernel(%arg0: i32, %arg1: memref<1x4x4x32xbf16, #tpu.memory_space<vmem>>, %arg2: memref<1x32xf32, #tpu.memory_space<vmem>>, %arg3: memref<1x32xf32, #tpu.memory_space<vmem>>, %arg4: memref<4x4x32x16xbf16, #tpu.memory_space<vmem>>, %arg5: memref<4x16x16xbf16, #tpu.memory_space<vmem>>, %arg6: memref<1x2x16xf32, #tpu.memory_space<vmem>>, %arg7: memref<1x6x6x32xf32, #tpu.memory_space<vmem>>) attributes {dimension_semantics = [#tpu.dimension_semantics<parallel>], iteration_bounds = array<i64: 2>, scalar_prefetch = 0 : i64, scratch_operands = 1 : i64, tpu.core_type = #tpu.core_type<tc>, window_params = [{transform_indices = @transform_0, window_bounds = array<i64: 1, 4, 4, 32>}, {pipeline_mode = #tpu.pipeline_mode<synchronous>, transform_indices = @transform_1, window_bounds = array<i64: 1, 32>}, {pipeline_mode = #tpu.pipeline_mode<synchronous>, transform_indices = @transform_2, window_bounds = array<i64: 1, 32>}, {pipeline_mode = #tpu.pipeline_mode<synchronous>, transform_indices = @transform_3, window_bounds = array<i64: 4, 4, 32, 16>}, {transform_indices = @transform_4, window_bounds = array<i64: 4, 16, 16>}, {transform_indices = @transform_5, window_bounds = array<i64: 1, 2, 16>}]} {
    %cst = arith.constant 0.000000e+00 : f32
    %0 = vector.broadcast %cst : f32 to vector<1x6x6x32xf32>
    %c0 = arith.constant 0 : index
    %c0_0 = arith.constant 0 : index
    %c0_1 = arith.constant 0 : index
    %c0_2 = arith.constant 0 : index
    %1 = vector.load %arg7[%c0, %c0_0, %c0_1, %c0_2] : memref<1x6x6x32xf32, #tpu.memory_space<vmem>>, vector<1x6x6x32xf32>
    tpu.vector_store %arg7[%c0, %c0_0, %c0_1, %c0_2], %0 {strides = array<i32>} : memref<1x6x6x32xf32, #tpu.memory_space<vmem>>, vector<1x6x6x32xf32>,
    %c0_3 = arith.constant 0 : index
    %c0_4 = arith.constant 0 : index
    %c0_5 = arith.constant 0 : index
    %c0_6 = arith.constant 0 : index
    %2 = vector.load %arg1[%c0_3, %c0_4, %c0_5, %c0_6] : memref<1x4x4x32xbf16, #tpu.memory_space<vmem>>, vector<1x4x4x32xbf16>
    %3 = arith.extf %2 : vector<1x4x4x32xbf16> to vector<1x4x4x32xf32>
    %c0_7 = arith.constant 0 : index
    %c0_8 = arith.constant 0 : index
    %4 = vector.load %arg2[%c0_7, %c0_8] : memref<1x32xf32, #tpu.memory_space<vmem>>, vector<1x32xf32>
    %5 = vector.shape_cast %4 : vector<1x32xf32> to vector<1x1x1x32xf32>
    %6 = vector.broadcast %5 : vector<1x1x1x32xf32> to vector<1x4x4x32xf32>
    %7 = arith.mulf %3, %6 : vector<1x4x4x32xf32>
    %c0_9 = arith.constant 0 : index
    %c0_10 = arith.constant 0 : index
    %8 = vector.load %arg3[%c0_9, %c0_10] : memref<1x32xf32, #tpu.memory_space<vmem>>, vector<1x32xf32>
    %9 = vector.shape_cast %8 : vector<1x32xf32> to vector<1x1x1x32xf32>
    %10 = vector.broadcast %9 : vector<1x1x1x32xf32> to vector<1x4x4x32xf32>
    %11 = arith.addf %7, %10 : vector<1x4x4x32xf32>
    %cst_11 = arith.constant 0.000000e+00 : f32
    %12 = vector.broadcast %cst_11 : f32 to vector<1x4x4x32xf32>
    %13 = arith.maximumf %11, %12 : vector<1x4x4x32xf32>
    %c0_12 = arith.constant 0 : index
    %c1 = arith.constant 1 : index
    %c1_13 = arith.constant 1 : index
    %c0_14 = arith.constant 0 : index
    %14 = vector.load %arg7[%c0_12, %c1, %c1_13, %c0_14] : memref<1x6x6x32xf32, #tpu.memory_space<vmem>>, vector<1x4x4x32xf32>
    tpu.vector_store %arg7[%c0_12, %c1, %c1_13, %c0_14], %13 {strides = array<i32>} : memref<1x6x6x32xf32, #tpu.memory_space<vmem>>, vector<1x4x4x32xf32>,
    %cst_15 = arith.constant 0.000000e+00 : f32
    %15 = vector.broadcast %cst_15 : f32 to vector<1x16xf32>
    %cst_16 = arith.constant 0.000000e+00 : f32
    %16 = vector.broadcast %cst_16 : f32 to vector<1x16xf32>
    %cst_17 = arith.constant 0.000000e+00 : f32
    %17 = vector.broadcast %cst_17 : f32 to vector<16x16xf32>
    %c0_18 = arith.constant 0 : index
    %c0_19 = arith.constant 0 : index
    %c0_20 = arith.constant 0 : index
    %c0_21 = arith.constant 0 : index
    %18 = vector.load %arg7[%c0_18, %c0_19, %c0_20, %c0_21] : memref<1x6x6x32xf32, #tpu.memory_space<vmem>>, vector<1x4x4x32xf32>
    %19 = vector.shape_cast %18 : vector<1x4x4x32xf32> to vector<16x32xf32>
    %20 = arith.truncf %19 : vector<16x32xf32> to vector<16x32xbf16>
    %c0_22 = arith.constant 0 : index
    %c0_23 = arith.constant 0 : index
    %c0_24 = arith.constant 0 : index
    %c0_25 = arith.constant 0 : index
    %21 = vector.load %arg4[%c0_22, %c0_23, %c0_24, %c0_25] : memref<4x4x32x16xbf16, #tpu.memory_space<vmem>>, vector<1x1x32x16xbf16>
    %22 = vector.shape_cast %21 : vector<1x1x32x16xbf16> to vector<32x16xbf16>
    %cst_26 = arith.constant dense<0.000000e+00> : vector<16x16xf32>
    %23 = tpu.matmul %20, %22, %cst_26 {dimension_numbers = #tpu.dot_dimension_numbers<[1], [0], [0], [1], [0, 0, 1, 1], [], []>} : vector<16x32xbf16>, vector<32x16xbf16>, vector<16x16xf32> -> vector<16x16xf32>
    %24 = arith.addf %17, %23 : vector<16x16xf32>
    %c0_27 = arith.constant 0 : index
    %c0_28 = arith.constant 0 : index
    %c1_29 = arith.constant 1 : index
    %c0_30 = arith.constant 0 : index
    %25 = vector.load %arg7[%c0_27, %c0_28, %c1_29, %c0_30] : memref<1x6x6x32xf32, #tpu.memory_space<vmem>>, vector<1x4x4x32xf32>
    %26 = vector.shape_cast %25 : vector<1x4x4x32xf32> to vector<16x32xf32>
    %27 = arith.truncf %26 : vector<16x32xf32> to vector<16x32xbf16>
    %c0_31 = arith.constant 0 : index
    %c1_32 = arith.constant 1 : index
    %c0_33 = arith.constant 0 : index
    %c0_34 = arith.constant 0 : index
    %28 = vector.load %arg4[%c0_31, %c1_32, %c0_33, %c0_34] : memref<4x4x32x16xbf16, #tpu.memory_space<vmem>>, vector<1x1x32x16xbf16>
    %29 = vector.shape_cast %28 : vector<1x1x32x16xbf16> to vector<32x16xbf16>
    %cst_35 = arith.constant dense<0.000000e+00> : vector<16x16xf32>
    %30 = tpu.matmul %27, %29, %cst_35 {dimension_numbers = #tpu.dot_dimension_numbers<[1], [0], [0], [1], [0, 0, 1, 1], [], []>} : vector<16x32xbf16>, vector<32x16xbf16>, vector<16x16xf32> -> vector<16x16xf32>
    %31 = arith.addf %24, %30 : vector<16x16xf32>
    %c0_36 = arith.constant 0 : index
    %c1_37 = arith.constant 1 : index
    %c0_38 = arith.constant 0 : index
    %c0_39 = arith.constant 0 : index
    %32 = vector.load %arg7[%c0_36, %c1_37, %c0_38, %c0_39] : memref<1x6x6x32xf32, #tpu.memory_space<vmem>>, vector<1x4x4x32xf32>
    %33 = vector.shape_cast %32 : vector<1x4x4x32xf32> to vector<16x32xf32>
    %34 = arith.truncf %33 : vector<16x32xf32> to vector<16x32xbf16>
    %c0_40 = arith.constant 0 : index
    %c2 = arith.constant 2 : index
    %c0_41 = arith.constant 0 : index
    %c0_42 = arith.constant 0 : index
    %35 = vector.load %arg4[%c0_40, %c2, %c0_41, %c0_42] : memref<4x4x32x16xbf16, #tpu.memory_space<vmem>>, vector<1x1x32x16xbf16>
    %36 = vector.shape_cast %35 : vector<1x1x32x16xbf16> to vector<32x16xbf16>
    %cst_43 = arith.constant dense<0.000000e+00> : vector<16x16xf32>
    %37 = tpu.matmul %34, %36, %cst_43 {dimension_numbers = #tpu.dot_dimension_numbers<[1], [0], [0], [1], [0, 0, 1, 1], [], []>} : vector<16x32xbf16>, vector<32x16xbf16>, vector<16x16xf32> -> vector<16x16xf32>
    %38 = arith.addf %31, %37 : vector<16x16xf32>
    %c0_44 = arith.constant 0 : index
    %c1_45 = arith.constant 1 : index
    %c1_46 = arith.constant 1 : index
    %c0_47 = arith.constant 0 : index
    %39 = vector.load %arg7[%c0_44, %c1_45, %c1_46, %c0_47] : memref<1x6x6x32xf32, #tpu.memory_space<vmem>>, vector<1x4x4x32xf32>
    %40 = vector.shape_cast %39 : vector<1x4x4x32xf32> to vector<16x32xf32>
    %41 = arith.truncf %40 : vector<16x32xf32> to vector<16x32xbf16>
    %c0_48 = arith.constant 0 : index
    %c3 = arith.constant 3 : index
    %c0_49 = arith.constant 0 : index
    %c0_50 = arith.constant 0 : index
    %42 = vector.load %arg4[%c0_48, %c3, %c0_49, %c0_50] : memref<4x4x32x16xbf16, #tpu.memory_space<vmem>>, vector<1x1x32x16xbf16>
    %43 = vector.shape_cast %42 : vector<1x1x32x16xbf16> to vector<32x16xbf16>
    %cst_51 = arith.constant dense<0.000000e+00> : vector<16x16xf32>
    %44 = tpu.matmul %41, %43, %cst_51 {dimension_numbers = #tpu.dot_dimension_numbers<[1], [0], [0], [1], [0, 0, 1, 1], [], []>} : vector<16x32xbf16>, vector<32x16xbf16>, vector<16x16xf32> -> vector<16x16xf32>
    %45 = arith.addf %38, %44 : vector<16x16xf32>
    %46 = arith.truncf %45 : vector<16x16xf32> to vector<16x16xbf16>
    %c0_52 = arith.constant 0 : index
    %c0_53 = arith.constant 0 : index
    %c0_54 = arith.constant 0 : index
    %47 = vector.load %arg5[%c0_52, %c0_53, %c0_54] : memref<4x16x16xbf16, #tpu.memory_space<vmem>>, vector<1x16x16xbf16>
    %48 = vector.shape_cast %47 : vector<1x16x16xbf16> to vector<16x16xbf16>
    %49 = vector.shape_cast %46 : vector<16x16xbf16> to vector<1x16x16xbf16>
    tpu.vector_store %arg5[%c0_52, %c0_53, %c0_54], %49 {strides = array<i32>} : memref<4x16x16xbf16, #tpu.memory_space<vmem>>, vector<1x16x16xbf16>,
    %cst_55 = arith.constant dense<0.000000e+00> : vector<16xf32>
    %50 = vector.multi_reduction <add>, %45, %cst_55 [0] : vector<16x16xf32> to vector<16xf32>
    %51 = vector.shape_cast %50 : vector<16xf32> to vector<1x16xf32>
    %52 = arith.addf %15, %51 : vector<1x16xf32>
    %53 = arith.mulf %45, %45 : vector<16x16xf32>
    %cst_56 = arith.constant dense<0.000000e+00> : vector<16xf32>
    %54 = vector.multi_reduction <add>, %53, %cst_56 [0] : vector<16x16xf32> to vector<16xf32>
    %55 = vector.shape_cast %54 : vector<16xf32> to vector<1x16xf32>
    %56 = arith.addf %16, %55 : vector<1x16xf32>
    %cst_57 = arith.constant 0.000000e+00 : f32
    %57 = vector.broadcast %cst_57 : f32 to vector<16x16xf32>
    %c0_58 = arith.constant 0 : index
    %c0_59 = arith.constant 0 : index
    %c1_60 = arith.constant 1 : index
    %c0_61 = arith.constant 0 : index
    %58 = vector.load %arg7[%c0_58, %c0_59, %c1_60, %c0_61] : memref<1x6x6x32xf32, #tpu.memory_space<vmem>>, vector<1x4x4x32xf32>
    %59 = vector.shape_cast %58 : vector<1x4x4x32xf32> to vector<16x32xf32>
    %60 = arith.truncf %59 : vector<16x32xf32> to vector<16x32xbf16>
    %c1_62 = arith.constant 1 : index
    %c0_63 = arith.constant 0 : index
    %c0_64 = arith.constant 0 : index
    %c0_65 = arith.constant 0 : index
    %61 = vector.load %arg4[%c1_62, %c0_63, %c0_64, %c0_65] : memref<4x4x32x16xbf16, #tpu.memory_space<vmem>>, vector<1x1x32x16xbf16>
    %62 = vector.shape_cast %61 : vector<1x1x32x16xbf16> to vector<32x16xbf16>
    %cst_66 = arith.constant dense<0.000000e+00> : vector<16x16xf32>
    %63 = tpu.matmul %60, %62, %cst_66 {dimension_numbers = #tpu.dot_dimension_numbers<[1], [0], [0], [1], [0, 0, 1, 1], [], []>} : vector<16x32xbf16>, vector<32x16xbf16>, vector<16x16xf32> -> vector<16x16xf32>
    %64 = arith.addf %57, %63 : vector<16x16xf32>
    %c0_67 = arith.constant 0 : index
    %c0_68 = arith.constant 0 : index
    %c2_69 = arith.constant 2 : index
    %c0_70 = arith.constant 0 : index
    %65 = vector.load %arg7[%c0_67, %c0_68, %c2_69, %c0_70] : memref<1x6x6x32xf32, #tpu.memory_space<vmem>>, vector<1x4x4x32xf32>
    %66 = vector.shape_cast %65 : vector<1x4x4x32xf32> to vector<16x32xf32>
    %67 = arith.truncf %66 : vector<16x32xf32> to vector<16x32xbf16>
    %c1_71 = arith.constant 1 : index
    %c1_72 = arith.constant 1 : index
    %c0_73 = arith.constant 0 : index
    %c0_74 = arith.constant 0 : index
    %68 = vector.load %arg4[%c1_71, %c1_72, %c0_73, %c0_74] : memref<4x4x32x16xbf16, #tpu.memory_space<vmem>>, vector<1x1x32x16xbf16>
    %69 = vector.shape_cast %68 : vector<1x1x32x16xbf16> to vector<32x16xbf16>
    %cst_75 = arith.constant dense<0.000000e+00> : vector<16x16xf32>
    %70 = tpu.matmul %67, %69, %cst_75 {dimension_numbers = #tpu.dot_dimension_numbers<[1], [0], [0], [1], [0, 0, 1, 1], [], []>} : vector<16x32xbf16>, vector<32x16xbf16>, vector<16x16xf32> -> vector<16x16xf32>
    %71 = arith.addf %64, %70 : vector<16x16xf32>
    %c0_76 = arith.constant 0 : index
    %c1_77 = arith.constant 1 : index
    %c1_78 = arith.constant 1 : index
    %c0_79 = arith.constant 0 : index
    %72 = vector.load %arg7[%c0_76, %c1_77, %c1_78, %c0_79] : memref<1x6x6x32xf32, #tpu.memory_space<vmem>>, vector<1x4x4x32xf32>
    %73 = vector.shape_cast %72 : vector<1x4x4x32xf32> to vector<16x32xf32>
    %74 = arith.truncf %73 : vector<16x32xf32> to vector<16x32xbf16>
    %c1_80 = arith.constant 1 : index
    %c2_81 = arith.constant 2 : index
    %c0_82 = arith.constant 0 : index
    %c0_83 = arith.constant 0 : index
    %75 = vector.load %arg4[%c1_80, %c2_81, %c0_82, %c0_83] : memref<4x4x32x16xbf16, #tpu.memory_space<vmem>>, vector<1x1x32x16xbf16>
    %76 = vector.shape_cast %75 : vector<1x1x32x16xbf16> to vector<32x16xbf16>
    %cst_84 = arith.constant dense<0.000000e+00> : vector<16x16xf32>
    %77 = tpu.matmul %74, %76, %cst_84 {dimension_numbers = #tpu.dot_dimension_numbers<[1], [0], [0], [1], [0, 0, 1, 1], [], []>} : vector<16x32xbf16>, vector<32x16xbf16>, vector<16x16xf32> -> vector<16x16xf32>
    %78 = arith.addf %71, %77 : vector<16x16xf32>
    %c0_85 = arith.constant 0 : index
    %c1_86 = arith.constant 1 : index
    %c2_87 = arith.constant 2 : index
    %c0_88 = arith.constant 0 : index
    %79 = vector.load %arg7[%c0_85, %c1_86, %c2_87, %c0_88] : memref<1x6x6x32xf32, #tpu.memory_space<vmem>>, vector<1x4x4x32xf32>
    %80 = vector.shape_cast %79 : vector<1x4x4x32xf32> to vector<16x32xf32>
    %81 = arith.truncf %80 : vector<16x32xf32> to vector<16x32xbf16>
    %c1_89 = arith.constant 1 : index
    %c3_90 = arith.constant 3 : index
    %c0_91 = arith.constant 0 : index
    %c0_92 = arith.constant 0 : index
    %82 = vector.load %arg4[%c1_89, %c3_90, %c0_91, %c0_92] : memref<4x4x32x16xbf16, #tpu.memory_space<vmem>>, vector<1x1x32x16xbf16>
    %83 = vector.shape_cast %82 : vector<1x1x32x16xbf16> to vector<32x16xbf16>
    %cst_93 = arith.constant dense<0.000000e+00> : vector<16x16xf32>
    %84 = tpu.matmul %81, %83, %cst_93 {dimension_numbers = #tpu.dot_dimension_numbers<[1], [0], [0], [1], [0, 0, 1, 1], [], []>} : vector<16x32xbf16>, vector<32x16xbf16>, vector<16x16xf32> -> vector<16x16xf32>
    %85 = arith.addf %78, %84 : vector<16x16xf32>
    %86 = arith.truncf %85 : vector<16x16xf32> to vector<16x16xbf16>
    %c1_94 = arith.constant 1 : index
    %c0_95 = arith.constant 0 : index
    %c0_96 = arith.constant 0 : index
    %87 = vector.load %arg5[%c1_94, %c0_95, %c0_96] : memref<4x16x16xbf16, #tpu.memory_space<vmem>>, vector<1x16x16xbf16>
    %88 = vector.shape_cast %87 : vector<1x16x16xbf16> to vector<16x16xbf16>
    %89 = vector.shape_cast %86 : vector<16x16xbf16> to vector<1x16x16xbf16>
    tpu.vector_store %arg5[%c1_94, %c0_95, %c0_96], %89 {strides = array<i32>} : memref<4x16x16xbf16, #tpu.memory_space<vmem>>, vector<1x16x16xbf16>,
    %cst_97 = arith.constant dense<0.000000e+00> : vector<16xf32>
    %90 = vector.multi_reduction <add>, %85, %cst_97 [0] : vector<16x16xf32> to vector<16xf32>
    %91 = vector.shape_cast %90 : vector<16xf32> to vector<1x16xf32>
    %92 = arith.addf %52, %91 : vector<1x16xf32>
    %93 = arith.mulf %85, %85 : vector<16x16xf32>
    %cst_98 = arith.constant dense<0.000000e+00> : vector<16xf32>
    %94 = vector.multi_reduction <add>, %93, %cst_98 [0] : vector<16x16xf32> to vector<16xf32>
    %95 = vector.shape_cast %94 : vector<16xf32> to vector<1x16xf32>
    %96 = arith.addf %56, %95 : vector<1x16xf32>
    %cst_99 = arith.constant 0.000000e+00 : f32
    %97 = vector.broadcast %cst_99 : f32 to vector<16x16xf32>
    %c0_100 = arith.constant 0 : index
    %c1_101 = arith.constant 1 : index
    %c0_102 = arith.constant 0 : index
    %c0_103 = arith.constant 0 : index
    %98 = vector.load %arg7[%c0_100, %c1_101, %c0_102, %c0_103] : memref<1x6x6x32xf32, #tpu.memory_space<vmem>>, vector<1x4x4x32xf32>
    %99 = vector.shape_cast %98 : vector<1x4x4x32xf32> to vector<16x32xf32>
    %100 = arith.truncf %99 : vector<16x32xf32> to vector<16x32xbf16>
    %c2_104 = arith.constant 2 : index
    %c0_105 = arith.constant 0 : index
    %c0_106 = arith.constant 0 : index
    %c0_107 = arith.constant 0 : index
    %101 = vector.load %arg4[%c2_104, %c0_105, %c0_106, %c0_107] : memref<4x4x32x16xbf16, #tpu.memory_space<vmem>>, vector<1x1x32x16xbf16>
    %102 = vector.shape_cast %101 : vector<1x1x32x16xbf16> to vector<32x16xbf16>
    %cst_108 = arith.constant dense<0.000000e+00> : vector<16x16xf32>
    %103 = tpu.matmul %100, %102, %cst_108 {dimension_numbers = #tpu.dot_dimension_numbers<[1], [0], [0], [1], [0, 0, 1, 1], [], []>} : vector<16x32xbf16>, vector<32x16xbf16>, vector<16x16xf32> -> vector<16x16xf32>
    %104 = arith.addf %97, %103 : vector<16x16xf32>
    %c0_109 = arith.constant 0 : index
    %c1_110 = arith.constant 1 : index
    %c1_111 = arith.constant 1 : index
    %c0_112 = arith.constant 0 : index
    %105 = vector.load %arg7[%c0_109, %c1_110, %c1_111, %c0_112] : memref<1x6x6x32xf32, #tpu.memory_space<vmem>>, vector<1x4x4x32xf32>
    %106 = vector.shape_cast %105 : vector<1x4x4x32xf32> to vector<16x32xf32>
    %107 = arith.truncf %106 : vector<16x32xf32> to vector<16x32xbf16>
    %c2_113 = arith.constant 2 : index
    %c1_114 = arith.constant 1 : index
    %c0_115 = arith.constant 0 : index
    %c0_116 = arith.constant 0 : index
    %108 = vector.load %arg4[%c2_113, %c1_114, %c0_115, %c0_116] : memref<4x4x32x16xbf16, #tpu.memory_space<vmem>>, vector<1x1x32x16xbf16>
    %109 = vector.shape_cast %108 : vector<1x1x32x16xbf16> to vector<32x16xbf16>
    %cst_117 = arith.constant dense<0.000000e+00> : vector<16x16xf32>
    %110 = tpu.matmul %107, %109, %cst_117 {dimension_numbers = #tpu.dot_dimension_numbers<[1], [0], [0], [1], [0, 0, 1, 1], [], []>} : vector<16x32xbf16>, vector<32x16xbf16>, vector<16x16xf32> -> vector<16x16xf32>
    %111 = arith.addf %104, %110 : vector<16x16xf32>
    %c0_118 = arith.constant 0 : index
    %c2_119 = arith.constant 2 : index
    %c0_120 = arith.constant 0 : index
    %c0_121 = arith.constant 0 : index
    %112 = vector.load %arg7[%c0_118, %c2_119, %c0_120, %c0_121] : memref<1x6x6x32xf32, #tpu.memory_space<vmem>>, vector<1x4x4x32xf32>
    %113 = vector.shape_cast %112 : vector<1x4x4x32xf32> to vector<16x32xf32>
    %114 = arith.truncf %113 : vector<16x32xf32> to vector<16x32xbf16>
    %c2_122 = arith.constant 2 : index
    %c2_123 = arith.constant 2 : index
    %c0_124 = arith.constant 0 : index
    %c0_125 = arith.constant 0 : index
    %115 = vector.load %arg4[%c2_122, %c2_123, %c0_124, %c0_125] : memref<4x4x32x16xbf16, #tpu.memory_space<vmem>>, vector<1x1x32x16xbf16>
    %116 = vector.shape_cast %115 : vector<1x1x32x16xbf16> to vector<32x16xbf16>
    %cst_126 = arith.constant dense<0.000000e+00> : vector<16x16xf32>
    %117 = tpu.matmul %114, %116, %cst_126 {dimension_numbers = #tpu.dot_dimension_numbers<[1], [0], [0], [1], [0, 0, 1, 1], [], []>} : vector<16x32xbf16>, vector<32x16xbf16>, vector<16x16xf32> -> vector<16x16xf32>
    %118 = arith.addf %111, %117 : vector<16x16xf32>
    %c0_127 = arith.constant 0 : index
    %c2_128 = arith.constant 2 : index
    %c1_129 = arith.constant 1 : index
    %c0_130 = arith.constant 0 : index
    %119 = vector.load %arg7[%c0_127, %c2_128, %c1_129, %c0_130] : memref<1x6x6x32xf32, #tpu.memory_space<vmem>>, vector<1x4x4x32xf32>
    %120 = vector.shape_cast %119 : vector<1x4x4x32xf32> to vector<16x32xf32>
    %121 = arith.truncf %120 : vector<16x32xf32> to vector<16x32xbf16>
    %c2_131 = arith.constant 2 : index
    %c3_132 = arith.constant 3 : index
    %c0_133 = arith.constant 0 : index
    %c0_134 = arith.constant 0 : index
    %122 = vector.load %arg4[%c2_131, %c3_132, %c0_133, %c0_134] : memref<4x4x32x16xbf16, #tpu.memory_space<vmem>>, vector<1x1x32x16xbf16>
    %123 = vector.shape_cast %122 : vector<1x1x32x16xbf16> to vector<32x16xbf16>
    %cst_135 = arith.constant dense<0.000000e+00> : vector<16x16xf32>
    %124 = tpu.matmul %121, %123, %cst_135 {dimension_numbers = #tpu.dot_dimension_numbers<[1], [0], [0], [1], [0, 0, 1, 1], [], []>} : vector<16x32xbf16>, vector<32x16xbf16>, vector<16x16xf32> -> vector<16x16xf32>
    %125 = arith.addf %118, %124 : vector<16x16xf32>
    %126 = arith.truncf %125 : vector<16x16xf32> to vector<16x16xbf16>
    %c2_136 = arith.constant 2 : index
    %c0_137 = arith.constant 0 : index
    %c0_138 = arith.constant 0 : index
    %127 = vector.load %arg5[%c2_136, %c0_137, %c0_138] : memref<4x16x16xbf16, #tpu.memory_space<vmem>>, vector<1x16x16xbf16>
    %128 = vector.shape_cast %127 : vector<1x16x16xbf16> to vector<16x16xbf16>
    %129 = vector.shape_cast %126 : vector<16x16xbf16> to vector<1x16x16xbf16>
    tpu.vector_store %arg5[%c2_136, %c0_137, %c0_138], %129 {strides = array<i32>} : memref<4x16x16xbf16, #tpu.memory_space<vmem>>, vector<1x16x16xbf16>,
    %cst_139 = arith.constant dense<0.000000e+00> : vector<16xf32>
    %130 = vector.multi_reduction <add>, %125, %cst_139 [0] : vector<16x16xf32> to vector<16xf32>
    %131 = vector.shape_cast %130 : vector<16xf32> to vector<1x16xf32>
    %132 = arith.addf %92, %131 : vector<1x16xf32>
    %133 = arith.mulf %125, %125 : vector<16x16xf32>
    %cst_140 = arith.constant dense<0.000000e+00> : vector<16xf32>
    %134 = vector.multi_reduction <add>, %133, %cst_140 [0] : vector<16x16xf32> to vector<16xf32>
    %135 = vector.shape_cast %134 : vector<16xf32> to vector<1x16xf32>
    %136 = arith.addf %96, %135 : vector<1x16xf32>
    %cst_141 = arith.constant 0.000000e+00 : f32
    %137 = vector.broadcast %cst_141 : f32 to vector<16x16xf32>
    %c0_142 = arith.constant 0 : index
    %c1_143 = arith.constant 1 : index
    %c1_144 = arith.constant 1 : index
    %c0_145 = arith.constant 0 : index
    %138 = vector.load %arg7[%c0_142, %c1_143, %c1_144, %c0_145] : memref<1x6x6x32xf32, #tpu.memory_space<vmem>>, vector<1x4x4x32xf32>
    %139 = vector.shape_cast %138 : vector<1x4x4x32xf32> to vector<16x32xf32>
    %140 = arith.truncf %139 : vector<16x32xf32> to vector<16x32xbf16>
    %c3_146 = arith.constant 3 : index
    %c0_147 = arith.constant 0 : index
    %c0_148 = arith.constant 0 : index
    %c0_149 = arith.constant 0 : index
    %141 = vector.load %arg4[%c3_146, %c0_147, %c0_148, %c0_149] : memref<4x4x32x16xbf16, #tpu.memory_space<vmem>>, vector<1x1x32x16xbf16>
    %142 = vector.shape_cast %141 : vector<1x1x32x16xbf16> to vector<32x16xbf16>
    %cst_150 = arith.constant dense<0.000000e+00> : vector<16x16xf32>
    %143 = tpu.matmul %140, %142, %cst_150 {dimension_numbers = #tpu.dot_dimension_numbers<[1], [0], [0], [1], [0, 0, 1, 1], [], []>} : vector<16x32xbf16>, vector<32x16xbf16>, vector<16x16xf32> -> vector<16x16xf32>
    %144 = arith.addf %137, %143 : vector<16x16xf32>
    %c0_151 = arith.constant 0 : index
    %c1_152 = arith.constant 1 : index
    %c2_153 = arith.constant 2 : index
    %c0_154 = arith.constant 0 : index
    %145 = vector.load %arg7[%c0_151, %c1_152, %c2_153, %c0_154] : memref<1x6x6x32xf32, #tpu.memory_space<vmem>>, vector<1x4x4x32xf32>
    %146 = vector.shape_cast %145 : vector<1x4x4x32xf32> to vector<16x32xf32>
    %147 = arith.truncf %146 : vector<16x32xf32> to vector<16x32xbf16>
    %c3_155 = arith.constant 3 : index
    %c1_156 = arith.constant 1 : index
    %c0_157 = arith.constant 0 : index
    %c0_158 = arith.constant 0 : index
    %148 = vector.load %arg4[%c3_155, %c1_156, %c0_157, %c0_158] : memref<4x4x32x16xbf16, #tpu.memory_space<vmem>>, vector<1x1x32x16xbf16>
    %149 = vector.shape_cast %148 : vector<1x1x32x16xbf16> to vector<32x16xbf16>
    %cst_159 = arith.constant dense<0.000000e+00> : vector<16x16xf32>
    %150 = tpu.matmul %147, %149, %cst_159 {dimension_numbers = #tpu.dot_dimension_numbers<[1], [0], [0], [1], [0, 0, 1, 1], [], []>} : vector<16x32xbf16>, vector<32x16xbf16>, vector<16x16xf32> -> vector<16x16xf32>
    %151 = arith.addf %144, %150 : vector<16x16xf32>
    %c0_160 = arith.constant 0 : index
    %c2_161 = arith.constant 2 : index
    %c1_162 = arith.constant 1 : index
    %c0_163 = arith.constant 0 : index
    %152 = vector.load %arg7[%c0_160, %c2_161, %c1_162, %c0_163] : memref<1x6x6x32xf32, #tpu.memory_space<vmem>>, vector<1x4x4x32xf32>
    %153 = vector.shape_cast %152 : vector<1x4x4x32xf32> to vector<16x32xf32>
    %154 = arith.truncf %153 : vector<16x32xf32> to vector<16x32xbf16>
    %c3_164 = arith.constant 3 : index
    %c2_165 = arith.constant 2 : index
    %c0_166 = arith.constant 0 : index
    %c0_167 = arith.constant 0 : index
    %155 = vector.load %arg4[%c3_164, %c2_165, %c0_166, %c0_167] : memref<4x4x32x16xbf16, #tpu.memory_space<vmem>>, vector<1x1x32x16xbf16>
    %156 = vector.shape_cast %155 : vector<1x1x32x16xbf16> to vector<32x16xbf16>
    %cst_168 = arith.constant dense<0.000000e+00> : vector<16x16xf32>
    %157 = tpu.matmul %154, %156, %cst_168 {dimension_numbers = #tpu.dot_dimension_numbers<[1], [0], [0], [1], [0, 0, 1, 1], [], []>} : vector<16x32xbf16>, vector<32x16xbf16>, vector<16x16xf32> -> vector<16x16xf32>
    %158 = arith.addf %151, %157 : vector<16x16xf32>
    %c0_169 = arith.constant 0 : index
    %c2_170 = arith.constant 2 : index
    %c2_171 = arith.constant 2 : index
    %c0_172 = arith.constant 0 : index
    %159 = vector.load %arg7[%c0_169, %c2_170, %c2_171, %c0_172] : memref<1x6x6x32xf32, #tpu.memory_space<vmem>>, vector<1x4x4x32xf32>
    %160 = vector.shape_cast %159 : vector<1x4x4x32xf32> to vector<16x32xf32>
    %161 = arith.truncf %160 : vector<16x32xf32> to vector<16x32xbf16>
    %c3_173 = arith.constant 3 : index
    %c3_174 = arith.constant 3 : index
    %c0_175 = arith.constant 0 : index
    %c0_176 = arith.constant 0 : index
    %162 = vector.load %arg4[%c3_173, %c3_174, %c0_175, %c0_176] : memref<4x4x32x16xbf16, #tpu.memory_space<vmem>>, vector<1x1x32x16xbf16>
    %163 = vector.shape_cast %162 : vector<1x1x32x16xbf16> to vector<32x16xbf16>
    %cst_177 = arith.constant dense<0.000000e+00> : vector<16x16xf32>
    %164 = tpu.matmul %161, %163, %cst_177 {dimension_numbers = #tpu.dot_dimension_numbers<[1], [0], [0], [1], [0, 0, 1, 1], [], []>} : vector<16x32xbf16>, vector<32x16xbf16>, vector<16x16xf32> -> vector<16x16xf32>
    %165 = arith.addf %158, %164 : vector<16x16xf32>
    %166 = arith.truncf %165 : vector<16x16xf32> to vector<16x16xbf16>
    %c3_178 = arith.constant 3 : index
    %c0_179 = arith.constant 0 : index
    %c0_180 = arith.constant 0 : index
    %167 = vector.load %arg5[%c3_178, %c0_179, %c0_180] : memref<4x16x16xbf16, #tpu.memory_space<vmem>>, vector<1x16x16xbf16>
    %168 = vector.shape_cast %167 : vector<1x16x16xbf16> to vector<16x16xbf16>
    %169 = vector.shape_cast %166 : vector<16x16xbf16> to vector<1x16x16xbf16>
    tpu.vector_store %arg5[%c3_178, %c0_179, %c0_180], %169 {strides = array<i32>} : memref<4x16x16xbf16, #tpu.memory_space<vmem>>, vector<1x16x16xbf16>,
    %cst_181 = arith.constant dense<0.000000e+00> : vector<16xf32>
    %170 = vector.multi_reduction <add>, %165, %cst_181 [0] : vector<16x16xf32> to vector<16xf32>
    %171 = vector.shape_cast %170 : vector<16xf32> to vector<1x16xf32>
    %172 = arith.addf %132, %171 : vector<1x16xf32>
    %173 = arith.mulf %165, %165 : vector<16x16xf32>
    %cst_182 = arith.constant dense<0.000000e+00> : vector<16xf32>
    %174 = vector.multi_reduction <add>, %173, %cst_182 [0] : vector<16x16xf32> to vector<16xf32>
    %175 = vector.shape_cast %174 : vector<16xf32> to vector<1x16xf32>
    %176 = arith.addf %136, %175 : vector<1x16xf32>
    %177 = tpu.concatenate %172, %176 in 0 : vector<1x16xf32>, vector<1x16xf32> -> vector<2x16xf32>
    %178 = vector.shape_cast %177 : vector<2x16xf32> to vector<1x2x16xf32>
    %c0_183 = arith.constant 0 : index
    %c0_184 = arith.constant 0 : index
    %c0_185 = arith.constant 0 : index
    %179 = vector.load %arg6[%c0_183, %c0_184, %c0_185] : memref<1x2x16xf32, #tpu.memory_space<vmem>>, vector<1x2x16xf32>
    tpu.vector_store %arg6[%c0_183, %c0_184, %c0_185], %178 {strides = array<i32>} : memref<1x2x16xf32, #tpu.memory_space<vmem>>, vector<1x2x16xf32>,
    return
  }
  func.func @transform_0(%arg0: i32) -> (i32, i32, i32, i32) {
    %c0_i32 = arith.constant 0 : i32
    %c0_i32_0 = arith.constant 0 : i32
    %c0_i32_1 = arith.constant 0 : i32
    %c0_i32_2 = arith.constant 0 : i32
    return %arg0, %c0_i32, %c0_i32_0, %c0_i32_1 : i32, i32, i32, i32
  }
  func.func @transform_1(%arg0: i32) -> (i32, i32) {
    %c0_i32 = arith.constant 0 : i32
    %c0_i32_0 = arith.constant 0 : i32
    %c0_i32_1 = arith.constant 0 : i32
    return %c0_i32, %c0_i32_0 : i32, i32
  }
  func.func @transform_2(%arg0: i32) -> (i32, i32) {
    %c0_i32 = arith.constant 0 : i32
    %c0_i32_0 = arith.constant 0 : i32
    %c0_i32_1 = arith.constant 0 : i32
    return %c0_i32, %c0_i32_0 : i32, i32
  }
  func.func @transform_3(%arg0: i32) -> (i32, i32, i32, i32) {
    %c0_i32 = arith.constant 0 : i32
    %c0_i32_0 = arith.constant 0 : i32
    %c0_i32_1 = arith.constant 0 : i32
    %c0_i32_2 = arith.constant 0 : i32
    %c0_i32_3 = arith.constant 0 : i32
    return %c0_i32, %c0_i32_0, %c0_i32_1, %c0_i32_2 : i32, i32, i32, i32
  }
  func.func @transform_4(%arg0: i32) -> (i32, i32, i32) {
    %c0_i32 = arith.constant 0 : i32
    %c0_i32_0 = arith.constant 0 : i32
    %c0_i32_1 = arith.constant 0 : i32
    return %c0_i32, %arg0, %c0_i32_0 : i32, i32, i32
  }
  func.func @transform_5(%arg0: i32) -> (i32, i32, i32) {
    %c0_i32 = arith.constant 0 : i32
    %c0_i32_0 = arith.constant 0 : i32
    %c0_i32_1 = arith.constant 0 : i32
    return %arg0, %c0_i32, %c0_i32_0 : i32, i32, i32
  }
}

module attributes {stable_mosaic.version = 11 : i64} {
  func.func @_up_kernel(%arg0: i32, %arg1: memref<1x8x8x16xbf16, #tpu.memory_space<vmem>>, %arg2: memref<1x16xf32, #tpu.memory_space<vmem>>, %arg3: memref<1x16xf32, #tpu.memory_space<vmem>>, %arg4: memref<4x4x16x8xbf16, #tpu.memory_space<vmem>>, %arg5: memref<4x64x8xbf16, #tpu.memory_space<vmem>>, %arg6: memref<1x2x8xf32, #tpu.memory_space<vmem>>, %arg7: memref<1x10x10x16xf32, #tpu.memory_space<vmem>>) attributes {dimension_semantics = [#tpu.dimension_semantics<parallel>], iteration_bounds = array<i64: 2>, scalar_prefetch = 0 : i64, scratch_operands = 1 : i64, tpu.core_type = #tpu.core_type<tc>, window_params = [{transform_indices = @transform_0, window_bounds = array<i64: 1, 8, 8, 16>}, {pipeline_mode = #tpu.pipeline_mode<synchronous>, transform_indices = @transform_1, window_bounds = array<i64: 1, 16>}, {pipeline_mode = #tpu.pipeline_mode<synchronous>, transform_indices = @transform_2, window_bounds = array<i64: 1, 16>}, {pipeline_mode = #tpu.pipeline_mode<synchronous>, transform_indices = @transform_3, window_bounds = array<i64: 4, 4, 16, 8>}, {transform_indices = @transform_4, window_bounds = array<i64: 4, 64, 8>}, {transform_indices = @transform_5, window_bounds = array<i64: 1, 2, 8>}]} {
    %cst = arith.constant 0.000000e+00 : f32
    %0 = vector.broadcast %cst : f32 to vector<1x10x10x16xf32>
    %c0 = arith.constant 0 : index
    %c0_0 = arith.constant 0 : index
    %c0_1 = arith.constant 0 : index
    %c0_2 = arith.constant 0 : index
    %1 = vector.load %arg7[%c0, %c0_0, %c0_1, %c0_2] : memref<1x10x10x16xf32, #tpu.memory_space<vmem>>, vector<1x10x10x16xf32>
    tpu.vector_store %arg7[%c0, %c0_0, %c0_1, %c0_2], %0 {strides = array<i32>} : memref<1x10x10x16xf32, #tpu.memory_space<vmem>>, vector<1x10x10x16xf32>,
    %c0_3 = arith.constant 0 : index
    %c0_4 = arith.constant 0 : index
    %c0_5 = arith.constant 0 : index
    %c0_6 = arith.constant 0 : index
    %2 = vector.load %arg1[%c0_3, %c0_4, %c0_5, %c0_6] : memref<1x8x8x16xbf16, #tpu.memory_space<vmem>>, vector<1x8x8x16xbf16>
    %3 = arith.extf %2 : vector<1x8x8x16xbf16> to vector<1x8x8x16xf32>
    %c0_7 = arith.constant 0 : index
    %c0_8 = arith.constant 0 : index
    %4 = vector.load %arg2[%c0_7, %c0_8] : memref<1x16xf32, #tpu.memory_space<vmem>>, vector<1x16xf32>
    %5 = vector.shape_cast %4 : vector<1x16xf32> to vector<1x1x1x16xf32>
    %6 = vector.broadcast %5 : vector<1x1x1x16xf32> to vector<1x8x8x16xf32>
    %7 = arith.mulf %3, %6 : vector<1x8x8x16xf32>
    %c0_9 = arith.constant 0 : index
    %c0_10 = arith.constant 0 : index
    %8 = vector.load %arg3[%c0_9, %c0_10] : memref<1x16xf32, #tpu.memory_space<vmem>>, vector<1x16xf32>
    %9 = vector.shape_cast %8 : vector<1x16xf32> to vector<1x1x1x16xf32>
    %10 = vector.broadcast %9 : vector<1x1x1x16xf32> to vector<1x8x8x16xf32>
    %11 = arith.addf %7, %10 : vector<1x8x8x16xf32>
    %cst_11 = arith.constant 0.000000e+00 : f32
    %12 = vector.broadcast %cst_11 : f32 to vector<1x8x8x16xf32>
    %13 = arith.maximumf %11, %12 : vector<1x8x8x16xf32>
    %c0_12 = arith.constant 0 : index
    %c1 = arith.constant 1 : index
    %c1_13 = arith.constant 1 : index
    %c0_14 = arith.constant 0 : index
    %14 = vector.load %arg7[%c0_12, %c1, %c1_13, %c0_14] : memref<1x10x10x16xf32, #tpu.memory_space<vmem>>, vector<1x8x8x16xf32>
    tpu.vector_store %arg7[%c0_12, %c1, %c1_13, %c0_14], %13 {strides = array<i32>} : memref<1x10x10x16xf32, #tpu.memory_space<vmem>>, vector<1x8x8x16xf32>,
    %cst_15 = arith.constant 0.000000e+00 : f32
    %15 = vector.broadcast %cst_15 : f32 to vector<1x8xf32>
    %cst_16 = arith.constant 0.000000e+00 : f32
    %16 = vector.broadcast %cst_16 : f32 to vector<1x8xf32>
    %cst_17 = arith.constant 0.000000e+00 : f32
    %17 = vector.broadcast %cst_17 : f32 to vector<64x8xf32>
    %c0_18 = arith.constant 0 : index
    %c0_19 = arith.constant 0 : index
    %c0_20 = arith.constant 0 : index
    %c0_21 = arith.constant 0 : index
    %18 = vector.load %arg7[%c0_18, %c0_19, %c0_20, %c0_21] : memref<1x10x10x16xf32, #tpu.memory_space<vmem>>, vector<1x8x8x16xf32>
    %19 = vector.shape_cast %18 : vector<1x8x8x16xf32> to vector<64x16xf32>
    %20 = arith.truncf %19 : vector<64x16xf32> to vector<64x16xbf16>
    %c0_22 = arith.constant 0 : index
    %c0_23 = arith.constant 0 : index
    %c0_24 = arith.constant 0 : index
    %c0_25 = arith.constant 0 : index
    %21 = vector.load %arg4[%c0_22, %c0_23, %c0_24, %c0_25] : memref<4x4x16x8xbf16, #tpu.memory_space<vmem>>, vector<1x1x16x8xbf16>
    %22 = vector.shape_cast %21 : vector<1x1x16x8xbf16> to vector<16x8xbf16>
    %cst_26 = arith.constant dense<0.000000e+00> : vector<64x8xf32>
    %23 = tpu.matmul %20, %22, %cst_26 {dimension_numbers = #tpu.dot_dimension_numbers<[1], [0], [0], [1], [0, 0, 1, 1], [], []>} : vector<64x16xbf16>, vector<16x8xbf16>, vector<64x8xf32> -> vector<64x8xf32>
    %24 = arith.addf %17, %23 : vector<64x8xf32>
    %c0_27 = arith.constant 0 : index
    %c0_28 = arith.constant 0 : index
    %c1_29 = arith.constant 1 : index
    %c0_30 = arith.constant 0 : index
    %25 = vector.load %arg7[%c0_27, %c0_28, %c1_29, %c0_30] : memref<1x10x10x16xf32, #tpu.memory_space<vmem>>, vector<1x8x8x16xf32>
    %26 = vector.shape_cast %25 : vector<1x8x8x16xf32> to vector<64x16xf32>
    %27 = arith.truncf %26 : vector<64x16xf32> to vector<64x16xbf16>
    %c0_31 = arith.constant 0 : index
    %c1_32 = arith.constant 1 : index
    %c0_33 = arith.constant 0 : index
    %c0_34 = arith.constant 0 : index
    %28 = vector.load %arg4[%c0_31, %c1_32, %c0_33, %c0_34] : memref<4x4x16x8xbf16, #tpu.memory_space<vmem>>, vector<1x1x16x8xbf16>
    %29 = vector.shape_cast %28 : vector<1x1x16x8xbf16> to vector<16x8xbf16>
    %cst_35 = arith.constant dense<0.000000e+00> : vector<64x8xf32>
    %30 = tpu.matmul %27, %29, %cst_35 {dimension_numbers = #tpu.dot_dimension_numbers<[1], [0], [0], [1], [0, 0, 1, 1], [], []>} : vector<64x16xbf16>, vector<16x8xbf16>, vector<64x8xf32> -> vector<64x8xf32>
    %31 = arith.addf %24, %30 : vector<64x8xf32>
    %c0_36 = arith.constant 0 : index
    %c1_37 = arith.constant 1 : index
    %c0_38 = arith.constant 0 : index
    %c0_39 = arith.constant 0 : index
    %32 = vector.load %arg7[%c0_36, %c1_37, %c0_38, %c0_39] : memref<1x10x10x16xf32, #tpu.memory_space<vmem>>, vector<1x8x8x16xf32>
    %33 = vector.shape_cast %32 : vector<1x8x8x16xf32> to vector<64x16xf32>
    %34 = arith.truncf %33 : vector<64x16xf32> to vector<64x16xbf16>
    %c0_40 = arith.constant 0 : index
    %c2 = arith.constant 2 : index
    %c0_41 = arith.constant 0 : index
    %c0_42 = arith.constant 0 : index
    %35 = vector.load %arg4[%c0_40, %c2, %c0_41, %c0_42] : memref<4x4x16x8xbf16, #tpu.memory_space<vmem>>, vector<1x1x16x8xbf16>
    %36 = vector.shape_cast %35 : vector<1x1x16x8xbf16> to vector<16x8xbf16>
    %cst_43 = arith.constant dense<0.000000e+00> : vector<64x8xf32>
    %37 = tpu.matmul %34, %36, %cst_43 {dimension_numbers = #tpu.dot_dimension_numbers<[1], [0], [0], [1], [0, 0, 1, 1], [], []>} : vector<64x16xbf16>, vector<16x8xbf16>, vector<64x8xf32> -> vector<64x8xf32>
    %38 = arith.addf %31, %37 : vector<64x8xf32>
    %c0_44 = arith.constant 0 : index
    %c1_45 = arith.constant 1 : index
    %c1_46 = arith.constant 1 : index
    %c0_47 = arith.constant 0 : index
    %39 = vector.load %arg7[%c0_44, %c1_45, %c1_46, %c0_47] : memref<1x10x10x16xf32, #tpu.memory_space<vmem>>, vector<1x8x8x16xf32>
    %40 = vector.shape_cast %39 : vector<1x8x8x16xf32> to vector<64x16xf32>
    %41 = arith.truncf %40 : vector<64x16xf32> to vector<64x16xbf16>
    %c0_48 = arith.constant 0 : index
    %c3 = arith.constant 3 : index
    %c0_49 = arith.constant 0 : index
    %c0_50 = arith.constant 0 : index
    %42 = vector.load %arg4[%c0_48, %c3, %c0_49, %c0_50] : memref<4x4x16x8xbf16, #tpu.memory_space<vmem>>, vector<1x1x16x8xbf16>
    %43 = vector.shape_cast %42 : vector<1x1x16x8xbf16> to vector<16x8xbf16>
    %cst_51 = arith.constant dense<0.000000e+00> : vector<64x8xf32>
    %44 = tpu.matmul %41, %43, %cst_51 {dimension_numbers = #tpu.dot_dimension_numbers<[1], [0], [0], [1], [0, 0, 1, 1], [], []>} : vector<64x16xbf16>, vector<16x8xbf16>, vector<64x8xf32> -> vector<64x8xf32>
    %45 = arith.addf %38, %44 : vector<64x8xf32>
    %46 = arith.truncf %45 : vector<64x8xf32> to vector<64x8xbf16>
    %c0_52 = arith.constant 0 : index
    %c0_53 = arith.constant 0 : index
    %c0_54 = arith.constant 0 : index
    %47 = vector.load %arg5[%c0_52, %c0_53, %c0_54] : memref<4x64x8xbf16, #tpu.memory_space<vmem>>, vector<1x64x8xbf16>
    %48 = vector.shape_cast %47 : vector<1x64x8xbf16> to vector<64x8xbf16>
    %49 = vector.shape_cast %46 : vector<64x8xbf16> to vector<1x64x8xbf16>
    tpu.vector_store %arg5[%c0_52, %c0_53, %c0_54], %49 {strides = array<i32>} : memref<4x64x8xbf16, #tpu.memory_space<vmem>>, vector<1x64x8xbf16>,
    %cst_55 = arith.constant dense<0.000000e+00> : vector<8xf32>
    %50 = vector.multi_reduction <add>, %45, %cst_55 [0] : vector<64x8xf32> to vector<8xf32>
    %51 = vector.shape_cast %50 : vector<8xf32> to vector<1x8xf32>
    %52 = arith.addf %15, %51 : vector<1x8xf32>
    %53 = arith.mulf %45, %45 : vector<64x8xf32>
    %cst_56 = arith.constant dense<0.000000e+00> : vector<8xf32>
    %54 = vector.multi_reduction <add>, %53, %cst_56 [0] : vector<64x8xf32> to vector<8xf32>
    %55 = vector.shape_cast %54 : vector<8xf32> to vector<1x8xf32>
    %56 = arith.addf %16, %55 : vector<1x8xf32>
    %cst_57 = arith.constant 0.000000e+00 : f32
    %57 = vector.broadcast %cst_57 : f32 to vector<64x8xf32>
    %c0_58 = arith.constant 0 : index
    %c0_59 = arith.constant 0 : index
    %c1_60 = arith.constant 1 : index
    %c0_61 = arith.constant 0 : index
    %58 = vector.load %arg7[%c0_58, %c0_59, %c1_60, %c0_61] : memref<1x10x10x16xf32, #tpu.memory_space<vmem>>, vector<1x8x8x16xf32>
    %59 = vector.shape_cast %58 : vector<1x8x8x16xf32> to vector<64x16xf32>
    %60 = arith.truncf %59 : vector<64x16xf32> to vector<64x16xbf16>
    %c1_62 = arith.constant 1 : index
    %c0_63 = arith.constant 0 : index
    %c0_64 = arith.constant 0 : index
    %c0_65 = arith.constant 0 : index
    %61 = vector.load %arg4[%c1_62, %c0_63, %c0_64, %c0_65] : memref<4x4x16x8xbf16, #tpu.memory_space<vmem>>, vector<1x1x16x8xbf16>
    %62 = vector.shape_cast %61 : vector<1x1x16x8xbf16> to vector<16x8xbf16>
    %cst_66 = arith.constant dense<0.000000e+00> : vector<64x8xf32>
    %63 = tpu.matmul %60, %62, %cst_66 {dimension_numbers = #tpu.dot_dimension_numbers<[1], [0], [0], [1], [0, 0, 1, 1], [], []>} : vector<64x16xbf16>, vector<16x8xbf16>, vector<64x8xf32> -> vector<64x8xf32>
    %64 = arith.addf %57, %63 : vector<64x8xf32>
    %c0_67 = arith.constant 0 : index
    %c0_68 = arith.constant 0 : index
    %c2_69 = arith.constant 2 : index
    %c0_70 = arith.constant 0 : index
    %65 = vector.load %arg7[%c0_67, %c0_68, %c2_69, %c0_70] : memref<1x10x10x16xf32, #tpu.memory_space<vmem>>, vector<1x8x8x16xf32>
    %66 = vector.shape_cast %65 : vector<1x8x8x16xf32> to vector<64x16xf32>
    %67 = arith.truncf %66 : vector<64x16xf32> to vector<64x16xbf16>
    %c1_71 = arith.constant 1 : index
    %c1_72 = arith.constant 1 : index
    %c0_73 = arith.constant 0 : index
    %c0_74 = arith.constant 0 : index
    %68 = vector.load %arg4[%c1_71, %c1_72, %c0_73, %c0_74] : memref<4x4x16x8xbf16, #tpu.memory_space<vmem>>, vector<1x1x16x8xbf16>
    %69 = vector.shape_cast %68 : vector<1x1x16x8xbf16> to vector<16x8xbf16>
    %cst_75 = arith.constant dense<0.000000e+00> : vector<64x8xf32>
    %70 = tpu.matmul %67, %69, %cst_75 {dimension_numbers = #tpu.dot_dimension_numbers<[1], [0], [0], [1], [0, 0, 1, 1], [], []>} : vector<64x16xbf16>, vector<16x8xbf16>, vector<64x8xf32> -> vector<64x8xf32>
    %71 = arith.addf %64, %70 : vector<64x8xf32>
    %c0_76 = arith.constant 0 : index
    %c1_77 = arith.constant 1 : index
    %c1_78 = arith.constant 1 : index
    %c0_79 = arith.constant 0 : index
    %72 = vector.load %arg7[%c0_76, %c1_77, %c1_78, %c0_79] : memref<1x10x10x16xf32, #tpu.memory_space<vmem>>, vector<1x8x8x16xf32>
    %73 = vector.shape_cast %72 : vector<1x8x8x16xf32> to vector<64x16xf32>
    %74 = arith.truncf %73 : vector<64x16xf32> to vector<64x16xbf16>
    %c1_80 = arith.constant 1 : index
    %c2_81 = arith.constant 2 : index
    %c0_82 = arith.constant 0 : index
    %c0_83 = arith.constant 0 : index
    %75 = vector.load %arg4[%c1_80, %c2_81, %c0_82, %c0_83] : memref<4x4x16x8xbf16, #tpu.memory_space<vmem>>, vector<1x1x16x8xbf16>
    %76 = vector.shape_cast %75 : vector<1x1x16x8xbf16> to vector<16x8xbf16>
    %cst_84 = arith.constant dense<0.000000e+00> : vector<64x8xf32>
    %77 = tpu.matmul %74, %76, %cst_84 {dimension_numbers = #tpu.dot_dimension_numbers<[1], [0], [0], [1], [0, 0, 1, 1], [], []>} : vector<64x16xbf16>, vector<16x8xbf16>, vector<64x8xf32> -> vector<64x8xf32>
    %78 = arith.addf %71, %77 : vector<64x8xf32>
    %c0_85 = arith.constant 0 : index
    %c1_86 = arith.constant 1 : index
    %c2_87 = arith.constant 2 : index
    %c0_88 = arith.constant 0 : index
    %79 = vector.load %arg7[%c0_85, %c1_86, %c2_87, %c0_88] : memref<1x10x10x16xf32, #tpu.memory_space<vmem>>, vector<1x8x8x16xf32>
    %80 = vector.shape_cast %79 : vector<1x8x8x16xf32> to vector<64x16xf32>
    %81 = arith.truncf %80 : vector<64x16xf32> to vector<64x16xbf16>
    %c1_89 = arith.constant 1 : index
    %c3_90 = arith.constant 3 : index
    %c0_91 = arith.constant 0 : index
    %c0_92 = arith.constant 0 : index
    %82 = vector.load %arg4[%c1_89, %c3_90, %c0_91, %c0_92] : memref<4x4x16x8xbf16, #tpu.memory_space<vmem>>, vector<1x1x16x8xbf16>
    %83 = vector.shape_cast %82 : vector<1x1x16x8xbf16> to vector<16x8xbf16>
    %cst_93 = arith.constant dense<0.000000e+00> : vector<64x8xf32>
    %84 = tpu.matmul %81, %83, %cst_93 {dimension_numbers = #tpu.dot_dimension_numbers<[1], [0], [0], [1], [0, 0, 1, 1], [], []>} : vector<64x16xbf16>, vector<16x8xbf16>, vector<64x8xf32> -> vector<64x8xf32>
    %85 = arith.addf %78, %84 : vector<64x8xf32>
    %86 = arith.truncf %85 : vector<64x8xf32> to vector<64x8xbf16>
    %c1_94 = arith.constant 1 : index
    %c0_95 = arith.constant 0 : index
    %c0_96 = arith.constant 0 : index
    %87 = vector.load %arg5[%c1_94, %c0_95, %c0_96] : memref<4x64x8xbf16, #tpu.memory_space<vmem>>, vector<1x64x8xbf16>
    %88 = vector.shape_cast %87 : vector<1x64x8xbf16> to vector<64x8xbf16>
    %89 = vector.shape_cast %86 : vector<64x8xbf16> to vector<1x64x8xbf16>
    tpu.vector_store %arg5[%c1_94, %c0_95, %c0_96], %89 {strides = array<i32>} : memref<4x64x8xbf16, #tpu.memory_space<vmem>>, vector<1x64x8xbf16>,
    %cst_97 = arith.constant dense<0.000000e+00> : vector<8xf32>
    %90 = vector.multi_reduction <add>, %85, %cst_97 [0] : vector<64x8xf32> to vector<8xf32>
    %91 = vector.shape_cast %90 : vector<8xf32> to vector<1x8xf32>
    %92 = arith.addf %52, %91 : vector<1x8xf32>
    %93 = arith.mulf %85, %85 : vector<64x8xf32>
    %cst_98 = arith.constant dense<0.000000e+00> : vector<8xf32>
    %94 = vector.multi_reduction <add>, %93, %cst_98 [0] : vector<64x8xf32> to vector<8xf32>
    %95 = vector.shape_cast %94 : vector<8xf32> to vector<1x8xf32>
    %96 = arith.addf %56, %95 : vector<1x8xf32>
    %cst_99 = arith.constant 0.000000e+00 : f32
    %97 = vector.broadcast %cst_99 : f32 to vector<64x8xf32>
    %c0_100 = arith.constant 0 : index
    %c1_101 = arith.constant 1 : index
    %c0_102 = arith.constant 0 : index
    %c0_103 = arith.constant 0 : index
    %98 = vector.load %arg7[%c0_100, %c1_101, %c0_102, %c0_103] : memref<1x10x10x16xf32, #tpu.memory_space<vmem>>, vector<1x8x8x16xf32>
    %99 = vector.shape_cast %98 : vector<1x8x8x16xf32> to vector<64x16xf32>
    %100 = arith.truncf %99 : vector<64x16xf32> to vector<64x16xbf16>
    %c2_104 = arith.constant 2 : index
    %c0_105 = arith.constant 0 : index
    %c0_106 = arith.constant 0 : index
    %c0_107 = arith.constant 0 : index
    %101 = vector.load %arg4[%c2_104, %c0_105, %c0_106, %c0_107] : memref<4x4x16x8xbf16, #tpu.memory_space<vmem>>, vector<1x1x16x8xbf16>
    %102 = vector.shape_cast %101 : vector<1x1x16x8xbf16> to vector<16x8xbf16>
    %cst_108 = arith.constant dense<0.000000e+00> : vector<64x8xf32>
    %103 = tpu.matmul %100, %102, %cst_108 {dimension_numbers = #tpu.dot_dimension_numbers<[1], [0], [0], [1], [0, 0, 1, 1], [], []>} : vector<64x16xbf16>, vector<16x8xbf16>, vector<64x8xf32> -> vector<64x8xf32>
    %104 = arith.addf %97, %103 : vector<64x8xf32>
    %c0_109 = arith.constant 0 : index
    %c1_110 = arith.constant 1 : index
    %c1_111 = arith.constant 1 : index
    %c0_112 = arith.constant 0 : index
    %105 = vector.load %arg7[%c0_109, %c1_110, %c1_111, %c0_112] : memref<1x10x10x16xf32, #tpu.memory_space<vmem>>, vector<1x8x8x16xf32>
    %106 = vector.shape_cast %105 : vector<1x8x8x16xf32> to vector<64x16xf32>
    %107 = arith.truncf %106 : vector<64x16xf32> to vector<64x16xbf16>
    %c2_113 = arith.constant 2 : index
    %c1_114 = arith.constant 1 : index
    %c0_115 = arith.constant 0 : index
    %c0_116 = arith.constant 0 : index
    %108 = vector.load %arg4[%c2_113, %c1_114, %c0_115, %c0_116] : memref<4x4x16x8xbf16, #tpu.memory_space<vmem>>, vector<1x1x16x8xbf16>
    %109 = vector.shape_cast %108 : vector<1x1x16x8xbf16> to vector<16x8xbf16>
    %cst_117 = arith.constant dense<0.000000e+00> : vector<64x8xf32>
    %110 = tpu.matmul %107, %109, %cst_117 {dimension_numbers = #tpu.dot_dimension_numbers<[1], [0], [0], [1], [0, 0, 1, 1], [], []>} : vector<64x16xbf16>, vector<16x8xbf16>, vector<64x8xf32> -> vector<64x8xf32>
    %111 = arith.addf %104, %110 : vector<64x8xf32>
    %c0_118 = arith.constant 0 : index
    %c2_119 = arith.constant 2 : index
    %c0_120 = arith.constant 0 : index
    %c0_121 = arith.constant 0 : index
    %112 = vector.load %arg7[%c0_118, %c2_119, %c0_120, %c0_121] : memref<1x10x10x16xf32, #tpu.memory_space<vmem>>, vector<1x8x8x16xf32>
    %113 = vector.shape_cast %112 : vector<1x8x8x16xf32> to vector<64x16xf32>
    %114 = arith.truncf %113 : vector<64x16xf32> to vector<64x16xbf16>
    %c2_122 = arith.constant 2 : index
    %c2_123 = arith.constant 2 : index
    %c0_124 = arith.constant 0 : index
    %c0_125 = arith.constant 0 : index
    %115 = vector.load %arg4[%c2_122, %c2_123, %c0_124, %c0_125] : memref<4x4x16x8xbf16, #tpu.memory_space<vmem>>, vector<1x1x16x8xbf16>
    %116 = vector.shape_cast %115 : vector<1x1x16x8xbf16> to vector<16x8xbf16>
    %cst_126 = arith.constant dense<0.000000e+00> : vector<64x8xf32>
    %117 = tpu.matmul %114, %116, %cst_126 {dimension_numbers = #tpu.dot_dimension_numbers<[1], [0], [0], [1], [0, 0, 1, 1], [], []>} : vector<64x16xbf16>, vector<16x8xbf16>, vector<64x8xf32> -> vector<64x8xf32>
    %118 = arith.addf %111, %117 : vector<64x8xf32>
    %c0_127 = arith.constant 0 : index
    %c2_128 = arith.constant 2 : index
    %c1_129 = arith.constant 1 : index
    %c0_130 = arith.constant 0 : index
    %119 = vector.load %arg7[%c0_127, %c2_128, %c1_129, %c0_130] : memref<1x10x10x16xf32, #tpu.memory_space<vmem>>, vector<1x8x8x16xf32>
    %120 = vector.shape_cast %119 : vector<1x8x8x16xf32> to vector<64x16xf32>
    %121 = arith.truncf %120 : vector<64x16xf32> to vector<64x16xbf16>
    %c2_131 = arith.constant 2 : index
    %c3_132 = arith.constant 3 : index
    %c0_133 = arith.constant 0 : index
    %c0_134 = arith.constant 0 : index
    %122 = vector.load %arg4[%c2_131, %c3_132, %c0_133, %c0_134] : memref<4x4x16x8xbf16, #tpu.memory_space<vmem>>, vector<1x1x16x8xbf16>
    %123 = vector.shape_cast %122 : vector<1x1x16x8xbf16> to vector<16x8xbf16>
    %cst_135 = arith.constant dense<0.000000e+00> : vector<64x8xf32>
    %124 = tpu.matmul %121, %123, %cst_135 {dimension_numbers = #tpu.dot_dimension_numbers<[1], [0], [0], [1], [0, 0, 1, 1], [], []>} : vector<64x16xbf16>, vector<16x8xbf16>, vector<64x8xf32> -> vector<64x8xf32>
    %125 = arith.addf %118, %124 : vector<64x8xf32>
    %126 = arith.truncf %125 : vector<64x8xf32> to vector<64x8xbf16>
    %c2_136 = arith.constant 2 : index
    %c0_137 = arith.constant 0 : index
    %c0_138 = arith.constant 0 : index
    %127 = vector.load %arg5[%c2_136, %c0_137, %c0_138] : memref<4x64x8xbf16, #tpu.memory_space<vmem>>, vector<1x64x8xbf16>
    %128 = vector.shape_cast %127 : vector<1x64x8xbf16> to vector<64x8xbf16>
    %129 = vector.shape_cast %126 : vector<64x8xbf16> to vector<1x64x8xbf16>
    tpu.vector_store %arg5[%c2_136, %c0_137, %c0_138], %129 {strides = array<i32>} : memref<4x64x8xbf16, #tpu.memory_space<vmem>>, vector<1x64x8xbf16>,
    %cst_139 = arith.constant dense<0.000000e+00> : vector<8xf32>
    %130 = vector.multi_reduction <add>, %125, %cst_139 [0] : vector<64x8xf32> to vector<8xf32>
    %131 = vector.shape_cast %130 : vector<8xf32> to vector<1x8xf32>
    %132 = arith.addf %92, %131 : vector<1x8xf32>
    %133 = arith.mulf %125, %125 : vector<64x8xf32>
    %cst_140 = arith.constant dense<0.000000e+00> : vector<8xf32>
    %134 = vector.multi_reduction <add>, %133, %cst_140 [0] : vector<64x8xf32> to vector<8xf32>
    %135 = vector.shape_cast %134 : vector<8xf32> to vector<1x8xf32>
    %136 = arith.addf %96, %135 : vector<1x8xf32>
    %cst_141 = arith.constant 0.000000e+00 : f32
    %137 = vector.broadcast %cst_141 : f32 to vector<64x8xf32>
    %c0_142 = arith.constant 0 : index
    %c1_143 = arith.constant 1 : index
    %c1_144 = arith.constant 1 : index
    %c0_145 = arith.constant 0 : index
    %138 = vector.load %arg7[%c0_142, %c1_143, %c1_144, %c0_145] : memref<1x10x10x16xf32, #tpu.memory_space<vmem>>, vector<1x8x8x16xf32>
    %139 = vector.shape_cast %138 : vector<1x8x8x16xf32> to vector<64x16xf32>
    %140 = arith.truncf %139 : vector<64x16xf32> to vector<64x16xbf16>
    %c3_146 = arith.constant 3 : index
    %c0_147 = arith.constant 0 : index
    %c0_148 = arith.constant 0 : index
    %c0_149 = arith.constant 0 : index
    %141 = vector.load %arg4[%c3_146, %c0_147, %c0_148, %c0_149] : memref<4x4x16x8xbf16, #tpu.memory_space<vmem>>, vector<1x1x16x8xbf16>
    %142 = vector.shape_cast %141 : vector<1x1x16x8xbf16> to vector<16x8xbf16>
    %cst_150 = arith.constant dense<0.000000e+00> : vector<64x8xf32>
    %143 = tpu.matmul %140, %142, %cst_150 {dimension_numbers = #tpu.dot_dimension_numbers<[1], [0], [0], [1], [0, 0, 1, 1], [], []>} : vector<64x16xbf16>, vector<16x8xbf16>, vector<64x8xf32> -> vector<64x8xf32>
    %144 = arith.addf %137, %143 : vector<64x8xf32>
    %c0_151 = arith.constant 0 : index
    %c1_152 = arith.constant 1 : index
    %c2_153 = arith.constant 2 : index
    %c0_154 = arith.constant 0 : index
    %145 = vector.load %arg7[%c0_151, %c1_152, %c2_153, %c0_154] : memref<1x10x10x16xf32, #tpu.memory_space<vmem>>, vector<1x8x8x16xf32>
    %146 = vector.shape_cast %145 : vector<1x8x8x16xf32> to vector<64x16xf32>
    %147 = arith.truncf %146 : vector<64x16xf32> to vector<64x16xbf16>
    %c3_155 = arith.constant 3 : index
    %c1_156 = arith.constant 1 : index
    %c0_157 = arith.constant 0 : index
    %c0_158 = arith.constant 0 : index
    %148 = vector.load %arg4[%c3_155, %c1_156, %c0_157, %c0_158] : memref<4x4x16x8xbf16, #tpu.memory_space<vmem>>, vector<1x1x16x8xbf16>
    %149 = vector.shape_cast %148 : vector<1x1x16x8xbf16> to vector<16x8xbf16>
    %cst_159 = arith.constant dense<0.000000e+00> : vector<64x8xf32>
    %150 = tpu.matmul %147, %149, %cst_159 {dimension_numbers = #tpu.dot_dimension_numbers<[1], [0], [0], [1], [0, 0, 1, 1], [], []>} : vector<64x16xbf16>, vector<16x8xbf16>, vector<64x8xf32> -> vector<64x8xf32>
    %151 = arith.addf %144, %150 : vector<64x8xf32>
    %c0_160 = arith.constant 0 : index
    %c2_161 = arith.constant 2 : index
    %c1_162 = arith.constant 1 : index
    %c0_163 = arith.constant 0 : index
    %152 = vector.load %arg7[%c0_160, %c2_161, %c1_162, %c0_163] : memref<1x10x10x16xf32, #tpu.memory_space<vmem>>, vector<1x8x8x16xf32>
    %153 = vector.shape_cast %152 : vector<1x8x8x16xf32> to vector<64x16xf32>
    %154 = arith.truncf %153 : vector<64x16xf32> to vector<64x16xbf16>
    %c3_164 = arith.constant 3 : index
    %c2_165 = arith.constant 2 : index
    %c0_166 = arith.constant 0 : index
    %c0_167 = arith.constant 0 : index
    %155 = vector.load %arg4[%c3_164, %c2_165, %c0_166, %c0_167] : memref<4x4x16x8xbf16, #tpu.memory_space<vmem>>, vector<1x1x16x8xbf16>
    %156 = vector.shape_cast %155 : vector<1x1x16x8xbf16> to vector<16x8xbf16>
    %cst_168 = arith.constant dense<0.000000e+00> : vector<64x8xf32>
    %157 = tpu.matmul %154, %156, %cst_168 {dimension_numbers = #tpu.dot_dimension_numbers<[1], [0], [0], [1], [0, 0, 1, 1], [], []>} : vector<64x16xbf16>, vector<16x8xbf16>, vector<64x8xf32> -> vector<64x8xf32>
    %158 = arith.addf %151, %157 : vector<64x8xf32>
    %c0_169 = arith.constant 0 : index
    %c2_170 = arith.constant 2 : index
    %c2_171 = arith.constant 2 : index
    %c0_172 = arith.constant 0 : index
    %159 = vector.load %arg7[%c0_169, %c2_170, %c2_171, %c0_172] : memref<1x10x10x16xf32, #tpu.memory_space<vmem>>, vector<1x8x8x16xf32>
    %160 = vector.shape_cast %159 : vector<1x8x8x16xf32> to vector<64x16xf32>
    %161 = arith.truncf %160 : vector<64x16xf32> to vector<64x16xbf16>
    %c3_173 = arith.constant 3 : index
    %c3_174 = arith.constant 3 : index
    %c0_175 = arith.constant 0 : index
    %c0_176 = arith.constant 0 : index
    %162 = vector.load %arg4[%c3_173, %c3_174, %c0_175, %c0_176] : memref<4x4x16x8xbf16, #tpu.memory_space<vmem>>, vector<1x1x16x8xbf16>
    %163 = vector.shape_cast %162 : vector<1x1x16x8xbf16> to vector<16x8xbf16>
    %cst_177 = arith.constant dense<0.000000e+00> : vector<64x8xf32>
    %164 = tpu.matmul %161, %163, %cst_177 {dimension_numbers = #tpu.dot_dimension_numbers<[1], [0], [0], [1], [0, 0, 1, 1], [], []>} : vector<64x16xbf16>, vector<16x8xbf16>, vector<64x8xf32> -> vector<64x8xf32>
    %165 = arith.addf %158, %164 : vector<64x8xf32>
    %166 = arith.truncf %165 : vector<64x8xf32> to vector<64x8xbf16>
    %c3_178 = arith.constant 3 : index
    %c0_179 = arith.constant 0 : index
    %c0_180 = arith.constant 0 : index
    %167 = vector.load %arg5[%c3_178, %c0_179, %c0_180] : memref<4x64x8xbf16, #tpu.memory_space<vmem>>, vector<1x64x8xbf16>
    %168 = vector.shape_cast %167 : vector<1x64x8xbf16> to vector<64x8xbf16>
    %169 = vector.shape_cast %166 : vector<64x8xbf16> to vector<1x64x8xbf16>
    tpu.vector_store %arg5[%c3_178, %c0_179, %c0_180], %169 {strides = array<i32>} : memref<4x64x8xbf16, #tpu.memory_space<vmem>>, vector<1x64x8xbf16>,
    %cst_181 = arith.constant dense<0.000000e+00> : vector<8xf32>
    %170 = vector.multi_reduction <add>, %165, %cst_181 [0] : vector<64x8xf32> to vector<8xf32>
    %171 = vector.shape_cast %170 : vector<8xf32> to vector<1x8xf32>
    %172 = arith.addf %132, %171 : vector<1x8xf32>
    %173 = arith.mulf %165, %165 : vector<64x8xf32>
    %cst_182 = arith.constant dense<0.000000e+00> : vector<8xf32>
    %174 = vector.multi_reduction <add>, %173, %cst_182 [0] : vector<64x8xf32> to vector<8xf32>
    %175 = vector.shape_cast %174 : vector<8xf32> to vector<1x8xf32>
    %176 = arith.addf %136, %175 : vector<1x8xf32>
    %177 = tpu.concatenate %172, %176 in 0 : vector<1x8xf32>, vector<1x8xf32> -> vector<2x8xf32>
    %178 = vector.shape_cast %177 : vector<2x8xf32> to vector<1x2x8xf32>
    %c0_183 = arith.constant 0 : index
    %c0_184 = arith.constant 0 : index
    %c0_185 = arith.constant 0 : index
    %179 = vector.load %arg6[%c0_183, %c0_184, %c0_185] : memref<1x2x8xf32, #tpu.memory_space<vmem>>, vector<1x2x8xf32>
    tpu.vector_store %arg6[%c0_183, %c0_184, %c0_185], %178 {strides = array<i32>} : memref<1x2x8xf32, #tpu.memory_space<vmem>>, vector<1x2x8xf32>,
    return
  }
  func.func @transform_0(%arg0: i32) -> (i32, i32, i32, i32) {
    %c0_i32 = arith.constant 0 : i32
    %c0_i32_0 = arith.constant 0 : i32
    %c0_i32_1 = arith.constant 0 : i32
    %c0_i32_2 = arith.constant 0 : i32
    return %arg0, %c0_i32, %c0_i32_0, %c0_i32_1 : i32, i32, i32, i32
  }
  func.func @transform_1(%arg0: i32) -> (i32, i32) {
    %c0_i32 = arith.constant 0 : i32
    %c0_i32_0 = arith.constant 0 : i32
    %c0_i32_1 = arith.constant 0 : i32
    return %c0_i32, %c0_i32_0 : i32, i32
  }
  func.func @transform_2(%arg0: i32) -> (i32, i32) {
    %c0_i32 = arith.constant 0 : i32
    %c0_i32_0 = arith.constant 0 : i32
    %c0_i32_1 = arith.constant 0 : i32
    return %c0_i32, %c0_i32_0 : i32, i32
  }
  func.func @transform_3(%arg0: i32) -> (i32, i32, i32, i32) {
    %c0_i32 = arith.constant 0 : i32
    %c0_i32_0 = arith.constant 0 : i32
    %c0_i32_1 = arith.constant 0 : i32
    %c0_i32_2 = arith.constant 0 : i32
    %c0_i32_3 = arith.constant 0 : i32
    return %c0_i32, %c0_i32_0, %c0_i32_1, %c0_i32_2 : i32, i32, i32, i32
  }
  func.func @transform_4(%arg0: i32) -> (i32, i32, i32) {
    %c0_i32 = arith.constant 0 : i32
    %c0_i32_0 = arith.constant 0 : i32
    %c0_i32_1 = arith.constant 0 : i32
    return %c0_i32, %arg0, %c0_i32_0 : i32, i32, i32
  }
  func.func @transform_5(%arg0: i32) -> (i32, i32, i32) {
    %c0_i32 = arith.constant 0 : i32
    %c0_i32_0 = arith.constant 0 : i32
    %c0_i32_1 = arith.constant 0 : i32
    return %arg0, %c0_i32, %c0_i32_0 : i32, i32, i32
  }
}

module attributes {stable_mosaic.version = 11 : i64} {
  func.func @_final_kernel(%arg0: i32, %arg1: memref<1x16x16x8xbf16, #tpu.memory_space<vmem>>, %arg2: memref<1x8xf32, #tpu.memory_space<vmem>>, %arg3: memref<1x8xf32, #tpu.memory_space<vmem>>, %arg4: memref<4x4x8x8xbf16, #tpu.memory_space<vmem>>, %arg5: memref<4x8x256xf32, #tpu.memory_space<vmem>>, %arg6: memref<1x18x18x8xf32, #tpu.memory_space<vmem>>) attributes {dimension_semantics = [#tpu.dimension_semantics<parallel>], iteration_bounds = array<i64: 2>, scalar_prefetch = 0 : i64, scratch_operands = 1 : i64, tpu.core_type = #tpu.core_type<tc>, window_params = [{transform_indices = @transform_0, window_bounds = array<i64: 1, 16, 16, 8>}, {pipeline_mode = #tpu.pipeline_mode<synchronous>, transform_indices = @transform_1, window_bounds = array<i64: 1, 8>}, {pipeline_mode = #tpu.pipeline_mode<synchronous>, transform_indices = @transform_2, window_bounds = array<i64: 1, 8>}, {pipeline_mode = #tpu.pipeline_mode<synchronous>, transform_indices = @transform_3, window_bounds = array<i64: 4, 4, 8, 8>}, {transform_indices = @transform_4, window_bounds = array<i64: 4, 8, 256>}]} {
    %cst = arith.constant 0.000000e+00 : f32
    %0 = vector.broadcast %cst : f32 to vector<1x18x18x8xf32>
    %c0 = arith.constant 0 : index
    %c0_0 = arith.constant 0 : index
    %c0_1 = arith.constant 0 : index
    %c0_2 = arith.constant 0 : index
    %1 = vector.load %arg6[%c0, %c0_0, %c0_1, %c0_2] : memref<1x18x18x8xf32, #tpu.memory_space<vmem>>, vector<1x18x18x8xf32>
    tpu.vector_store %arg6[%c0, %c0_0, %c0_1, %c0_2], %0 {strides = array<i32>} : memref<1x18x18x8xf32, #tpu.memory_space<vmem>>, vector<1x18x18x8xf32>,
    %c0_3 = arith.constant 0 : index
    %c0_4 = arith.constant 0 : index
    %c0_5 = arith.constant 0 : index
    %c0_6 = arith.constant 0 : index
    %2 = vector.load %arg1[%c0_3, %c0_4, %c0_5, %c0_6] : memref<1x16x16x8xbf16, #tpu.memory_space<vmem>>, vector<1x16x16x8xbf16>
    %3 = arith.extf %2 : vector<1x16x16x8xbf16> to vector<1x16x16x8xf32>
    %c0_7 = arith.constant 0 : index
    %c0_8 = arith.constant 0 : index
    %4 = vector.load %arg2[%c0_7, %c0_8] : memref<1x8xf32, #tpu.memory_space<vmem>>, vector<1x8xf32>
    %5 = vector.shape_cast %4 : vector<1x8xf32> to vector<1x1x1x8xf32>
    %6 = vector.broadcast %5 : vector<1x1x1x8xf32> to vector<1x16x16x8xf32>
    %7 = arith.mulf %3, %6 : vector<1x16x16x8xf32>
    %c0_9 = arith.constant 0 : index
    %c0_10 = arith.constant 0 : index
    %8 = vector.load %arg3[%c0_9, %c0_10] : memref<1x8xf32, #tpu.memory_space<vmem>>, vector<1x8xf32>
    %9 = vector.shape_cast %8 : vector<1x8xf32> to vector<1x1x1x8xf32>
    %10 = vector.broadcast %9 : vector<1x1x1x8xf32> to vector<1x16x16x8xf32>
    %11 = arith.addf %7, %10 : vector<1x16x16x8xf32>
    %cst_11 = arith.constant 0.000000e+00 : f32
    %12 = vector.broadcast %cst_11 : f32 to vector<1x16x16x8xf32>
    %13 = arith.maximumf %11, %12 : vector<1x16x16x8xf32>
    %c0_12 = arith.constant 0 : index
    %c1 = arith.constant 1 : index
    %c1_13 = arith.constant 1 : index
    %c0_14 = arith.constant 0 : index
    %14 = vector.load %arg6[%c0_12, %c1, %c1_13, %c0_14] : memref<1x18x18x8xf32, #tpu.memory_space<vmem>>, vector<1x16x16x8xf32>
    tpu.vector_store %arg6[%c0_12, %c1, %c1_13, %c0_14], %13 {strides = array<i32>} : memref<1x18x18x8xf32, #tpu.memory_space<vmem>>, vector<1x16x16x8xf32>,
    %cst_15 = arith.constant 0.000000e+00 : f32
    %15 = vector.broadcast %cst_15 : f32 to vector<256x8xf32>
    %c0_16 = arith.constant 0 : index
    %c0_17 = arith.constant 0 : index
    %c0_18 = arith.constant 0 : index
    %c0_19 = arith.constant 0 : index
    %16 = vector.load %arg6[%c0_16, %c0_17, %c0_18, %c0_19] : memref<1x18x18x8xf32, #tpu.memory_space<vmem>>, vector<1x16x16x8xf32>
    %17 = vector.shape_cast %16 : vector<1x16x16x8xf32> to vector<256x8xf32>
    %18 = arith.truncf %17 : vector<256x8xf32> to vector<256x8xbf16>
    %c0_20 = arith.constant 0 : index
    %c0_21 = arith.constant 0 : index
    %c0_22 = arith.constant 0 : index
    %c0_23 = arith.constant 0 : index
    %19 = vector.load %arg4[%c0_20, %c0_21, %c0_22, %c0_23] : memref<4x4x8x8xbf16, #tpu.memory_space<vmem>>, vector<1x1x8x8xbf16>
    %20 = vector.shape_cast %19 : vector<1x1x8x8xbf16> to vector<8x8xbf16>
    %cst_24 = arith.constant dense<0.000000e+00> : vector<256x8xf32>
    %21 = tpu.matmul %18, %20, %cst_24 {dimension_numbers = #tpu.dot_dimension_numbers<[1], [0], [0], [1], [0, 0, 1, 1], [], []>} : vector<256x8xbf16>, vector<8x8xbf16>, vector<256x8xf32> -> vector<256x8xf32>
    %22 = arith.addf %15, %21 : vector<256x8xf32>
    %c0_25 = arith.constant 0 : index
    %c0_26 = arith.constant 0 : index
    %c1_27 = arith.constant 1 : index
    %c0_28 = arith.constant 0 : index
    %23 = vector.load %arg6[%c0_25, %c0_26, %c1_27, %c0_28] : memref<1x18x18x8xf32, #tpu.memory_space<vmem>>, vector<1x16x16x8xf32>
    %24 = vector.shape_cast %23 : vector<1x16x16x8xf32> to vector<256x8xf32>
    %25 = arith.truncf %24 : vector<256x8xf32> to vector<256x8xbf16>
    %c0_29 = arith.constant 0 : index
    %c1_30 = arith.constant 1 : index
    %c0_31 = arith.constant 0 : index
    %c0_32 = arith.constant 0 : index
    %26 = vector.load %arg4[%c0_29, %c1_30, %c0_31, %c0_32] : memref<4x4x8x8xbf16, #tpu.memory_space<vmem>>, vector<1x1x8x8xbf16>
    %27 = vector.shape_cast %26 : vector<1x1x8x8xbf16> to vector<8x8xbf16>
    %cst_33 = arith.constant dense<0.000000e+00> : vector<256x8xf32>
    %28 = tpu.matmul %25, %27, %cst_33 {dimension_numbers = #tpu.dot_dimension_numbers<[1], [0], [0], [1], [0, 0, 1, 1], [], []>} : vector<256x8xbf16>, vector<8x8xbf16>, vector<256x8xf32> -> vector<256x8xf32>
    %29 = arith.addf %22, %28 : vector<256x8xf32>
    %c0_34 = arith.constant 0 : index
    %c1_35 = arith.constant 1 : index
    %c0_36 = arith.constant 0 : index
    %c0_37 = arith.constant 0 : index
    %30 = vector.load %arg6[%c0_34, %c1_35, %c0_36, %c0_37] : memref<1x18x18x8xf32, #tpu.memory_space<vmem>>, vector<1x16x16x8xf32>
    %31 = vector.shape_cast %30 : vector<1x16x16x8xf32> to vector<256x8xf32>
    %32 = arith.truncf %31 : vector<256x8xf32> to vector<256x8xbf16>
    %c0_38 = arith.constant 0 : index
    %c2 = arith.constant 2 : index
    %c0_39 = arith.constant 0 : index
    %c0_40 = arith.constant 0 : index
    %33 = vector.load %arg4[%c0_38, %c2, %c0_39, %c0_40] : memref<4x4x8x8xbf16, #tpu.memory_space<vmem>>, vector<1x1x8x8xbf16>
    %34 = vector.shape_cast %33 : vector<1x1x8x8xbf16> to vector<8x8xbf16>
    %cst_41 = arith.constant dense<0.000000e+00> : vector<256x8xf32>
    %35 = tpu.matmul %32, %34, %cst_41 {dimension_numbers = #tpu.dot_dimension_numbers<[1], [0], [0], [1], [0, 0, 1, 1], [], []>} : vector<256x8xbf16>, vector<8x8xbf16>, vector<256x8xf32> -> vector<256x8xf32>
    %36 = arith.addf %29, %35 : vector<256x8xf32>
    %c0_42 = arith.constant 0 : index
    %c1_43 = arith.constant 1 : index
    %c1_44 = arith.constant 1 : index
    %c0_45 = arith.constant 0 : index
    %37 = vector.load %arg6[%c0_42, %c1_43, %c1_44, %c0_45] : memref<1x18x18x8xf32, #tpu.memory_space<vmem>>, vector<1x16x16x8xf32>
    %38 = vector.shape_cast %37 : vector<1x16x16x8xf32> to vector<256x8xf32>
    %39 = arith.truncf %38 : vector<256x8xf32> to vector<256x8xbf16>
    %c0_46 = arith.constant 0 : index
    %c3 = arith.constant 3 : index
    %c0_47 = arith.constant 0 : index
    %c0_48 = arith.constant 0 : index
    %40 = vector.load %arg4[%c0_46, %c3, %c0_47, %c0_48] : memref<4x4x8x8xbf16, #tpu.memory_space<vmem>>, vector<1x1x8x8xbf16>
    %41 = vector.shape_cast %40 : vector<1x1x8x8xbf16> to vector<8x8xbf16>
    %cst_49 = arith.constant dense<0.000000e+00> : vector<256x8xf32>
    %42 = tpu.matmul %39, %41, %cst_49 {dimension_numbers = #tpu.dot_dimension_numbers<[1], [0], [0], [1], [0, 0, 1, 1], [], []>} : vector<256x8xbf16>, vector<8x8xbf16>, vector<256x8xf32> -> vector<256x8xf32>
    %43 = arith.addf %36, %42 : vector<256x8xf32>
    %44 = tpu.transpose %43, [1, 0] : vector<256x8xf32> -> vector<8x256xf32>
    %45 = math.tanh %44 : vector<8x256xf32>
    %c0_50 = arith.constant 0 : index
    %c0_51 = arith.constant 0 : index
    %c0_52 = arith.constant 0 : index
    %46 = vector.load %arg5[%c0_50, %c0_51, %c0_52] : memref<4x8x256xf32, #tpu.memory_space<vmem>>, vector<1x8x256xf32>
    %47 = vector.shape_cast %46 : vector<1x8x256xf32> to vector<8x256xf32>
    %48 = vector.shape_cast %45 : vector<8x256xf32> to vector<1x8x256xf32>
    tpu.vector_store %arg5[%c0_50, %c0_51, %c0_52], %48 {strides = array<i32>} : memref<4x8x256xf32, #tpu.memory_space<vmem>>, vector<1x8x256xf32>,
    %cst_53 = arith.constant 0.000000e+00 : f32
    %49 = vector.broadcast %cst_53 : f32 to vector<256x8xf32>
    %c0_54 = arith.constant 0 : index
    %c0_55 = arith.constant 0 : index
    %c1_56 = arith.constant 1 : index
    %c0_57 = arith.constant 0 : index
    %50 = vector.load %arg6[%c0_54, %c0_55, %c1_56, %c0_57] : memref<1x18x18x8xf32, #tpu.memory_space<vmem>>, vector<1x16x16x8xf32>
    %51 = vector.shape_cast %50 : vector<1x16x16x8xf32> to vector<256x8xf32>
    %52 = arith.truncf %51 : vector<256x8xf32> to vector<256x8xbf16>
    %c1_58 = arith.constant 1 : index
    %c0_59 = arith.constant 0 : index
    %c0_60 = arith.constant 0 : index
    %c0_61 = arith.constant 0 : index
    %53 = vector.load %arg4[%c1_58, %c0_59, %c0_60, %c0_61] : memref<4x4x8x8xbf16, #tpu.memory_space<vmem>>, vector<1x1x8x8xbf16>
    %54 = vector.shape_cast %53 : vector<1x1x8x8xbf16> to vector<8x8xbf16>
    %cst_62 = arith.constant dense<0.000000e+00> : vector<256x8xf32>
    %55 = tpu.matmul %52, %54, %cst_62 {dimension_numbers = #tpu.dot_dimension_numbers<[1], [0], [0], [1], [0, 0, 1, 1], [], []>} : vector<256x8xbf16>, vector<8x8xbf16>, vector<256x8xf32> -> vector<256x8xf32>
    %56 = arith.addf %49, %55 : vector<256x8xf32>
    %c0_63 = arith.constant 0 : index
    %c0_64 = arith.constant 0 : index
    %c2_65 = arith.constant 2 : index
    %c0_66 = arith.constant 0 : index
    %57 = vector.load %arg6[%c0_63, %c0_64, %c2_65, %c0_66] : memref<1x18x18x8xf32, #tpu.memory_space<vmem>>, vector<1x16x16x8xf32>
    %58 = vector.shape_cast %57 : vector<1x16x16x8xf32> to vector<256x8xf32>
    %59 = arith.truncf %58 : vector<256x8xf32> to vector<256x8xbf16>
    %c1_67 = arith.constant 1 : index
    %c1_68 = arith.constant 1 : index
    %c0_69 = arith.constant 0 : index
    %c0_70 = arith.constant 0 : index
    %60 = vector.load %arg4[%c1_67, %c1_68, %c0_69, %c0_70] : memref<4x4x8x8xbf16, #tpu.memory_space<vmem>>, vector<1x1x8x8xbf16>
    %61 = vector.shape_cast %60 : vector<1x1x8x8xbf16> to vector<8x8xbf16>
    %cst_71 = arith.constant dense<0.000000e+00> : vector<256x8xf32>
    %62 = tpu.matmul %59, %61, %cst_71 {dimension_numbers = #tpu.dot_dimension_numbers<[1], [0], [0], [1], [0, 0, 1, 1], [], []>} : vector<256x8xbf16>, vector<8x8xbf16>, vector<256x8xf32> -> vector<256x8xf32>
    %63 = arith.addf %56, %62 : vector<256x8xf32>
    %c0_72 = arith.constant 0 : index
    %c1_73 = arith.constant 1 : index
    %c1_74 = arith.constant 1 : index
    %c0_75 = arith.constant 0 : index
    %64 = vector.load %arg6[%c0_72, %c1_73, %c1_74, %c0_75] : memref<1x18x18x8xf32, #tpu.memory_space<vmem>>, vector<1x16x16x8xf32>
    %65 = vector.shape_cast %64 : vector<1x16x16x8xf32> to vector<256x8xf32>
    %66 = arith.truncf %65 : vector<256x8xf32> to vector<256x8xbf16>
    %c1_76 = arith.constant 1 : index
    %c2_77 = arith.constant 2 : index
    %c0_78 = arith.constant 0 : index
    %c0_79 = arith.constant 0 : index
    %67 = vector.load %arg4[%c1_76, %c2_77, %c0_78, %c0_79] : memref<4x4x8x8xbf16, #tpu.memory_space<vmem>>, vector<1x1x8x8xbf16>
    %68 = vector.shape_cast %67 : vector<1x1x8x8xbf16> to vector<8x8xbf16>
    %cst_80 = arith.constant dense<0.000000e+00> : vector<256x8xf32>
    %69 = tpu.matmul %66, %68, %cst_80 {dimension_numbers = #tpu.dot_dimension_numbers<[1], [0], [0], [1], [0, 0, 1, 1], [], []>} : vector<256x8xbf16>, vector<8x8xbf16>, vector<256x8xf32> -> vector<256x8xf32>
    %70 = arith.addf %63, %69 : vector<256x8xf32>
    %c0_81 = arith.constant 0 : index
    %c1_82 = arith.constant 1 : index
    %c2_83 = arith.constant 2 : index
    %c0_84 = arith.constant 0 : index
    %71 = vector.load %arg6[%c0_81, %c1_82, %c2_83, %c0_84] : memref<1x18x18x8xf32, #tpu.memory_space<vmem>>, vector<1x16x16x8xf32>
    %72 = vector.shape_cast %71 : vector<1x16x16x8xf32> to vector<256x8xf32>
    %73 = arith.truncf %72 : vector<256x8xf32> to vector<256x8xbf16>
    %c1_85 = arith.constant 1 : index
    %c3_86 = arith.constant 3 : index
    %c0_87 = arith.constant 0 : index
    %c0_88 = arith.constant 0 : index
    %74 = vector.load %arg4[%c1_85, %c3_86, %c0_87, %c0_88] : memref<4x4x8x8xbf16, #tpu.memory_space<vmem>>, vector<1x1x8x8xbf16>
    %75 = vector.shape_cast %74 : vector<1x1x8x8xbf16> to vector<8x8xbf16>
    %cst_89 = arith.constant dense<0.000000e+00> : vector<256x8xf32>
    %76 = tpu.matmul %73, %75, %cst_89 {dimension_numbers = #tpu.dot_dimension_numbers<[1], [0], [0], [1], [0, 0, 1, 1], [], []>} : vector<256x8xbf16>, vector<8x8xbf16>, vector<256x8xf32> -> vector<256x8xf32>
    %77 = arith.addf %70, %76 : vector<256x8xf32>
    %78 = tpu.transpose %77, [1, 0] : vector<256x8xf32> -> vector<8x256xf32>
    %79 = math.tanh %78 : vector<8x256xf32>
    %c1_90 = arith.constant 1 : index
    %c0_91 = arith.constant 0 : index
    %c0_92 = arith.constant 0 : index
    %80 = vector.load %arg5[%c1_90, %c0_91, %c0_92] : memref<4x8x256xf32, #tpu.memory_space<vmem>>, vector<1x8x256xf32>
    %81 = vector.shape_cast %80 : vector<1x8x256xf32> to vector<8x256xf32>
    %82 = vector.shape_cast %79 : vector<8x256xf32> to vector<1x8x256xf32>
    tpu.vector_store %arg5[%c1_90, %c0_91, %c0_92], %82 {strides = array<i32>} : memref<4x8x256xf32, #tpu.memory_space<vmem>>, vector<1x8x256xf32>,
    %cst_93 = arith.constant 0.000000e+00 : f32
    %83 = vector.broadcast %cst_93 : f32 to vector<256x8xf32>
    %c0_94 = arith.constant 0 : index
    %c1_95 = arith.constant 1 : index
    %c0_96 = arith.constant 0 : index
    %c0_97 = arith.constant 0 : index
    %84 = vector.load %arg6[%c0_94, %c1_95, %c0_96, %c0_97] : memref<1x18x18x8xf32, #tpu.memory_space<vmem>>, vector<1x16x16x8xf32>
    %85 = vector.shape_cast %84 : vector<1x16x16x8xf32> to vector<256x8xf32>
    %86 = arith.truncf %85 : vector<256x8xf32> to vector<256x8xbf16>
    %c2_98 = arith.constant 2 : index
    %c0_99 = arith.constant 0 : index
    %c0_100 = arith.constant 0 : index
    %c0_101 = arith.constant 0 : index
    %87 = vector.load %arg4[%c2_98, %c0_99, %c0_100, %c0_101] : memref<4x4x8x8xbf16, #tpu.memory_space<vmem>>, vector<1x1x8x8xbf16>
    %88 = vector.shape_cast %87 : vector<1x1x8x8xbf16> to vector<8x8xbf16>
    %cst_102 = arith.constant dense<0.000000e+00> : vector<256x8xf32>
    %89 = tpu.matmul %86, %88, %cst_102 {dimension_numbers = #tpu.dot_dimension_numbers<[1], [0], [0], [1], [0, 0, 1, 1], [], []>} : vector<256x8xbf16>, vector<8x8xbf16>, vector<256x8xf32> -> vector<256x8xf32>
    %90 = arith.addf %83, %89 : vector<256x8xf32>
    %c0_103 = arith.constant 0 : index
    %c1_104 = arith.constant 1 : index
    %c1_105 = arith.constant 1 : index
    %c0_106 = arith.constant 0 : index
    %91 = vector.load %arg6[%c0_103, %c1_104, %c1_105, %c0_106] : memref<1x18x18x8xf32, #tpu.memory_space<vmem>>, vector<1x16x16x8xf32>
    %92 = vector.shape_cast %91 : vector<1x16x16x8xf32> to vector<256x8xf32>
    %93 = arith.truncf %92 : vector<256x8xf32> to vector<256x8xbf16>
    %c2_107 = arith.constant 2 : index
    %c1_108 = arith.constant 1 : index
    %c0_109 = arith.constant 0 : index
    %c0_110 = arith.constant 0 : index
    %94 = vector.load %arg4[%c2_107, %c1_108, %c0_109, %c0_110] : memref<4x4x8x8xbf16, #tpu.memory_space<vmem>>, vector<1x1x8x8xbf16>
    %95 = vector.shape_cast %94 : vector<1x1x8x8xbf16> to vector<8x8xbf16>
    %cst_111 = arith.constant dense<0.000000e+00> : vector<256x8xf32>
    %96 = tpu.matmul %93, %95, %cst_111 {dimension_numbers = #tpu.dot_dimension_numbers<[1], [0], [0], [1], [0, 0, 1, 1], [], []>} : vector<256x8xbf16>, vector<8x8xbf16>, vector<256x8xf32> -> vector<256x8xf32>
    %97 = arith.addf %90, %96 : vector<256x8xf32>
    %c0_112 = arith.constant 0 : index
    %c2_113 = arith.constant 2 : index
    %c0_114 = arith.constant 0 : index
    %c0_115 = arith.constant 0 : index
    %98 = vector.load %arg6[%c0_112, %c2_113, %c0_114, %c0_115] : memref<1x18x18x8xf32, #tpu.memory_space<vmem>>, vector<1x16x16x8xf32>
    %99 = vector.shape_cast %98 : vector<1x16x16x8xf32> to vector<256x8xf32>
    %100 = arith.truncf %99 : vector<256x8xf32> to vector<256x8xbf16>
    %c2_116 = arith.constant 2 : index
    %c2_117 = arith.constant 2 : index
    %c0_118 = arith.constant 0 : index
    %c0_119 = arith.constant 0 : index
    %101 = vector.load %arg4[%c2_116, %c2_117, %c0_118, %c0_119] : memref<4x4x8x8xbf16, #tpu.memory_space<vmem>>, vector<1x1x8x8xbf16>
    %102 = vector.shape_cast %101 : vector<1x1x8x8xbf16> to vector<8x8xbf16>
    %cst_120 = arith.constant dense<0.000000e+00> : vector<256x8xf32>
    %103 = tpu.matmul %100, %102, %cst_120 {dimension_numbers = #tpu.dot_dimension_numbers<[1], [0], [0], [1], [0, 0, 1, 1], [], []>} : vector<256x8xbf16>, vector<8x8xbf16>, vector<256x8xf32> -> vector<256x8xf32>
    %104 = arith.addf %97, %103 : vector<256x8xf32>
    %c0_121 = arith.constant 0 : index
    %c2_122 = arith.constant 2 : index
    %c1_123 = arith.constant 1 : index
    %c0_124 = arith.constant 0 : index
    %105 = vector.load %arg6[%c0_121, %c2_122, %c1_123, %c0_124] : memref<1x18x18x8xf32, #tpu.memory_space<vmem>>, vector<1x16x16x8xf32>
    %106 = vector.shape_cast %105 : vector<1x16x16x8xf32> to vector<256x8xf32>
    %107 = arith.truncf %106 : vector<256x8xf32> to vector<256x8xbf16>
    %c2_125 = arith.constant 2 : index
    %c3_126 = arith.constant 3 : index
    %c0_127 = arith.constant 0 : index
    %c0_128 = arith.constant 0 : index
    %108 = vector.load %arg4[%c2_125, %c3_126, %c0_127, %c0_128] : memref<4x4x8x8xbf16, #tpu.memory_space<vmem>>, vector<1x1x8x8xbf16>
    %109 = vector.shape_cast %108 : vector<1x1x8x8xbf16> to vector<8x8xbf16>
    %cst_129 = arith.constant dense<0.000000e+00> : vector<256x8xf32>
    %110 = tpu.matmul %107, %109, %cst_129 {dimension_numbers = #tpu.dot_dimension_numbers<[1], [0], [0], [1], [0, 0, 1, 1], [], []>} : vector<256x8xbf16>, vector<8x8xbf16>, vector<256x8xf32> -> vector<256x8xf32>
    %111 = arith.addf %104, %110 : vector<256x8xf32>
    %112 = tpu.transpose %111, [1, 0] : vector<256x8xf32> -> vector<8x256xf32>
    %113 = math.tanh %112 : vector<8x256xf32>
    %c2_130 = arith.constant 2 : index
    %c0_131 = arith.constant 0 : index
    %c0_132 = arith.constant 0 : index
    %114 = vector.load %arg5[%c2_130, %c0_131, %c0_132] : memref<4x8x256xf32, #tpu.memory_space<vmem>>, vector<1x8x256xf32>
    %115 = vector.shape_cast %114 : vector<1x8x256xf32> to vector<8x256xf32>
    %116 = vector.shape_cast %113 : vector<8x256xf32> to vector<1x8x256xf32>
    tpu.vector_store %arg5[%c2_130, %c0_131, %c0_132], %116 {strides = array<i32>} : memref<4x8x256xf32, #tpu.memory_space<vmem>>, vector<1x8x256xf32>,
    %cst_133 = arith.constant 0.000000e+00 : f32
    %117 = vector.broadcast %cst_133 : f32 to vector<256x8xf32>
    %c0_134 = arith.constant 0 : index
    %c1_135 = arith.constant 1 : index
    %c1_136 = arith.constant 1 : index
    %c0_137 = arith.constant 0 : index
    %118 = vector.load %arg6[%c0_134, %c1_135, %c1_136, %c0_137] : memref<1x18x18x8xf32, #tpu.memory_space<vmem>>, vector<1x16x16x8xf32>
    %119 = vector.shape_cast %118 : vector<1x16x16x8xf32> to vector<256x8xf32>
    %120 = arith.truncf %119 : vector<256x8xf32> to vector<256x8xbf16>
    %c3_138 = arith.constant 3 : index
    %c0_139 = arith.constant 0 : index
    %c0_140 = arith.constant 0 : index
    %c0_141 = arith.constant 0 : index
    %121 = vector.load %arg4[%c3_138, %c0_139, %c0_140, %c0_141] : memref<4x4x8x8xbf16, #tpu.memory_space<vmem>>, vector<1x1x8x8xbf16>
    %122 = vector.shape_cast %121 : vector<1x1x8x8xbf16> to vector<8x8xbf16>
    %cst_142 = arith.constant dense<0.000000e+00> : vector<256x8xf32>
    %123 = tpu.matmul %120, %122, %cst_142 {dimension_numbers = #tpu.dot_dimension_numbers<[1], [0], [0], [1], [0, 0, 1, 1], [], []>} : vector<256x8xbf16>, vector<8x8xbf16>, vector<256x8xf32> -> vector<256x8xf32>
    %124 = arith.addf %117, %123 : vector<256x8xf32>
    %c0_143 = arith.constant 0 : index
    %c1_144 = arith.constant 1 : index
    %c2_145 = arith.constant 2 : index
    %c0_146 = arith.constant 0 : index
    %125 = vector.load %arg6[%c0_143, %c1_144, %c2_145, %c0_146] : memref<1x18x18x8xf32, #tpu.memory_space<vmem>>, vector<1x16x16x8xf32>
    %126 = vector.shape_cast %125 : vector<1x16x16x8xf32> to vector<256x8xf32>
    %127 = arith.truncf %126 : vector<256x8xf32> to vector<256x8xbf16>
    %c3_147 = arith.constant 3 : index
    %c1_148 = arith.constant 1 : index
    %c0_149 = arith.constant 0 : index
    %c0_150 = arith.constant 0 : index
    %128 = vector.load %arg4[%c3_147, %c1_148, %c0_149, %c0_150] : memref<4x4x8x8xbf16, #tpu.memory_space<vmem>>, vector<1x1x8x8xbf16>
    %129 = vector.shape_cast %128 : vector<1x1x8x8xbf16> to vector<8x8xbf16>
    %cst_151 = arith.constant dense<0.000000e+00> : vector<256x8xf32>
    %130 = tpu.matmul %127, %129, %cst_151 {dimension_numbers = #tpu.dot_dimension_numbers<[1], [0], [0], [1], [0, 0, 1, 1], [], []>} : vector<256x8xbf16>, vector<8x8xbf16>, vector<256x8xf32> -> vector<256x8xf32>
    %131 = arith.addf %124, %130 : vector<256x8xf32>
    %c0_152 = arith.constant 0 : index
    %c2_153 = arith.constant 2 : index
    %c1_154 = arith.constant 1 : index
    %c0_155 = arith.constant 0 : index
    %132 = vector.load %arg6[%c0_152, %c2_153, %c1_154, %c0_155] : memref<1x18x18x8xf32, #tpu.memory_space<vmem>>, vector<1x16x16x8xf32>
    %133 = vector.shape_cast %132 : vector<1x16x16x8xf32> to vector<256x8xf32>
    %134 = arith.truncf %133 : vector<256x8xf32> to vector<256x8xbf16>
    %c3_156 = arith.constant 3 : index
    %c2_157 = arith.constant 2 : index
    %c0_158 = arith.constant 0 : index
    %c0_159 = arith.constant 0 : index
    %135 = vector.load %arg4[%c3_156, %c2_157, %c0_158, %c0_159] : memref<4x4x8x8xbf16, #tpu.memory_space<vmem>>, vector<1x1x8x8xbf16>
    %136 = vector.shape_cast %135 : vector<1x1x8x8xbf16> to vector<8x8xbf16>
    %cst_160 = arith.constant dense<0.000000e+00> : vector<256x8xf32>
    %137 = tpu.matmul %134, %136, %cst_160 {dimension_numbers = #tpu.dot_dimension_numbers<[1], [0], [0], [1], [0, 0, 1, 1], [], []>} : vector<256x8xbf16>, vector<8x8xbf16>, vector<256x8xf32> -> vector<256x8xf32>
    %138 = arith.addf %131, %137 : vector<256x8xf32>
    %c0_161 = arith.constant 0 : index
    %c2_162 = arith.constant 2 : index
    %c2_163 = arith.constant 2 : index
    %c0_164 = arith.constant 0 : index
    %139 = vector.load %arg6[%c0_161, %c2_162, %c2_163, %c0_164] : memref<1x18x18x8xf32, #tpu.memory_space<vmem>>, vector<1x16x16x8xf32>
    %140 = vector.shape_cast %139 : vector<1x16x16x8xf32> to vector<256x8xf32>
    %141 = arith.truncf %140 : vector<256x8xf32> to vector<256x8xbf16>
    %c3_165 = arith.constant 3 : index
    %c3_166 = arith.constant 3 : index
    %c0_167 = arith.constant 0 : index
    %c0_168 = arith.constant 0 : index
    %142 = vector.load %arg4[%c3_165, %c3_166, %c0_167, %c0_168] : memref<4x4x8x8xbf16, #tpu.memory_space<vmem>>, vector<1x1x8x8xbf16>
    %143 = vector.shape_cast %142 : vector<1x1x8x8xbf16> to vector<8x8xbf16>
    %cst_169 = arith.constant dense<0.000000e+00> : vector<256x8xf32>
    %144 = tpu.matmul %141, %143, %cst_169 {dimension_numbers = #tpu.dot_dimension_numbers<[1], [0], [0], [1], [0, 0, 1, 1], [], []>} : vector<256x8xbf16>, vector<8x8xbf16>, vector<256x8xf32> -> vector<256x8xf32>
    %145 = arith.addf %138, %144 : vector<256x8xf32>
    %146 = tpu.transpose %145, [1, 0] : vector<256x8xf32> -> vector<8x256xf32>
    %147 = math.tanh %146 : vector<8x256xf32>
    %c3_170 = arith.constant 3 : index
    %c0_171 = arith.constant 0 : index
    %c0_172 = arith.constant 0 : index
    %148 = vector.load %arg5[%c3_170, %c0_171, %c0_172] : memref<4x8x256xf32, #tpu.memory_space<vmem>>, vector<1x8x256xf32>
    %149 = vector.shape_cast %148 : vector<1x8x256xf32> to vector<8x256xf32>
    %150 = vector.shape_cast %147 : vector<8x256xf32> to vector<1x8x256xf32>
    tpu.vector_store %arg5[%c3_170, %c0_171, %c0_172], %150 {strides = array<i32>} : memref<4x8x256xf32, #tpu.memory_space<vmem>>, vector<1x8x256xf32>,
    return
  }
  func.func @transform_0(%arg0: i32) -> (i32, i32, i32, i32) {
    %c0_i32 = arith.constant 0 : i32
    %c0_i32_0 = arith.constant 0 : i32
    %c0_i32_1 = arith.constant 0 : i32
    %c0_i32_2 = arith.constant 0 : i32
    return %arg0, %c0_i32, %c0_i32_0, %c0_i32_1 : i32, i32, i32, i32
  }
  func.func @transform_1(%arg0: i32) -> (i32, i32) {
    %c0_i32 = arith.constant 0 : i32
    %c0_i32_0 = arith.constant 0 : i32
    %c0_i32_1 = arith.constant 0 : i32
    return %c0_i32, %c0_i32_0 : i32, i32
  }
  func.func @transform_2(%arg0: i32) -> (i32, i32) {
    %c0_i32 = arith.constant 0 : i32
    %c0_i32_0 = arith.constant 0 : i32
    %c0_i32_1 = arith.constant 0 : i32
    return %c0_i32, %c0_i32_0 : i32, i32
  }
  func.func @transform_3(%arg0: i32) -> (i32, i32, i32, i32) {
    %c0_i32 = arith.constant 0 : i32
    %c0_i32_0 = arith.constant 0 : i32
    %c0_i32_1 = arith.constant 0 : i32
    %c0_i32_2 = arith.constant 0 : i32
    %c0_i32_3 = arith.constant 0 : i32
    return %c0_i32, %c0_i32_0, %c0_i32_1, %c0_i32_2 : i32, i32, i32, i32
  }
  func.func @transform_4(%arg0: i32) -> (i32, i32, i32) {
    %c0_i32 = arith.constant 0 : i32
    %c0_i32_0 = arith.constant 0 : i32
    %c0_i32_1 = arith.constant 0 : i32
    return %c0_i32, %c0_i32_0, %arg0 : i32, i32, i32
  }
}

</mosaic_0001>

<bundles_post_ra>
// kernel: generator_forward.5
= control target key start
LH: loop header
LB: loop body
LE: loop exit
PB: predicated region body
PF: predicated region fallthrough
CT: control target
= control target key end

     0   :  { %9 = vsyncpa [#allocation3], 0  ;;  %s236_s15 = smov [#allocation2]   ;;  %s300_s0 = inlined_call_operand.hbm [shape: f32[2,8], index: 0, kind: input, shape index: {}]   ;;  %s301_s1 = inlined_call_operand.vmem [shape: bf16[4,8,64], index: 1, kind: input, shape index: {}]   ;;  %s302_s2 = inlined_call_operand.vmem [shape: bf16[4,2,64], index: 2, kind: output, shape index: {0}]   ;;  %s303_s3 = inlined_call_operand.vmem [shape: f32[1,2,64], index: 3, kind: output, shape index: {1}]  }
   0x1   :  { %s15_s14 = sshll.u32 %s300_s0, 4  ;;  %s17_s16 = sshll.u32 %s236_s15, 4  ;;  %s16_s14 = int_to_ptr.hbm [resolvable:$true] %s15_s14  ;;  %s18_s16 = int_to_ptr.vmem [resolvable:$true] %s17_s16 }
   0x2   :  { %20 = dma.hbm_to_vmem [thread:$0]  %s16_s14, 32, %s18_s16, [#allocation3]  }
   0x3   :  { %234 = dma.done.wait [#allocation3], 32  }
   0x4   :  { %235 = vsyncadd [#allocation3], 4294967264  ;;  %vm35_vm0 = vcmask 1043456   ;;  %v30_v0 = vld [vmem:[%s301_s1] sm:$0xf]  ;;  %vm31_vm1 = vcmask 64512  }
   0x5   :  { %v200_v1 = vld [vmem:[%s301_s1 + $0x4] sm:$0xf]  ;;  %v203_v2 = vld [vmem:[%s301_s1 + $0x8] sm:$0xf]  ;;  %v37_v3 = vsel %vm35_vm0, %v30_v0, 0  ;;  %vm55_vm2 = vcmask 517120  }
   0x6   :  { %v76_v4 = vsel %vm35_vm0, %v200_v1, 0  ;;  %v114_v5 = vsel %vm35_vm0, %v203_v2, 0  ;;  %v206_v6 = vld [vmem:[%s301_s1 + $0xc] sm:$0xf]  ;;  %46 = vmatpush.bf16.msra.mxu0 %v37_v3  ;;  %v28_v8 = vld [vmem:[#allocation2] sm:$0x3] }
   0x7   :  { %85 = vmatpush.bf16.msra.mxu1 %v76_v4  ;;  %v152_v7 = vsel %vm35_vm0, %v206_v6, 0  ;;  %123 = vmatpush.bf16.msra.mxu2 %v114_v5  ;;  %v29_v9 = vpack.c.bf16 %v28_v8, %v28_v8  ;;  %vm53_vm3 = vcmask 516096   ;;  %vm187_vm4 = vcmask 1040384  }
   0x8   :  { %161 = vmatpush.bf16.msra.mxu3 %v152_v7 }
   0x9   :  { %199 = vmatmul.msk.bf16.vlgmr.msra.gmra.mxu0 %vm31_vm1, %v29_v9 }
   0xa   :  { %201 = vmatmul.msk.bf16.vlgmr.msra.gmra.mxu1 %vm31_vm1, %v29_v9  ;;  %204 = vmatmul.msk.bf16.vlgmr.msra.gmra.mxu2 %vm31_vm1, %v29_v9 }
   0xb   :  { %207 = vmatmul.msk.bf16.vlgmr.msra.gmra.mxu3 %vm31_vm1, %v29_v9 }
  0x86   :  { %v48_v10 = vpop.f32.mrf.mxu0 }
  0x87   :  { %v87_v11 = vpop.f32.mrf.mxu1  ;;  %v52_v12 = vpack.c.bf16 %v48_v10, %v48_v10  ;;  %v56_v13 = vsel %vm55_vm2, %v48_v10, 0.0  ;;  %v64_v14 = vmul.f32 %v48_v10, %v48_v10 }
  0x88   :  { %v91_v15 = vpack.c.bf16 %v87_v11, %v87_v11  ;;  %v57_v16 = vrot.slane %v56_v13, 4  ;;  %v94_v17 = vsel %vm55_vm2, %v87_v11, 0.0  ;;  %v102_v18 = vmul.f32 %v87_v11, %v87_v11 }
  0x89   :  { %54 = vst.msk [vmem:[%s302_s2] sm:$0x1] %vm53_vm3, %v52_v12  ;;  %v65_v19 = vsel %vm55_vm2, %v64_v14, 0.0  ;;  %v95_v20 = vrot.slane %v94_v17, 4 }
  0x8a   :  { %v58_v21 = vadd.f32 %v57_v16, %v56_v13  ;;  %v66_v22 = vrot.slane %v65_v19, 4  ;;  %202 = vst.msk [vmem:[%s302_s2 + $0x1] sm:$0x1] %vm53_vm3, %v91_v15  ;;  %v103_v23 = vsel %vm55_vm2, %v102_v18, 0.0 }
  0x8b   :  { %v96_v24 = vadd.f32 %v95_v20, %v94_v17  ;;  %v104_v25 = vrot.slane %v103_v23, 4 }
  0x8c   :  { %v59_v26 = vrot.slane %v58_v21, 2  ;;  %v67_v27 = vadd.f32 %v66_v22, %v65_v19 }
  0x8d   :  { %v97_v28 = vrot.slane %v96_v24, 2  ;;  %v105_v29 = vadd.f32 %v104_v25, %v103_v23  ;;  %v125_v30 = vpop.f32.mrf.mxu2 }
  0x8e   :  { %v163_v31 = vpop.f32.mrf.mxu3  ;;  %v60_v32 = vadd.f32 %v59_v26, %v58_v21  ;;  %v68_v33 = vrot.slane %v67_v27, 2  ;;  %v129_v34 = vpack.c.bf16 %v125_v30, %v125_v30  ;;  %v132_v35 = vsel %vm55_vm2, %v125_v30, 0.0  ;;  %v50_v36 = vpop.f32.mrf.mxu0 }
  0x8f   :  { %v89_v37 = vpop.f32.mrf.mxu1  ;;  %v98_v38 = vadd.f32 %v97_v28, %v96_v24  ;;  %v106_v39 = vrot.slane %v105_v29, 2  ;;  %v133_v40 = vrot.slane %v132_v35, 4  ;;  %v140_v41 = vmul.f32 %v125_v30, %v125_v30 }
  0x90   :  { %v69_v42 = vadd.f32 %v68_v33, %v67_v27  ;;  %205 = vst.msk [vmem:[%s302_s2 + $0x2] sm:$0x1] %vm53_vm3, %v129_v34  ;;  %v167_v43 = vpack.c.bf16 %v163_v31, %v163_v31  ;;  %v170_v44 = vsel %vm55_vm2, %v163_v31, 0.0  ;;  %v61_v48 = vrot.slane %v60_v32, 1 }
  0x91   :  { %v107_v45 = vadd.f32 %v106_v39, %v105_v29  ;;  %v134_v46 = vadd.f32 %v133_v40, %v132_v35  ;;  %v141_v47 = vsel %vm55_vm2, %v140_v41, 0.0  ;;  %v171_v50 = vrot.slane %v170_v44, 4 }
  0x92   :  { %v142_v49 = vrot.slane %v141_v47, 4  ;;  %208 = vst.msk [vmem:[%s302_s2 + $0x3] sm:$0x1] %vm53_vm3, %v167_v43  ;;  %v70_v51 = vrot.slane %v69_v42, 1  ;;  %v99_v52 = vrot.slane %v98_v38, 1  ;;  %v178_v54 = vmul.f32 %v163_v31, %v163_v31 }
  0x93   :  { %v135_v53 = vrot.slane %v134_v46, 2  ;;  %v108_v55 = vrot.slane %v107_v45, 1  ;;  %v172_v57 = vadd.f32 %v171_v50, %v170_v44  ;;  %v62_v1 = vadd.f32 %v61_v48, %v60_v32 }
  0x94   :  { %v143_v56 = vadd.f32 %v142_v49, %v141_v47  ;;  %v179_v59 = vsel %vm55_vm2, %v178_v54, 0.0  ;;  %v71_v2 = vadd.f32 %v70_v51, %v69_v42  ;;  %v100_v3 = vadd.f32 %v99_v52, %v98_v38 }
  0x95   :  { %v136_v58 = vadd.f32 %v135_v53, %v134_v46  ;;  %v127_v60 = vpop.f32.mrf.mxu2  ;;  %v173_v63 = vrot.slane %v172_v57, 2  ;;  %v180_v0 = vrot.slane %v179_v59, 4  ;;  %v109_v5 = vadd.f32 %v108_v55, %v107_v45 }
  0x96   :  { %v165_v61 = vpop.f32.mrf.mxu3  ;;  %v144_v62 = vrot.slane %v143_v56, 2  ;;  %v101_v12 = vadd.f32 %v100_v3, %v62_v1 }
  0x97   :  { %v137_v4 = vrot.slane %v136_v58, 1  ;;  %v174_v7 = vadd.f32 %v173_v63, %v172_v57  ;;  %v181_v8 = vadd.f32 %v180_v0, %v179_v59  ;;  %v110_v13 = vadd.f32 %v109_v5, %v71_v2 }
  0x98   :  { %v145_v6 = vadd.f32 %v144_v62, %v143_v56 }
  0x99   :  { %v138_v9 = vadd.f32 %v137_v4, %v136_v58  ;;  %v182_v11 = vrot.slane %v181_v8, 2  ;;  %v175_v15 = vrot.slane %v174_v7, 1 }
  0x9a   :  { %v146_v10 = vrot.slane %v145_v6, 1 }
  0x9b   :  { %v183_v16 = vadd.f32 %v182_v11, %v181_v8  ;;  %v139_v17 = vadd.f32 %v138_v9, %v101_v12  ;;  %v176_v20 = vadd.f32 %v175_v15, %v174_v7 }
  0x9c   :  { %v147_v14 = vadd.f32 %v146_v10, %v145_v6 }
  0x9d   :  { %v184_v19 = vrot.slane %v183_v16, 1  ;;  %v177_v22 = vadd.f32 %v176_v20, %v139_v17 }
  0x9e   :  { %v148_v18 = vadd.f32 %v147_v14, %v110_v13 }
  0x9f   :  { %v185_v21 = vadd.f32 %v184_v19, %v183_v16 }
  0xa1   :  { %v186_v23 = vadd.f32 %v185_v21, %v148_v18 }
  0xa3   :  { %v188_v24 = vsel %vm187_vm4, %v177_v22, %v186_v23 }
  0xa4   :  { %189 = vst.msk [vmem:[%s303_s3] sm:$0x3] %vm55_vm2, %v188_v24 }
  0xa5   :  { %198 = vsyncpa [#allocation3], 1 }

// kernel: generator_forward.6
= control target key start
LH: loop header
LB: loop body
LE: loop exit
PB: predicated region body
PF: predicated region fallthrough
CT: control target
= control target key end

     0   :  { %vm20_vm0 = vcmask 519168   ;;  %v1699_v3 = vmov 0.0   ;;  %vm58_vm1 = vcmask 517120   ;;  %vm140_vm2 = vcmask 523264   ;;  %s1991_s3 = inlined_call_operand.vmem [shape: bf16[4,4,64,32], index: 3, kind: input, shape index: {}]   ;;  %s1992_s0 = inlined_call_operand.vmem [shape: bf16[2,2,2,64], index: 0, kind: input, shape index: {}]   ;;  %s1993_s1 = inlined_call_operand.vmem [shape: f32[1,64], index: 1, kind: input, shape index: {}]   ;;  %s1994_s2 = inlined_call_operand.vmem [shape: f32[1,64], index: 2, kind: input, shape index: {}]   ;;  %s1995_s4 = inlined_call_operand.vmem [shape: bf16[4,8,32], index: 4, kind: output, shape index: {0}]   ;;  %s1996_s5 = inlined_call_operand.vmem [shape: f32[1,2,32], index: 5, kind: output, shape index: {1}]  }
   0x1   :  { %v1643_v0 = vld [vmem:[%s1991_s3 + $0x58] sm:$0xff]  ;;  %21 = vst.msk [vmem:[#allocation2] sm:$0xf] %vm20_vm0, %v1699_v3  ;;  %v1642_v5 = vld [vmem:[%s1991_s3 + $0x50] sm:$0xff]  ;;  %v1641_v9 = vld [vmem:[%s1991_s3 + $0x48] sm:$0xff]  ;;  %vm334_vm3 = vcmask 257024  }
   0x2   :  { %v1647_v1 = vld [vmem:[%s1991_s3 + $0x78] sm:$0xff]  ;;  %22 = vst.msk [vmem:[#allocation2 + $0x4] sm:$0xf] %vm20_vm0, %v1699_v3  ;;  %255 = vmatpush.bf16.msra.mxu2 %v1643_v0  ;;  %v1646_v6 = vld [vmem:[%s1991_s3 + $0x70] sm:$0xff]  ;;  %v1645_v10 = vld [vmem:[%s1991_s3 + $0x68] sm:$0xff]  ;;  %vm336_vm4 = vcmask 261120  }
   0x3   :  { %v1639_v2 = vld [vmem:[%s1991_s3 + $0x38] sm:$0xff]  ;;  %323 = vmatpush.bf16.msra.mxu3 %v1647_v1  ;;  %23 = vst.msk [vmem:[#allocation2 + $0x8] sm:$0xf] %vm20_vm0, %v1699_v3  ;;  %v1638_v7 = vld [vmem:[%s1991_s3 + $0x30] sm:$0xff]  ;;  %v29_v11 = vld [vmem:[%s1992_s0] sm:$0x1] }
   0x4   :  { %v1635_v4 = vld [vmem:[%s1991_s3 + $0x18] sm:$0xff]  ;;  %148 = vmatpush.bf16.msra.mxu0 %v1639_v2  ;;  %v1634_v8 = vld [vmem:[%s1991_s3 + $0x10] sm:$0xff]  ;;  %25 = vst.msk [vmem:[#allocation2 + $0x10] sm:$0xf] %vm20_vm0, %v1699_v3  ;;  %v1637_v12 = vld [vmem:[%s1991_s3 + $0x28] sm:$0xff]  ;;  %v33_v16 = vunpack.c.l.bf16 %v29_v11  ;;  %vm1225_vm5 = vcmask 1040384  }
   0x5   :  { %188 = vmatpush.bf16.msra.mxu1 %v1635_v4  ;;  %26 = vst.msk [vmem:[#allocation2 + $0x14] sm:$0xf] %vm20_vm0, %v1699_v3  ;;  %v1633_v13 = vld [vmem:[%s1991_s3 + $0x8] sm:$0xff]  ;;  %v30_v14 = vld [vmem:[%s1992_s0 + $0x1] sm:$0x1]  ;;  %v1659_v43 = vld [vmem:[%s1991_s3 + $0xd8] sm:$0xff] }
   0x6   :  { %27 = vst.msk [vmem:[#allocation2 + $0x18] sm:$0xf] %vm20_vm0, %v1699_v3  ;;  %v31_v15 = vld [vmem:[%s1992_s0 + $0x2] sm:$0x1]  ;;  %256 = vmatpush.bf16.msra.mxu2 %v1642_v5  ;;  %v32_v17 = vld [vmem:[%s1992_s0 + $0x3] sm:$0x1]  ;;  %v34_v18 = vunpack.c.l.bf16 %v30_v14 }
   0x7   :  { %324 = vmatpush.bf16.msra.mxu3 %v1646_v6  ;;  %v35_v19 = vunpack.c.l.bf16 %v31_v15  ;;  %v1697_v20 = vld [vmem:[%s1993_s1] ss:$0 sm:$0xff]  ;;  %v36_v21 = vunpack.c.l.bf16 %v32_v17  ;;  %24 = vst.msk [vmem:[#allocation2 + $0xc] sm:$0xf] %vm20_vm0, %v1699_v3  ;;  %v1663_v49 = vld [vmem:[%s1991_s3 + $0xf8] sm:$0xff]  ;;  %v1658_v53 = vld [vmem:[%s1991_s3 + $0xd0] sm:$0xff] }
   0x8   :  { %149 = vmatpush.bf16.msra.mxu0 %v1638_v7  ;;  %v1698_v22 = vld [vmem:[%s1994_s2] ss:$0 sm:$0xff]  ;;  %v63_v23 = vld [vmem:[#allocation2] sm:$0x3]  ;;  %v41_v24 = vmul.f32 %v1697_v20, %v33_v16  ;;  %v42_v25 = vmul.f32 %v1697_v20, %v34_v18  ;;  %28 = vst.msk [vmem:[#allocation2 + $0x1c] sm:$0xf] %vm20_vm0, %v1699_v3 }
   0x9   :  { %189 = vmatpush.bf16.msra.mxu1 %v1634_v8  ;;  %v43_v26 = vmul.f32 %v1697_v20, %v35_v19  ;;  %71 = vst [vmem:[#allocation1] ss:$4 sm:$0xff] %v63_v23  ;;  %v44_v27 = vmul.f32 %v1697_v20, %v36_v21  ;;  %v1640_v28 = vld [vmem:[%s1991_s3 + $0x40] sm:$0xff]  ;;  %v89_v44 = vld [vmem:[#allocation2 + $0x1] sm:$0x3]  ;;  %v1655_v51 = vld [vmem:[%s1991_s3 + $0xb8] sm:$0xff] }
   0xa   :  { %257 = vmatpush.bf16.msra.mxu2 %v1641_v9  ;;  %v1644_v29 = vld [vmem:[%s1991_s3 + $0x60] sm:$0xff]  ;;  %v49_v30 = vadd.f32 %v1698_v22, %v41_v24  ;;  %v50_v31 = vadd.f32 %v1698_v22, %v42_v25  ;;  %v1651_v52 = vld [vmem:[%s1991_s3 + $0x98] sm:$0xff]  ;;  %v1662_v54 = vld [vmem:[%s1991_s3 + $0xf0] sm:$0xff]  ;;  %vm1227_vm6 = vcmask 254976  }
   0xb   :  { %325 = vmatpush.bf16.msra.mxu3 %v1645_v10  ;;  %v51_v32 = vadd.f32 %v1698_v22, %v43_v26  ;;  %v65_v33 = vld [vmem:[#allocation2 + $0x10] sm:$0x3]  ;;  %v52_v34 = vadd.f32 %v1698_v22, %v44_v27  ;;  %v1636_v41 = vld [vmem:[%s1991_s3 + $0x20] sm:$0xff]  ;;  %v1654_v55 = vld [vmem:[%s1991_s3 + $0xb0] sm:$0xff] }
   0xc   :  { %150 = vmatpush.bf16.msra.mxu0 %v1637_v12  ;;  %75 = vst [vmem:[#allocation1 + $0x2] ss:$4 sm:$0xff] %v65_v33  ;;  %v53_v35 = vmax.f32 %v49_v30, 0.0  ;;  %v54_v36 = vmax.f32 %v50_v31, 0.0  ;;  %v1632_v42 = vld [vmem:[%s1991_s3] sm:$0xff]  ;;  %v1650_v56 = vld [vmem:[%s1991_s3 + $0x90] sm:$0xff] }
   0xd   :  { %190 = vmatpush.bf16.msra.mxu1 %v1633_v13  ;;  %v55_v37 = vmax.f32 %v51_v32, 0.0  ;;  %v56_v38 = vmax.f32 %v52_v34, 0.0  ;;  %v91_v47 = vld [vmem:[#allocation2 + $0x11] sm:$0x3]  ;;  %v1657_v57 = vld [vmem:[%s1991_s3 + $0xc8] sm:$0xff]  ;;  %v1656_v3 = vld [vmem:[%s1991_s3 + $0xc0] sm:$0xff] }
   0xe   :  { %258 = vmatpush.bf16.msra.mxu2 %v1640_v28  ;;  %59 = vst.msk [vmem:[#allocation2 + $0x5] sm:$0x3] %vm58_vm1, %v53_v35  ;;  %v1661_v61 = vld [vmem:[%s1991_s3 + $0xe8] sm:$0xff]  ;;  %v1660_v4 = vld [vmem:[%s1991_s3 + $0xe0] sm:$0xff]  ;;  %v356_v14 = vld [vmem:[#allocation2 + $0x11] sm:$0x3] }
   0xf   :  { %326 = vmatpush.bf16.msra.mxu3 %v1644_v29  ;;  %60 = vst.msk [vmem:[#allocation2 + $0x9] sm:$0x3] %vm58_vm1, %v54_v36  ;;  %v1653_v63 = vld [vmem:[%s1991_s3 + $0xa8] sm:$0xff]  ;;  %v1652_v17 = vld [vmem:[%s1991_s3 + $0xa0] sm:$0xff]  ;;  %v383_v22 = vld [vmem:[#allocation2 + $0x12] sm:$0x3] }
  0x10   :  { %61 = vst.msk [vmem:[#allocation2 + $0x15] sm:$0x3] %vm58_vm1, %v55_v37  ;;  %151 = vmatpush.bf16.msra.mxu0 %v1636_v41  ;;  %v1649_v0 = vld [vmem:[%s1991_s3 + $0x88] sm:$0xff]  ;;  %v1648_v18 = vld [vmem:[%s1991_s3 + $0x80] sm:$0xff]  ;;  %v1675_v25 = vld [vmem:[%s1991_s3 + $0x158] sm:$0xff] }
  0x11   :  { %62 = vst.msk [vmem:[#allocation2 + $0x19] sm:$0x3] %vm58_vm1, %v56_v38  ;;  %191 = vmatpush.bf16.msra.mxu1 %v1632_v42  ;;  %v354_v11 = vld [vmem:[#allocation2 + $0x1] sm:$0x3]  ;;  %v1679_v26 = vld [vmem:[%s1991_s3 + $0x178] sm:$0xff]  ;;  %v1674_v29 = vld [vmem:[%s1991_s3 + $0x150] sm:$0xff] }
  0x12   :  { %546 = vmatpush.bf16.msrb.mxu2 %v1659_v43  ;;  %v381_v19 = vld [vmem:[#allocation2 + $0x2] sm:$0x3]  ;;  %v1671_v27 = vld [vmem:[%s1991_s3 + $0x138] sm:$0xff]  ;;  %v1678_v30 = vld [vmem:[%s1991_s3 + $0x170] sm:$0xff] }
  0x13   :  { %614 = vmatpush.bf16.msrb.mxu3 %v1663_v49  ;;  %v1667_v28 = vld [vmem:[%s1991_s3 + $0x118] sm:$0xff]  ;;  %v1670_v31 = vld [vmem:[%s1991_s3 + $0x130] sm:$0xff]  ;;  %v1673_v36 = vld [vmem:[%s1991_s3 + $0x148] sm:$0xff] }
  0x14   :  { %439 = vmatpush.bf16.msrb.mxu0 %v1655_v51  ;;  %v1666_v32 = vld [vmem:[%s1991_s3 + $0x110] sm:$0xff]  ;;  %v1677_v38 = vld [vmem:[%s1991_s3 + $0x168] sm:$0xff]  ;;  %v1672_v43 = vld [vmem:[%s1991_s3 + $0x140] sm:$0xff] }
  0x15   :  { %v64_v39 = vld [vmem:[#allocation2 + $0x4] sm:$0x3]  ;;  %479 = vmatpush.bf16.msrb.mxu1 %v1651_v52  ;;  %v382_v20 = vld [vmem:[#allocation2 + $0x6] sm:$0x3] }
  0x16   :  { %73 = vst [vmem:[#allocation1 + $0x1] ss:$4 sm:$0xff] %v64_v39  ;;  %v90_v45 = vld [vmem:[#allocation2 + $0x5] sm:$0x3]  ;;  %547 = vmatpush.bf16.msrb.mxu2 %v1658_v53  ;;  %v198_v59 = vld [vmem:[#allocation2 + $0x8] sm:$0x3] }
  0x17   :  { %v66_v40 = vld [vmem:[#allocation2 + $0x14] sm:$0x3]  ;;  %v197_v58 = vld [vmem:[#allocation2 + $0x4] sm:$0x3]  ;;  %615 = vmatpush.bf16.msrb.mxu3 %v1662_v54  ;;  %v266_v6 = vld [vmem:[#allocation2 + $0x9] sm:$0x3] }
  0x18   :  { %77 = vst [vmem:[#allocation1 + $0x3] ss:$4 sm:$0xff] %v66_v40  ;;  %v92_v48 = vld [vmem:[#allocation2 + $0x15] sm:$0x3]  ;;  %440 = vmatpush.bf16.msrb.mxu0 %v1654_v55  ;;  %v200_v1 = vld [vmem:[#allocation2 + $0x18] sm:$0x3] }
  0x19   :  { %v199_v60 = vld [vmem:[#allocation2 + $0x14] sm:$0x3]  ;;  %480 = vmatpush.bf16.msrb.mxu1 %v1650_v56  ;;  %v265_v5 = vld [vmem:[#allocation2 + $0x5] sm:$0x3]  ;;  %v268_v10 = vld [vmem:[#allocation2 + $0x19] sm:$0x3] }
  0x1a   :  { %548 = vmatpush.bf16.msrb.mxu2 %v1657_v57  ;;  %v267_v8 = vld [vmem:[#allocation2 + $0x15] sm:$0x3]  ;;  %v355_v12 = vld [vmem:[#allocation2 + $0x5] sm:$0x3]  ;;  %v489_v34 = vld [vmem:[#allocation2 + $0x9] sm:$0x3] }
  0x1b   :  { %616 = vmatpush.bf16.msrb.mxu3 %v1661_v61  ;;  %v357_v16 = vld [vmem:[#allocation2 + $0x15] sm:$0x3]  ;;  %v488_v33 = vld [vmem:[#allocation2 + $0x5] sm:$0x3]  ;;  %v491_v40 = vld [vmem:[#allocation2 + $0x19] sm:$0x3] }
  0x1c   :  { %441 = vmatpush.bf16.msrb.mxu0 %v1653_v63  ;;  %v384_v23 = vld [vmem:[#allocation2 + $0x16] sm:$0x3]  ;;  %v1669_v39 = vld [vmem:[%s1991_s3 + $0x128] sm:$0xff]  ;;  %v645_v52 = vld [vmem:[#allocation2 + $0x8] sm:$0x3] }
  0x1d   :  { %481 = vmatpush.bf16.msrb.mxu1 %v1649_v0  ;;  %v490_v35 = vld [vmem:[#allocation2 + $0x15] sm:$0x3]  ;;  %v1665_v42 = vld [vmem:[%s1991_s3 + $0x108] sm:$0xff]  ;;  %v647_v56 = vld [vmem:[#allocation2 + $0x18] sm:$0x3] }
  0x1e   :  { %549 = vmatpush.bf16.msrb.mxu2 %v1656_v3  ;;  %v644_v51 = vld [vmem:[#allocation2 + $0x4] sm:$0x3]  ;;  %v646_v54 = vld [vmem:[#allocation2 + $0x14] sm:$0x3]  ;;  %v1668_v57 = vld [vmem:[%s1991_s3 + $0x120] sm:$0xff] }
  0x1f   :  { %v78_v46 = vld.sshfl [vmem:[#allocation1] sm:$0xff pattern:$0x73625140]  ;;  %617 = vmatpush.bf16.msrb.mxu3 %v1660_v4  ;;  %v1683_v3 = vld [vmem:[%s1991_s3 + $0x198] sm:$0xff]  ;;  %v1690_v4 = vld [vmem:[%s1991_s3 + $0x1d0] sm:$0xff] }
  0x20   :  { %97 = vst [vmem:[#allocation1] ss:$4 sm:$0xff] %v89_v44  ;;  %v80_v50 = vpack.c.bf16 %v78_v46, %v78_v46  ;;  %442 = vmatpush.bf16.msrb.mxu0 %v1652_v17  ;;  %v1676_v44 = vld [vmem:[%s1991_s3 + $0x160] sm:$0xff]  ;;  %v557_v46 = vld [vmem:[#allocation2 + $0xa] sm:$0x3] }
  0x21   :  { %99 = vst [vmem:[#allocation1 + $0x1] ss:$4 sm:$0xff] %v90_v45  ;;  %482 = vmatpush.bf16.msrb.mxu1 %v1648_v18  ;;  %v556_v45 = vld [vmem:[#allocation2 + $0x6] sm:$0x3]  ;;  %v674_v63 = vld [vmem:[#allocation2 + $0x19] sm:$0x3] }
  0x22   :  { %101 = vst [vmem:[#allocation1 + $0x2] ss:$4 sm:$0xff] %v91_v47  ;;  %1278 = vmatmul.msk.bf16.vlgmr.msra.gmra.mxu1 %vm140_vm2, %v80_v50  ;;  %v559_v50 = vld [vmem:[#allocation2 + $0x1a] sm:$0x3] }
  0x23   :  { %103 = vst [vmem:[#allocation1 + $0x3] ss:$4 sm:$0xff] %v92_v48  ;;  %v558_v48 = vld [vmem:[#allocation2 + $0x16] sm:$0x3]  ;;  %v1688_v18 = vld [vmem:[%s1991_s3 + $0x1c0] sm:$0xff] }
  0x25   :  { %769 = vmatpush.bf16.msra.mxu1 %v1667_v28  ;;  %v936_v28 = vld [vmem:[#allocation2 + $0x9] sm:$0x3] }
  0x29   :  { %770 = vmatpush.bf16.msra.mxu1 %v1666_v32  ;;  %v938_v32 = vld [vmem:[#allocation2 + $0x19] sm:$0x3] }
  0x2a   :  { %v104_v62 = vld.sshfl [vmem:[#allocation1] sm:$0xff pattern:$0x73625140] }
  0x2b   :  { %205 = vst [vmem:[#allocation1] ss:$4 sm:$0xff] %v197_v58  ;;  %v106_v2 = vpack.c.bf16 %v104_v62, %v104_v62  ;;  %v1664_v58 = vld [vmem:[%s1991_s3 + $0x100] sm:$0xff]  ;;  %v673_v62 = vld [vmem:[#allocation2 + $0x15] sm:$0x3] }
  0x2c   :  { %207 = vst [vmem:[#allocation1 + $0x1] ss:$4 sm:$0xff] %v198_v59  ;;  %v671_v59 = vld [vmem:[#allocation2 + $0x5] sm:$0x3] }
  0x2d   :  { %209 = vst [vmem:[#allocation1 + $0x2] ss:$4 sm:$0xff] %v199_v60  ;;  %1261 = vmatmul.msk.bf16.vlgmr.msra.gmra.mxu0 %vm140_vm2, %v106_v2  ;;  %771 = vmatpush.bf16.msra.mxu1 %v1665_v42  ;;  %v672_v60 = vld [vmem:[#allocation2 + $0x9] sm:$0x3]  ;;  %v1687_v2 = vld [vmem:[%s1991_s3 + $0x1b8] sm:$0xff] }
  0x2e   :  { %211 = vst [vmem:[#allocation1 + $0x3] ss:$4 sm:$0xff] %v200_v1  ;;  %729 = vmatpush.bf16.msra.mxu0 %v1671_v27  ;;  %v1691_v1 = vld [vmem:[%s1991_s3 + $0x1d8] sm:$0xff]  ;;  %v935_v27 = vld [vmem:[#allocation2 + $0x5] sm:$0x3] }
  0x31   :  { %772 = vmatpush.bf16.msra.mxu1 %v1664_v58 }
  0x32   :  { %730 = vmatpush.bf16.msra.mxu0 %v1670_v31 }
  0x35   :  { %v212_v7 = vld.sshfl [vmem:[#allocation1] sm:$0xff pattern:$0x73625140] }
  0x36   :  { %v214_v9 = vpack.c.bf16 %v212_v7, %v212_v7  ;;  %273 = vst [vmem:[#allocation1] ss:$4 sm:$0xff] %v265_v5  ;;  %731 = vmatpush.bf16.msra.mxu0 %v1669_v39  ;;  %v1695_v5 = vld [vmem:[%s1991_s3 + $0x1f8] sm:$0xff]  ;;  %v1682_v7 = vld [vmem:[%s1991_s3 + $0x190] sm:$0xff]  ;;  %v965_v39 = vld [vmem:[#allocation2 + $0x1a] sm:$0x3] }
  0x37   :  { %275 = vst [vmem:[#allocation1 + $0x1] ss:$4 sm:$0xff] %v266_v6  ;;  %v1686_v6 = vld [vmem:[%s1991_s3 + $0x1b0] sm:$0xff] }
  0x38   :  { %1303 = vmatmul.msk.bf16.vlgmr.msra.gmra.mxu2 %vm140_vm2, %v214_v9  ;;  %277 = vst [vmem:[#allocation1 + $0x2] ss:$4 sm:$0xff] %v267_v8  ;;  %v1694_v8 = vld [vmem:[%s1991_s3 + $0x1f0] sm:$0xff] }
  0x39   :  { %279 = vst [vmem:[#allocation1 + $0x3] ss:$4 sm:$0xff] %v268_v10  ;;  %837 = vmatpush.bf16.msra.mxu2 %v1675_v25  ;;  %v779_v9 = vld [vmem:[#allocation2 + $0x8] sm:$0x3]  ;;  %v780_v10 = vld [vmem:[#allocation2 + $0xc] sm:$0x3] }
  0x3a   :  { %732 = vmatpush.bf16.msra.mxu0 %v1668_v57 }
  0x3d   :  { %838 = vmatpush.bf16.msra.mxu2 %v1674_v29 }
  0x40   :  { %v280_v13 = vld.sshfl [vmem:[#allocation1] sm:$0xff pattern:$0x73625140] }
  0x41   :  { %v282_v15 = vpack.c.bf16 %v280_v13, %v280_v13  ;;  %362 = vst [vmem:[#allocation1] ss:$4 sm:$0xff] %v354_v11  ;;  %839 = vmatpush.bf16.msra.mxu2 %v1673_v36  ;;  %v781_v11 = vld [vmem:[#allocation2 + $0x18] sm:$0x3]  ;;  %v963_v36 = vld [vmem:[#allocation2 + $0xa] sm:$0x3] }
  0x42   :  { %364 = vst [vmem:[#allocation1 + $0x1] ss:$4 sm:$0xff] %v355_v12  ;;  %v1689_v12 = vld [vmem:[%s1991_s3 + $0x1c8] sm:$0xff] }
  0x43   :  { %1328 = vmatmul.msk.bf16.vlgmr.msra.gmra.mxu3 %vm140_vm2, %v282_v15  ;;  %366 = vst [vmem:[#allocation1 + $0x2] ss:$4 sm:$0xff] %v356_v14  ;;  %v1685_v14 = vld [vmem:[%s1991_s3 + $0x1a8] sm:$0xff] }
  0x44   :  { %368 = vst [vmem:[#allocation1 + $0x3] ss:$4 sm:$0xff] %v357_v16  ;;  %905 = vmatpush.bf16.msra.mxu3 %v1679_v26  ;;  %v1681_v15 = vld [vmem:[%s1991_s3 + $0x188] sm:$0xff]  ;;  %v782_v16 = vld [vmem:[#allocation2 + $0x1c] sm:$0x3] }
  0x45   :  { %840 = vmatpush.bf16.msra.mxu2 %v1672_v43  ;;  %v850_v26 = vld [vmem:[#allocation2 + $0x1d] sm:$0x3]  ;;  %v1069_v43 = vld [vmem:[#allocation2 + $0x9] sm:$0x3] }
  0x48   :  { %906 = vmatpush.bf16.msra.mxu3 %v1678_v30  ;;  %v937_v30 = vld [vmem:[#allocation2 + $0x15] sm:$0x3] }
  0x4b   :  { %v369_v21 = vld.sshfl [vmem:[#allocation1] sm:$0xff pattern:$0x73625140] }
  0x4c   :  { %389 = vst [vmem:[#allocation1] ss:$4 sm:$0xff] %v381_v19  ;;  %v371_v24 = vpack.c.bf16 %v369_v21, %v369_v21  ;;  %907 = vmatpush.bf16.msra.mxu3 %v1677_v38  ;;  %v1684_v19 = vld [vmem:[%s1991_s3 + $0x1a0] sm:$0xff]  ;;  %v847_v21 = vld [vmem:[#allocation2 + $0x9] sm:$0x3] }
  0x4d   :  { %391 = vst [vmem:[#allocation1 + $0x1] ss:$4 sm:$0xff] %v382_v20  ;;  %v1680_v20 = vld [vmem:[%s1991_s3 + $0x180] sm:$0xff]  ;;  %v964_v38 = vld [vmem:[#allocation2 + $0x16] sm:$0x3] }
  0x4e   :  { %393 = vst [vmem:[#allocation1 + $0x2] ss:$4 sm:$0xff] %v383_v22  ;;  %1378 = vmatmul.msk.bf16.vlgmr.msrb.gmra.mxu1 %vm140_vm2, %v371_v24  ;;  %v848_v22 = vld [vmem:[#allocation2 + $0xd] sm:$0x3]  ;;  %v849_v24 = vld [vmem:[#allocation2 + $0x19] sm:$0x3] }
  0x4f   :  { %395 = vst [vmem:[#allocation1 + $0x3] ss:$4 sm:$0xff] %v384_v23  ;;  %1060 = vmatpush.bf16.msrb.mxu1 %v1683_v3 }
  0x50   :  { %908 = vmatpush.bf16.msra.mxu3 %v1676_v44  ;;  %v1070_v44 = vld [vmem:[#allocation2 + $0xd] sm:$0x3] }
  0x53   :  { %1061 = vmatpush.bf16.msrb.mxu1 %v1682_v7 }
  0x56   :  { %v396_v37 = vld.sshfl [vmem:[#allocation1] sm:$0xff pattern:$0x73625140] }
  0x57   :  { %496 = vst [vmem:[#allocation1] ss:$4 sm:$0xff] %v488_v33  ;;  %v398_v41 = vpack.c.bf16 %v396_v37, %v396_v37  ;;  %1062 = vmatpush.bf16.msrb.mxu1 %v1681_v15  ;;  %v1693_v33 = vld [vmem:[%s1991_s3 + $0x1e8] sm:$0xff] }
  0x58   :  { %498 = vst [vmem:[#allocation1 + $0x1] ss:$4 sm:$0xff] %v489_v34  ;;  %v1692_v34 = vld [vmem:[%s1991_s3 + $0x1e0] sm:$0xff] }
  0x59   :  { %500 = vst [vmem:[#allocation1 + $0x2] ss:$4 sm:$0xff] %v490_v35  ;;  %1361 = vmatmul.msk.bf16.vlgmr.msrb.gmra.mxu0 %vm140_vm2, %v398_v41  ;;  %v962_v35 = vld [vmem:[#allocation2 + $0x6] sm:$0x3] }
  0x5a   :  { %502 = vst [vmem:[#allocation1 + $0x3] ss:$4 sm:$0xff] %v491_v40  ;;  %1020 = vmatpush.bf16.msrb.mxu0 %v1687_v2 }
  0x5b   :  { %1063 = vmatpush.bf16.msrb.mxu1 %v1680_v20 }
  0x5e   :  { %1021 = vmatpush.bf16.msrb.mxu0 %v1686_v6 }
  0x61   :  { %v503_v47 = vld.sshfl [vmem:[#allocation1] sm:$0xff pattern:$0x73625140] }
  0x62   :  { %v505_v49 = vpack.c.bf16 %v503_v47, %v503_v47  ;;  %564 = vst [vmem:[#allocation1] ss:$4 sm:$0xff] %v556_v45  ;;  %1022 = vmatpush.bf16.msrb.mxu0 %v1685_v14  ;;  %v1072_v47 = vld [vmem:[#allocation2 + $0x1d] sm:$0x3] }
  0x63   :  { %566 = vst [vmem:[#allocation1 + $0x1] ss:$4 sm:$0xff] %v557_v46  ;;  %v1071_v46 = vld [vmem:[#allocation2 + $0x19] sm:$0x3] }
  0x64   :  { %1403 = vmatmul.msk.bf16.vlgmr.msrb.gmra.mxu2 %vm140_vm2, %v505_v49  ;;  %568 = vst [vmem:[#allocation1 + $0x2] ss:$4 sm:$0xff] %v558_v48 }
  0x65   :  { %570 = vst [vmem:[#allocation1 + $0x3] ss:$4 sm:$0xff] %v559_v50  ;;  %1127 = vmatpush.bf16.msrb.mxu2 %v1691_v1 }
  0x66   :  { %1023 = vmatpush.bf16.msrb.mxu0 %v1684_v19 }
  0x69   :  { %1128 = vmatpush.bf16.msrb.mxu2 %v1690_v4 }
  0x6c   :  { %v571_v53 = vld.sshfl [vmem:[#allocation1] sm:$0xff pattern:$0x73625140] }
  0x6d   :  { %v573_v55 = vpack.c.bf16 %v571_v53, %v571_v53  ;;  %652 = vst [vmem:[#allocation1] ss:$4 sm:$0xff] %v644_v51  ;;  %1129 = vmatpush.bf16.msrb.mxu2 %v1689_v12  ;;  %v1137_v51 = vld [vmem:[#allocation2 + $0xa] sm:$0x3] }
  0x6e   :  { %654 = vst [vmem:[#allocation1 + $0x1] ss:$4 sm:$0xff] %v645_v52  ;;  %v1138_v52 = vld [vmem:[#allocation2 + $0xe] sm:$0x3] }
  0x6f   :  { %1428 = vmatmul.msk.bf16.vlgmr.msrb.gmra.mxu3 %vm140_vm2, %v573_v55  ;;  %656 = vst [vmem:[#allocation1 + $0x2] ss:$4 sm:$0xff] %v646_v54  ;;  %v1139_v54 = vld [vmem:[#allocation2 + $0x1a] sm:$0x3] }
  0x70   :  { %658 = vst [vmem:[#allocation1 + $0x3] ss:$4 sm:$0xff] %v647_v56  ;;  %1195 = vmatpush.bf16.msrb.mxu3 %v1695_v5  ;;  %v1140_v56 = vld [vmem:[#allocation2 + $0x1e] sm:$0x3] }
  0x71   :  { %1130 = vmatpush.bf16.msrb.mxu2 %v1688_v18 }
  0x74   :  { %1196 = vmatpush.bf16.msrb.mxu3 %v1694_v8 }
  0x77   :  { %v659_v61 = vld.sshfl [vmem:[#allocation1] sm:$0xff pattern:$0x73625140] }
  0x78   :  { %679 = vst [vmem:[#allocation1] ss:$4 sm:$0xff] %v671_v59  ;;  %v661_v0 = vpack.c.bf16 %v659_v61, %v659_v61  ;;  %1197 = vmatpush.bf16.msrb.mxu3 %v1693_v33 }
  0x79   :  { %681 = vst [vmem:[#allocation1 + $0x1] ss:$4 sm:$0xff] %v672_v60 }
  0x7a   :  { %683 = vst [vmem:[#allocation1 + $0x2] ss:$4 sm:$0xff] %v673_v62  ;;  %1479 = vmatmul.msk.bf16.vlgmr.msra.gmra.mxu1 %vm140_vm2, %v661_v0 }
  0x7b   :  { %685 = vst [vmem:[#allocation1 + $0x3] ss:$4 sm:$0xff] %v674_v63 }
  0x7c   :  { %1198 = vmatpush.bf16.msrb.mxu3 %v1692_v34 }
  0x82   :  { %v686_v13 = vld.sshfl [vmem:[#allocation1] sm:$0xff pattern:$0x73625140] }
  0x83   :  { %787 = vst [vmem:[#allocation1] ss:$4 sm:$0xff] %v779_v9  ;;  %v688_v17 = vpack.c.bf16 %v686_v13, %v686_v13 }
  0x84   :  { %789 = vst [vmem:[#allocation1 + $0x1] ss:$4 sm:$0xff] %v780_v10 }
  0x85   :  { %791 = vst [vmem:[#allocation1 + $0x2] ss:$4 sm:$0xff] %v781_v11  ;;  %1462 = vmatmul.msk.bf16.vlgmr.msra.gmra.mxu0 %vm140_vm2, %v688_v17 }
  0x86   :  { %793 = vst [vmem:[#allocation1 + $0x3] ss:$4 sm:$0xff] %v782_v16 }
  0x8d   :  { %v794_v23 = vld.sshfl [vmem:[#allocation1] sm:$0xff pattern:$0x73625140] }
  0x8e   :  { %v796_v25 = vpack.c.bf16 %v794_v23, %v794_v23  ;;  %855 = vst [vmem:[#allocation1] ss:$4 sm:$0xff] %v847_v21 }
  0x8f   :  { %857 = vst [vmem:[#allocation1 + $0x1] ss:$4 sm:$0xff] %v848_v22 }
  0x90   :  { %1504 = vmatmul.msk.bf16.vlgmr.msra.gmra.mxu2 %vm140_vm2, %v796_v25  ;;  %859 = vst [vmem:[#allocation1 + $0x2] ss:$4 sm:$0xff] %v849_v24 }
  0x91   :  { %861 = vst [vmem:[#allocation1 + $0x3] ss:$4 sm:$0xff] %v850_v26 }
  0x98   :  { %v862_v29 = vld.sshfl [vmem:[#allocation1] sm:$0xff pattern:$0x73625140] }
  0x99   :  { %v864_v31 = vpack.c.bf16 %v862_v29, %v862_v29  ;;  %943 = vst [vmem:[#allocation1] ss:$4 sm:$0xff] %v935_v27 }
  0x9a   :  { %945 = vst [vmem:[#allocation1 + $0x1] ss:$4 sm:$0xff] %v936_v28 }
  0x9b   :  { %1529 = vmatmul.msk.bf16.vlgmr.msra.gmra.mxu3 %vm140_vm2, %v864_v31  ;;  %947 = vst [vmem:[#allocation1 + $0x2] ss:$4 sm:$0xff] %v937_v30 }
  0x9c   :  { %949 = vst [vmem:[#allocation1 + $0x3] ss:$4 sm:$0xff] %v938_v32 }
  0x9f   :  { %v193_v41 = vpop.f32.mrf.mxu1 }
  0xa3   :  { %v950_v37 = vld.sshfl [vmem:[#allocation1] sm:$0xff pattern:$0x73625140] }
  0xa4   :  { %970 = vst [vmem:[#allocation1] ss:$4 sm:$0xff] %v962_v35  ;;  %v952_v40 = vpack.c.bf16 %v950_v37, %v950_v37 }
  0xa5   :  { %972 = vst [vmem:[#allocation1 + $0x1] ss:$4 sm:$0xff] %v963_v36 }
  0xa6   :  { %974 = vst [vmem:[#allocation1 + $0x2] ss:$4 sm:$0xff] %v964_v38  ;;  %1580 = vmatmul.msk.bf16.vlgmr.msrb.gmra.mxu1 %vm140_vm2, %v952_v40 }
  0xa7   :  { %976 = vst [vmem:[#allocation1 + $0x3] ss:$4 sm:$0xff] %v965_v39  ;;  %v195_v49 = vpop.f32.mrf.mxu1 }
  0xaa   :  { %v153_v42 = vpop.f32.mrf.mxu0 }
  0xab   :  { %v194_v58 = vadd.f32 %v193_v41, %v153_v42 }
  0xae   :  { %v977_v45 = vld.sshfl [vmem:[#allocation1] sm:$0xff pattern:$0x73625140] }
  0xaf   :  { %1077 = vst [vmem:[#allocation1] ss:$4 sm:$0xff] %v1069_v43  ;;  %v979_v48 = vpack.c.bf16 %v977_v45, %v977_v45 }
  0xb0   :  { %1079 = vst [vmem:[#allocation1 + $0x1] ss:$4 sm:$0xff] %v1070_v44 }
  0xb1   :  { %1081 = vst [vmem:[#allocation1 + $0x2] ss:$4 sm:$0xff] %v1071_v46  ;;  %1563 = vmatmul.msk.bf16.vlgmr.msrb.gmra.mxu0 %vm140_vm2, %v979_v48 }
  0xb2   :  { %1083 = vst [vmem:[#allocation1 + $0x3] ss:$4 sm:$0xff] %v1072_v47  ;;  %v155_v50 = vpop.f32.mrf.mxu0 }
  0xb9   :  { %v1084_v53 = vld.sshfl [vmem:[#allocation1] sm:$0xff pattern:$0x73625140] }
  0xba   :  { %v1086_v55 = vpack.c.bf16 %v1084_v53, %v1084_v53  ;;  %1145 = vst [vmem:[#allocation1] ss:$4 sm:$0xff] %v1137_v51 }
  0xbb   :  { %1147 = vst [vmem:[#allocation1 + $0x1] ss:$4 sm:$0xff] %v1138_v52  ;;  %v260_v57 = vpop.f32.mrf.mxu2 }
  0xbc   :  { %1605 = vmatmul.msk.bf16.vlgmr.msrb.gmra.mxu2 %vm140_vm2, %v1086_v55  ;;  %1149 = vst [vmem:[#allocation1 + $0x2] ss:$4 sm:$0xff] %v1139_v54  ;;  %v264_v59 = vadd.f32 %v260_v57, %v194_v58 }
  0xbd   :  { %1151 = vst [vmem:[#allocation1 + $0x3] ss:$4 sm:$0xff] %v1140_v56 }
  0xc3   :  { %v262_v60 = vpop.f32.mrf.mxu2 }
  0xc4   :  { %v1152_v61 = vld.sshfl [vmem:[#allocation1] sm:$0xff pattern:$0x73625140] }
  0xc5   :  { %v1154_v62 = vpack.c.bf16 %v1152_v61, %v1152_v61 }
  0xc6   :  { %v328_v63 = vpop.f32.mrf.mxu3 }
  0xc7   :  { %1630 = vmatmul.msk.bf16.vlgmr.msrb.gmra.mxu3 %vm140_vm2, %v1154_v62  ;;  %v332_v0 = vadd.f32 %v328_v63, %v264_v59 }
  0xc9   :  { %v333_v1 = vpack.c.bf16 %v332_v0, %v332_v0  ;;  %v345_v7 = vmul.f32 %v332_v0, %v332_v0  ;;  %v337_v8 = vsel %vm336_vm4, %v332_v0, 0.0 }
  0xca   :  { %v338_v11 = vrot.slane %v337_v8, 4 }
  0xcb   :  { %335 = vst.msk [vmem:[%s1995_s4] sm:$0xf] %vm334_vm3, %v333_v1  ;;  %v484_v3 = vpop.f32.mrf.mxu1  ;;  %v346_v10 = vsel %vm336_vm4, %v345_v7, 0.0 }
  0xcc   :  { %v347_v13 = vrot.slane %v346_v10, 4  ;;  %v339_v14 = vadd.f32 %v338_v11, %v337_v8 }
  0xce   :  { %v330_v2 = vpop.f32.mrf.mxu3  ;;  %v348_v17 = vadd.f32 %v347_v13, %v346_v10  ;;  %v340_v18 = vrot.slane %v339_v14, 2 }
  0xd0   :  { %v349_v21 = vrot.slane %v348_v17, 2  ;;  %v341_v25 = vadd.f32 %v340_v18, %v339_v14 }
  0xd2   :  { %v350_v28 = vadd.f32 %v349_v21, %v348_v17  ;;  %v342_v31 = vrot.slane %v341_v25, 1 }
  0xd3   :  { %v486_v5 = vpop.f32.mrf.mxu1 }
  0xd4   :  { %v351_v36 = vrot.slane %v350_v28, 1  ;;  %v343_v39 = vadd.f32 %v342_v31, %v341_v25 }
  0xd6   :  { %v444_v4 = vpop.f32.mrf.mxu0  ;;  %v352_v42 = vadd.f32 %v351_v36, %v350_v28 }
  0xd7   :  { %v485_v12 = vadd.f32 %v484_v3, %v444_v4 }
  0xde   :  { %v446_v6 = vpop.f32.mrf.mxu0 }
  0xe7   :  { %v551_v9 = vpop.f32.mrf.mxu2 }
  0xe8   :  { %v555_v15 = vadd.f32 %v551_v9, %v485_v12 }
  0xef   :  { %v553_v16 = vpop.f32.mrf.mxu2 }
  0xf2   :  { %v619_v19 = vpop.f32.mrf.mxu3 }
  0xf3   :  { %v623_v20 = vadd.f32 %v619_v19, %v555_v15 }
  0xf5   :  { %v624_v22 = vpack.c.bf16 %v623_v20, %v623_v20  ;;  %v627_v23 = vsel %vm336_vm4, %v623_v20, 0.0  ;;  %v635_v24 = vmul.f32 %v623_v20, %v623_v20 }
  0xf6   :  { %v628_v26 = vrot.slane %v627_v23, 4 }
  0xf7   :  { %1429 = vst.msk [vmem:[%s1995_s4 + $0x4] sm:$0xf] %vm334_vm3, %v624_v22  ;;  %v636_v27 = vsel %vm336_vm4, %v635_v24, 0.0  ;;  %v774_v35 = vpop.f32.mrf.mxu1 }
  0xf8   :  { %v629_v29 = vadd.f32 %v628_v26, %v627_v23  ;;  %v637_v30 = vrot.slane %v636_v27, 4 }
  0xfa   :  { %v630_v32 = vrot.slane %v629_v29, 2  ;;  %v638_v33 = vadd.f32 %v637_v30, %v636_v27  ;;  %v621_v34 = vpop.f32.mrf.mxu3 }
  0xfc   :  { %v631_v37 = vadd.f32 %v630_v32, %v629_v29  ;;  %v639_v38 = vrot.slane %v638_v33, 2 }
  0xfe   :  { %v632_v40 = vrot.slane %v631_v37, 1  ;;  %v640_v41 = vadd.f32 %v639_v38, %v638_v33 }
  0xff   :  { %v776_v48 = vpop.f32.mrf.mxu1 }
 0x100   :  { %v633_v43 = vadd.f32 %v632_v40, %v631_v37  ;;  %v641_v44 = vrot.slane %v640_v41, 1 }
 0x102   :  { %v634_v45 = vadd.f32 %v633_v43, %v343_v39  ;;  %v642_v46 = vadd.f32 %v641_v44, %v640_v41  ;;  %v734_v47 = vpop.f32.mrf.mxu0 }
 0x103   :  { %v775_v52 = vadd.f32 %v774_v35, %v734_v47 }
 0x104   :  { %v643_v49 = vadd.f32 %v642_v46, %v352_v42 }
 0x10a   :  { %v736_v50 = vpop.f32.mrf.mxu0 }
 0x113   :  { %v842_v51 = vpop.f32.mrf.mxu2 }
 0x114   :  { %v846_v53 = vadd.f32 %v842_v51, %v775_v52 }
 0x11b   :  { %v844_v54 = vpop.f32.mrf.mxu2 }
 0x11e   :  { %v910_v55 = vpop.f32.mrf.mxu3 }
 0x11f   :  { %v914_v56 = vadd.f32 %v910_v55, %v846_v53 }
 0x121   :  { %v915_v57 = vpack.c.bf16 %v914_v56, %v914_v56  ;;  %v926_v63 = vmul.f32 %v914_v56, %v914_v56  ;;  %v918_v0 = vsel %vm336_vm4, %v914_v56, 0.0 }
 0x122   :  { %v919_v3 = vrot.slane %v918_v0, 4 }
 0x123   :  { %1530 = vst.msk [vmem:[%s1995_s4 + $0x8] sm:$0xf] %vm334_vm3, %v915_v57  ;;  %v1065_v58 = vpop.f32.mrf.mxu1  ;;  %v927_v1 = vsel %vm336_vm4, %v926_v63, 0.0 }
 0x124   :  { %v928_v4 = vrot.slane %v927_v1, 4  ;;  %v920_v6 = vadd.f32 %v919_v3, %v918_v0 }
 0x126   :  { %v912_v59 = vpop.f32.mrf.mxu3  ;;  %v929_v7 = vadd.f32 %v928_v4, %v927_v1  ;;  %v921_v10 = vrot.slane %v920_v6, 2 }
 0x128   :  { %v930_v11 = vrot.slane %v929_v7, 2  ;;  %v922_v17 = vadd.f32 %v921_v10, %v920_v6 }
 0x12a   :  { %v931_v18 = vadd.f32 %v930_v11, %v929_v7  ;;  %v923_v23 = vrot.slane %v922_v17, 1 }
 0x12b   :  { %v1067_v60 = vpop.f32.mrf.mxu1 }
 0x12c   :  { %v932_v24 = vrot.slane %v931_v18, 1  ;;  %v924_v30 = vadd.f32 %v923_v23, %v922_v17 }
 0x12e   :  { %v1025_v61 = vpop.f32.mrf.mxu0  ;;  %v933_v31 = vadd.f32 %v932_v24, %v931_v18  ;;  %v925_v36 = vadd.f32 %v924_v30, %v634_v45 }
 0x12f   :  { %v1066_v5 = vadd.f32 %v1065_v58, %v1025_v61 }
 0x130   :  { %v934_v37 = vadd.f32 %v933_v31, %v643_v49 }
 0x136   :  { %v1027_v62 = vpop.f32.mrf.mxu0 }
 0x13f   :  { %v1132_v2 = vpop.f32.mrf.mxu2 }
 0x140   :  { %v1136_v8 = vadd.f32 %v1132_v2, %v1066_v5 }
 0x147   :  { %v1134_v9 = vpop.f32.mrf.mxu2 }
 0x14a   :  { %v1200_v12 = vpop.f32.mrf.mxu3 }
 0x14b   :  { %v1204_v13 = vadd.f32 %v1200_v12, %v1136_v8 }
 0x14d   :  { %v1205_v14 = vpack.c.bf16 %v1204_v13, %v1204_v13  ;;  %v1208_v15 = vsel %vm336_vm4, %v1204_v13, 0.0  ;;  %v1216_v16 = vmul.f32 %v1204_v13, %v1204_v13 }
 0x14e   :  { %v1209_v19 = vrot.slane %v1208_v15, 4 }
 0x14f   :  { %1631 = vst.msk [vmem:[%s1995_s4 + $0xc] sm:$0xf] %vm334_vm3, %v1205_v14  ;;  %v1217_v20 = vsel %vm336_vm4, %v1216_v16, 0.0 }
 0x150   :  { %v1210_v21 = vadd.f32 %v1209_v19, %v1208_v15  ;;  %v1218_v22 = vrot.slane %v1217_v20, 4 }
 0x152   :  { %v1211_v25 = vrot.slane %v1210_v21, 2  ;;  %v1219_v26 = vadd.f32 %v1218_v22, %v1217_v20  ;;  %v1202_v27 = vpop.f32.mrf.mxu3 }
 0x154   :  { %v1212_v28 = vadd.f32 %v1211_v25, %v1210_v21  ;;  %v1220_v29 = vrot.slane %v1219_v26, 2 }
 0x156   :  { %v1213_v32 = vrot.slane %v1212_v28, 1  ;;  %v1221_v33 = vadd.f32 %v1220_v29, %v1219_v26 }
 0x158   :  { %v1214_v34 = vadd.f32 %v1213_v32, %v1212_v28  ;;  %v1222_v35 = vrot.slane %v1221_v33, 1 }
 0x15a   :  { %v1223_v38 = vadd.f32 %v1222_v35, %v1221_v33  ;;  %v1215_v39 = vadd.f32 %v1214_v34, %v925_v36 }
 0x15c   :  { %v1224_v40 = vadd.f32 %v1223_v38, %v934_v37 }
 0x15e   :  { %v1226_v41 = vsel %vm1225_vm5, %v1215_v39, %v1224_v40 }
 0x15f   :  { %1228 = vst.msk [vmem:[%s1996_s5] sm:$0x3] %vm1227_vm6, %v1226_v41 }

// kernel: generator_forward.7
= control target key start
LH: loop header
LB: loop body
LE: loop exit
PB: predicated region body
PF: predicated region fallthrough
CT: control target
= control target key end

     0   :  { %s1767_s18 = smov 0   ;;  %s1769_s19 = smov 0   ;;  %s1993_s0 = inlined_call_operand.vmem [shape: bf16[2,4,4,32], index: 0, kind: input, shape index: {}]   ;;  %s1994_s1 = inlined_call_operand.vmem [shape: f32[1,32], index: 1, kind: input, shape index: {}]   ;;  %s1995_s2 = inlined_call_operand.vmem [shape: f32[1,32], index: 2, kind: input, shape index: {}]   ;;  %s1996_s3 = inlined_call_operand.vmem [shape: bf16[4,4,32,16], index: 3, kind: input, shape index: {}]   ;;  %s1997_s4 = inlined_call_operand.vmem [shape: bf16[4,32,16], index: 4, kind: output, shape index: {0}]   ;;  %s1998_s5 = inlined_call_operand.vmem [shape: f32[2,2,16], index: 5, kind: output, shape index: {1}]  }
   0x1   :  { %s1771_s20 = smov 0  }
   0x2 LB: > { %s1780_s21 = sadd.s32 4294967295, %s1734_s20   ;;  %s1782_s22 = sadd.s32 1, %s1734_s20   ;;  %s1734_s20 = sphi %s1771_s20, %s2002_s20   ;;  %s1730_s19 = sphi %s1769_s19, %s2001_s19   ;;  %s1726_s18 = sphi %s1767_s18, %s2000_s18  }
   0x3   : > { %s109_s23 = ssub.s32 %s1734_s20, %s1782_s22  ;;  %s112_s24 = sadd.s32 1, %s1730_s19 }
   0x4   : > { %p110_p0 = scmp.eq.s32.totalorder %s109_s23, 0  ;;  %p122_p1 = scmp.ne.s32.totalorder %s1730_s19, %s1726_s18 }
   0x5   : > { %p123_p2 = scmp.eq.s32.totalorder %s1780_s21, 1  ;;  %p1431_p3 = scmp.ge.s32.totalorder %s1734_s20, 1 }
   0x6   : > { %s1790_s25 = scalar_select %p110_p0, %s1730_s19, %s112_s24  }
   0x7   : > { %p1792_p4 = por %p123_p2, %p122_p1  ;;  %p190_p5 = scmp.lt.s32.totalorder %s1734_s20, 3 }
   0x9   : > { %p191_p6 = pnand %p1431_p3, %p190_p5 }
   0xa   : > { %p221_p7 = scmp.lt.s32.totalorder (!%p191_p6), %s1780_s21, 1  ;;  %s212_s27 = sand.u32 (!%p191_p6), 1, %s1726_s18  }
   0xb   : > { %194 = sbr.rel (%p191_p6) target bundleno = 347 (0x15b), region = 36  ;;  %s1432_s28 = sshll.u32 (!%p191_p6), %s212_s27, 5 }
   0xc   : > { %s1929_s29 = scalar_lea.vmem (!%p191_p6), [#allocation3], %s1432_s28 }
  0x10   : > { %v1657_v0 = vld [vmem:[%s1996_s3 + $0x28] sm:$0xff]  ;;  %v1659_v1 = vld [vmem:[%s1996_s3 + $0x38] sm:$0xff]  ;;  %vm232_vm0 = vcmask 259072   ;;  %v1656_v4 = vld [vmem:[%s1996_s3 + $0x20] sm:$0xff]  ;;  %v1736_v5 = vmov 0.0   ;;  %s1817_s14 = scalar_select %p221_p7, %s1780_s21, 1 }
  0x11   : > { %v1655_v2 = vld [vmem:[%s1996_s3 + $0x18] sm:$0xff]  ;;  %v1653_v3 = vld [vmem:[%s1996_s3 + $0x8] sm:$0xff]  ;;  %233 = vst.msk [vmem:[#allocation2] sm:$0x3f] %vm232_vm0, %v1736_v5  ;;  %427 = vmatpush.bf16.msra.mxu2 %v1657_v0  ;;  %483 = vmatpush.bf16.msra.mxu3 %v1659_v1  ;;  %v1658_v6 = vld [vmem:[%s1996_s3 + $0x30] sm:$0xff]  ;;  %vm268_vm1 = vcmask 257024  }
  0x12   : > { %234 = vst.msk [vmem:[#allocation2 + $0x8] sm:$0x3f] %vm232_vm0, %v1736_v5  ;;  %344 = vmatpush.bf16.msra.mxu0 %v1655_v2  ;;  %373 = vmatpush.bf16.msra.mxu1 %v1653_v3  ;;  %s1651_s15 = sshll.u32 %s1817_s14, 3  ;;  %v1710_v7 = vld [vmem:[%s1994_s1] ss:$0 sm:$0xff]  ;;  %v1654_v30 = vld [vmem:[%s1996_s3 + $0x10] sm:$0xff] }
  0x13   : > { %235 = vst.msk [vmem:[#allocation2 + $0x10] sm:$0x3f] %vm232_vm0, %v1736_v5  ;;  %s225_s20 = scalar_lea.vmem %s1993_s0, %s1651_s15  ;;  %v1711_v15 = vld [vmem:[%s1995_s2] ss:$0 sm:$0xff]  ;;  %v1665_v40 = vld [vmem:[%s1996_s3 + $0x68] sm:$0xff]  ;;  %v1667_v41 = vld [vmem:[%s1996_s3 + $0x78] sm:$0xff] }
  0x14   : > { %236 = vst.msk [vmem:[#allocation2 + $0x18] sm:$0x3f] %vm232_vm0, %v1736_v5  ;;  %v239_v8 = vld [vmem:[%s225_s20] sm:$0x3]  ;;  %v240_v9 = vld [vmem:[%s225_s20 + $0x2] sm:$0x3] }
  0x15   : > { %237 = vst.msk [vmem:[#allocation2 + $0x20] sm:$0x3f] %vm232_vm0, %v1736_v5  ;;  %428 = vmatpush.bf16.msra.mxu2 %v1656_v4  ;;  %484 = vmatpush.bf16.msra.mxu3 %v1658_v6  ;;  %v241_v10 = vld [vmem:[%s225_s20 + $0x4] sm:$0x3]  ;;  %v242_v11 = vld [vmem:[%s225_s20 + $0x6] sm:$0x3]  ;;  %v243_v12 = vunpack.c.l.bf16 %v239_v8  ;;  %v244_v13 = vunpack.c.l.bf16 %v240_v9 }
  0x16   : > { %v245_v14 = vunpack.c.l.bf16 %v241_v10  ;;  %238 = vst.msk [vmem:[#allocation2 + $0x28] sm:$0x3f] %vm232_vm0, %v1736_v5  ;;  %v246_v16 = vunpack.c.l.bf16 %v242_v11  ;;  %v1652_v31 = vld [vmem:[%s1996_s3] sm:$0xff]  ;;  %345 = vmatpush.bf16.msra.mxu0 %v1654_v30  ;;  %v1663_v42 = vld [vmem:[%s1996_s3 + $0x58] sm:$0xff]  ;;  %v1661_v43 = vld [vmem:[%s1996_s3 + $0x48] sm:$0xff]  ;;  %vm334_vm2 = vcmask 261120  }
  0x17   : > { %v251_v18 = vmul.f32 %v1710_v7, %v243_v12  ;;  %v252_v19 = vmul.f32 %v1710_v7, %v244_v13  ;;  %374 = vmatpush.bf16.msra.mxu1 %v1652_v31  ;;  %v1664_v44 = vld [vmem:[%s1996_s3 + $0x60] sm:$0xff]  ;;  %v1666_v46 = vld [vmem:[%s1996_s3 + $0x70] sm:$0xff]  ;;  %v1673_v12 = vld [vmem:[%s1996_s3 + $0xa8] sm:$0xff]  ;;  %vm495_vm3 = vcmask 125952   ;;  %vm498_vm4 = vcmask 130048   ;;  %s1435_s18 = sshll.u32 %s1817_s14, 1 }
  0x18   : > { %v273_v17 = vld [vmem:[#allocation2] sm:$0xf]  ;;  %v253_v20 = vmul.f32 %v1710_v7, %v245_v14  ;;  %v254_v21 = vmul.f32 %v1710_v7, %v246_v16  ;;  %v1662_v2 = vld [vmem:[%s1996_s3 + $0x50] sm:$0xff]  ;;  %v1660_v3 = vld [vmem:[%s1996_s3 + $0x40] sm:$0xff]  ;;  %vm1263_vm5 = vcmask 1040384   ;;  %s230_s7 = scalar_lea.vmem %s1998_s5, %s1435_s18  ;;  %vm1265_vm6 = vcmask 123904  }
  0x19   : > { %281 = vst [vmem:[#allocation1] ss:$2 sm:$0xff] %v273_v17  ;;  %v259_v22 = vadd.f32 %v1711_v15, %v251_v18  ;;  %v260_v23 = vadd.f32 %v1711_v15, %v252_v19  ;;  %v297_v35 = vld [vmem:[#allocation2 + $0x1] sm:$0xf]  ;;  %675 = vmatpush.bf16.msrb.mxu2 %v1665_v40  ;;  %731 = vmatpush.bf16.msrb.mxu3 %v1667_v41  ;;  %v1675_v13 = vld [vmem:[%s1996_s3 + $0xb8] sm:$0xff]  ;;  %v1672_v16 = vld [vmem:[%s1996_s3 + $0xa0] sm:$0xff] }
  0x1a   : > { %v261_v24 = vadd.f32 %v1711_v15, %v253_v20  ;;  %v262_v25 = vadd.f32 %v1711_v15, %v254_v21  ;;  %592 = vmatpush.bf16.msrb.mxu0 %v1663_v42  ;;  %v521_v62 = vld [vmem:[#allocation2 + $0x1] sm:$0xf]  ;;  %v1671_v14 = vld [vmem:[%s1996_s3 + $0x98] sm:$0xff]  ;;  %v1674_v18 = vld [vmem:[%s1996_s3 + $0xb0] sm:$0xff]  ;;  %s1684_s14 = sshll.u32 (%p1792_p4), %s1780_s21, 3 }
  0x1b   : > { %v263_v26 = vmax.f32 %v259_v22, 0.0  ;;  %v264_v27 = vmax.f32 %v260_v23, 0.0  ;;  %621 = vmatpush.bf16.msrb.mxu1 %v1661_v43  ;;  %v546_v7 = vld [vmem:[#allocation2 + $0x2] sm:$0xf]  ;;  %s1280_s10 = scalar_lea.vmem (%p1792_p4), %s1997_s4, %s1684_s14 }
  0x1c   : > { %v265_v28 = vmax.f32 %v261_v24, 0.0  ;;  %v266_v29 = vmax.f32 %v262_v25, 0.0  ;;  %v1669_v15 = vld [vmem:[%s1996_s3 + $0x88] sm:$0xff] }
  0x1d   : > { %269 = vst.msk [vmem:[#allocation2 + $0x9] sm:$0xf] %vm268_vm1, %v263_v26  ;;  %676 = vmatpush.bf16.msrb.mxu2 %v1664_v44  ;;  %732 = vmatpush.bf16.msrb.mxu3 %v1666_v46 }
  0x1e   : > { %270 = vst.msk [vmem:[#allocation2 + $0x11] sm:$0xf] %vm268_vm1, %v264_v27  ;;  %593 = vmatpush.bf16.msrb.mxu0 %v1662_v2 }
  0x1f   : > { %271 = vst.msk [vmem:[#allocation2 + $0x19] sm:$0xf] %vm268_vm1, %v265_v28  ;;  %622 = vmatpush.bf16.msrb.mxu1 %v1660_v3 }
  0x20   : > { %272 = vst.msk [vmem:[#allocation2 + $0x21] sm:$0xf] %vm268_vm1, %v266_v29 }
  0x24   : > { %v274_v32 = vld [vmem:[#allocation2 + $0x8] sm:$0xf] }
  0x25   : > { %v275_v33 = vld [vmem:[#allocation2 + $0x10] sm:$0xf]  ;;  %283 = vst [vmem:[#allocation1 + $0x1] ss:$2 sm:$0xff] %v274_v32  ;;  %v298_v36 = vld [vmem:[#allocation2 + $0x9] sm:$0xf] }
  0x26   : > { %v276_v34 = vld [vmem:[#allocation2 + $0x18] sm:$0xf]  ;;  %285 = vst [vmem:[#allocation1 + $0x10] ss:$2 sm:$0xff] %v275_v33  ;;  %v299_v37 = vld [vmem:[#allocation2 + $0x11] sm:$0xf] }
  0x27   : > { %287 = vst [vmem:[#allocation1 + $0x11] ss:$2 sm:$0xff] %v276_v34  ;;  %v300_v38 = vld [vmem:[#allocation2 + $0x19] sm:$0xf]  ;;  %v381_v48 = vld [vmem:[#allocation2 + $0x8] sm:$0xf] }
  0x28   : > { %v382_v49 = vld [vmem:[#allocation2 + $0x10] sm:$0xf]  ;;  %v383_v51 = vld [vmem:[#allocation2 + $0x18] sm:$0xf]  ;;  %v384_v52 = vld [vmem:[#allocation2 + $0x20] sm:$0xf] }
  0x29   : > { %v437_v55 = vld [vmem:[#allocation2 + $0x9] sm:$0xf]  ;;  %v438_v56 = vld [vmem:[#allocation2 + $0x11] sm:$0xf]  ;;  %v439_v58 = vld [vmem:[#allocation2 + $0x19] sm:$0xf] }
  0x2a   : > { %v440_v59 = vld [vmem:[#allocation2 + $0x21] sm:$0xf]  ;;  %v522_v63 = vld [vmem:[#allocation2 + $0x9] sm:$0xf]  ;;  %v523_v0 = vld [vmem:[#allocation2 + $0x11] sm:$0xf] }
  0x2b   : > { %v524_v4 = vld [vmem:[#allocation2 + $0x19] sm:$0xf]  ;;  %v547_v8 = vld [vmem:[#allocation2 + $0xa] sm:$0xf]  ;;  %v548_v9 = vld [vmem:[#allocation2 + $0x12] sm:$0xf] }
  0x2c   : > { %v288_v39 = vld.sshfl [vmem:[#allocation1] sm:$0xff pattern:$0x75316420]  ;;  %v629_v20 = vld [vmem:[#allocation2 + $0x9] sm:$0xf] }
  0x2d   : > { %305 = vst [vmem:[#allocation1] ss:$2 sm:$0xff] %v297_v35  ;;  %v549_v10 = vld [vmem:[#allocation2 + $0x1a] sm:$0xf]  ;;  %v630_v21 = vld [vmem:[#allocation2 + $0x11] sm:$0xf] }
  0x2e   : > { %v289_v45 = vld.sshfl [vmem:[#allocation1 + $0x10] sm:$0xff pattern:$0x75316420]  ;;  %307 = vst [vmem:[#allocation1 + $0x1] ss:$2 sm:$0xff] %v298_v36 }
  0x2f   : > { %309 = vst [vmem:[#allocation1 + $0x10] ss:$2 sm:$0xff] %v299_v37  ;;  %v292_v47 = vpack.c.bf16 %v289_v45, %v288_v39  ;;  %v631_v23 = vld [vmem:[#allocation2 + $0x19] sm:$0xf]  ;;  %v632_v24 = vld [vmem:[#allocation2 + $0x21] sm:$0xf] }
  0x30   : > { %311 = vst [vmem:[#allocation1 + $0x11] ss:$2 sm:$0xff] %v300_v38  ;;  %v685_v27 = vld [vmem:[#allocation2 + $0xa] sm:$0xf]  ;;  %v686_v28 = vld [vmem:[#allocation2 + $0x12] sm:$0xf] }
  0x31   : > { %1457 = vmatmul.msk.bf16.vlgmr.msra.gmra.mxu1 %vm334_vm2, %v292_v47  ;;  %v687_v30 = vld [vmem:[#allocation2 + $0x1a] sm:$0xf]  ;;  %v688_v31 = vld [vmem:[#allocation2 + $0x22] sm:$0xf]  ;;  %v768_v34 = vld [vmem:[#allocation2 + $0x8] sm:$0xf] }
  0x32   : > { %868 = vmatpush.bf16.msra.mxu1 %v1669_v15  ;;  %v769_v35 = vld [vmem:[#allocation2 + $0x10] sm:$0xf]  ;;  %v770_v36 = vld [vmem:[#allocation2 + $0x18] sm:$0xf]  ;;  %v1670_v38 = vld [vmem:[%s1996_s3 + $0x90] sm:$0xff] }
  0x33   : > { %v1668_v39 = vld [vmem:[%s1996_s3 + $0x80] sm:$0xff]  ;;  %v771_v40 = vld [vmem:[#allocation2 + $0x20] sm:$0xf]  ;;  %v793_v43 = vld [vmem:[#allocation2 + $0x9] sm:$0xf] }
  0x34   : > { %v794_v44 = vld [vmem:[#allocation2 + $0x11] sm:$0xf]  ;;  %v795_v46 = vld [vmem:[#allocation2 + $0x19] sm:$0xf]  ;;  %v796_v47 = vld [vmem:[#allocation2 + $0x21] sm:$0xf] }
  0x35   : > { %v312_v50 = vld.sshfl [vmem:[#allocation1] sm:$0xff pattern:$0x75316420]  ;;  %v935_v3 = vld [vmem:[#allocation2 + $0x21] sm:$0xf] }
  0x36   : > { %389 = vst [vmem:[#allocation1] ss:$2 sm:$0xff] %v381_v48  ;;  %869 = vmatpush.bf16.msra.mxu1 %v1668_v39  ;;  %v1041_v15 = vld [vmem:[#allocation2 + $0xa] sm:$0xf] }
  0x37   : > { %v313_v53 = vld.sshfl [vmem:[#allocation1 + $0x10] sm:$0xff pattern:$0x75316420]  ;;  %391 = vst [vmem:[#allocation1 + $0x1] ss:$2 sm:$0xff] %v382_v49 }
  0x38   : > { %393 = vst [vmem:[#allocation1 + $0x10] ss:$2 sm:$0xff] %v383_v51  ;;  %v316_v54 = vpack.c.bf16 %v313_v53, %v312_v50  ;;  %v877_v50 = vld [vmem:[#allocation2 + $0x10] sm:$0xf]  ;;  %v878_v51 = vld [vmem:[#allocation2 + $0x18] sm:$0xf] }
  0x39   : > { %395 = vst [vmem:[#allocation1 + $0x11] ss:$2 sm:$0xff] %v384_v52  ;;  %v1681_v52 = vld [vmem:[%s1996_s3 + $0xe8] sm:$0xff]  ;;  %v1683_v53 = vld [vmem:[%s1996_s3 + $0xf8] sm:$0xff] }
  0x3a   : > { %1448 = vmatmul.msk.bf16.vlgmr.msra.gmra.mxu0 %vm334_vm2, %v316_v54  ;;  %v1679_v54 = vld [vmem:[%s1996_s3 + $0xd8] sm:$0xff] }
  0x3b   : > { %839 = vmatpush.bf16.msra.mxu0 %v1671_v14 }
  0x3e   : > { %v396_v57 = vld.sshfl [vmem:[#allocation1] sm:$0xff pattern:$0x75316420] }
  0x3f   : > { %445 = vst [vmem:[#allocation1] ss:$2 sm:$0xff] %v437_v55  ;;  %840 = vmatpush.bf16.msra.mxu0 %v1670_v38 }
  0x40   : > { %v397_v60 = vld.sshfl [vmem:[#allocation1 + $0x10] sm:$0xff pattern:$0x75316420]  ;;  %447 = vst [vmem:[#allocation1 + $0x1] ss:$2 sm:$0xff] %v438_v56 }
  0x41   : > { %v400_v61 = vpack.c.bf16 %v397_v60, %v396_v57  ;;  %449 = vst [vmem:[#allocation1 + $0x10] ss:$2 sm:$0xff] %v439_v58  ;;  %v879_v56 = vld [vmem:[#allocation2 + $0x20] sm:$0xf]  ;;  %v880_v58 = vld [vmem:[#allocation2 + $0x28] sm:$0xf] }
  0x42   : > { %451 = vst [vmem:[#allocation1 + $0x11] ss:$2 sm:$0xff] %v440_v59  ;;  %v1677_v57 = vld [vmem:[%s1996_s3 + $0xc8] sm:$0xff]  ;;  %v1680_v59 = vld [vmem:[%s1996_s3 + $0xe0] sm:$0xff]  ;;  %v1678_v60 = vld [vmem:[%s1996_s3 + $0xd0] sm:$0xff] }
  0x43   : > { %1470 = vmatmul.msk.bf16.vlgmr.msra.gmra.mxu2 %vm334_vm2, %v400_v61 }
  0x44   : > { %923 = vmatpush.bf16.msra.mxu2 %v1673_v12  ;;  %v1019_v12 = vld [vmem:[#allocation2 + $0x21] sm:$0xf] }
  0x47   : > { %v452_v1 = vld.sshfl [vmem:[#allocation1] sm:$0xff pattern:$0x75316420] }
  0x48   : > { %529 = vst [vmem:[#allocation1] ss:$2 sm:$0xff] %v521_v62  ;;  %924 = vmatpush.bf16.msra.mxu2 %v1672_v16  ;;  %v1676_v62 = vld [vmem:[%s1996_s3 + $0xc0] sm:$0xff]  ;;  %v1042_v16 = vld [vmem:[#allocation2 + $0x12] sm:$0xf] }
  0x49   : > { %v453_v5 = vld.sshfl [vmem:[#allocation1 + $0x10] sm:$0xff pattern:$0x75316420]  ;;  %531 = vst [vmem:[#allocation1 + $0x1] ss:$2 sm:$0xff] %v522_v63 }
  0x4a   : > { %v456_v6 = vpack.c.bf16 %v453_v5, %v452_v1  ;;  %533 = vst [vmem:[#allocation1 + $0x10] ss:$2 sm:$0xff] %v523_v0  ;;  %v933_v0 = vld [vmem:[#allocation2 + $0x11] sm:$0xf]  ;;  %v934_v1 = vld [vmem:[#allocation2 + $0x19] sm:$0xf] }
  0x4b   : > { %535 = vst [vmem:[#allocation1 + $0x11] ss:$2 sm:$0xff] %v524_v4  ;;  %v936_v4 = vld [vmem:[#allocation2 + $0x29] sm:$0xf] }
  0x4c   : > { %1483 = vmatmul.msk.bf16.vlgmr.msra.gmra.mxu3 %vm334_vm2, %v456_v6 }
  0x4d   : > { %979 = vmatpush.bf16.msra.mxu3 %v1675_v13 }
  0x50   : > { %v536_v11 = vld.sshfl [vmem:[#allocation1] sm:$0xff pattern:$0x75316420] }
  0x51   : > { %554 = vst [vmem:[#allocation1] ss:$2 sm:$0xff] %v546_v7  ;;  %980 = vmatpush.bf16.msra.mxu3 %v1674_v18  ;;  %v1016_v7 = vld [vmem:[#allocation2 + $0x9] sm:$0xf]  ;;  %v1043_v18 = vld [vmem:[#allocation2 + $0x1a] sm:$0xf] }
  0x52   : > { %v537_v17 = vld.sshfl [vmem:[#allocation1 + $0x10] sm:$0xff pattern:$0x75316420]  ;;  %556 = vst [vmem:[#allocation1 + $0x1] ss:$2 sm:$0xff] %v547_v8 }
  0x53   : > { %558 = vst [vmem:[#allocation1 + $0x10] ss:$2 sm:$0xff] %v548_v9  ;;  %v540_v19 = vpack.c.bf16 %v537_v17, %v536_v11  ;;  %v1017_v8 = vld [vmem:[#allocation2 + $0x11] sm:$0xf]  ;;  %v1682_v11 = vld [vmem:[%s1996_s3 + $0xf0] sm:$0xff] }
  0x54   : > { %560 = vst [vmem:[#allocation1 + $0x11] ss:$2 sm:$0xff] %v549_v10  ;;  %v1018_v10 = vld [vmem:[#allocation2 + $0x19] sm:$0xf] }
  0x55   : > { %1509 = vmatmul.msk.bf16.vlgmr.msrb.gmra.mxu1 %vm334_vm2, %v540_v19  ;;  %v1044_v19 = vld [vmem:[#allocation2 + $0x22] sm:$0xf] }
  0x56   : > { %1116 = vmatpush.bf16.msrb.mxu1 %v1677_v57 }
  0x59   : > { %v561_v22 = vld.sshfl [vmem:[#allocation1] sm:$0xff pattern:$0x75316420] }
  0x5a   : > { %637 = vst [vmem:[#allocation1] ss:$2 sm:$0xff] %v629_v20  ;;  %1117 = vmatpush.bf16.msrb.mxu1 %v1676_v62 }
  0x5b   : > { %v562_v25 = vld.sshfl [vmem:[#allocation1 + $0x10] sm:$0xff pattern:$0x75316420]  ;;  %639 = vst [vmem:[#allocation1 + $0x1] ss:$2 sm:$0xff] %v630_v21 }
  0x5c   : > { %641 = vst [vmem:[#allocation1 + $0x10] ss:$2 sm:$0xff] %v631_v23  ;;  %v565_v26 = vpack.c.bf16 %v562_v25, %v561_v22  ;;  %v1124_v22 = vld [vmem:[#allocation2 + $0x11] sm:$0xf]  ;;  %v1125_v23 = vld [vmem:[#allocation2 + $0x19] sm:$0xf] }
  0x5d   : > { %643 = vst [vmem:[#allocation1 + $0x11] ss:$2 sm:$0xff] %v632_v24  ;;  %v1126_v25 = vld [vmem:[#allocation2 + $0x21] sm:$0xf] }
  0x5e   : > { %1500 = vmatmul.msk.bf16.vlgmr.msrb.gmra.mxu0 %vm334_vm2, %v565_v26  ;;  %v1127_v26 = vld [vmem:[#allocation2 + $0x29] sm:$0xf] }
  0x5f   : > { %1087 = vmatpush.bf16.msrb.mxu0 %v1679_v54 }
  0x62   : > { %v644_v29 = vld.sshfl [vmem:[#allocation1] sm:$0xff pattern:$0x75316420] }
  0x63   : > { %693 = vst [vmem:[#allocation1] ss:$2 sm:$0xff] %v685_v27  ;;  %1088 = vmatpush.bf16.msrb.mxu0 %v1678_v60 }
  0x64   : > { %v645_v32 = vld.sshfl [vmem:[#allocation1 + $0x10] sm:$0xff pattern:$0x75316420]  ;;  %695 = vst [vmem:[#allocation1 + $0x1] ss:$2 sm:$0xff] %v686_v28 }
  0x65   : > { %v648_v33 = vpack.c.bf16 %v645_v32, %v644_v29  ;;  %697 = vst [vmem:[#allocation1 + $0x10] ss:$2 sm:$0xff] %v687_v30  ;;  %v1180_v29 = vld [vmem:[#allocation2 + $0x12] sm:$0xf]  ;;  %v1181_v30 = vld [vmem:[#allocation2 + $0x1a] sm:$0xf] }
  0x66   : > { %699 = vst [vmem:[#allocation1 + $0x11] ss:$2 sm:$0xff] %v688_v31  ;;  %v1182_v32 = vld [vmem:[#allocation2 + $0x22] sm:$0xf] }
  0x67   : > { %1522 = vmatmul.msk.bf16.vlgmr.msrb.gmra.mxu2 %vm334_vm2, %v648_v33  ;;  %v1183_v33 = vld [vmem:[#allocation2 + $0x2a] sm:$0xf] }
  0x68   : > { %1170 = vmatpush.bf16.msrb.mxu2 %v1681_v52 }
  0x6b   : > { %v700_v37 = vld.sshfl [vmem:[#allocation1] sm:$0xff pattern:$0x75316420] }
  0x6c   : > { %776 = vst [vmem:[#allocation1] ss:$2 sm:$0xff] %v768_v34  ;;  %1171 = vmatpush.bf16.msrb.mxu2 %v1680_v59 }
  0x6d   : > { %v701_v41 = vld.sshfl [vmem:[#allocation1 + $0x10] sm:$0xff pattern:$0x75316420]  ;;  %778 = vst [vmem:[#allocation1 + $0x1] ss:$2 sm:$0xff] %v769_v35 }
  0x6e   : > { %v704_v42 = vpack.c.bf16 %v701_v41, %v700_v37  ;;  %780 = vst [vmem:[#allocation1 + $0x10] ss:$2 sm:$0xff] %v770_v36 }
  0x6f   : > { %782 = vst [vmem:[#allocation1 + $0x11] ss:$2 sm:$0xff] %v771_v40 }
  0x70   : > { %1535 = vmatmul.msk.bf16.vlgmr.msrb.gmra.mxu3 %vm334_vm2, %v704_v42 }
  0x71   : > { %1226 = vmatpush.bf16.msrb.mxu3 %v1683_v53 }
  0x74   : > { %v783_v45 = vld.sshfl [vmem:[#allocation1] sm:$0xff pattern:$0x75316420] }
  0x75   : > { %801 = vst [vmem:[#allocation1] ss:$2 sm:$0xff] %v793_v43  ;;  %1227 = vmatpush.bf16.msrb.mxu3 %v1682_v11 }
  0x76   : > { %v784_v48 = vld.sshfl [vmem:[#allocation1 + $0x10] sm:$0xff pattern:$0x75316420]  ;;  %803 = vst [vmem:[#allocation1 + $0x1] ss:$2 sm:$0xff] %v794_v44 }
  0x77   : > { %805 = vst [vmem:[#allocation1 + $0x10] ss:$2 sm:$0xff] %v795_v46  ;;  %v787_v49 = vpack.c.bf16 %v784_v48, %v783_v45 }
  0x78   : > { %807 = vst [vmem:[#allocation1 + $0x11] ss:$2 sm:$0xff] %v796_v47 }
  0x79   : > { %1563 = vmatmul.msk.bf16.vlgmr.msra.gmra.mxu1 %vm334_vm2, %v787_v49 }
  0x7d   : > { %v808_v55 = vld.sshfl [vmem:[#allocation1] sm:$0xff pattern:$0x75316420] }
  0x7e   : > { %885 = vst [vmem:[#allocation1] ss:$2 sm:$0xff] %v877_v50 }
  0x7f   : > { %v809_v61 = vld.sshfl [vmem:[#allocation1 + $0x10] sm:$0xff pattern:$0x75316420]  ;;  %887 = vst [vmem:[#allocation1 + $0x1] ss:$2 sm:$0xff] %v878_v51 }
  0x80   : > { %889 = vst [vmem:[#allocation1 + $0x10] ss:$2 sm:$0xff] %v879_v56  ;;  %v812_v63 = vpack.c.bf16 %v809_v61, %v808_v55 }
  0x81   : > { %891 = vst [vmem:[#allocation1 + $0x11] ss:$2 sm:$0xff] %v880_v58 }
  0x82   : > { %1554 = vmatmul.msk.bf16.vlgmr.msra.gmra.mxu0 %vm334_vm2, %v812_v63 }
  0x86   : > { %v892_v2 = vld.sshfl [vmem:[#allocation1] sm:$0xff pattern:$0x75316420] }
  0x87   : > { %941 = vst [vmem:[#allocation1] ss:$2 sm:$0xff] %v933_v0 }
  0x88   : > { %v893_v5 = vld.sshfl [vmem:[#allocation1 + $0x10] sm:$0xff pattern:$0x75316420]  ;;  %943 = vst [vmem:[#allocation1 + $0x1] ss:$2 sm:$0xff] %v934_v1 }
  0x89   : > { %v896_v6 = vpack.c.bf16 %v893_v5, %v892_v2  ;;  %945 = vst [vmem:[#allocation1 + $0x10] ss:$2 sm:$0xff] %v935_v3 }
  0x8a   : > { %947 = vst [vmem:[#allocation1 + $0x11] ss:$2 sm:$0xff] %v936_v4 }
  0x8b   : > { %1576 = vmatmul.msk.bf16.vlgmr.msra.gmra.mxu2 %vm334_vm2, %v896_v6 }
  0x8f   : > { %v948_v9 = vld.sshfl [vmem:[#allocation1] sm:$0xff pattern:$0x75316420] }
  0x90   : > { %1024 = vst [vmem:[#allocation1] ss:$2 sm:$0xff] %v1016_v7 }
  0x91   : > { %v949_v13 = vld.sshfl [vmem:[#allocation1 + $0x10] sm:$0xff pattern:$0x75316420]  ;;  %1026 = vst [vmem:[#allocation1 + $0x1] ss:$2 sm:$0xff] %v1017_v8 }
  0x92   : > { %v952_v14 = vpack.c.bf16 %v949_v13, %v948_v9  ;;  %1028 = vst [vmem:[#allocation1 + $0x10] ss:$2 sm:$0xff] %v1018_v10 }
  0x93   : > { %1030 = vst [vmem:[#allocation1 + $0x11] ss:$2 sm:$0xff] %v1019_v12 }
  0x94   : > { %1589 = vmatmul.msk.bf16.vlgmr.msra.gmra.mxu3 %vm334_vm2, %v952_v14 }
  0x98   : > { %v1031_v17 = vld.sshfl [vmem:[#allocation1] sm:$0xff pattern:$0x75316420] }
  0x99   : > { %1049 = vst [vmem:[#allocation1] ss:$2 sm:$0xff] %v1041_v15 }
  0x9a   : > { %v1032_v20 = vld.sshfl [vmem:[#allocation1 + $0x10] sm:$0xff pattern:$0x75316420]  ;;  %1051 = vst [vmem:[#allocation1 + $0x1] ss:$2 sm:$0xff] %v1042_v16 }
  0x9b   : > { %1053 = vst [vmem:[#allocation1 + $0x10] ss:$2 sm:$0xff] %v1043_v18  ;;  %v1035_v21 = vpack.c.bf16 %v1032_v20, %v1031_v17 }
  0x9c   : > { %1055 = vst [vmem:[#allocation1 + $0x11] ss:$2 sm:$0xff] %v1044_v19 }
  0x9d   : > { %1617 = vmatmul.msk.bf16.vlgmr.msrb.gmra.mxu1 %vm334_vm2, %v1035_v21 }
  0xa1   : > { %v1056_v24 = vld.sshfl [vmem:[#allocation1] sm:$0xff pattern:$0x75316420] }
  0xa2   : > { %1132 = vst [vmem:[#allocation1] ss:$2 sm:$0xff] %v1124_v22 }
  0xa3   : > { %v1057_v27 = vld.sshfl [vmem:[#allocation1 + $0x10] sm:$0xff pattern:$0x75316420]  ;;  %1134 = vst [vmem:[#allocation1 + $0x1] ss:$2 sm:$0xff] %v1125_v23 }
  0xa4   : > { %1136 = vst [vmem:[#allocation1 + $0x10] ss:$2 sm:$0xff] %v1126_v25  ;;  %v1060_v28 = vpack.c.bf16 %v1057_v27, %v1056_v24 }
  0xa5   : > { %1138 = vst [vmem:[#allocation1 + $0x11] ss:$2 sm:$0xff] %v1127_v26 }
  0xa6   : > { %1608 = vmatmul.msk.bf16.vlgmr.msrb.gmra.mxu0 %vm334_vm2, %v1060_v28 }
  0xaa   : > { %v1139_v31 = vld.sshfl [vmem:[#allocation1] sm:$0xff pattern:$0x75316420] }
  0xab   : > { %1188 = vst [vmem:[#allocation1] ss:$2 sm:$0xff] %v1180_v29 }
  0xac   : > { %v1140_v34 = vld.sshfl [vmem:[#allocation1 + $0x10] sm:$0xff pattern:$0x75316420]  ;;  %1190 = vst [vmem:[#allocation1 + $0x1] ss:$2 sm:$0xff] %v1181_v30 }
  0xad   : > { %v1143_v35 = vpack.c.bf16 %v1140_v34, %v1139_v31  ;;  %1192 = vst [vmem:[#allocation1 + $0x10] ss:$2 sm:$0xff] %v1182_v32 }
  0xae   : > { %1194 = vst [vmem:[#allocation1 + $0x11] ss:$2 sm:$0xff] %v1183_v33  ;;  %v376_v39 = vpop.f32.mrf.mxu1 }
  0xaf   : > { %1630 = vmatmul.msk.bf16.vlgmr.msrb.gmra.mxu2 %vm334_vm2, %v1143_v35 }
  0xb3   : > { %v1195_v36 = vld.sshfl [vmem:[#allocation1] sm:$0xff pattern:$0x75316420] }
  0xb5   : > { %v1196_v37 = vld.sshfl [vmem:[#allocation1 + $0x10] sm:$0xff pattern:$0x75316420] }
  0xb6   : > { %v1199_v38 = vpack.c.bf16 %v1196_v37, %v1195_v36  ;;  %v378_v44 = vpop.f32.mrf.mxu1 }
  0xb7   : > { %v347_v40 = vpop.f32.mrf.mxu0 }
  0xb8   : > { %1643 = vmatmul.msk.bf16.vlgmr.msrb.gmra.mxu3 %vm334_vm2, %v1199_v38  ;;  %v377_v41 = vadd.f32 %v376_v39, %v347_v40 }
  0xbf   : > { %v349_v46 = vpop.f32.mrf.mxu0 }
  0xc0   : > { %v379_v48 = vadd.f32 %v378_v44, %v349_v46 }
  0xc6   : > { %v430_v42 = vpop.f32.mrf.mxu2 }
  0xc7   : > { %v435_v43 = vadd.f32 %v430_v42, %v377_v41 }
  0xce   : > { %v432_v50 = vpop.f32.mrf.mxu2 }
  0xcf   : > { %v486_v45 = vpop.f32.mrf.mxu3  ;;  %v436_v51 = vadd.f32 %v432_v50, %v379_v48 }
  0xd0   : > { %v491_v47 = vadd.f32 %v486_v45, %v435_v43 }
  0xd2   : > { %v493_v49 = vpack.c.bf16 %v491_v47, %v491_v47  ;;  %v509_v52 = vmul.f32 %v491_v47, %v491_v47  ;;  %v499_v54 = vsel %vm498_vm4, %v491_v47, 0.0  ;;  %v624_v0 = vpop.f32.mrf.mxu1 }
  0xd4   : > { %496 = vst.msk [vmem:[%s1929_s29] sm:$0xf] %vm495_vm3, %v493_v49  ;;  %v511_v56 = vsel %vm498_vm4, %v509_v52, 0.0 }
  0xd7   : > { %v488_v53 = vpop.f32.mrf.mxu3 }
  0xd8   : > { %v492_v55 = vadd.f32 %v488_v53, %v436_v51 }
  0xda   : > { %v494_v57 = vpack.c.bf16 %v492_v55, %v492_v55  ;;  %v500_v58 = vsel %vm498_vm4, %v492_v55, 0.0  ;;  %v510_v59 = vmul.f32 %v492_v55, %v492_v55  ;;  %v626_v5 = vpop.f32.mrf.mxu1 }
  0xdb   : > { %v501_v60 = vadd.f32 %v500_v58, %v499_v54  ;;  %v595_v63 = vpop.f32.mrf.mxu0 }
  0xdc   : > { %497 = vst.msk [vmem:[%s1929_s29 + $0x4] sm:$0xf] %vm495_vm3, %v494_v57  ;;  %v512_v61 = vsel %vm498_vm4, %v510_v59, 0.0  ;;  %v625_v2 = vadd.f32 %v624_v0, %v595_v63 }
  0xdd   : > { %v513_v62 = vadd.f32 %v512_v61, %v511_v56  ;;  %v502_v9 = vrot.slane %v501_v60, 4 }
  0xdf   : > { %v514_v12 = vrot.slane %v513_v62, 4  ;;  %v503_v14 = vadd.f32 %v502_v9, %v501_v60 }
  0xe1   : > { %v515_v16 = vadd.f32 %v514_v12, %v513_v62  ;;  %v504_v20 = vrot.slane %v503_v14, 2 }
  0xe3   : > { %v597_v4 = vpop.f32.mrf.mxu0  ;;  %v516_v25 = vrot.slane %v515_v16, 2  ;;  %v505_v28 = vadd.f32 %v504_v20, %v503_v14 }
  0xe4   : > { %v627_v8 = vadd.f32 %v626_v5, %v597_v4 }
  0xe5   : > { %v517_v31 = vadd.f32 %v516_v25, %v515_v16  ;;  %v506_v34 = vrot.slane %v505_v28, 1 }
  0xe7   : > { %v518_v37 = vrot.slane %v517_v31, 1  ;;  %v507_v40 = vadd.f32 %v506_v34, %v505_v28 }
  0xe9   : > { %v519_v43 = vadd.f32 %v518_v37, %v517_v31 }
  0xea   : > { %v678_v1 = vpop.f32.mrf.mxu2 }
  0xeb   : > { %v683_v3 = vadd.f32 %v678_v1, %v625_v2 }
  0xf2   : > { %v680_v10 = vpop.f32.mrf.mxu2 }
  0xf3   : > { %v734_v6 = vpop.f32.mrf.mxu3  ;;  %v684_v13 = vadd.f32 %v680_v10, %v627_v8 }
  0xf4   : > { %v739_v7 = vadd.f32 %v734_v6, %v683_v3 }
  0xf6   : > { %v741_v11 = vpack.c.bf16 %v739_v7, %v739_v7  ;;  %v756_v15 = vmul.f32 %v739_v7, %v739_v7  ;;  %v746_v18 = vsel %vm498_vm4, %v739_v7, 0.0  ;;  %v871_v47 = vpop.f32.mrf.mxu1 }
  0xf8   : > { %1536 = vst.msk [vmem:[%s1929_s29 + $0x8] sm:$0xf] %vm495_vm3, %v741_v11  ;;  %v758_v21 = vsel %vm498_vm4, %v756_v15, 0.0 }
  0xfb   : > { %v736_v17 = vpop.f32.mrf.mxu3 }
  0xfc   : > { %v740_v19 = vadd.f32 %v736_v17, %v684_v13 }
  0xfe   : > { %v742_v22 = vpack.c.bf16 %v740_v19, %v740_v19  ;;  %v747_v23 = vsel %vm498_vm4, %v740_v19, 0.0  ;;  %v757_v24 = vmul.f32 %v740_v19, %v740_v19  ;;  %v873_v55 = vpop.f32.mrf.mxu1 }
  0xff   : > { %v748_v26 = vadd.f32 %v747_v23, %v746_v18  ;;  %v842_v46 = vpop.f32.mrf.mxu0 }
 0x100   : > { %1537 = vst.msk [vmem:[%s1929_s29 + $0xc] sm:$0xf] %vm495_vm3, %v742_v22  ;;  %v759_v27 = vsel %vm498_vm4, %v757_v24, 0.0  ;;  %v872_v52 = vadd.f32 %v871_v47, %v842_v46 }
 0x101   : > { %v749_v29 = vrot.slane %v748_v26, 4  ;;  %v760_v30 = vadd.f32 %v759_v27, %v758_v21 }
 0x103   : > { %v750_v32 = vadd.f32 %v749_v29, %v748_v26  ;;  %v761_v33 = vrot.slane %v760_v30, 4 }
 0x105   : > { %v751_v35 = vrot.slane %v750_v32, 2  ;;  %v762_v36 = vadd.f32 %v761_v33, %v760_v30 }
 0x107   : > { %v752_v38 = vadd.f32 %v751_v35, %v750_v32  ;;  %v763_v39 = vrot.slane %v762_v36, 2  ;;  %v844_v54 = vpop.f32.mrf.mxu0 }
 0x108   : > { %v874_v58 = vadd.f32 %v873_v55, %v844_v54 }
 0x109   : > { %v753_v41 = vrot.slane %v752_v38, 1  ;;  %v764_v42 = vadd.f32 %v763_v39, %v762_v36 }
 0x10b   : > { %v754_v44 = vadd.f32 %v753_v41, %v752_v38  ;;  %v765_v45 = vrot.slane %v764_v42, 1 }
 0x10d   : > { %v1947_v48 = vadd.f32 %v754_v44, %v507_v40  ;;  %v766_v49 = vadd.f32 %v765_v45, %v764_v42 }
 0x10e   : > { %v926_v51 = vpop.f32.mrf.mxu2 }
 0x10f   : > { %v1949_v50 = vadd.f32 %v766_v49, %v519_v43  ;;  %v931_v53 = vadd.f32 %v926_v51, %v872_v52 }
 0x116   : > { %v928_v59 = vpop.f32.mrf.mxu2 }
 0x117   : > { %v982_v56 = vpop.f32.mrf.mxu3  ;;  %v932_v61 = vadd.f32 %v928_v59, %v874_v58 }
 0x118   : > { %v987_v57 = vadd.f32 %v982_v56, %v931_v53 }
 0x11a   : > { %v989_v60 = vpack.c.bf16 %v987_v57, %v987_v57  ;;  %v1004_v1 = vmul.f32 %v987_v57, %v987_v57  ;;  %v1119_v4 = vpop.f32.mrf.mxu1  ;;  %v994_v7 = vsel %vm498_vm4, %v987_v57, 0.0 }
 0x11c   : > { %1590 = vst.msk [vmem:[%s1929_s29 + $0x10] sm:$0xf] %vm495_vm3, %v989_v60  ;;  %v1006_v8 = vsel %vm498_vm4, %v1004_v1, 0.0 }
 0x11f   : > { %v984_v62 = vpop.f32.mrf.mxu3 }
 0x120   : > { %v988_v63 = vadd.f32 %v984_v62, %v932_v61 }
 0x122   : > { %v990_v0 = vpack.c.bf16 %v988_v63, %v988_v63  ;;  %v1005_v2 = vmul.f32 %v988_v63, %v988_v63  ;;  %v995_v9 = vsel %vm498_vm4, %v988_v63, 0.0  ;;  %v1121_v19 = vpop.f32.mrf.mxu1 }
 0x123   : > { %v1090_v3 = vpop.f32.mrf.mxu0  ;;  %v996_v12 = vadd.f32 %v995_v9, %v994_v7 }
 0x124   : > { %1591 = vst.msk [vmem:[%s1929_s29 + $0x14] sm:$0xf] %vm495_vm3, %v990_v0  ;;  %v1120_v5 = vadd.f32 %v1119_v4, %v1090_v3  ;;  %v1007_v10 = vsel %vm498_vm4, %v1005_v2, 0.0 }
 0x125   : > { %v1008_v13 = vadd.f32 %v1007_v10, %v1006_v8  ;;  %v997_v16 = vrot.slane %v996_v12, 4 }
 0x127   : > { %v1009_v17 = vrot.slane %v1008_v13, 4  ;;  %v998_v23 = vadd.f32 %v997_v16, %v996_v12 }
 0x129   : > { %v1010_v24 = vadd.f32 %v1009_v17, %v1008_v13  ;;  %v999_v29 = vrot.slane %v998_v23, 2 }
 0x12b   : > { %v1092_v18 = vpop.f32.mrf.mxu0  ;;  %v1011_v30 = vrot.slane %v1010_v24, 2  ;;  %v1000_v38 = vadd.f32 %v999_v29, %v998_v23  ;;  %v1305_v0 = vld [vmem:[%s1929_s29 + $0x10] sm:$0xff] (%p1792_p4)  }
 0x12c   : > { %v1122_v22 = vadd.f32 %v1121_v19, %v1092_v18  ;;  %1306 = vst [vmem:[%s1280_s10 + $0x20] sm:$0xff] (%p1792_p4), %v1305_v0  }
 0x12d   : > { %v1012_v39 = vadd.f32 %v1011_v30, %v1010_v24  ;;  %v1001_v44 = vrot.slane %v1000_v38, 1 }
 0x12f   : > { %v1013_v45 = vrot.slane %v1012_v39, 1  ;;  %v1002_v52 = vadd.f32 %v1001_v44, %v1000_v38 }
 0x131   : > { %v1014_v53 = vadd.f32 %v1013_v45, %v1012_v39  ;;  %v1003_v58 = vadd.f32 %v1002_v52, %v1947_v48  ;;  %v1297_v48 = vld [vmem:[%s1929_s29] sm:$0xff] (%p1792_p4)  }
 0x132   : > { %v1173_v6 = vpop.f32.mrf.mxu2  ;;  %1298 = vst [vmem:[%s1280_s10] sm:$0xff] (%p1792_p4), %v1297_v48  }
 0x133   : > { %v1178_v11 = vadd.f32 %v1173_v6, %v1120_v5  ;;  %v1015_v59 = vadd.f32 %v1014_v53, %v1949_v50  ;;  %v1301_v50 = vld [vmem:[%s1929_s29 + $0x8] sm:$0xff] (%p1792_p4)  }
 0x134   : > { %1302 = vst [vmem:[%s1280_s10 + $0x10] sm:$0xff] (%p1792_p4), %v1301_v50  }
 0x13a   : > { %v1175_v21 = vpop.f32.mrf.mxu2 }
 0x13b   : > { %v1229_v14 = vpop.f32.mrf.mxu3  ;;  %v1179_v25 = vadd.f32 %v1175_v21, %v1122_v22 }
 0x13c   : > { %v1234_v15 = vadd.f32 %v1229_v14, %v1178_v11 }
 0x13e   : > { %v1236_v20 = vpack.c.bf16 %v1234_v15, %v1234_v15  ;;  %v1251_v27 = vmul.f32 %v1234_v15, %v1234_v15  ;;  %v1241_v31 = vsel %vm498_vm4, %v1234_v15, 0.0 }
 0x140   : > { %1644 = vst.msk [vmem:[%s1929_s29 + $0x18] sm:$0xf] %vm495_vm3, %v1236_v20  ;;  %v1253_v36 = vsel %vm498_vm4, %v1251_v27, 0.0 }
 0x143   : > { %v1231_v26 = vpop.f32.mrf.mxu3 }
 0x144   : > { %v1235_v28 = vadd.f32 %v1231_v26, %v1179_v25 }
 0x146   : > { %v1237_v32 = vpack.c.bf16 %v1235_v28, %v1235_v28  ;;  %v1242_v33 = vsel %vm498_vm4, %v1235_v28, 0.0  ;;  %v1252_v34 = vmul.f32 %v1235_v28, %v1235_v28 }
 0x147   : > { %v1243_v35 = vadd.f32 %v1242_v33, %v1241_v31 }
 0x148   : > { %1645 = vst.msk [vmem:[%s1929_s29 + $0x1c] sm:$0xf] %vm495_vm3, %v1237_v32  ;;  %v1254_v37 = vsel %vm498_vm4, %v1252_v34, 0.0 }
 0x149   : > { %v1244_v40 = vrot.slane %v1243_v35, 4  ;;  %v1255_v41 = vadd.f32 %v1254_v37, %v1253_v36 }
 0x14b   : > { %v1245_v42 = vadd.f32 %v1244_v40, %v1243_v35  ;;  %v1256_v43 = vrot.slane %v1255_v41, 4 }
 0x14d   : > { %v1246_v46 = vrot.slane %v1245_v42, 2  ;;  %v1257_v47 = vadd.f32 %v1256_v43, %v1255_v41 }
 0x14f   : > { %v1247_v49 = vadd.f32 %v1246_v46, %v1245_v42  ;;  %v1258_v51 = vrot.slane %v1257_v47, 2  ;;  %v1309_v1 = vld [vmem:[%s1929_s29 + $0x18] sm:$0xff] (%p1792_p4)  }
 0x150   : > { %1310 = vst [vmem:[%s1280_s10 + $0x30] sm:$0xff] (%p1792_p4), %v1309_v1  }
 0x151   : > { %v1248_v54 = vrot.slane %v1247_v49, 1  ;;  %v1259_v55 = vadd.f32 %v1258_v51, %v1257_v47 }
 0x153   : > { %v1249_v56 = vadd.f32 %v1248_v54, %v1247_v49  ;;  %v1260_v57 = vrot.slane %v1259_v55, 1 }
 0x155   : > { %v1261_v60 = vadd.f32 %v1260_v57, %v1259_v55  ;;  %v1250_v61 = vadd.f32 %v1249_v56, %v1003_v58 }
 0x156   : > { %1277 = sbr.rel (!%p1792_p4) target bundleno = 347 (0x15b), region = 40 }
 0x157   : > { %v1262_v62 = vadd.f32 %v1261_v60, %v1015_v59 }
 0x159   : > { %v1264_v63 = vsel %vm1263_vm5, %v1250_v61, %v1262_v62 }
 0x15a   : > { %1266 = vst.msk [vmem:[%s230_s7] sm:$0x3] %vm1265_vm6, %v1264_v63 }
 0x15b PF: > { %p13_p8 = scmp.ge.s32.totalorder %s1782_s22, 4   ;;  %s2000_s18 = smov %s1730_s19 }
 0x15c   : > { %s2001_s19 = smov %s1790_s25  ;;  %s2002_s20 = smov %s1782_s22 }
 0x15d   :  { %15 = sbr.rel (!%p13_p8) target bundleno = 2 (0x2), region = 187 }

// kernel: generator_forward.8
= control target key start
LH: loop header
LB: loop body
LE: loop exit
PB: predicated region body
PF: predicated region fallthrough
CT: control target
= control target key end

     0   :  { %s2219_s18 = smov 0   ;;  %s2221_s19 = smov 0   ;;  %s2760_s0 = inlined_call_operand.vmem [shape: bf16[2,8,8,16], index: 0, kind: input, shape index: {}]   ;;  %s2761_s1 = inlined_call_operand.vmem [shape: f32[1,16], index: 1, kind: input, shape index: {}]   ;;  %s2762_s2 = inlined_call_operand.vmem [shape: f32[1,16], index: 2, kind: input, shape index: {}]   ;;  %s2763_s3 = inlined_call_operand.vmem [shape: bf16[4,4,16,8], index: 3, kind: input, shape index: {}]   ;;  %s2764_s4 = inlined_call_operand.vmem [shape: bf16[4,128,8], index: 4, kind: output, shape index: {0}]   ;;  %s2765_s5 = inlined_call_operand.vmem [shape: f32[2,2,8], index: 5, kind: output, shape index: {1}]  }
   0x1   :  { %s2223_s20 = smov 0  }
   0x2 LB: > { %s2232_s21 = sadd.s32 4294967295, %s2186_s20   ;;  %s2234_s22 = sadd.s32 1, %s2186_s20   ;;  %s2186_s20 = sphi %s2223_s20, %s2769_s20   ;;  %s2182_s19 = sphi %s2221_s19, %s2768_s19   ;;  %s2178_s18 = sphi %s2219_s18, %s2767_s18  }
   0x3   : > { %s109_s23 = ssub.s32 %s2186_s20, %s2234_s22  ;;  %s112_s24 = sadd.s32 1, %s2182_s19 }
   0x4   : > { %p110_p0 = scmp.eq.s32.totalorder %s109_s23, 0  ;;  %p122_p1 = scmp.ne.s32.totalorder %s2182_s19, %s2178_s18 }
   0x5   : > { %p123_p2 = scmp.eq.s32.totalorder %s2232_s21, 1  ;;  %p1908_p3 = scmp.ge.s32.totalorder %s2186_s20, 1 }
   0x6   : > { %s2242_s25 = scalar_select %p110_p0, %s2182_s19, %s112_s24  }
   0x7   : > { %p2244_p4 = por %p123_p2, %p122_p1  ;;  %p190_p5 = scmp.lt.s32.totalorder %s2186_s20, 3 }
   0x9   : > { %p191_p6 = pnand %p1908_p3, %p190_p5 }
   0xa   : > { %p221_p7 = scmp.lt.s32.totalorder (!%p191_p6), %s2232_s21, 1  ;;  %s212_s6 = sand.u32 (!%p191_p6), 1, %s2178_s18  }
   0xb   : > { %194 = sbr.rel (%p191_p6) target bundleno = 453 (0x1c5), region = 36  ;;  %s1909_s7 = sshll.u32 (!%p191_p6), %s212_s6, 7 }
   0xc   : > { %s2512_s8 = scalar_lea.vmem (!%p191_p6), [#allocation3], %s1909_s7 }
  0x10   : > { %v2102_v0 = vld [vmem:[%s2763_s3 + $0x8] sm:$0xff]  ;;  %v2101_v1 = vld [vmem:[%s2763_s3] sm:$0xff]  ;;  %v2103_v2 = vld [vmem:[%s2763_s3 + $0x10] sm:$0xff]  ;;  %vm232_vm0 = vcmask 130048   ;;  %v2188_v4 = vmov 0.0   ;;  %vm234_vm1 = vcmask 123904  }
  0x11   : > { %v2104_v3 = vld [vmem:[%s2763_s3 + $0x18] sm:$0xff]  ;;  %233 = vst.msk [vmem:[#allocation2] sm:$0xff] %vm232_vm0, %v2188_v4  ;;  %v2107_v5 = vld [vmem:[%s2763_s3 + $0x30] sm:$0xff]  ;;  %365 = vmatpush.bf16.msra.mxu0 %v2102_v0  ;;  %412 = vmatpush.bf16.msra.mxu1 %v2101_v1  ;;  %s2267_s12 = scalar_select %p221_p7, %s2232_s21, 1  ;;  %v2106_v7 = vld [vmem:[%s2763_s3 + $0x28] sm:$0xff]  ;;  %vm582_vm2 = vcmask 60416  }
  0x12   : > { %235 = vst.msk [vmem:[#allocation2 + $0x8] sm:$0x3] %vm234_vm1, %v2188_v4  ;;  %v2108_v6 = vld [vmem:[%s2763_s3 + $0x38] sm:$0xff]  ;;  %474 = vmatpush.bf16.msra.mxu2 %v2103_v2  ;;  %544 = vmatpush.bf16.msra.mxu3 %v2104_v3  ;;  %v2105_v8 = vld [vmem:[%s2763_s3 + $0x20] sm:$0xff]  ;;  %vm591_vm3 = vcmask 64512   ;;  %vm1644_vm4 = vcmask 1040384  }
  0x13   : > { %236 = vst.msk [vmem:[#allocation2 + $0x10] sm:$0xff] %vm232_vm0, %v2188_v4  ;;  %s2100_s17 = sshll.u32 %s2267_s12, 5  ;;  %v2293_v9 = vld [vmem:[%s2761_s1] ss:$0 sm:$0xff]  ;;  %s1912_s18 = sshll.u32 %s2267_s12, 1  ;;  %vm1646_vm5 = vcmask 58368  }
  0x14   : > { %237 = vst.msk [vmem:[#allocation2 + $0x18] sm:$0x3] %vm234_vm1, %v2188_v4  ;;  %s2288_s28 = scalar_lea.vmem %s2760_s0, %s2100_s17  ;;  %v2304_v13 = vld [vmem:[%s2762_s2] ss:$0 sm:$0xff]  ;;  %s230_s11 = scalar_lea.vmem %s2765_s5, %s1912_s18 }
  0x15   : > { %238 = vst.msk [vmem:[#allocation2 + $0x20] sm:$0xff] %vm232_vm0, %v2188_v4  ;;  %699 = vmatpush.bf16.msrb.mxu0 %v2106_v7  ;;  %v2119_v10 = vld [vmem:[%s2288_s28] sm:$0xff]   ;;  %746 = vmatpush.bf16.msrb.mxu1 %v2105_v8  ;;  %v2134_v11 = vld [vmem:[%s2288_s28 + $0x8] sm:$0xff]   ;;  %v2135_v23 = vld [vmem:[%s2288_s28 + $0x10] sm:$0xff]   ;;  %s2117_s12 = sshll.u32 (%p2244_p4), %s2232_s21, 5 }
  0x16   : > { %808 = vmatpush.bf16.msrb.mxu2 %v2107_v5  ;;  %878 = vmatpush.bf16.msrb.mxu3 %v2108_v6  ;;  %239 = vst.msk [vmem:[#allocation2 + $0x28] sm:$0x3] %vm234_vm1, %v2188_v4  ;;  %v2120_v12 = vunpack.c.l.bf16 %v2119_v10  ;;  %v2121_v14 = vunpack.c.h.bf16 %v2119_v10  ;;  %v2124_v15 = vunpack.c.l.bf16 %v2134_v11  ;;  %v2125_v16 = vunpack.c.h.bf16 %v2134_v11  ;;  %v2136_v46 = vld [vmem:[%s2288_s28 + $0x18] sm:$0xff]   ;;  %v2110_v11 = vld [vmem:[%s2763_s3 + $0x48] sm:$0xff]  ;;  %s1661_s15 = scalar_lea.vmem (%p2244_p4), %s2764_s4, %s2117_s12 }
  0x17   : > { %240 = vst.msk [vmem:[#allocation2 + $0x30] sm:$0xff] %vm232_vm0, %v2188_v4  ;;  %v2128_v25 = vunpack.c.l.bf16 %v2135_v23  ;;  %v2129_v26 = vunpack.c.h.bf16 %v2135_v23  ;;  %v2132_v49 = vunpack.c.l.bf16 %v2136_v46  ;;  %v2133_v50 = vunpack.c.h.bf16 %v2136_v46  ;;  %v2112_v10 = vld [vmem:[%s2763_s3 + $0x58] sm:$0xff] }
  0x18   : > { %241 = vst.msk [vmem:[#allocation2 + $0x38] sm:$0x3] %vm234_vm1, %v2188_v4  ;;  %v274_v17 = vmul.f32 %v2293_v9, %v2120_v12  ;;  %v275_v18 = vmul.f32 %v2293_v9, %v2121_v14  ;;  %v276_v20 = vmul.f32 %v2293_v9, %v2124_v15  ;;  %v277_v21 = vmul.f32 %v2293_v9, %v2125_v16  ;;  %v311_v36 = vld [vmem:[#allocation2] sm:$0xff] }
  0x19   : > { %242 = vst.msk [vmem:[#allocation2 + $0x40] sm:$0xff] %vm232_vm0, %v2188_v4  ;;  %v278_v29 = vmul.f32 %v2293_v9, %v2128_v25  ;;  %v279_v30 = vmul.f32 %v2293_v9, %v2129_v26  ;;  %v325_v35 = vld [vmem:[#allocation2 + $0x1] sm:$0xff]  ;;  %v280_v51 = vmul.f32 %v2293_v9, %v2132_v49  ;;  %v281_v52 = vmul.f32 %v2293_v9, %v2133_v50  ;;  %v2111_v9 = vld [vmem:[%s2763_s3 + $0x50] sm:$0xff] }
  0x1a   : > { %243 = vst.msk [vmem:[#allocation2 + $0x48] sm:$0x3] %vm234_vm1, %v2188_v4  ;;  %v286_v19 = vadd.f32 %v2304_v13, %v274_v17  ;;  %v287_v24 = vadd.f32 %v2304_v13, %v275_v18  ;;  %v288_v27 = vadd.f32 %v2304_v13, %v276_v20  ;;  %v289_v28 = vadd.f32 %v2304_v13, %v277_v21  ;;  %v2109_v12 = vld [vmem:[%s2763_s3 + $0x40] sm:$0xff] }
  0x1b   : > { %244 = vst.msk [vmem:[#allocation2 + $0x50] sm:$0xff] %vm232_vm0, %v2188_v4  ;;  %v290_v32 = vadd.f32 %v2304_v13, %v278_v29  ;;  %v291_v33 = vadd.f32 %v2304_v13, %v279_v30  ;;  %v292_v55 = vadd.f32 %v2304_v13, %v280_v51  ;;  %v293_v56 = vadd.f32 %v2304_v13, %v281_v52  ;;  %v659_v21 = vld [vmem:[#allocation2 + $0x2] sm:$0xff] }
  0x1c   : > { %245 = vst.msk [vmem:[#allocation2 + $0x58] sm:$0x3] %vm234_vm1, %v2188_v4  ;;  %v294_v22 = vmax.f32 %v286_v19, 0.0  ;;  %v295_v31 = vmax.f32 %v287_v24, 0.0  ;;  %v296_v34 = vmax.f32 %v288_v27, 0.0  ;;  %v297_v37 = vmax.f32 %v289_v28, 0.0 }
  0x1d   : > { %246 = vst.msk [vmem:[#allocation2 + $0x60] sm:$0xff] %vm232_vm0, %v2188_v4  ;;  %v298_v38 = vmax.f32 %v290_v32, 0.0  ;;  %v299_v41 = vmax.f32 %v291_v33, 0.0  ;;  %v300_v57 = vmax.f32 %v292_v55, 0.0  ;;  %v301_v60 = vmax.f32 %v293_v56, 0.0 }
  0x1e   : > { %247 = vst.msk [vmem:[#allocation2 + $0x68] sm:$0x3] %vm234_vm1, %v2188_v4 }
  0x1f   : > { %303 = vst.msk [vmem:[#allocation2 + $0x11] sm:$0xff] %vm232_vm0, %v294_v22 }
  0x20   : > { %248 = vst.msk [vmem:[#allocation2 + $0x70] sm:$0xff] %vm232_vm0, %v2188_v4 }
  0x21   : > { %249 = vst.msk [vmem:[#allocation2 + $0x78] sm:$0x3] %vm234_vm1, %v2188_v4 }
  0x22   : > { %250 = vst.msk [vmem:[#allocation2 + $0x80] sm:$0xff] %vm232_vm0, %v2188_v4 }
  0x23   : > { %251 = vst.msk [vmem:[#allocation2 + $0x88] sm:$0x3] %vm234_vm1, %v2188_v4 }
  0x24   : > { %252 = vst.msk [vmem:[#allocation2 + $0x90] sm:$0xff] %vm232_vm0, %v2188_v4 }
  0x25   : > { %253 = vst.msk [vmem:[#allocation2 + $0x98] sm:$0x3] %vm234_vm1, %v2188_v4 }
  0x26   : > { %v326_v39 = vld [vmem:[#allocation2 + $0x11] sm:$0xff]  ;;  %304 = vst.msk [vmem:[#allocation2 + $0x21] sm:$0xff] %vm232_vm0, %v295_v31 }
  0x27   : > { %v312_v40 = vld [vmem:[#allocation2 + $0x10] sm:$0xff]  ;;  %v2349_v42 = vpack.c.bf16 %v326_v39, %v325_v35  ;;  %305 = vst.msk [vmem:[#allocation2 + $0x31] sm:$0xff] %vm232_vm0, %v296_v34  ;;  %v2116_v35 = vld [vmem:[%s2763_s3 + $0x78] sm:$0xff] }
  0x28   : > { %v319_v43 = vpack.c.bf16 %v312_v40, %v311_v36  ;;  %306 = vst.msk [vmem:[#allocation2 + $0x41] sm:$0xff] %vm232_vm0, %v297_v37  ;;  %v660_v22 = vld [vmem:[#allocation2 + $0x12] sm:$0xff] }
  0x29   : > { %1919 = vmatmul.msk.bf16.vlgmr.msra.gmra.mxu0 %vm232_vm0, %v2349_v42  ;;  %307 = vst.msk [vmem:[#allocation2 + $0x51] sm:$0xff] %vm232_vm0, %v298_v38  ;;  %v667_v23 = vpack.c.bf16 %v660_v22, %v659_v21  ;;  %v2115_v34 = vld [vmem:[%s2763_s3 + $0x70] sm:$0xff] }
  0x2a   : > { %1927 = vmatmul.msk.bf16.vlgmr.msra.gmra.mxu1 %vm232_vm0, %v319_v43  ;;  %308 = vst.msk [vmem:[#allocation2 + $0x61] sm:$0xff] %vm232_vm0, %v299_v41  ;;  %1032 = vmatpush.bf16.msra.mxu0 %v2110_v11 }
  0x2b   : > { %309 = vst.msk [vmem:[#allocation2 + $0x71] sm:$0xff] %vm232_vm0, %v300_v57  ;;  %1079 = vmatpush.bf16.msra.mxu1 %v2109_v12 }
  0x2c   : > { %310 = vst.msk [vmem:[#allocation2 + $0x81] sm:$0xff] %vm232_vm0, %v301_v60 }
  0x2d   : > { %v435_v44 = vld [vmem:[#allocation2 + $0x20] sm:$0xff] }
  0x2e   : > { %v505_v45 = vld [vmem:[#allocation2 + $0x21] sm:$0xff]  ;;  %v2359_v47 = vpack.c.bf16 %v435_v44, %v312_v40  ;;  %v328_v53 = vld [vmem:[#allocation2 + $0x31] sm:$0xff] }
  0x2f   : > { %v2361_v48 = vpack.c.bf16 %v505_v45, %v326_v39  ;;  %v314_v54 = vld [vmem:[#allocation2 + $0x30] sm:$0xff]  ;;  %v2371_v58 = vpack.c.bf16 %v328_v53, %v505_v45  ;;  %v437_v61 = vld [vmem:[#allocation2 + $0x40] sm:$0xff]  ;;  %v2114_v39 = vld [vmem:[%s2763_s3 + $0x68] sm:$0xff] }
  0x30   : > { %1937 = vmatmul.msk.bf16.vlgmr.msra.gmra.mxu2 %vm232_vm0, %v2359_v47  ;;  %v2373_v59 = vpack.c.bf16 %v314_v54, %v435_v44  ;;  %v507_v62 = vld [vmem:[#allocation2 + $0x41] sm:$0xff]  ;;  %v2381_v63 = vpack.c.bf16 %v437_v61, %v314_v54  ;;  %v330_v1 = vld [vmem:[#allocation2 + $0x51] sm:$0xff] }
  0x31   : > { %1947 = vmatmul.msk.bf16.vlgmr.msra.gmra.mxu3 %vm232_vm0, %v2361_v48  ;;  %v2383_v0 = vpack.c.bf16 %v507_v62, %v328_v53  ;;  %v316_v2 = vld [vmem:[#allocation2 + $0x50] sm:$0xff]  ;;  %v2389_v3 = vpack.c.bf16 %v330_v1, %v507_v62  ;;  %v439_v5 = vld [vmem:[#allocation2 + $0x60] sm:$0xff]  ;;  %1142 = vmatpush.bf16.msra.mxu2 %v2111_v9 }
  0x32   : > { %v2391_v4 = vpack.c.bf16 %v316_v2, %v437_v61  ;;  %v509_v6 = vld [vmem:[#allocation2 + $0x61] sm:$0xff]  ;;  %v2397_v7 = vpack.c.bf16 %v439_v5, %v316_v2  ;;  %v332_v13 = vld [vmem:[#allocation2 + $0x71] sm:$0xff]  ;;  %1212 = vmatpush.bf16.msra.mxu3 %v2112_v10 }
  0x33   : > { %v2399_v8 = vpack.c.bf16 %v509_v6, %v330_v1  ;;  %v318_v14 = vld [vmem:[#allocation2 + $0x70] sm:$0xff]  ;;  %v2417_v15 = vpack.c.bf16 %v332_v13, %v509_v6  ;;  %v2425_v17 = vld [vmem:[#allocation2 + $0x80] sm:$0xff] }
  0x34   : > { %v2419_v16 = vpack.c.bf16 %v318_v14, %v439_v5  ;;  %v2427_v18 = vld [vmem:[#allocation2 + $0x81] sm:$0xff]  ;;  %v2430_v19 = vpack.c.bf16 %v2425_v17, %v318_v14  ;;  %v662_v26 = vld [vmem:[#allocation2 + $0x32] sm:$0xff] }
  0x35   : > { %v2433_v20 = vpack.c.bf16 %v2427_v18, %v332_v13  ;;  %v839_v24 = vld [vmem:[#allocation2 + $0x22] sm:$0xff]  ;;  %v664_v30 = vld [vmem:[#allocation2 + $0x52] sm:$0xff] }
  0x36   : > { %v2442_v25 = vpack.c.bf16 %v839_v24, %v660_v22  ;;  %v2448_v27 = vpack.c.bf16 %v662_v26, %v839_v24  ;;  %v841_v28 = vld [vmem:[#allocation2 + $0x42] sm:$0xff]  ;;  %v666_v36 = vld [vmem:[#allocation2 + $0x72] sm:$0xff] }
  0x37   : > { %v2454_v29 = vpack.c.bf16 %v841_v28, %v662_v26  ;;  %v2460_v31 = vpack.c.bf16 %v664_v30, %v841_v28  ;;  %v843_v32 = vld [vmem:[#allocation2 + $0x62] sm:$0xff] }
  0x38   : > { %v2466_v33 = vpack.c.bf16 %v843_v32, %v664_v30  ;;  %v2478_v37 = vpack.c.bf16 %v666_v36, %v843_v32  ;;  %v2484_v38 = vld [vmem:[#allocation2 + $0x82] sm:$0xff] }
  0x39   : > { %1920 = vmatmul.msk.bf16.gmra.mxu0 %vm232_vm0, %v2371_v58  ;;  %v2113_v40 = vld [vmem:[%s2763_s3 + $0x60] sm:$0xff]  ;;  %v2493_v41 = vpack.c.bf16 %v2484_v38, %v666_v36 }
  0x3a   : > { %1928 = vmatmul.msk.bf16.gmra.mxu1 %vm232_vm0, %v2373_v59 }
  0x40   : > { %1938 = vmatmul.msk.bf16.gmra.mxu2 %vm232_vm0, %v2381_v63 }
  0x41   : > { %1948 = vmatmul.msk.bf16.gmra.mxu3 %vm232_vm0, %v2383_v0 }
  0x49   : > { %1921 = vmatmul.msk.bf16.gmra.mxu0 %vm232_vm0, %v2389_v3 }
  0x4a   : > { %1929 = vmatmul.msk.bf16.gmra.mxu1 %vm232_vm0, %v2391_v4 }
  0x50   : > { %1939 = vmatmul.msk.bf16.gmra.mxu2 %vm232_vm0, %v2397_v7 }
  0x51   : > { %1949 = vmatmul.msk.bf16.gmra.mxu3 %vm232_vm0, %v2399_v8 }
  0x59   : > { %1922 = vmatmul.msk.bf16.gmra.mxu0 %vm232_vm0, %v2417_v15 }
  0x5a   : > { %1930 = vmatmul.msk.bf16.gmra.mxu1 %vm232_vm0, %v2419_v16 }
  0x60   : > { %1940 = vmatmul.msk.bf16.gmra.mxu2 %vm232_vm0, %v2430_v19 }
  0x61   : > { %1950 = vmatmul.msk.bf16.gmra.mxu3 %vm232_vm0, %v2433_v20 }
  0x69   : > { %1959 = vmatmul.msk.bf16.vlgmr.msrb.gmra.mxu0 %vm232_vm0, %v667_v23 }
  0x6a   : > { %1967 = vmatmul.msk.bf16.vlgmr.msrb.gmra.mxu1 %vm232_vm0, %v2349_v42  ;;  %1366 = vmatpush.bf16.msrb.mxu0 %v2114_v39 }
  0x6b   : > { %1413 = vmatpush.bf16.msrb.mxu1 %v2113_v40 }
  0x70   : > { %1977 = vmatmul.msk.bf16.vlgmr.msrb.gmra.mxu2 %vm232_vm0, %v2361_v48 }
  0x71   : > { %1987 = vmatmul.msk.bf16.vlgmr.msrb.gmra.mxu3 %vm232_vm0, %v2442_v25  ;;  %1475 = vmatpush.bf16.msrb.mxu2 %v2115_v34 }
  0x72   : > { %1545 = vmatpush.bf16.msrb.mxu3 %v2116_v35 }
  0x79   : > { %1960 = vmatmul.msk.bf16.gmra.mxu0 %vm232_vm0, %v2448_v27 }
  0x7a   : > { %1968 = vmatmul.msk.bf16.gmra.mxu1 %vm232_vm0, %v2371_v58 }
  0x80   : > { %1978 = vmatmul.msk.bf16.gmra.mxu2 %vm232_vm0, %v2383_v0 }
  0x81   : > { %1988 = vmatmul.msk.bf16.gmra.mxu3 %vm232_vm0, %v2454_v29 }
  0x89   : > { %1961 = vmatmul.msk.bf16.gmra.mxu0 %vm232_vm0, %v2460_v31 }
  0x8a   : > { %1969 = vmatmul.msk.bf16.gmra.mxu1 %vm232_vm0, %v2389_v3 }
  0x90   : > { %1979 = vmatmul.msk.bf16.gmra.mxu2 %vm232_vm0, %v2399_v8 }
  0x91   : > { %1989 = vmatmul.msk.bf16.gmra.mxu3 %vm232_vm0, %v2466_v33 }
  0x99   : > { %1962 = vmatmul.msk.bf16.gmra.mxu0 %vm232_vm0, %v2478_v37 }
  0x9a   : > { %1970 = vmatmul.msk.bf16.gmra.mxu1 %vm232_vm0, %v2417_v15 }
  0xa0   : > { %1980 = vmatmul.msk.bf16.gmra.mxu2 %vm232_vm0, %v2433_v20 }
  0xa1   : > { %1990 = vmatmul.msk.bf16.gmra.mxu3 %vm232_vm0, %v2493_v41 }
  0xa6   : > { %v367_v42 = vpop.f32.mrf.mxu0 }
  0xa7   : > { %v414_v43 = vpop.f32.mrf.mxu1 }
  0xa8   : > { %v415_v46 = vadd.f32 %v414_v43, %v367_v42 }
  0xa9   : > { %2007 = vmatmul.msk.bf16.vlgmr.msra.gmra.mxu0 %vm232_vm0, %v2361_v48 }
  0xaa   : > { %2015 = vmatmul.msk.bf16.vlgmr.msra.gmra.mxu1 %vm232_vm0, %v2359_v47 }
  0xae   : > { %v369_v44 = vpop.f32.mrf.mxu0 }
  0xaf   : > { %v416_v45 = vpop.f32.mrf.mxu1 }
  0xb0   : > { %2025 = vmatmul.msk.bf16.vlgmr.msra.gmra.mxu2 %vm232_vm0, %v2373_v59  ;;  %v417_v47 = vadd.f32 %v416_v45, %v369_v44 }
  0xb1   : > { %2035 = vmatmul.msk.bf16.vlgmr.msra.gmra.mxu3 %vm232_vm0, %v2371_v58 }
  0xb3   : > { %v476_v49 = vpop.f32.mrf.mxu2 }
  0xb4   : > { %v546_v50 = vpop.f32.mrf.mxu3  ;;  %v496_v51 = vadd.f32 %v476_v49, %v415_v46 }
  0xb6   : > { %v566_v52 = vadd.f32 %v546_v50, %v496_v51  ;;  %v372_v53 = vpop.f32.mrf.mxu0 }
  0xb7   : > { %v419_v54 = vpop.f32.mrf.mxu1 }
  0xb8   : > { %v574_v55 = vpack.c.bf16 %v566_v52, %v566_v52  ;;  %v614_v60 = vmul.f32 %v566_v52, %v566_v52  ;;  %v420_v2 = vadd.f32 %v419_v54, %v372_v53  ;;  %v592_v5 = vsel %vm591_vm3, %v566_v52, 0.0 }
  0xb9   : > { %2008 = vmatmul.msk.bf16.gmra.mxu0 %vm232_vm0, %v2383_v0 }
  0xba   : > { %2016 = vmatmul.msk.bf16.gmra.mxu1 %vm232_vm0, %v2381_v63  ;;  %583 = vst.msk [vmem:[%s2512_s8] sm:$0xf] %vm582_vm2, %v574_v55  ;;  %v622_v11 = vsel %vm591_vm3, %v614_v60, 0.0 }
  0xbb   : > { %v478_v56 = vpop.f32.mrf.mxu2 }
  0xbc   : > { %v548_v57 = vpop.f32.mrf.mxu3  ;;  %v497_v59 = vadd.f32 %v478_v56, %v417_v47 }
  0xbe   : > { %v567_v61 = vadd.f32 %v548_v57, %v497_v59  ;;  %v374_v62 = vpop.f32.mrf.mxu0 }
  0xbf   : > { %v421_v1 = vpop.f32.mrf.mxu1 }
  0xc0   : > { %v575_v6 = vpack.c.bf16 %v567_v61, %v567_v61  ;;  %v593_v63 = vsel %vm591_vm3, %v567_v61, 0.0  ;;  %v615_v9 = vmul.f32 %v567_v61, %v567_v61  ;;  %2026 = vmatmul.msk.bf16.gmra.mxu2 %vm232_vm0, %v2391_v4  ;;  %v422_v35 = vadd.f32 %v421_v1, %v374_v62  ;;  %v1109_v1 = vld [vmem:[#allocation2 + $0x90] sm:$0xff] }
  0xc1   : > { %2036 = vmatmul.msk.bf16.gmra.mxu3 %vm232_vm0, %v2389_v3  ;;  %v594_v10 = vadd.f32 %v593_v63, %v592_v5 }
  0xc2   : > { %584 = vst.msk [vmem:[%s2512_s8 + $0x4] sm:$0xf] %vm582_vm2, %v575_v6  ;;  %v623_v12 = vsel %vm591_vm3, %v615_v9, 0.0 }
  0xc3   : > { %v624_v13 = vadd.f32 %v623_v12, %v622_v11  ;;  %v481_v14 = vpop.f32.mrf.mxu2  ;;  %v1113_v12 = vpack.c.bf16 %v1109_v1, %v2425_v17 }
  0xc4   : > { %v551_v21 = vpop.f32.mrf.mxu3  ;;  %v498_v22 = vadd.f32 %v481_v14, %v420_v2  ;;  %v1179_v2 = vld [vmem:[#allocation2 + $0x91] sm:$0xff] }
  0xc6   : > { %v568_v23 = vadd.f32 %v551_v21, %v498_v22  ;;  %v377_v24 = vpop.f32.mrf.mxu0 }
  0xc7   : > { %v424_v26 = vpop.f32.mrf.mxu1 }
  0xc8   : > { %v576_v28 = vpack.c.bf16 %v568_v23, %v568_v23  ;;  %v595_v4 = vsel %vm591_vm3, %v568_v23, 0.0  ;;  %v616_v30 = vmul.f32 %v568_v23, %v568_v23  ;;  %v425_v51 = vadd.f32 %v424_v26, %v377_v24 }
  0xc9   : > { %v596_v32 = vadd.f32 %v595_v4, %v594_v10  ;;  %2009 = vmatmul.msk.bf16.gmra.mxu0 %vm232_vm0, %v2399_v8 }
  0xca   : > { %2017 = vmatmul.msk.bf16.gmra.mxu1 %vm232_vm0, %v2397_v7  ;;  %585 = vst.msk [vmem:[%s2512_s8 + $0x8] sm:$0xf] %vm582_vm2, %v576_v28  ;;  %v625_v34 = vsel %vm591_vm3, %v616_v30, 0.0 }
  0xcb   : > { %v626_v36 = vadd.f32 %v625_v34, %v624_v13  ;;  %v483_v39 = vpop.f32.mrf.mxu2  ;;  %v2552_v13 = vpack.c.bf16 %v1179_v2, %v2427_v18 }
  0xcc   : > { %v553_v40 = vpop.f32.mrf.mxu3  ;;  %v499_v42 = vadd.f32 %v483_v39, %v422_v35 }
  0xce   : > { %v569_v43 = vadd.f32 %v553_v40, %v499_v42  ;;  %v379_v44 = vpop.f32.mrf.mxu0 }
  0xcf   : > { %v426_v45 = vpop.f32.mrf.mxu1 }
  0xd0   : > { %v577_v46 = vpack.c.bf16 %v569_v43, %v569_v43  ;;  %v597_v49 = vsel %vm591_vm3, %v569_v43, 0.0  ;;  %v617_v50 = vmul.f32 %v569_v43, %v569_v43  ;;  %2027 = vmatmul.msk.bf16.gmra.mxu2 %vm232_vm0, %v2419_v16  ;;  %v427_v6 = vadd.f32 %v426_v45, %v379_v44 }
  0xd1   : > { %2037 = vmatmul.msk.bf16.gmra.mxu3 %vm232_vm0, %v2417_v15  ;;  %v598_v7 = vadd.f32 %v597_v49, %v596_v32 }
  0xd2   : > { %586 = vst.msk [vmem:[%s2512_s8 + $0xc] sm:$0xf] %vm582_vm2, %v577_v46  ;;  %v627_v52 = vsel %vm591_vm3, %v617_v50, 0.0 }
  0xd3   : > { %v628_v53 = vadd.f32 %v627_v52, %v626_v36  ;;  %v486_v54 = vpop.f32.mrf.mxu2 }
  0xd4   : > { %v556_v55 = vpop.f32.mrf.mxu3  ;;  %v500_v47 = vadd.f32 %v486_v54, %v425_v51 }
  0xd6   : > { %v570_v56 = vadd.f32 %v556_v55, %v500_v47  ;;  %v382_v57 = vpop.f32.mrf.mxu0 }
  0xd7   : > { %v429_v59 = vpop.f32.mrf.mxu1 }
  0xd8   : > { %v578_v60 = vpack.c.bf16 %v570_v56, %v570_v56  ;;  %v599_v61 = vsel %vm591_vm3, %v570_v56, 0.0  ;;  %v618_v16 = vmul.f32 %v570_v56, %v570_v56  ;;  %v430_v26 = vadd.f32 %v429_v59, %v382_v57 }
  0xd9   : > { %v600_v62 = vadd.f32 %v599_v61, %v598_v7  ;;  %2010 = vmatmul.msk.bf16.gmra.mxu0 %vm232_vm0, %v2433_v20 }
  0xda   : > { %2018 = vmatmul.msk.bf16.gmra.mxu1 %vm232_vm0, %v2430_v19  ;;  %587 = vst.msk [vmem:[%s2512_s8 + $0x10] sm:$0xf] %vm582_vm2, %v578_v60  ;;  %v629_v5 = vsel %vm591_vm3, %v618_v16, 0.0 }
  0xdb   : > { %v630_v63 = vadd.f32 %v629_v5, %v628_v53  ;;  %v488_v9 = vpop.f32.mrf.mxu2 }
  0xdc   : > { %v558_v10 = vpop.f32.mrf.mxu3  ;;  %v501_v11 = vadd.f32 %v488_v9, %v427_v6 }
  0xde   : > { %v571_v14 = vadd.f32 %v558_v10, %v501_v11  ;;  %v384_v21 = vpop.f32.mrf.mxu0 }
  0xdf   : > { %v431_v19 = vpop.f32.mrf.mxu1 }
  0xe0   : > { %v579_v22 = vpack.c.bf16 %v571_v14, %v571_v14  ;;  %v601_v23 = vsel %vm591_vm3, %v571_v14, 0.0  ;;  %v619_v24 = vmul.f32 %v571_v14, %v571_v14  ;;  %2028 = vmatmul.msk.bf16.gmra.mxu2 %vm232_vm0, %v1113_v12  ;;  %v432_v45 = vadd.f32 %v431_v19, %v384_v21 }
  0xe1   : > { %2038 = vmatmul.msk.bf16.gmra.mxu3 %vm232_vm0, %v2552_v13  ;;  %v602_v28 = vadd.f32 %v601_v23, %v600_v62 }
  0xe2   : > { %588 = vst.msk [vmem:[%s2512_s8 + $0x14] sm:$0xf] %vm582_vm2, %v579_v22  ;;  %v631_v17 = vsel %vm591_vm3, %v619_v24, 0.0 }
  0xe3   : > { %v632_v18 = vadd.f32 %v631_v17, %v630_v63  ;;  %v491_v4 = vpop.f32.mrf.mxu2 }
  0xe4   : > { %v561_v30 = vpop.f32.mrf.mxu3  ;;  %v502_v32 = vadd.f32 %v491_v4, %v430_v26 }
  0xe6   : > { %v572_v34 = vadd.f32 %v561_v30, %v502_v32  ;;  %v701_v35 = vpop.f32.mrf.mxu0 }
  0xe7   : > { %v748_v36 = vpop.f32.mrf.mxu1 }
  0xe8   : > { %v580_v39 = vpack.c.bf16 %v572_v34, %v572_v34  ;;  %v603_v40 = vsel %vm591_vm3, %v572_v34, 0.0  ;;  %v620_v42 = vmul.f32 %v572_v34, %v572_v34  ;;  %v749_v47 = vadd.f32 %v748_v36, %v701_v35 }
  0xe9   : > { %v604_v43 = vadd.f32 %v603_v40, %v602_v28  ;;  %2055 = vmatmul.msk.bf16.vlgmr.msrb.gmra.mxu0 %vm232_vm0, %v2442_v25 }
  0xea   : > { %2063 = vmatmul.msk.bf16.vlgmr.msrb.gmra.mxu1 %vm232_vm0, %v2361_v48  ;;  %589 = vst.msk [vmem:[%s2512_s8 + $0x18] sm:$0xf] %vm582_vm2, %v580_v39  ;;  %v633_v44 = vsel %vm591_vm3, %v620_v42, 0.0 }
  0xeb   : > { %v634_v46 = vadd.f32 %v633_v44, %v632_v18  ;;  %v493_v49 = vpop.f32.mrf.mxu2 }
  0xec   : > { %v563_v50 = vpop.f32.mrf.mxu3  ;;  %v503_v51 = vadd.f32 %v493_v49, %v432_v45 }
  0xee   : > { %v573_v7 = vadd.f32 %v563_v50, %v503_v51  ;;  %v703_v52 = vpop.f32.mrf.mxu0 }
  0xef   : > { %v750_v53 = vpop.f32.mrf.mxu1 }
  0xf0   : > { %v581_v54 = vpack.c.bf16 %v573_v7, %v573_v7  ;;  %v605_v55 = vsel %vm591_vm3, %v573_v7, 0.0  ;;  %v621_v25 = vmul.f32 %v573_v7, %v573_v7  ;;  %2073 = vmatmul.msk.bf16.vlgmr.msrb.gmra.mxu2 %vm232_vm0, %v2371_v58  ;;  %v751_v58 = vadd.f32 %v750_v53, %v703_v52 }
  0xf1   : > { %2083 = vmatmul.msk.bf16.vlgmr.msrb.gmra.mxu3 %vm232_vm0, %v2448_v27  ;;  %v2574_v48 = vadd.f32 %v605_v55, %v604_v43 }
  0xf2   : > { %590 = vst.msk [vmem:[%s2512_s8 + $0x1c] sm:$0xf] %vm582_vm2, %v581_v54  ;;  %v635_v56 = vsel %vm591_vm3, %v621_v25, 0.0 }
  0xf3   : > { %v2579_v57 = vadd.f32 %v635_v56, %v634_v46  ;;  %v810_v59 = vpop.f32.mrf.mxu2 }
  0xf4   : > { %v880_v60 = vpop.f32.mrf.mxu3  ;;  %v830_v61 = vadd.f32 %v810_v59, %v749_v47 }
  0xf6   : > { %v900_v16 = vadd.f32 %v880_v60, %v830_v61  ;;  %v706_v62 = vpop.f32.mrf.mxu0 }
  0xf7   : > { %v753_v1 = vpop.f32.mrf.mxu1 }
  0xf8   : > { %v908_v2 = vpack.c.bf16 %v900_v16, %v900_v16  ;;  %v947_v63 = vmul.f32 %v900_v16, %v900_v16  ;;  %v754_v12 = vadd.f32 %v753_v1, %v706_v62  ;;  %v925_v14 = vsel %vm591_vm3, %v900_v16, 0.0 }
  0xf9   : > { %2056 = vmatmul.msk.bf16.gmra.mxu0 %vm232_vm0, %v2454_v29 }
  0xfa   : > { %2064 = vmatmul.msk.bf16.gmra.mxu1 %vm232_vm0, %v2383_v0  ;;  %1991 = vst.msk [vmem:[%s2512_s8 + $0x20] sm:$0xf] %vm582_vm2, %v908_v2  ;;  %v955_v22 = vsel %vm591_vm3, %v947_v63, 0.0 }
  0xfb   : > { %v812_v27 = vpop.f32.mrf.mxu2 }
  0xfc   : > { %v882_v5 = vpop.f32.mrf.mxu3  ;;  %v831_v6 = vadd.f32 %v812_v27, %v751_v58 }
  0xfe   : > { %v901_v9 = vadd.f32 %v882_v5, %v831_v6  ;;  %v708_v10 = vpop.f32.mrf.mxu0 }
  0xff   : > { %v755_v11 = vpop.f32.mrf.mxu1 }
 0x100   : > { %v909_v21 = vpack.c.bf16 %v901_v9, %v901_v9  ;;  %v926_v29 = vsel %vm591_vm3, %v901_v9, 0.0  ;;  %v948_v19 = vmul.f32 %v901_v9, %v901_v9  ;;  %2074 = vmatmul.msk.bf16.gmra.mxu2 %vm232_vm0, %v2389_v3  ;;  %v756_v36 = vadd.f32 %v755_v11, %v708_v10 }
 0x101   : > { %2084 = vmatmul.msk.bf16.gmra.mxu3 %vm232_vm0, %v2460_v31  ;;  %v927_v0 = vadd.f32 %v926_v29, %v925_v14 }
 0x102   : > { %1992 = vst.msk [vmem:[%s2512_s8 + $0x24] sm:$0xf] %vm582_vm2, %v909_v21  ;;  %v956_v23 = vsel %vm591_vm3, %v948_v19, 0.0 }
 0x103   : > { %v957_v24 = vadd.f32 %v956_v23, %v955_v22  ;;  %v815_v26 = vpop.f32.mrf.mxu2 }
 0x104   : > { %v885_v28 = vpop.f32.mrf.mxu3  ;;  %v832_v17 = vadd.f32 %v815_v26, %v754_v12 }
 0x106   : > { %v902_v18 = vadd.f32 %v885_v28, %v832_v17  ;;  %v711_v4 = vpop.f32.mrf.mxu0 }
 0x107   : > { %v758_v30 = vpop.f32.mrf.mxu1 }
 0x108   : > { %v910_v32 = vpack.c.bf16 %v902_v18, %v902_v18  ;;  %v928_v3 = vsel %vm591_vm3, %v902_v18, 0.0  ;;  %v949_v34 = vmul.f32 %v902_v18, %v902_v18  ;;  %v759_v51 = vadd.f32 %v758_v30, %v711_v4 }
 0x109   : > { %v929_v31 = vadd.f32 %v928_v3, %v927_v0  ;;  %2057 = vmatmul.msk.bf16.gmra.mxu0 %vm232_vm0, %v2466_v33  ;;  %v637_v30 = vrot.slane %v2579_v57, 4 }
 0x10a   : > { %2065 = vmatmul.msk.bf16.gmra.mxu1 %vm232_vm0, %v2399_v8  ;;  %1993 = vst.msk [vmem:[%s2512_s8 + $0x28] sm:$0xf] %vm582_vm2, %v910_v32  ;;  %v958_v35 = vsel %vm591_vm3, %v949_v34, 0.0 }
 0x10b   : > { %v959_v39 = vadd.f32 %v958_v35, %v957_v24  ;;  %v817_v40 = vpop.f32.mrf.mxu2 }
 0x10c   : > { %v887_v42 = vpop.f32.mrf.mxu3  ;;  %v833_v43 = vadd.f32 %v817_v40, %v756_v36 }
 0x10e   : > { %v903_v44 = vadd.f32 %v887_v42, %v833_v43  ;;  %v713_v45 = vpop.f32.mrf.mxu0  ;;  %v638_v42 = vadd.f32 %v637_v30, %v2579_v57 }
 0x10f   : > { %v760_v46 = vpop.f32.mrf.mxu1 }
 0x110   : > { %v911_v49 = vpack.c.bf16 %v903_v44, %v903_v44  ;;  %v930_v50 = vsel %vm591_vm3, %v903_v44, 0.0  ;;  %v950_v33 = vmul.f32 %v903_v44, %v903_v44  ;;  %2075 = vmatmul.msk.bf16.gmra.mxu2 %vm232_vm0, %v2417_v15  ;;  %v761_v62 = vadd.f32 %v760_v46, %v713_v45 }
 0x111   : > { %2085 = vmatmul.msk.bf16.gmra.mxu3 %vm232_vm0, %v2478_v37  ;;  %v931_v8 = vadd.f32 %v930_v50, %v929_v31  ;;  %v1512_v37 = vld [vmem:[#allocation2 + $0x92] sm:$0xff] }
 0x112   : > { %1994 = vst.msk [vmem:[%s2512_s8 + $0x2c] sm:$0xf] %vm582_vm2, %v911_v49  ;;  %v960_v7 = vsel %vm591_vm3, %v950_v33, 0.0  ;;  %v1516_v5 = vpack.c.bf16 %v1512_v37, %v2484_v38 }
 0x113   : > { %v961_v52 = vadd.f32 %v960_v7, %v959_v39  ;;  %v820_v53 = vpop.f32.mrf.mxu2 }
 0x114   : > { %v890_v54 = vpop.f32.mrf.mxu3  ;;  %v834_v55 = vadd.f32 %v820_v53, %v759_v51  ;;  %v639_v51 = vrot.slane %v638_v42, 2 }
 0x116   : > { %v904_v25 = vadd.f32 %v890_v54, %v834_v55  ;;  %v716_v47 = vpop.f32.mrf.mxu0 }
 0x117   : > { %v763_v56 = vpop.f32.mrf.mxu1 }
 0x118   : > { %v912_v59 = vpack.c.bf16 %v904_v25, %v904_v25  ;;  %v932_v60 = vsel %vm591_vm3, %v904_v25, 0.0  ;;  %v951_v15 = vmul.f32 %v904_v25, %v904_v25  ;;  %v764_v11 = vadd.f32 %v763_v56, %v716_v47 }
 0x119   : > { %v933_v61 = vadd.f32 %v932_v60, %v931_v8  ;;  %2058 = vmatmul.msk.bf16.gmra.mxu0 %vm232_vm0, %v2493_v41 }
 0x11a   : > { %2066 = vmatmul.msk.bf16.gmra.mxu1 %vm232_vm0, %v2433_v20  ;;  %1995 = vst.msk [vmem:[%s2512_s8 + $0x30] sm:$0xf] %vm582_vm2, %v912_v59  ;;  %v962_v16 = vsel %vm591_vm3, %v951_v15, 0.0  ;;  %v640_v59 = vadd.f32 %v639_v51, %v638_v42 }
 0x11b   : > { %v963_v1 = vadd.f32 %v962_v16, %v961_v52  ;;  %v822_v2 = vpop.f32.mrf.mxu2 }
 0x11c   : > { %v892_v58 = vpop.f32.mrf.mxu3  ;;  %v835_v27 = vadd.f32 %v822_v2, %v761_v62  ;;  %v641_v2 = vrot.slane %v640_v59, 1 }
 0x11e   : > { %v905_v6 = vadd.f32 %v892_v58, %v835_v27  ;;  %v718_v63 = vpop.f32.mrf.mxu0 }
 0x11f   : > { %v765_v9 = vpop.f32.mrf.mxu1 }
 0x120   : > { %v913_v41 = vpack.c.bf16 %v905_v6, %v905_v6  ;;  %v934_v10 = vsel %vm591_vm3, %v905_v6, 0.0  ;;  %v952_v20 = vmul.f32 %v905_v6, %v905_v6  ;;  %2076 = vmatmul.msk.bf16.gmra.mxu2 %vm232_vm0, %v2552_v13  ;;  %v607_v13 = vrot.slane %v2574_v48, 4 }
 0x121   : > { %2086 = vmatmul.msk.bf16.gmra.mxu3 %vm232_vm0, %v1516_v5  ;;  %v935_v12 = vadd.f32 %v934_v10, %v933_v61  ;;  %v766_v4 = vadd.f32 %v765_v9, %v718_v63 }
 0x122   : > { %1996 = vst.msk [vmem:[%s2512_s8 + $0x34] sm:$0xf] %vm582_vm2, %v913_v41  ;;  %v964_v14 = vsel %vm591_vm3, %v952_v20, 0.0  ;;  %v608_v35 = vadd.f32 %v607_v13, %v2574_v48 }
 0x123   : > { %v965_v38 = vadd.f32 %v964_v14, %v963_v1  ;;  %v825_v21 = vpop.f32.mrf.mxu2 }
 0x124   : > { %v895_v29 = vpop.f32.mrf.mxu3  ;;  %v836_v19 = vadd.f32 %v825_v21, %v764_v11  ;;  %v609_v49 = vrot.slane %v608_v35, 2 }
 0x126   : > { %v906_v0 = vadd.f32 %v895_v29, %v836_v19  ;;  %v1034_v22 = vpop.f32.mrf.mxu0  ;;  %v610_v54 = vadd.f32 %v609_v49, %v608_v35 }
 0x127   : > { %v1081_v23 = vpop.f32.mrf.mxu1 }
 0x128   : > { %v914_v24 = vpack.c.bf16 %v906_v0, %v906_v0  ;;  %v936_v26 = vsel %vm591_vm3, %v906_v0, 0.0  ;;  %v953_v28 = vmul.f32 %v906_v0, %v906_v0  ;;  %v1082_v46 = vadd.f32 %v1081_v23, %v1034_v22 }
 0x129   : > { %v937_v17 = vadd.f32 %v936_v26, %v935_v12  ;;  %v611_v37 = vrot.slane %v610_v54, 1 }
 0x12a   : > { %1997 = vst.msk [vmem:[%s2512_s8 + $0x38] sm:$0xf] %vm582_vm2, %v914_v24  ;;  %v966_v18 = vsel %vm591_vm3, %v953_v28, 0.0 }
 0x12b   : > { %v967_v32 = vadd.f32 %v966_v18, %v965_v38  ;;  %v827_v3 = vpop.f32.mrf.mxu2  ;;  %v612_v9 = vadd.f32 %v611_v37, %v610_v54  ;;  %v642_v38 = vadd.f32 %v641_v2, %v640_v59 }
 0x12c   : > { %v897_v34 = vpop.f32.mrf.mxu3  ;;  %v837_v31 = vadd.f32 %v827_v3, %v766_v4 }
 0x12e   : > { %v907_v36 = vadd.f32 %v897_v34, %v837_v31  ;;  %v1036_v39 = vpop.f32.mrf.mxu0 }
 0x12f   : > { %v1083_v40 = vpop.f32.mrf.mxu1 }
 0x130   : > { %v915_v43 = vpack.c.bf16 %v907_v36, %v907_v36  ;;  %v938_v44 = vsel %vm591_vm3, %v907_v36, 0.0  ;;  %v954_v45 = vmul.f32 %v907_v36, %v907_v36  ;;  %v1084_v1 = vadd.f32 %v1083_v40, %v1036_v39 }
 0x131   : > { %v939_v50 = vadd.f32 %v938_v44, %v937_v17 }
 0x132   : > { %1998 = vst.msk [vmem:[%s2512_s8 + $0x3c] sm:$0xf] %vm582_vm2, %v915_v43  ;;  %v968_v33 = vsel %vm591_vm3, %v954_v45, 0.0 }
 0x133   : > { %v940_v8 = vrot.slane %v939_v50, 4  ;;  %v969_v7 = vadd.f32 %v968_v33, %v967_v32  ;;  %v1144_v48 = vpop.f32.mrf.mxu2 }
 0x134   : > { %v1214_v52 = vpop.f32.mrf.mxu3  ;;  %v1164_v53 = vadd.f32 %v1144_v48, %v1082_v46 }
 0x135   : > { %v941_v57 = vadd.f32 %v940_v8, %v939_v50  ;;  %v970_v55 = vrot.slane %v969_v7, 4 }
 0x136   : > { %v1234_v25 = vadd.f32 %v1214_v52, %v1164_v53  ;;  %v1039_v47 = vpop.f32.mrf.mxu0 }
 0x137   : > { %v1086_v56 = vpop.f32.mrf.mxu1  ;;  %v942_v60 = vrot.slane %v941_v57, 2  ;;  %v971_v15 = vadd.f32 %v970_v55, %v969_v7 }
 0x138   : > { %v1242_v61 = vpack.c.bf16 %v1234_v25, %v1234_v25  ;;  %v1281_v20 = vmul.f32 %v1234_v25, %v1234_v25  ;;  %v1087_v19 = vadd.f32 %v1086_v56, %v1039_v47  ;;  %v1259_v0 = vsel %vm591_vm3, %v1234_v25, 0.0 }
 0x139   : > { %v943_v16 = vadd.f32 %v942_v60, %v941_v57  ;;  %v972_v62 = vrot.slane %v971_v15, 2 }
 0x13a   : > { %2039 = vst.msk [vmem:[%s2512_s8 + $0x40] sm:$0xf] %vm582_vm2, %v1242_v61  ;;  %v1289_v13 = vsel %vm591_vm3, %v1281_v20, 0.0 }
 0x13b   : > { %v944_v58 = vrot.slane %v943_v16, 1  ;;  %v973_v27 = vadd.f32 %v972_v62, %v971_v15  ;;  %v1146_v5 = vpop.f32.mrf.mxu2 }
 0x13c   : > { %v1216_v6 = vpop.f32.mrf.mxu3  ;;  %v1165_v63 = vadd.f32 %v1146_v5, %v1084_v1 }
 0x13d   : > { %v945_v41 = vadd.f32 %v944_v58, %v943_v16  ;;  %v974_v10 = vrot.slane %v973_v27, 1 }
 0x13e   : > { %v1235_v11 = vadd.f32 %v1216_v6, %v1165_v63  ;;  %v1041_v12 = vpop.f32.mrf.mxu0 }
 0x13f   : > { %v1088_v14 = vpop.f32.mrf.mxu1  ;;  %v2643_v21 = vadd.f32 %v945_v41, %v612_v9  ;;  %v975_v29 = vadd.f32 %v974_v10, %v973_v27 }
 0x140   : > { %v1243_v22 = vpack.c.bf16 %v1235_v11, %v1235_v11  ;;  %v1260_v23 = vsel %vm591_vm3, %v1235_v11, 0.0  ;;  %v1282_v24 = vmul.f32 %v1235_v11, %v1235_v11  ;;  %v1089_v43 = vadd.f32 %v1088_v14, %v1041_v12 }
 0x141   : > { %v2647_v26 = vadd.f32 %v975_v29, %v642_v38  ;;  %v1261_v28 = vadd.f32 %v1260_v23, %v1259_v0 }
 0x142   : > { %2040 = vst.msk [vmem:[%s2512_s8 + $0x44] sm:$0xf] %vm582_vm2, %v1243_v22  ;;  %v1290_v17 = vsel %vm591_vm3, %v1282_v24, 0.0 }
 0x143   : > { %v1291_v18 = vadd.f32 %v1290_v17, %v1289_v13  ;;  %v1149_v4 = vpop.f32.mrf.mxu2 }
 0x144   : > { %v1219_v30 = vpop.f32.mrf.mxu3  ;;  %v1166_v32 = vadd.f32 %v1149_v4, %v1087_v19 }
 0x146   : > { %v1236_v3 = vadd.f32 %v1219_v30, %v1166_v32  ;;  %v1044_v34 = vpop.f32.mrf.mxu0 }
 0x147   : > { %v1091_v31 = vpop.f32.mrf.mxu1 }
 0x148   : > { %v1244_v35 = vpack.c.bf16 %v1236_v3, %v1236_v3  ;;  %v1262_v36 = vsel %vm591_vm3, %v1236_v3, 0.0  ;;  %v1283_v39 = vmul.f32 %v1236_v3, %v1236_v3  ;;  %v1092_v52 = vadd.f32 %v1091_v31, %v1044_v34 }
 0x149   : > { %v1263_v40 = vadd.f32 %v1262_v36, %v1261_v28 }
 0x14a   : > { %2041 = vst.msk [vmem:[%s2512_s8 + $0x48] sm:$0xf] %vm582_vm2, %v1244_v35  ;;  %v1292_v42 = vsel %vm591_vm3, %v1283_v39, 0.0 }
 0x14b   : > { %v1293_v44 = vadd.f32 %v1292_v42, %v1291_v18  ;;  %v1151_v45 = vpop.f32.mrf.mxu2 }
 0x14c   : > { %v1221_v46 = vpop.f32.mrf.mxu3  ;;  %v1167_v49 = vadd.f32 %v1151_v45, %v1089_v43 }
 0x14e   : > { %v1237_v50 = vadd.f32 %v1221_v46, %v1167_v49  ;;  %v1046_v33 = vpop.f32.mrf.mxu0 }
 0x14f   : > { %v1093_v51 = vpop.f32.mrf.mxu1 }
 0x150   : > { %v1245_v8 = vpack.c.bf16 %v1237_v50, %v1237_v50  ;;  %v1264_v7 = vsel %vm591_vm3, %v1237_v50, 0.0  ;;  %v1284_v48 = vmul.f32 %v1237_v50, %v1237_v50  ;;  %v1094_v1 = vadd.f32 %v1093_v51, %v1046_v33 }
 0x151   : > { %v1265_v53 = vadd.f32 %v1264_v7, %v1263_v40 }
 0x152   : > { %2042 = vst.msk [vmem:[%s2512_s8 + $0x4c] sm:$0xf] %vm582_vm2, %v1245_v8  ;;  %v1294_v54 = vsel %vm591_vm3, %v1284_v48, 0.0 }
 0x153   : > { %v1295_v57 = vadd.f32 %v1294_v54, %v1293_v44  ;;  %v1154_v55 = vpop.f32.mrf.mxu2 }
 0x154   : > { %v1224_v25 = vpop.f32.mrf.mxu3  ;;  %v1168_v47 = vadd.f32 %v1154_v55, %v1092_v52 }
 0x156   : > { %v1238_v56 = vadd.f32 %v1224_v25, %v1168_v47  ;;  %v1049_v59 = vpop.f32.mrf.mxu0 }
 0x157   : > { %v1096_v60 = vpop.f32.mrf.mxu1 }
 0x158   : > { %v1246_v15 = vpack.c.bf16 %v1238_v56, %v1238_v56  ;;  %v1266_v61 = vsel %vm591_vm3, %v1238_v56, 0.0  ;;  %v1285_v37 = vmul.f32 %v1238_v56, %v1238_v56  ;;  %v1097_v11 = vadd.f32 %v1096_v60, %v1049_v59 }
 0x159   : > { %v1267_v16 = vadd.f32 %v1266_v61, %v1265_v53 }
 0x15a   : > { %2043 = vst.msk [vmem:[%s2512_s8 + $0x50] sm:$0xf] %vm582_vm2, %v1246_v15  ;;  %v1296_v62 = vsel %vm591_vm3, %v1285_v37, 0.0 }
 0x15b   : > { %v1297_v2 = vadd.f32 %v1296_v62, %v1295_v57  ;;  %v1156_v58 = vpop.f32.mrf.mxu2 }
 0x15c   : > { %v1226_v27 = vpop.f32.mrf.mxu3  ;;  %v1169_v5 = vadd.f32 %v1156_v58, %v1094_v1 }
 0x15e   : > { %v1239_v6 = vadd.f32 %v1226_v27, %v1169_v5  ;;  %v1051_v63 = vpop.f32.mrf.mxu0 }
 0x15f   : > { %v1098_v9 = vpop.f32.mrf.mxu1 }
 0x160   : > { %v1247_v41 = vpack.c.bf16 %v1239_v6, %v1239_v6  ;;  %v1268_v10 = vsel %vm591_vm3, %v1239_v6, 0.0  ;;  %v1286_v20 = vmul.f32 %v1239_v6, %v1239_v6  ;;  %v1099_v30 = vadd.f32 %v1098_v9, %v1051_v63 }
 0x161   : > { %v1269_v12 = vadd.f32 %v1268_v10, %v1267_v16 }
 0x162   : > { %2044 = vst.msk [vmem:[%s2512_s8 + $0x54] sm:$0xf] %vm582_vm2, %v1247_v41  ;;  %v1298_v14 = vsel %vm591_vm3, %v1286_v20, 0.0 }
 0x163   : > { %v1299_v38 = vadd.f32 %v1298_v14, %v1297_v2  ;;  %v1159_v29 = vpop.f32.mrf.mxu2 }
 0x164   : > { %v1229_v19 = vpop.f32.mrf.mxu3  ;;  %v1170_v0 = vadd.f32 %v1159_v29, %v1097_v11 }
 0x166   : > { %v1240_v22 = vadd.f32 %v1229_v19, %v1170_v0  ;;  %v1368_v23 = vpop.f32.mrf.mxu0 }
 0x167   : > { %v1415_v24 = vpop.f32.mrf.mxu1 }
 0x168   : > { %v1248_v28 = vpack.c.bf16 %v1240_v22, %v1240_v22  ;;  %v1270_v13 = vsel %vm591_vm3, %v1240_v22, 0.0  ;;  %v1287_v17 = vmul.f32 %v1240_v22, %v1240_v22  ;;  %v1416_v44 = vadd.f32 %v1415_v24, %v1368_v23 }
 0x169   : > { %v1271_v18 = vadd.f32 %v1270_v13, %v1269_v12 }
 0x16a   : > { %2045 = vst.msk [vmem:[%s2512_s8 + $0x58] sm:$0xf] %vm582_vm2, %v1248_v28  ;;  %v1300_v4 = vsel %vm591_vm3, %v1287_v17, 0.0 }
 0x16b   : > { %v1301_v32 = vadd.f32 %v1300_v4, %v1299_v38  ;;  %v1161_v3 = vpop.f32.mrf.mxu2 }
 0x16c   : > { %v1231_v34 = vpop.f32.mrf.mxu3  ;;  %v1171_v31 = vadd.f32 %v1161_v3, %v1099_v30 }
 0x16e   : > { %v1241_v35 = vadd.f32 %v1231_v34, %v1171_v31  ;;  %v1370_v36 = vpop.f32.mrf.mxu0 }
 0x16f   : > { %v1417_v39 = vpop.f32.mrf.mxu1 }
 0x170   : > { %v1249_v40 = vpack.c.bf16 %v1241_v35, %v1241_v35  ;;  %v1272_v42 = vsel %vm591_vm3, %v1241_v35, 0.0  ;;  %v1288_v43 = vmul.f32 %v1241_v35, %v1241_v35  ;;  %v1418_v59 = vadd.f32 %v1417_v39, %v1370_v36 }
 0x171   : > { %v1273_v45 = vadd.f32 %v1272_v42, %v1271_v18 }
 0x172   : > { %2046 = vst.msk [vmem:[%s2512_s8 + $0x5c] sm:$0xf] %vm582_vm2, %v1249_v40  ;;  %v1302_v46 = vsel %vm591_vm3, %v1288_v43, 0.0 }
 0x173   : > { %v1274_v49 = vrot.slane %v1273_v45, 4  ;;  %v1303_v50 = vadd.f32 %v1302_v46, %v1301_v32  ;;  %v1477_v33 = vpop.f32.mrf.mxu2 }
 0x174   : > { %v1547_v51 = vpop.f32.mrf.mxu3  ;;  %v1497_v8 = vadd.f32 %v1477_v33, %v1416_v44 }
 0x175   : > { %v1275_v7 = vadd.f32 %v1274_v49, %v1273_v45  ;;  %v1304_v48 = vrot.slane %v1303_v50, 4 }
 0x176   : > { %v2677_v52 = vadd.f32 %v1547_v51, %v1497_v8  ;;  %v1373_v53 = vpop.f32.mrf.mxu0 }
 0x177   : > { %v1420_v54 = vpop.f32.mrf.mxu1  ;;  %v1276_v57 = vrot.slane %v1275_v7, 2  ;;  %v1305_v55 = vadd.f32 %v1304_v48, %v1303_v50 }
 0x178   : > { %v1575_v25 = vpack.c.bf16 %v2677_v52, %v2677_v52  ;;  %v1421_v9 = vadd.f32 %v1420_v54, %v1373_v53  ;;  %v1614_v45 = vmul.f32 %v2677_v52, %v2677_v52  ;;  %v1592_v50 = vsel %vm591_vm3, %v2677_v52, 0.0 }
 0x179   : > { %v1277_v47 = vadd.f32 %v1276_v57, %v1275_v7  ;;  %v1306_v56 = vrot.slane %v1305_v55, 2 }
 0x17a   : > { %2087 = vst.msk [vmem:[%s2512_s8 + $0x60] sm:$0xf] %vm582_vm2, %v1575_v25  ;;  %v1622_v54 = vsel %vm591_vm3, %v1614_v45, 0.0 }
 0x17b   : > { %v1278_v60 = vrot.slane %v1277_v47, 1  ;;  %v1307_v15 = vadd.f32 %v1306_v56, %v1305_v55  ;;  %v1479_v61 = vpop.f32.mrf.mxu2 }
 0x17c   : > { %v1549_v37 = vpop.f32.mrf.mxu3  ;;  %v1498_v16 = vadd.f32 %v1479_v61, %v1418_v59 }
 0x17d   : > { %v1279_v62 = vadd.f32 %v1278_v60, %v1277_v47  ;;  %v1308_v1 = vrot.slane %v1307_v15, 1 }
 0x17e   : > { %v1568_v2 = vadd.f32 %v1549_v37, %v1498_v16  ;;  %v1375_v58 = vpop.f32.mrf.mxu0 }
 0x17f   : > { %v1422_v27 = vpop.f32.mrf.mxu1  ;;  %v2684_v5 = vadd.f32 %v1279_v62, %v2643_v21  ;;  %v1309_v6 = vadd.f32 %v1308_v1, %v1307_v15 }
 0x180   : > { %v1576_v63 = vpack.c.bf16 %v1568_v2, %v1568_v2  ;;  %v1423_v21 = vadd.f32 %v1422_v27, %v1375_v58  ;;  %v1615_v42 = vmul.f32 %v1568_v2, %v1568_v2  ;;  %v1593_v46 = vsel %vm591_vm3, %v1568_v2, 0.0 }
 0x181   : > { %v2687_v41 = vadd.f32 %v1309_v6, %v2647_v26  ;;  %v1594_v57 = vadd.f32 %v1593_v46, %v1592_v50  ;;  %v1682_v50 = vld [vmem:[%s2512_s8 + $0x8] sm:$0xff] (%p2244_p4)  }
 0x182   : > { %2088 = vst.msk [vmem:[%s2512_s8 + $0x64] sm:$0xf] %vm582_vm2, %v1576_v63  ;;  %v1623_v8 = vsel %vm591_vm3, %v1615_v42, 0.0 }
 0x183   : > { %v1482_v10 = vpop.f32.mrf.mxu2  ;;  %v1624_v59 = vadd.f32 %v1623_v8, %v1622_v54  ;;  %1683 = vst [vmem:[%s1661_s15 + $0x8] sm:$0xff] (%p2244_p4), %v1682_v50   ;;  %v1698_v8 = vld [vmem:[%s2512_s8 + $0x28] sm:$0xff] (%p2244_p4)  }
 0x184   : > { %v1552_v20 = vpop.f32.mrf.mxu3  ;;  %v1499_v11 = vadd.f32 %v1482_v10, %v1421_v9  ;;  %1699 = vst [vmem:[%s1661_s15 + $0x48] sm:$0xff] (%p2244_p4), %v1698_v8   ;;  %v1714_v54 = vld [vmem:[%s2512_s8 + $0x48] sm:$0xff] (%p2244_p4)  }
 0x185   : > { %1715 = vst [vmem:[%s1661_s15 + $0x88] sm:$0xff] (%p2244_p4), %v1714_v54  }
 0x186   : > { %v1569_v12 = vadd.f32 %v1552_v20, %v1499_v11  ;;  %v1378_v38 = vpop.f32.mrf.mxu0 }
 0x187   : > { %v1425_v29 = vpop.f32.mrf.mxu1 }
 0x188   : > { %v1577_v14 = vpack.c.bf16 %v1569_v12, %v1569_v12  ;;  %v1426_v24 = vadd.f32 %v1425_v29, %v1378_v38  ;;  %v1616_v49 = vmul.f32 %v1569_v12, %v1569_v12  ;;  %v1595_v7 = vsel %vm591_vm3, %v1569_v12, 0.0 }
 0x189   : > { %v1596_v52 = vadd.f32 %v1595_v7, %v1594_v57  ;;  %v1702_v7 = vld [vmem:[%s2512_s8 + $0x30] sm:$0xff] (%p2244_p4)  }
 0x18a   : > { %2089 = vst.msk [vmem:[%s2512_s8 + $0x68] sm:$0xf] %vm582_vm2, %v1577_v14  ;;  %v1625_v55 = vsel %vm591_vm3, %v1616_v49, 0.0  ;;  %v1718_v57 = vld [vmem:[%s2512_s8 + $0x50] sm:$0xff] (%p2244_p4)  }
 0x18b   : > { %v1484_v19 = vpop.f32.mrf.mxu2  ;;  %v1626_v1 = vadd.f32 %v1625_v55, %v1624_v59  ;;  %1703 = vst [vmem:[%s1661_s15 + $0x50] sm:$0xff] (%p2244_p4), %v1702_v7   ;;  %v1722_v55 = vld [vmem:[%s2512_s8 + $0x58] sm:$0xff] (%p2244_p4)  }
 0x18c   : > { %v1554_v0 = vpop.f32.mrf.mxu3  ;;  %v1500_v22 = vadd.f32 %v1484_v19, %v1423_v21  ;;  %1719 = vst [vmem:[%s1661_s15 + $0x90] sm:$0xff] (%p2244_p4), %v1718_v57  }
 0x18d   : > { %1723 = vst [vmem:[%s1661_s15 + $0x98] sm:$0xff] (%p2244_p4), %v1722_v55  }
 0x18e   : > { %v1570_v23 = vadd.f32 %v1554_v0, %v1500_v22  ;;  %v1380_v28 = vpop.f32.mrf.mxu0 }
 0x18f   : > { %v1427_v13 = vpop.f32.mrf.mxu1 }
 0x190   : > { %v1578_v26 = vpack.c.bf16 %v1570_v23, %v1570_v23  ;;  %v1428_v3 = vadd.f32 %v1427_v13, %v1380_v28  ;;  %v1617_v48 = vmul.f32 %v1570_v23, %v1570_v23  ;;  %v1597_v25 = vsel %vm591_vm3, %v1570_v23, 0.0 }
 0x191   : > { %v1598_v2 = vadd.f32 %v1597_v25, %v1596_v52  ;;  %v1726_v25 = vld [vmem:[%s2512_s8 + $0x60] sm:$0xff] (%p2244_p4)  }
 0x192   : > { %2090 = vst.msk [vmem:[%s2512_s8 + $0x6c] sm:$0xf] %vm582_vm2, %v1578_v26  ;;  %v1627_v61 = vsel %vm591_vm3, %v1617_v48, 0.0  ;;  %v1706_v48 = vld [vmem:[%s2512_s8 + $0x38] sm:$0xff] (%p2244_p4)  }
 0x193   : > { %v1487_v17 = vpop.f32.mrf.mxu2  ;;  %v1628_v9 = vadd.f32 %v1627_v61, %v1626_v1  ;;  %1707 = vst [vmem:[%s1661_s15 + $0x58] sm:$0xff] (%p2244_p4), %v1706_v48  }
 0x194   : > { %v1557_v18 = vpop.f32.mrf.mxu3  ;;  %v1501_v4 = vadd.f32 %v1487_v17, %v1426_v24  ;;  %1727 = vst [vmem:[%s1661_s15 + $0xc0] sm:$0xff] (%p2244_p4), %v1726_v25  }
 0x196   : > { %v1571_v30 = vadd.f32 %v1557_v18, %v1501_v4  ;;  %v1383_v36 = vpop.f32.mrf.mxu0 }
 0x197   : > { %v1430_v39 = vpop.f32.mrf.mxu1 }
 0x198   : > { %v1579_v32 = vpack.c.bf16 %v1571_v30, %v1571_v30  ;;  %v1431_v44 = vadd.f32 %v1430_v39, %v1383_v36  ;;  %v1618_v47 = vmul.f32 %v1571_v30, %v1571_v30  ;;  %v1599_v37 = vsel %vm591_vm3, %v1571_v30, 0.0 }
 0x199   : > { %v1600_v10 = vadd.f32 %v1599_v37, %v1598_v2 }
 0x19a   : > { %2091 = vst.msk [vmem:[%s2512_s8 + $0x70] sm:$0xf] %vm582_vm2, %v1579_v32  ;;  %v1629_v58 = vsel %vm591_vm3, %v1618_v47, 0.0  ;;  %v1730_v47 = vld [vmem:[%s2512_s8 + $0x68] sm:$0xff] (%p2244_p4)  }
 0x19b   : > { %v1489_v34 = vpop.f32.mrf.mxu2  ;;  %v1630_v38 = vadd.f32 %v1629_v58, %v1628_v9  ;;  %1731 = vst [vmem:[%s1661_s15 + $0xc8] sm:$0xff] (%p2244_p4), %v1730_v47  }
 0x19c   : > { %v1559_v31 = vpop.f32.mrf.mxu3  ;;  %v1502_v35 = vadd.f32 %v1489_v34, %v1428_v3 }
 0x19e   : > { %v1572_v40 = vadd.f32 %v1559_v31, %v1502_v35  ;;  %v1385_v60 = vpop.f32.mrf.mxu0 }
 0x19f   : > { %v1432_v15 = vpop.f32.mrf.mxu1 }
 0x1a0   : > { %v1580_v43 = vpack.c.bf16 %v1572_v40, %v1572_v40  ;;  %v1619_v16 = vmul.f32 %v1572_v40, %v1572_v40  ;;  %v1601_v27 = vsel %vm591_vm3, %v1572_v40, 0.0  ;;  %v1433_v63 = vadd.f32 %v1432_v15, %v1385_v60 }
 0x1a1   : > { %v1602_v29 = vadd.f32 %v1601_v27, %v1600_v10 }
 0x1a2   : > { %2092 = vst.msk [vmem:[%s2512_s8 + $0x74] sm:$0xf] %vm582_vm2, %v1580_v43  ;;  %v1631_v11 = vsel %vm591_vm3, %v1619_v16, 0.0 }
 0x1a3   : > { %v1492_v33 = vpop.f32.mrf.mxu2  ;;  %v1632_v22 = vadd.f32 %v1631_v11, %v1630_v38 }
 0x1a4   : > { %v1562_v51 = vpop.f32.mrf.mxu3  ;;  %v1503_v53 = vadd.f32 %v1492_v33, %v1431_v44  ;;  %v1690_v33 = vld [vmem:[%s2512_s8 + $0x18] sm:$0xff] (%p2244_p4)  }
 0x1a5   : > { %1691 = vst [vmem:[%s1661_s15 + $0x18] sm:$0xff] (%p2244_p4), %v1690_v33  }
 0x1a6   : > { %v1573_v56 = vadd.f32 %v1562_v51, %v1503_v53  ;;  %v1694_v51 = vld [vmem:[%s2512_s8 + $0x20] sm:$0xff] (%p2244_p4)  }
 0x1a7   : > { %1695 = vst [vmem:[%s1661_s15 + $0x40] sm:$0xff] (%p2244_p4), %v1694_v51   ;;  %v1710_v53 = vld [vmem:[%s2512_s8 + $0x40] sm:$0xff] (%p2244_p4)  }
 0x1a8   : > { %v1581_v62 = vpack.c.bf16 %v1573_v56, %v1573_v56  ;;  %v1620_v6 = vmul.f32 %v1573_v56, %v1573_v56  ;;  %v1603_v12 = vsel %vm591_vm3, %v1573_v56, 0.0  ;;  %1711 = vst [vmem:[%s1661_s15 + $0x80] sm:$0xff] (%p2244_p4), %v1710_v53  }
 0x1a9   : > { %v1604_v23 = vadd.f32 %v1603_v12, %v1602_v29  ;;  %v1734_v56 = vld [vmem:[%s2512_s8 + $0x70] sm:$0xff] (%p2244_p4)  }
 0x1aa   : > { %2093 = vst.msk [vmem:[%s2512_s8 + $0x78] sm:$0xf] %vm582_vm2, %v1581_v62  ;;  %v1633_v19 = vsel %vm591_vm3, %v1620_v6, 0.0 }
 0x1ab   : > { %v1494_v20 = vpop.f32.mrf.mxu2  ;;  %v1634_v13 = vadd.f32 %v1633_v19, %v1632_v22  ;;  %1735 = vst [vmem:[%s1661_s15 + $0xd0] sm:$0xff] (%p2244_p4), %v1734_v56  }
 0x1ac   : > { %v1504_v14 = vadd.f32 %v1494_v20, %v1433_v63  ;;  %v1564_v21 = vpop.f32.mrf.mxu3 }
 0x1ae   : > { %v1574_v0 = vadd.f32 %v1564_v21, %v1504_v14 }
 0x1b0   : > { %v1582_v26 = vpack.c.bf16 %v1574_v0, %v1574_v0  ;;  %v1605_v24 = vsel %vm591_vm3, %v1574_v0, 0.0  ;;  %v1621_v28 = vmul.f32 %v1574_v0, %v1574_v0 }
 0x1b1   : > { %v1606_v17 = vadd.f32 %v1605_v24, %v1604_v23 }
 0x1b2   : > { %2094 = vst.msk [vmem:[%s2512_s8 + $0x7c] sm:$0xf] %vm582_vm2, %v1582_v26  ;;  %v1635_v18 = vsel %vm591_vm3, %v1621_v28, 0.0 }
 0x1b3   : > { %v1607_v4 = vrot.slane %v1606_v17, 4  ;;  %v1636_v30 = vadd.f32 %v1635_v18, %v1634_v13 }
 0x1b5   : > { %v1608_v32 = vadd.f32 %v1607_v4, %v1606_v17  ;;  %v1637_v3 = vrot.slane %v1636_v30, 4 }
 0x1b7   : > { %v1609_v34 = vrot.slane %v1608_v32, 2  ;;  %v1638_v31 = vadd.f32 %v1637_v3, %v1636_v30 }
 0x1b9   : > { %v1610_v35 = vadd.f32 %v1609_v34, %v1608_v32  ;;  %v1639_v36 = vrot.slane %v1638_v31, 2  ;;  %v1738_v59 = vld [vmem:[%s2512_s8 + $0x78] sm:$0xff] (%p2244_p4)  }
 0x1ba   : > { %1739 = vst [vmem:[%s1661_s15 + $0xd8] sm:$0xff] (%p2244_p4), %v1738_v59  }
 0x1bb   : > { %v1611_v39 = vrot.slane %v1610_v35, 1  ;;  %v1640_v40 = vadd.f32 %v1639_v36, %v1638_v31 }
 0x1bd   : > { %v1612_v42 = vadd.f32 %v1611_v39, %v1610_v35  ;;  %v1641_v43 = vrot.slane %v1640_v40, 1 }
 0x1bf   : > { %v1642_v44 = vadd.f32 %v1641_v43, %v1640_v40  ;;  %v1613_v45 = vadd.f32 %v1612_v42, %v2684_v5  ;;  %v1678_v5 = vld [vmem:[%s2512_s8] sm:$0xff] (%p2244_p4)  }
 0x1c0   : > { %1658 = sbr.rel (!%p2244_p4) target bundleno = 453 (0x1c5), region = 40  ;;  %1679 = vst [vmem:[%s1661_s15] sm:$0xff] (%p2244_p4), %v1678_v5  }
 0x1c1   : > { %v1643_v46 = vadd.f32 %v1642_v44, %v2687_v41  ;;  %v1686_v41 = vld [vmem:[%s2512_s8 + $0x10] sm:$0xff] (%p2244_p4)  }
 0x1c2   : > { %1687 = vst [vmem:[%s1661_s15 + $0x10] sm:$0xff] (%p2244_p4), %v1686_v41  }
 0x1c3   : > { %v1645_v49 = vsel %vm1644_vm4, %v1613_v45, %v1643_v46 }
 0x1c4   : > { %1647 = vst.msk [vmem:[%s230_s11] sm:$0x3] %vm1646_vm5, %v1645_v49 }
 0x1c5 PF: > { %p13_p8 = scmp.ge.s32.totalorder %s2234_s22, 4   ;;  %s2767_s18 = smov %s2182_s19 }
 0x1c6   : > { %s2768_s19 = smov %s2242_s25  ;;  %s2769_s20 = smov %s2234_s22 }
 0x1c7   :  { %15 = sbr.rel (!%p13_p8) target bundleno = 2 (0x2), region = 139 }

// kernel: generator_forward.9
= control target key start
LH: loop header
LB: loop body
LE: loop exit
PB: predicated region body
PF: predicated region fallthrough
CT: control target
= control target key end

     0   :  { %s4578_s15 = smov 0   ;;  %s4580_s16 = smov 0   ;;  %s5337_s0 = inlined_call_operand.vmem [shape: bf16[2,16,16,8], index: 0, kind: input, shape index: {}]   ;;  %s5338_s1 = inlined_call_operand.vmem [shape: f32[1,8], index: 1, kind: input, shape index: {}]   ;;  %s5339_s2 = inlined_call_operand.vmem [shape: f32[1,8], index: 2, kind: input, shape index: {}]   ;;  %s5340_s3 = inlined_call_operand.vmem [shape: bf16[4,4,8,8], index: 3, kind: input, shape index: {}]   ;;  %s5341_s4 = inlined_call_operand.vmem [shape: f32[4,8,512], index: 4, kind: output, shape index: {}]  }
   0x1   :  { %s4582_s17 = smov 0  }
   0x2 LB: > { %s4591_s18 = sadd.s32 4294967295, %s4550_s17   ;;  %s4593_s19 = sadd.s32 1, %s4550_s17   ;;  %s4550_s17 = sphi %s4582_s17, %s5345_s17   ;;  %s4546_s16 = sphi %s4580_s16, %s5344_s16   ;;  %s4542_s15 = sphi %s4578_s15, %s5343_s15  }
   0x3   : > { %s107_s20 = ssub.s32 %s4550_s17, %s4593_s19  ;;  %s110_s21 = sadd.s32 1, %s4546_s16 }
   0x4   : > { %p108_p0 = scmp.eq.s32.totalorder %s107_s20, 0  ;;  %p120_p1 = scmp.ne.s32.totalorder %s4546_s16, %s4542_s15 }
   0x5   : > { %p121_p2 = scmp.eq.s32.totalorder %s4591_s18, 1  ;;  %p4118_p3 = scmp.ge.s32.totalorder %s4550_s17, 1 }
   0x6   : > { %s4601_s22 = scalar_select %p108_p0, %s4546_s16, %s110_s21  }
   0x7   : > { %p4603_p4 = por %p121_p2, %p120_p1  ;;  %p162_p5 = scmp.lt.s32.totalorder %s4550_s17, 3 }
   0x9   : > { %p163_p6 = pnand %p4118_p3, %p162_p5 }
   0xa   : > { %p187_p7 = scmp.lt.s32.totalorder (!%p163_p6), %s4591_s18, 1  ;;  %s184_s25 = sand.u32 (!%p163_p6), 1, %s4542_s15  }
   0xb   : > { %166 = sbr.rel (%p163_p6) target bundleno = 1297 (0x511), region = 36  ;;  %s4119_s26 = sshll.u32 (!%p163_p6), %s184_s25, 6 }
   0xc   : > { %s5303_s27 = scalar_lea.vmem (!%p163_p6), [#allocation3], %s4119_s26 }
  0x10   : > { %v4122_v0 = vld [vmem:[%s5340_s3 + $0x4] sm:$0xf]  ;;  %vm598_vm0 = vcmask 1043456   ;;  %v499_v1 = vld [vmem:[%s5340_s3] sm:$0xf]  ;;  %vm194_vm1 = vcmask 64512  }
  0x11   : > { %v600_v2 = vsel %vm598_vm0, %v4122_v0, 0  ;;  %v740_v3 = vsel %vm598_vm0, %v499_v1, 0  ;;  %vm197_vm2 = vcmask 58368   ;;  %v4155_v4 = vld [vmem:[%s5340_s3 + $0x8] sm:$0xf]  ;;  %v4552_v5 = vmov 0.0  }
  0x12   : > { %609 = vmatpush.bf16.msra.mxu0 %v600_v2  ;;  %749 = vmatpush.bf16.msra.mxu1 %v740_v3  ;;  %195 = vst.msk [vmem:[#allocation2] sm:$0xff] %vm194_vm1, %v4552_v5  ;;  %v930_v6 = vsel %vm598_vm0, %v4155_v4, 0  ;;  %v4172_v7 = vld [vmem:[%s5340_s3 + $0xc] sm:$0xf]  ;;  %s188_s6 = scalar_select %p187_p7, %s4591_s18, 1 }
  0x13   : > { %196 = vst.msk [vmem:[#allocation2 + $0x8] sm:$0xff] %vm194_vm1, %v4552_v5  ;;  %939 = vmatpush.bf16.msra.mxu2 %v930_v6  ;;  %v1152_v8 = vsel %vm598_vm0, %v4172_v7, 0  ;;  %v4223_v15 = vld [vmem:[%s5340_s3 + $0x18] sm:$0xf]  ;;  %v4240_v16 = vld [vmem:[%s5340_s3 + $0x1c] sm:$0xf] }
  0x14   : > { %198 = vst.msk [vmem:[#allocation2 + $0x10] sm:$0x3] %vm197_vm2, %v4552_v5  ;;  %1161 = vmatpush.bf16.msra.mxu3 %v1152_v8  ;;  %s4404_s7 = sshll.u32 %s188_s6, 7  ;;  %v1822_v17 = vsel %vm598_vm0, %v4223_v15, 0  ;;  %v2044_v18 = vsel %vm598_vm0, %v4240_v16, 0  ;;  %s4405_s15 = sshll.u32 (%p4603_p4), %s4591_s18, 4 }
  0x15   : > { %199 = vst.msk [vmem:[#allocation2 + $0x18] sm:$0xff] %vm194_vm1, %v4552_v5  ;;  %s4696_s10 = scalar_lea.vmem %s5337_s0, %s4404_s7  ;;  %v4190_v19 = vld [vmem:[%s5340_s3 + $0x14] sm:$0xf]  ;;  %v4189_v22 = vld [vmem:[%s5340_s3 + $0x10] sm:$0xf]  ;;  %s4032_s30 = scalar_lea.vmem (%p4603_p4), %s5341_s4, %s4405_s15 }
  0x16   : > { %200 = vst.msk [vmem:[#allocation2 + $0x20] sm:$0xff] %vm194_vm1, %v4552_v5  ;;  %v4407_v20 = vld [vmem:[%s4696_s10] sm:$0xff]   ;;  %v1492_v21 = vsel %vm598_vm0, %v4190_v19, 0  ;;  %v1632_v23 = vsel %vm598_vm0, %v4189_v22, 0  ;;  %v4470_v24 = vld [vmem:[%s4696_s10 + $0x8] sm:$0xff]   ;;  %v4471_v36 = vld [vmem:[%s4696_s10 + $0x10] sm:$0xff]  }
  0x17   : > { %201 = vst.msk [vmem:[#allocation2 + $0x28] sm:$0x3] %vm197_vm2, %v4552_v5  ;;  %1831 = vmatpush.bf16.msrb.mxu2 %v1822_v17  ;;  %1501 = vmatpush.bf16.msrb.mxu0 %v1492_v21  ;;  %v4408_v25 = vunpack.c.l.bf16 %v4407_v20  ;;  %v4731_v26 = vld [vmem:[%s5338_s1] ss:$0 sm:$0xff]  ;;  %v4409_v27 = vunpack.c.h.bf16 %v4407_v20  ;;  %v4412_v28 = vunpack.c.l.bf16 %v4470_v24  ;;  %v4413_v29 = vunpack.c.h.bf16 %v4470_v24  ;;  %v4472_v56 = vld [vmem:[%s4696_s10 + $0x18] sm:$0xff]   ;;  %v4474_v24 = vld [vmem:[%s4696_s10 + $0x28] sm:$0xff]  }
  0x18   : > { %202 = vst.msk [vmem:[#allocation2 + $0x30] sm:$0xff] %vm194_vm1, %v4552_v5  ;;  %2053 = vmatpush.bf16.msrb.mxu3 %v2044_v18  ;;  %1641 = vmatpush.bf16.msrb.mxu1 %v1632_v23  ;;  %v4745_v31 = vld [vmem:[%s5339_s2] ss:$0 sm:$0xff]  ;;  %v4416_v38 = vunpack.c.l.bf16 %v4471_v36  ;;  %v4417_v39 = vunpack.c.h.bf16 %v4471_v36  ;;  %v4420_v59 = vunpack.c.l.bf16 %v4472_v56  ;;  %v4421_v60 = vunpack.c.h.bf16 %v4472_v56  ;;  %v4476_v56 = vld [vmem:[%s4696_s10 + $0x38] sm:$0xff]  }
  0x19   : > { %203 = vst.msk [vmem:[#allocation2 + $0x38] sm:$0xff] %vm194_vm1, %v4552_v5  ;;  %v451_v9 = vld [vmem:[#allocation2] sm:$0xff]  ;;  %v318_v30 = vmul.f32 %v4731_v26, %v4408_v25  ;;  %v319_v32 = vmul.f32 %v4731_v26, %v4409_v27  ;;  %v320_v33 = vmul.f32 %v4731_v26, %v4412_v28  ;;  %v321_v34 = vmul.f32 %v4731_v26, %v4413_v29 }
  0x1a   : > { %v500_v10 = vld [vmem:[#allocation2 + $0x1] sm:$0xff]  ;;  %204 = vst.msk [vmem:[#allocation2 + $0x40] sm:$0x3] %vm197_vm2, %v4552_v5  ;;  %v322_v42 = vmul.f32 %v4731_v26, %v4416_v38  ;;  %v323_v43 = vmul.f32 %v4731_v26, %v4417_v39  ;;  %v324_v61 = vmul.f32 %v4731_v26, %v4420_v59  ;;  %v325_v62 = vmul.f32 %v4731_v26, %v4421_v60 }
  0x1b   : > { %v452_v11 = vld [vmem:[#allocation2 + $0x8] sm:$0xff]  ;;  %205 = vst.msk [vmem:[#allocation2 + $0x48] sm:$0xff] %vm194_vm1, %v4552_v5  ;;  %v354_v35 = vadd.f32 %v4745_v31, %v318_v30  ;;  %v355_v37 = vadd.f32 %v4745_v31, %v319_v32  ;;  %v356_v40 = vadd.f32 %v4745_v31, %v320_v33  ;;  %v357_v41 = vadd.f32 %v4745_v31, %v321_v34 }
  0x1c   : > { %v501_v12 = vld [vmem:[#allocation2 + $0x9] sm:$0xff]  ;;  %v483_v13 = vpack.c.bf16 %v452_v11, %v451_v9  ;;  %206 = vst.msk [vmem:[#allocation2 + $0x50] sm:$0xff] %vm194_vm1, %v4552_v5  ;;  %v358_v46 = vadd.f32 %v4745_v31, %v322_v42  ;;  %v359_v47 = vadd.f32 %v4745_v31, %v323_v43  ;;  %v360_v63 = vadd.f32 %v4745_v31, %v324_v61  ;;  %v4473_v9 = vld [vmem:[%s4696_s10 + $0x20] sm:$0xff]  }
  0x1d   : > { %v532_v14 = vpack.c.bf16 %v501_v12, %v500_v10  ;;  %207 = vst.msk [vmem:[#allocation2 + $0x58] sm:$0x3] %vm197_vm2, %v4552_v5  ;;  %v386_v44 = vmax.f32 %v354_v35, 0.0  ;;  %v387_v45 = vmax.f32 %v355_v37, 0.0  ;;  %v388_v48 = vmax.f32 %v356_v40, 0.0 }
  0x1e   : > { %4139 = vmatmul.msk.bf16.vlgmr.msra.gmra.mxu1 %vm194_vm1, %v483_v13  ;;  %208 = vst.msk [vmem:[#allocation2 + $0x60] sm:$0xff] %vm194_vm1, %v4552_v5  ;;  %v389_v49 = vmax.f32 %v357_v41, 0.0  ;;  %v390_v50 = vmax.f32 %v358_v46, 0.0  ;;  %v391_v51 = vmax.f32 %v359_v47, 0.0  ;;  %v361_v0 = vadd.f32 %v4745_v31, %v325_v62  ;;  %v4475_v41 = vld [vmem:[%s4696_s10 + $0x30] sm:$0xff]  }
  0x1f   : > { %4123 = vmatmul.msk.bf16.vlgmr.msra.gmra.mxu0 %vm194_vm1, %v532_v14  ;;  %209 = vst.msk [vmem:[#allocation2 + $0x68] sm:$0xff] %vm194_vm1, %v4552_v5  ;;  %v392_v1 = vmax.f32 %v360_v63, 0.0  ;;  %v4424_v10 = vunpack.c.l.bf16 %v4473_v9  ;;  %v4425_v11 = vunpack.c.h.bf16 %v4473_v9  ;;  %v4428_v25 = vunpack.c.l.bf16 %v4474_v24 }
  0x20   : > { %210 = vst.msk [vmem:[#allocation2 + $0x70] sm:$0x3] %vm197_vm2, %v4552_v5  ;;  %v393_v2 = vmax.f32 %v361_v0, 0.0  ;;  %v4429_v27 = vunpack.c.h.bf16 %v4474_v24  ;;  %v4432_v42 = vunpack.c.l.bf16 %v4475_v41  ;;  %v4433_v43 = vunpack.c.h.bf16 %v4475_v41  ;;  %v4479_v41 = vld [vmem:[%s4696_s10 + $0x50] sm:$0xff]  }
  0x21   : > { %211 = vst.msk [vmem:[#allocation2 + $0x78] sm:$0xff] %vm194_vm1, %v4552_v5  ;;  %v326_v12 = vmul.f32 %v4731_v26, %v4424_v10  ;;  %v327_v13 = vmul.f32 %v4731_v26, %v4425_v11  ;;  %v328_v28 = vmul.f32 %v4731_v26, %v4428_v25 }
  0x22   : > { %212 = vst.msk [vmem:[#allocation2 + $0x80] sm:$0xff] %vm194_vm1, %v4552_v5  ;;  %v329_v29 = vmul.f32 %v4731_v26, %v4429_v27 }
  0x23   : > { %213 = vst.msk [vmem:[#allocation2 + $0x88] sm:$0x3] %vm197_vm2, %v4552_v5  ;;  %v362_v14 = vadd.f32 %v4745_v31, %v326_v12  ;;  %v363_v15 = vadd.f32 %v4745_v31, %v327_v13  ;;  %v364_v30 = vadd.f32 %v4745_v31, %v328_v28 }
  0x24   : > { %214 = vst.msk [vmem:[#allocation2 + $0x90] sm:$0xff] %vm194_vm1, %v4552_v5  ;;  %v365_v32 = vadd.f32 %v4745_v31, %v329_v29 }
  0x25   : > { %215 = vst.msk [vmem:[#allocation2 + $0x98] sm:$0xff] %vm194_vm1, %v4552_v5  ;;  %v394_v16 = vmax.f32 %v362_v14, 0.0  ;;  %v395_v17 = vmax.f32 %v363_v15, 0.0  ;;  %v396_v33 = vmax.f32 %v364_v30, 0.0 }
  0x26   : > { %216 = vst.msk [vmem:[#allocation2 + $0xa0] sm:$0x3] %vm197_vm2, %v4552_v5  ;;  %v397_v34 = vmax.f32 %v365_v32, 0.0 }
  0x27   : > { %217 = vst.msk [vmem:[#allocation2 + $0xa8] sm:$0xff] %vm194_vm1, %v4552_v5 }
  0x28   : > { %218 = vst.msk [vmem:[#allocation2 + $0xb0] sm:$0xff] %vm194_vm1, %v4552_v5 }
  0x29   : > { %219 = vst.msk [vmem:[#allocation2 + $0xb8] sm:$0x3] %vm197_vm2, %v4552_v5 }
  0x2a   : > { %220 = vst.msk [vmem:[#allocation2 + $0xc0] sm:$0xff] %vm194_vm1, %v4552_v5 }
  0x2b   : > { %221 = vst.msk [vmem:[#allocation2 + $0xc8] sm:$0xff] %vm194_vm1, %v4552_v5 }
  0x2c   : > { %222 = vst.msk [vmem:[#allocation2 + $0xd0] sm:$0x3] %vm197_vm2, %v4552_v5 }
  0x2d   : > { %223 = vst.msk [vmem:[#allocation2 + $0xd8] sm:$0xff] %vm194_vm1, %v4552_v5 }
  0x2e   : > { %224 = vst.msk [vmem:[#allocation2 + $0xe0] sm:$0xff] %vm194_vm1, %v4552_v5 }
  0x2f   : > { %225 = vst.msk [vmem:[#allocation2 + $0xe8] sm:$0x3] %vm197_vm2, %v4552_v5 }
  0x30   : > { %226 = vst.msk [vmem:[#allocation2 + $0xf0] sm:$0xff] %vm194_vm1, %v4552_v5 }
  0x31   : > { %227 = vst.msk [vmem:[#allocation2 + $0xf8] sm:$0xff] %vm194_vm1, %v4552_v5 }
  0x32   : > { %228 = vst.msk [vmem:[#allocation2 + $0x100] sm:$0x3] %vm197_vm2, %v4552_v5 }
  0x33   : > { %229 = vst.msk [vmem:[#allocation2 + $0x108] sm:$0xff] %vm194_vm1, %v4552_v5 }
  0x34   : > { %230 = vst.msk [vmem:[#allocation2 + $0x110] sm:$0xff] %vm194_vm1, %v4552_v5 }
  0x35   : > { %231 = vst.msk [vmem:[#allocation2 + $0x118] sm:$0x3] %vm197_vm2, %v4552_v5 }
  0x36   : > { %232 = vst.msk [vmem:[#allocation2 + $0x120] sm:$0xff] %vm194_vm1, %v4552_v5 }
  0x37   : > { %233 = vst.msk [vmem:[#allocation2 + $0x128] sm:$0xff] %vm194_vm1, %v4552_v5 }
  0x38   : > { %234 = vst.msk [vmem:[#allocation2 + $0x130] sm:$0x3] %vm197_vm2, %v4552_v5 }
  0x39   : > { %235 = vst.msk [vmem:[#allocation2 + $0x138] sm:$0xff] %vm194_vm1, %v4552_v5 }
  0x3a   : > { %236 = vst.msk [vmem:[#allocation2 + $0x140] sm:$0xff] %vm194_vm1, %v4552_v5 }
  0x3b   : > { %237 = vst.msk [vmem:[#allocation2 + $0x148] sm:$0x3] %vm197_vm2, %v4552_v5 }
  0x3c   : > { %238 = vst.msk [vmem:[#allocation2 + $0x150] sm:$0xff] %vm194_vm1, %v4552_v5 }
  0x3d   : > { %239 = vst.msk [vmem:[#allocation2 + $0x158] sm:$0xff] %vm194_vm1, %v4552_v5 }
  0x3e   : > { %240 = vst.msk [vmem:[#allocation2 + $0x160] sm:$0x3] %vm197_vm2, %v4552_v5 }
  0x3f   : > { %241 = vst.msk [vmem:[#allocation2 + $0x168] sm:$0xff] %vm194_vm1, %v4552_v5 }
  0x40   : > { %242 = vst.msk [vmem:[#allocation2 + $0x170] sm:$0xff] %vm194_vm1, %v4552_v5 }
  0x41   : > { %243 = vst.msk [vmem:[#allocation2 + $0x178] sm:$0x3] %vm197_vm2, %v4552_v5 }
  0x42   : > { %244 = vst.msk [vmem:[#allocation2 + $0x180] sm:$0xff] %vm194_vm1, %v4552_v5 }
  0x43   : > { %245 = vst.msk [vmem:[#allocation2 + $0x188] sm:$0xff] %vm194_vm1, %v4552_v5 }
  0x44   : > { %246 = vst.msk [vmem:[#allocation2 + $0x190] sm:$0x3] %vm197_vm2, %v4552_v5 }
  0x45   : > { %247 = vst.msk [vmem:[#allocation2 + $0x198] sm:$0xff] %vm194_vm1, %v4552_v5 }
  0x46   : > { %248 = vst.msk [vmem:[#allocation2 + $0x1a0] sm:$0xff] %vm194_vm1, %v4552_v5 }
  0x47   : > { %249 = vst.msk [vmem:[#allocation2 + $0x1a8] sm:$0x3] %vm197_vm2, %v4552_v5 }
  0x48   : > { %419 = vst.msk [vmem:[#allocation2 + $0x19] sm:$0xff] %vm194_vm1, %v386_v44  ;;  %v330_v44 = vmul.f32 %v4731_v26, %v4432_v42  ;;  %v4448_v42 = vunpack.c.l.bf16 %v4479_v41 }
  0x49   : > { %420 = vst.msk [vmem:[#allocation2 + $0x21] sm:$0xff] %vm194_vm1, %v387_v45  ;;  %v331_v45 = vmul.f32 %v4731_v26, %v4433_v43  ;;  %v4449_v43 = vunpack.c.h.bf16 %v4479_v41 }
  0x4a   : > { %421 = vst.msk [vmem:[#allocation2 + $0x31] sm:$0xff] %vm194_vm1, %v388_v48  ;;  %v366_v46 = vadd.f32 %v4745_v31, %v330_v44  ;;  %v338_v44 = vmul.f32 %v4731_v26, %v4448_v42 }
  0x4b   : > { %422 = vst.msk [vmem:[#allocation2 + $0x39] sm:$0xff] %vm194_vm1, %v389_v49  ;;  %v367_v47 = vadd.f32 %v4745_v31, %v331_v45  ;;  %v339_v45 = vmul.f32 %v4731_v26, %v4449_v43 }
  0x4c   : > { %423 = vst.msk [vmem:[#allocation2 + $0x49] sm:$0xff] %vm194_vm1, %v390_v50  ;;  %v398_v48 = vmax.f32 %v366_v46, 0.0  ;;  %v374_v46 = vadd.f32 %v4745_v31, %v338_v44 }
  0x4d   : > { %424 = vst.msk [vmem:[#allocation2 + $0x51] sm:$0xff] %vm194_vm1, %v391_v51  ;;  %v399_v49 = vmax.f32 %v367_v47, 0.0  ;;  %v375_v47 = vadd.f32 %v4745_v31, %v339_v45 }
  0x4e   : > { %425 = vst.msk [vmem:[#allocation2 + $0x61] sm:$0xff] %vm194_vm1, %v392_v1 }
  0x4f   : > { %v831_v52 = vld [vmem:[#allocation2 + $0x18] sm:$0xff]  ;;  %426 = vst.msk [vmem:[#allocation2 + $0x69] sm:$0xff] %vm194_vm1, %v393_v2 }
  0x50   : > { %v1053_v53 = vld [vmem:[#allocation2 + $0x19] sm:$0xff]  ;;  %v1054_v55 = vld [vmem:[#allocation2 + $0x21] sm:$0xff]  ;;  %427 = vst.msk [vmem:[#allocation2 + $0x79] sm:$0xff] %vm194_vm1, %v394_v16 }
  0x51   : > { %v832_v54 = vld [vmem:[#allocation2 + $0x20] sm:$0xff]  ;;  %v1085_v58 = vpack.c.bf16 %v1054_v55, %v1053_v53  ;;  %v833_v3 = vld [vmem:[#allocation2 + $0x30] sm:$0xff]  ;;  %428 = vst.msk [vmem:[#allocation2 + $0x81] sm:$0xff] %vm194_vm1, %v395_v17 }
  0x52   : > { %v863_v57 = vpack.c.bf16 %v832_v54, %v831_v52  ;;  %v834_v4 = vld [vmem:[#allocation2 + $0x38] sm:$0xff]  ;;  %429 = vst.msk [vmem:[#allocation2 + $0x91] sm:$0xff] %vm194_vm1, %v396_v33 }
  0x53   : > { %4173 = vmatmul.msk.bf16.vlgmr.msra.gmra.mxu3 %vm194_vm1, %v1085_v58  ;;  %4124 = vmatmul.msk.bf16.gmra.mxu0 %vm194_vm1, %v1085_v58  ;;  %v1055_v5 = vld [vmem:[#allocation2 + $0x31] sm:$0xff]  ;;  %v1056_v6 = vld [vmem:[#allocation2 + $0x39] sm:$0xff]  ;;  %v864_v7 = vpack.c.bf16 %v834_v4, %v833_v3  ;;  %v835_v18 = vld [vmem:[#allocation2 + $0x48] sm:$0xff]  ;;  %430 = vst.msk [vmem:[#allocation2 + $0x99] sm:$0xff] %vm194_vm1, %v397_v34  ;;  %v4437_v58 = vunpack.c.h.bf16 %v4476_v56 }
  0x54   : > { %4156 = vmatmul.msk.bf16.vlgmr.msra.gmra.mxu2 %vm194_vm1, %v863_v57  ;;  %4140 = vmatmul.msk.bf16.gmra.mxu1 %vm194_vm1, %v863_v57  ;;  %v1086_v8 = vpack.c.bf16 %v1056_v6, %v1055_v5  ;;  %v836_v19 = vld [vmem:[#allocation2 + $0x50] sm:$0xff]  ;;  %431 = vst.msk [vmem:[#allocation2 + $0xa9] sm:$0xff] %vm194_vm1, %v398_v48  ;;  %v4436_v57 = vunpack.c.l.bf16 %v4476_v56 }
  0x55   : > { %v1057_v20 = vld [vmem:[#allocation2 + $0x49] sm:$0xff]  ;;  %v1058_v21 = vld [vmem:[#allocation2 + $0x51] sm:$0xff]  ;;  %v865_v22 = vpack.c.bf16 %v836_v19, %v835_v18  ;;  %v837_v35 = vld [vmem:[#allocation2 + $0x60] sm:$0xff]  ;;  %432 = vst.msk [vmem:[#allocation2 + $0xb1] sm:$0xff] %vm194_vm1, %v399_v49  ;;  %v333_v60 = vmul.f32 %v4731_v26, %v4437_v58 }
  0x56   : > { %v1087_v23 = vpack.c.bf16 %v1058_v21, %v1057_v20  ;;  %v838_v36 = vld [vmem:[#allocation2 + $0x68] sm:$0xff]  ;;  %v332_v59 = vmul.f32 %v4731_v26, %v4436_v57 }
  0x57   : > { %v1059_v37 = vld [vmem:[#allocation2 + $0x61] sm:$0xff]  ;;  %v1060_v38 = vld [vmem:[#allocation2 + $0x69] sm:$0xff]  ;;  %v866_v39 = vpack.c.bf16 %v838_v36, %v837_v35  ;;  %v839_v50 = vld [vmem:[#allocation2 + $0x78] sm:$0xff]  ;;  %v369_v62 = vadd.f32 %v4745_v31, %v333_v60 }
  0x58   : > { %v1088_v40 = vpack.c.bf16 %v1060_v38, %v1059_v37  ;;  %v840_v51 = vld [vmem:[#allocation2 + $0x80] sm:$0xff]  ;;  %v368_v61 = vadd.f32 %v4745_v31, %v332_v59  ;;  %v4480_v60 = vld [vmem:[%s4696_s10 + $0x58] sm:$0xff]  }
  0x59   : > { %v1061_v52 = vld [vmem:[#allocation2 + $0x79] sm:$0xff]  ;;  %v1062_v53 = vld [vmem:[#allocation2 + $0x81] sm:$0xff]  ;;  %v867_v54 = vpack.c.bf16 %v840_v51, %v839_v50  ;;  %v401_v0 = vmax.f32 %v369_v62, 0.0  ;;  %v841_v1 = vld [vmem:[#allocation2 + $0x90] sm:$0xff]  ;;  %v406_v50 = vmax.f32 %v374_v46, 0.0  ;;  %v407_v51 = vmax.f32 %v375_v47, 0.0 }
  0x5a   : > { %v1089_v55 = vpack.c.bf16 %v1062_v53, %v1061_v52  ;;  %v400_v63 = vmax.f32 %v368_v61, 0.0  ;;  %v842_v2 = vld [vmem:[#allocation2 + $0x98] sm:$0xff]  ;;  %v4452_v61 = vunpack.c.l.bf16 %v4480_v60  ;;  %v4453_v62 = vunpack.c.h.bf16 %v4480_v60 }
  0x5b   : > { %434 = vst.msk [vmem:[#allocation2 + $0xc9] sm:$0xff] %vm194_vm1, %v401_v0  ;;  %v1063_v3 = vld [vmem:[#allocation2 + $0x91] sm:$0xff]  ;;  %v1064_v4 = vld [vmem:[#allocation2 + $0x99] sm:$0xff]  ;;  %v868_v5 = vpack.c.bf16 %v842_v2, %v841_v1  ;;  %v843_v16 = vld [vmem:[#allocation2 + $0xa8] sm:$0xff] }
  0x5c   : > { %433 = vst.msk [vmem:[#allocation2 + $0xc1] sm:$0xff] %vm194_vm1, %v400_v63  ;;  %v1090_v6 = vpack.c.bf16 %v1064_v4, %v1063_v3  ;;  %v844_v17 = vld [vmem:[#allocation2 + $0xb0] sm:$0xff]  ;;  %v340_v0 = vmul.f32 %v4731_v26, %v4452_v61  ;;  %v341_v1 = vmul.f32 %v4731_v26, %v4453_v62 }
  0x5d   : > { %v1065_v18 = vld [vmem:[#allocation2 + $0xa9] sm:$0xff]  ;;  %v1066_v19 = vld [vmem:[#allocation2 + $0xb1] sm:$0xff]  ;;  %v869_v20 = vpack.c.bf16 %v844_v17, %v843_v16  ;;  %439 = vst.msk [vmem:[#allocation2 + $0x109] sm:$0xff] %vm194_vm1, %v406_v50 }
  0x5e   : > { %v1091_v21 = vpack.c.bf16 %v1066_v19, %v1065_v18  ;;  %440 = vst.msk [vmem:[#allocation2 + $0x111] sm:$0xff] %vm194_vm1, %v407_v51  ;;  %v376_v4 = vadd.f32 %v4745_v31, %v340_v0 }
  0x62   : > { %v1068_v36 = vld [vmem:[#allocation2 + $0xc9] sm:$0xff] }
  0x63   : > { %4174 = vmatmul.msk.bf16.gmra.mxu3 %vm194_vm1, %v1086_v8  ;;  %4125 = vmatmul.msk.bf16.gmra.mxu0 %vm194_vm1, %v1086_v8  ;;  %v845_v33 = vld [vmem:[#allocation2 + $0xc0] sm:$0xff]  ;;  %v846_v34 = vld [vmem:[#allocation2 + $0xc8] sm:$0xff] }
  0x64   : > { %4157 = vmatmul.msk.bf16.gmra.mxu2 %vm194_vm1, %v864_v7  ;;  %4141 = vmatmul.msk.bf16.gmra.mxu1 %vm194_vm1, %v864_v7  ;;  %v4477_v7 = vld [vmem:[%s4696_s10 + $0x40] sm:$0xff]   ;;  %v851_v43 = vld [vmem:[#allocation2 + $0x108] sm:$0xff] }
  0x65   : > { %v4440_v8 = vunpack.c.l.bf16 %v4477_v7  ;;  %v4441_v9 = vunpack.c.h.bf16 %v4477_v7  ;;  %v1067_v35 = vld [vmem:[#allocation2 + $0xc1] sm:$0xff]  ;;  %v408_v7 = vmax.f32 %v376_v4, 0.0  ;;  %v852_v44 = vld [vmem:[#allocation2 + $0x110] sm:$0xff] }
  0x66   : > { %v1073_v45 = vld [vmem:[#allocation2 + $0x109] sm:$0xff]  ;;  %v1074_v46 = vld [vmem:[#allocation2 + $0x111] sm:$0xff]  ;;  %v873_v51 = vpack.c.bf16 %v852_v44, %v851_v43 }
  0x67   : > { %v334_v10 = vmul.f32 %v4731_v26, %v4440_v8  ;;  %v335_v11 = vmul.f32 %v4731_v26, %v4441_v9  ;;  %441 = vst.msk [vmem:[#allocation2 + $0x121] sm:$0xff] %vm194_vm1, %v408_v7 }
  0x69   : > { %v370_v12 = vadd.f32 %v4745_v31, %v334_v10  ;;  %v371_v13 = vadd.f32 %v4745_v31, %v335_v11 }
  0x6b   : > { %v402_v14 = vmax.f32 %v370_v12, 0.0  ;;  %v403_v15 = vmax.f32 %v371_v13, 0.0 }
  0x6d   : > { %435 = vst.msk [vmem:[#allocation2 + $0xd9] sm:$0xff] %vm194_vm1, %v402_v14 }
  0x6e   : > { %436 = vst.msk [vmem:[#allocation2 + $0xe1] sm:$0xff] %vm194_vm1, %v403_v15 }
  0x73   : > { %4175 = vmatmul.msk.bf16.gmra.mxu3 %vm194_vm1, %v1087_v23  ;;  %4126 = vmatmul.msk.bf16.gmra.mxu0 %vm194_vm1, %v1087_v23 }
  0x74   : > { %4158 = vmatmul.msk.bf16.gmra.mxu2 %vm194_vm1, %v865_v22  ;;  %4142 = vmatmul.msk.bf16.gmra.mxu1 %vm194_vm1, %v865_v22  ;;  %v4478_v22 = vld [vmem:[%s4696_s10 + $0x48] sm:$0xff]   ;;  %v847_v52 = vld [vmem:[#allocation2 + $0xd8] sm:$0xff] }
  0x75   : > { %v4444_v23 = vunpack.c.l.bf16 %v4478_v22  ;;  %v4445_v24 = vunpack.c.h.bf16 %v4478_v22  ;;  %v848_v53 = vld [vmem:[#allocation2 + $0xe0] sm:$0xff] }
  0x76   : > { %v871_v56 = vpack.c.bf16 %v848_v53, %v847_v52  ;;  %v1095_v52 = vpack.c.bf16 %v1074_v46, %v1073_v45 }
  0x77   : > { %v336_v25 = vmul.f32 %v4731_v26, %v4444_v23  ;;  %v337_v27 = vmul.f32 %v4731_v26, %v4445_v24 }
  0x79   : > { %v372_v28 = vadd.f32 %v4745_v31, %v336_v25  ;;  %v373_v29 = vadd.f32 %v4745_v31, %v337_v27  ;;  %v4481_v25 = vld [vmem:[%s4696_s10 + $0x60] sm:$0xff]  }
  0x7a   : > { %v4456_v27 = vunpack.c.l.bf16 %v4481_v25 }
  0x7b   : > { %v404_v30 = vmax.f32 %v372_v28, 0.0  ;;  %v405_v32 = vmax.f32 %v373_v29, 0.0  ;;  %v4457_v28 = vunpack.c.h.bf16 %v4481_v25 }
  0x7d   : > { %437 = vst.msk [vmem:[#allocation2 + $0xf1] sm:$0xff] %vm194_vm1, %v404_v30  ;;  %v342_v30 = vmul.f32 %v4731_v26, %v4456_v27 }
  0x7e   : > { %438 = vst.msk [vmem:[#allocation2 + $0xf9] sm:$0xff] %vm194_vm1, %v405_v32  ;;  %v343_v32 = vmul.f32 %v4731_v26, %v4457_v28 }
  0x83   : > { %4176 = vmatmul.msk.bf16.gmra.mxu3 %vm194_vm1, %v1088_v40  ;;  %4127 = vmatmul.msk.bf16.gmra.mxu0 %vm194_vm1, %v1088_v40  ;;  %v1092_v40 = vpack.c.bf16 %v1068_v36, %v1067_v35  ;;  %v378_v35 = vadd.f32 %v4745_v31, %v342_v30  ;;  %v379_v36 = vadd.f32 %v4745_v31, %v343_v32 }
  0x84   : > { %4159 = vmatmul.msk.bf16.gmra.mxu2 %vm194_vm1, %v866_v39  ;;  %4143 = vmatmul.msk.bf16.gmra.mxu1 %vm194_vm1, %v866_v39  ;;  %v870_v39 = vpack.c.bf16 %v846_v34, %v845_v33  ;;  %v849_v12 = vld [vmem:[#allocation2 + $0xf0] sm:$0xff] }
  0x85   : > { %v850_v13 = vld [vmem:[#allocation2 + $0xf8] sm:$0xff] }
  0x86   : > { %v1071_v14 = vld [vmem:[#allocation2 + $0xf1] sm:$0xff]  ;;  %v1072_v15 = vld [vmem:[#allocation2 + $0xf9] sm:$0xff] }
  0x93   : > { %4177 = vmatmul.msk.bf16.gmra.mxu3 %vm194_vm1, %v1089_v55  ;;  %4128 = vmatmul.msk.bf16.gmra.mxu0 %vm194_vm1, %v1089_v55  ;;  %v1070_v55 = vld [vmem:[#allocation2 + $0xe1] sm:$0xff] }
  0x94   : > { %4160 = vmatmul.msk.bf16.gmra.mxu2 %vm194_vm1, %v867_v54  ;;  %4144 = vmatmul.msk.bf16.gmra.mxu1 %vm194_vm1, %v867_v54  ;;  %v1069_v54 = vld [vmem:[#allocation2 + $0xd9] sm:$0xff] }
  0x95   : > { %v1093_v57 = vpack.c.bf16 %v1070_v55, %v1069_v54 }
  0x9b   : > { %v751_v38 = vpop.f32.mrf.mxu1 }
  0x9c   : > { %v611_v37 = vpop.f32.mrf.mxu0 }
  0x9d   : > { %v752_v63 = vadd.f32 %v751_v38, %v611_v37  ;;  %v410_v38 = vmax.f32 %v378_v35, 0.0 }
  0x9f   : > { %443 = vst.msk [vmem:[#allocation2 + $0x139] sm:$0xff] %vm194_vm1, %v410_v38 }
  0xa3   : > { %4178 = vmatmul.msk.bf16.gmra.mxu3 %vm194_vm1, %v1090_v6  ;;  %4129 = vmatmul.msk.bf16.gmra.mxu0 %vm194_vm1, %v1090_v6  ;;  %v753_v49 = vpop.f32.mrf.mxu1 }
  0xa4   : > { %4161 = vmatmul.msk.bf16.gmra.mxu2 %vm194_vm1, %v868_v5  ;;  %4145 = vmatmul.msk.bf16.gmra.mxu1 %vm194_vm1, %v868_v5  ;;  %v613_v48 = vpop.f32.mrf.mxu0  ;;  %v377_v5 = vadd.f32 %v4745_v31, %v341_v1 }
  0xa5   : > { %v754_v16 = vadd.f32 %v753_v49, %v613_v48 }
  0xa6   : > { %v409_v8 = vmax.f32 %v377_v5, 0.0 }
  0xa8   : > { %442 = vst.msk [vmem:[#allocation2 + $0x129] sm:$0xff] %vm194_vm1, %v409_v8  ;;  %v853_v8 = vld [vmem:[#allocation2 + $0x120] sm:$0xff] }
  0xb3   : > { %4179 = vmatmul.msk.bf16.gmra.mxu3 %vm194_vm1, %v1091_v21  ;;  %4130 = vmatmul.msk.bf16.gmra.mxu0 %vm194_vm1, %v1091_v21  ;;  %v1094_v21 = vpack.c.bf16 %v1072_v15, %v1071_v14 }
  0xb4   : > { %4162 = vmatmul.msk.bf16.gmra.mxu2 %vm194_vm1, %v869_v20  ;;  %4146 = vmatmul.msk.bf16.gmra.mxu1 %vm194_vm1, %v869_v20  ;;  %v872_v20 = vpack.c.bf16 %v850_v13, %v849_v12 }
  0xc3   : > { %4180 = vmatmul.msk.bf16.gmra.mxu3 %vm194_vm1, %v1092_v40  ;;  %4131 = vmatmul.msk.bf16.gmra.mxu0 %vm194_vm1, %v1092_v40 }
  0xc4   : > { %4163 = vmatmul.msk.bf16.gmra.mxu2 %vm194_vm1, %v870_v39  ;;  %4147 = vmatmul.msk.bf16.gmra.mxu1 %vm194_vm1, %v870_v39  ;;  %v411_v39 = vmax.f32 %v379_v36, 0.0 }
  0xc6   : > { %444 = vst.msk [vmem:[#allocation2 + $0x141] sm:$0xff] %vm194_vm1, %v411_v39  ;;  %v855_v39 = vld [vmem:[#allocation2 + $0x138] sm:$0xff] }
  0xd0   : > { %v616_v58 = vpop.f32.mrf.mxu0 }
  0xd1   : > { %v756_v59 = vpop.f32.mrf.mxu1 }
  0xd2   : > { %v757_v29 = vadd.f32 %v756_v59, %v616_v58 }
  0xd3   : > { %4181 = vmatmul.msk.bf16.gmra.mxu3 %vm194_vm1, %v1093_v57  ;;  %4132 = vmatmul.msk.bf16.gmra.mxu0 %vm194_vm1, %v1093_v57 }
  0xd4   : > { %4164 = vmatmul.msk.bf16.gmra.mxu2 %vm194_vm1, %v871_v56  ;;  %4148 = vmatmul.msk.bf16.gmra.mxu1 %vm194_vm1, %v871_v56  ;;  %v4482_v56 = vld [vmem:[%s4696_s10 + $0x68] sm:$0xff]  }
  0xd5   : > { %v4460_v57 = vunpack.c.l.bf16 %v4482_v56  ;;  %v4461_v58 = vunpack.c.h.bf16 %v4482_v56 }
  0xd6   : > { %v1163_v3 = vpop.f32.mrf.mxu3 }
  0xd7   : > { %v941_v2 = vpop.f32.mrf.mxu2  ;;  %v344_v60 = vmul.f32 %v4731_v26, %v4460_v57  ;;  %v345_v61 = vmul.f32 %v4731_v26, %v4461_v58 }
  0xd8   : > { %v1021_v6 = vadd.f32 %v941_v2, %v752_v63  ;;  %v618_v10 = vpop.f32.mrf.mxu0 }
  0xd9   : > { %v758_v11 = vpop.f32.mrf.mxu1  ;;  %v380_v0 = vadd.f32 %v4745_v31, %v344_v60  ;;  %v381_v1 = vadd.f32 %v4745_v31, %v345_v61 }
  0xda   : > { %v1243_v9 = vadd.f32 %v1163_v3, %v1021_v6  ;;  %v759_v47 = vadd.f32 %v758_v11, %v618_v10  ;;  %v1075_v10 = vld [vmem:[#allocation2 + $0x121] sm:$0xff]  ;;  %v1076_v11 = vld [vmem:[#allocation2 + $0x129] sm:$0xff] }
  0xdb   : > { %v412_v3 = vmax.f32 %v380_v0, 0.0  ;;  %v413_v4 = vmax.f32 %v381_v1, 0.0 }
  0xdc   : > { %1275 = vxpose.xlu0.b32.start [1/16] (narrow) %v1243_v9, 8  ;;  %v854_v9 = vld [vmem:[#allocation2 + $0x128] sm:$0xff] }
  0xdd   : > { %445 = vst.msk [vmem:[#allocation2 + $0x151] sm:$0xff] %vm194_vm1, %v412_v3 }
  0xde   : > { %v1165_v18 = vpop.f32.mrf.mxu3  ;;  %446 = vst.msk [vmem:[#allocation2 + $0x159] sm:$0xff] %vm194_vm1, %v413_v4 }
  0xdf   : > { %v943_v17 = vpop.f32.mrf.mxu2 }
  0xe0   : > { %v1022_v19 = vadd.f32 %v943_v17, %v754_v16  ;;  %v621_v23 = vpop.f32.mrf.mxu0  ;;  %v874_v16 = vpack.c.bf16 %v854_v9, %v853_v8  ;;  %v1096_v17 = vpack.c.bf16 %v1076_v11, %v1075_v10 }
  0xe1   : > { %v761_v24 = vpop.f32.mrf.mxu1 }
  0xe2   : > { %v1244_v22 = vadd.f32 %v1165_v18, %v1022_v19  ;;  %v762_v59 = vadd.f32 %v761_v24, %v621_v23 }
  0xe3   : > { %4182 = vmatmul.msk.bf16.gmra.mxu3 %vm194_vm1, %v1094_v21  ;;  %4133 = vmatmul.msk.bf16.gmra.mxu0 %vm194_vm1, %v1094_v21  ;;  %v4483_v21 = vld [vmem:[%s4696_s10 + $0x70] sm:$0xff]  }
  0xe4   : > { %4165 = vmatmul.msk.bf16.gmra.mxu2 %vm194_vm1, %v872_v20  ;;  %1276 = vxpose.xlu0.b32.cont [2/16] (narrow) %v1244_v22, 8  ;;  %v4464_v22 = vunpack.c.l.bf16 %v4483_v21  ;;  %v4465_v23 = vunpack.c.h.bf16 %v4483_v21  ;;  %v857_v4 = vld [vmem:[#allocation2 + $0x150] sm:$0xff] }
  0xe5   : > { %4149 = vmatmul.msk.bf16.gmra.mxu1 %vm194_vm1, %v872_v20 }
  0xe6   : > { %v1168_v34 = vpop.f32.mrf.mxu3  ;;  %v346_v25 = vmul.f32 %v4731_v26, %v4464_v22  ;;  %v347_v27 = vmul.f32 %v4731_v26, %v4465_v23 }
  0xe7   : > { %v946_v33 = vpop.f32.mrf.mxu2 }
  0xe8   : > { %v1023_v37 = vadd.f32 %v946_v33, %v757_v29  ;;  %v623_v41 = vpop.f32.mrf.mxu0  ;;  %v382_v30 = vadd.f32 %v4745_v31, %v346_v25  ;;  %v383_v32 = vadd.f32 %v4745_v31, %v347_v27 }
  0xe9   : > { %v763_v42 = vpop.f32.mrf.mxu1 }
  0xea   : > { %v1245_v40 = vadd.f32 %v1168_v34, %v1023_v37  ;;  %v764_v12 = vadd.f32 %v763_v42, %v623_v41  ;;  %v414_v34 = vmax.f32 %v382_v30, 0.0  ;;  %v415_v35 = vmax.f32 %v383_v32, 0.0  ;;  %v1077_v41 = vld [vmem:[#allocation2 + $0x139] sm:$0xff]  ;;  %v1078_v42 = vld [vmem:[#allocation2 + $0x141] sm:$0xff] }
  0xec   : > { %1277 = vxpose.xlu0.b32.cont [3/16] (narrow) %v1245_v40, 8  ;;  %447 = vst.msk [vmem:[#allocation2 + $0x169] sm:$0xff] %vm194_vm1, %v414_v34  ;;  %v856_v40 = vld [vmem:[#allocation2 + $0x140] sm:$0xff] }
  0xed   : > { %448 = vst.msk [vmem:[#allocation2 + $0x171] sm:$0xff] %vm194_vm1, %v415_v35 }
  0xee   : > { %v1170_v49 = vpop.f32.mrf.mxu3 }
  0xef   : > { %v948_v48 = vpop.f32.mrf.mxu2 }
  0xf0   : > { %v1024_v50 = vadd.f32 %v948_v48, %v759_v47  ;;  %v626_v54 = vpop.f32.mrf.mxu0  ;;  %v875_v47 = vpack.c.bf16 %v856_v40, %v855_v39  ;;  %v1097_v48 = vpack.c.bf16 %v1078_v42, %v1077_v41  ;;  %v4310_v40 = vld [vmem:[%s5340_s3 + $0x2c] sm:$0xf] }
  0xf1   : > { %v766_v55 = vpop.f32.mrf.mxu1  ;;  %v2938_v41 = vsel %vm598_vm0, %v4310_v40, 0 }
  0xf2   : > { %v1246_v53 = vadd.f32 %v1170_v49, %v1024_v50  ;;  %v767_v24 = vadd.f32 %v766_v55, %v626_v54  ;;  %2947 = vmatpush.bf16.msra.mxu3 %v2938_v41 }
  0xf3   : > { %4183 = vmatmul.msk.bf16.gmra.mxu3 %vm194_vm1, %v1095_v52  ;;  %4134 = vmatmul.msk.bf16.gmra.mxu0 %vm194_vm1, %v1095_v52  ;;  %v4484_v52 = vld [vmem:[%s4696_s10 + $0x78] sm:$0xff]   ;;  %v859_v22 = vld [vmem:[#allocation2 + $0x168] sm:$0xff] }
  0xf4   : > { %4166 = vmatmul.msk.bf16.gmra.mxu2 %vm194_vm1, %v873_v51  ;;  %1278 = vxpose.xlu0.b32.cont [4/16] (narrow) %v1246_v53, 8  ;;  %v4468_v53 = vunpack.c.l.bf16 %v4484_v52  ;;  %v4469_v54 = vunpack.c.h.bf16 %v4484_v52  ;;  %v860_v23 = vld [vmem:[#allocation2 + $0x170] sm:$0xff] }
  0xf5   : > { %4150 = vmatmul.msk.bf16.gmra.mxu1 %vm194_vm1, %v873_v51  ;;  %v1082_v25 = vld [vmem:[#allocation2 + $0x171] sm:$0xff]  ;;  %v877_v32 = vpack.c.bf16 %v860_v23, %v859_v22 }
  0xf6   : > { %v1173_v63 = vpop.f32.mrf.mxu3  ;;  %v348_v56 = vmul.f32 %v4731_v26, %v4468_v53  ;;  %v349_v57 = vmul.f32 %v4731_v26, %v4469_v54  ;;  %v858_v26 = vld [vmem:[#allocation2 + $0x158] sm:$0xff] }
  0xf7   : > { %v951_v62 = vpop.f32.mrf.mxu2 }
  0xf8   : > { %v1025_v2 = vadd.f32 %v951_v62, %v762_v59  ;;  %v628_v6 = vpop.f32.mrf.mxu0  ;;  %v384_v60 = vadd.f32 %v4745_v31, %v348_v56  ;;  %v385_v61 = vadd.f32 %v4745_v31, %v349_v57  ;;  %v876_v31 = vpack.c.bf16 %v858_v26, %v857_v4  ;;  %v1393_v57 = vld [vmem:[#allocation2 + $0x2] sm:$0xff] }
  0xf9   : > { %v768_v7 = vpop.f32.mrf.mxu1 }
  0xfa   : > { %v1247_v5 = vadd.f32 %v1173_v63, %v1025_v2  ;;  %v769_v43 = vadd.f32 %v768_v7, %v628_v6  ;;  %v416_v63 = vmax.f32 %v384_v60, 0.0  ;;  %v417_v0 = vmax.f32 %v385_v61, 0.0  ;;  %v1080_v6 = vld [vmem:[#allocation2 + $0x159] sm:$0xff]  ;;  %v1343_v61 = vld [vmem:[#allocation2 + $0x1] sm:$0xff] }
  0xfc   : > { %1279 = vxpose.xlu0.b32.cont [5/16] (narrow) %v1247_v5, 8  ;;  %449 = vst.msk [vmem:[#allocation2 + $0x181] sm:$0xff] %vm194_vm1, %v416_v63  ;;  %v1079_v5 = vld [vmem:[#allocation2 + $0x151] sm:$0xff] }
  0xfd   : > { %450 = vst.msk [vmem:[#allocation2 + $0x189] sm:$0xff] %vm194_vm1, %v417_v0  ;;  %v1098_v11 = vpack.c.bf16 %v1080_v6, %v1079_v5 }
  0xfe   : > { %v1175_v14 = vpop.f32.mrf.mxu3 }
  0xff   : > { %v953_v13 = vpop.f32.mrf.mxu2 }
 0x100   : > { %v1026_v15 = vadd.f32 %v953_v13, %v764_v12  ;;  %v631_v19 = vpop.f32.mrf.mxu0 }
 0x101   : > { %v771_v20 = vpop.f32.mrf.mxu1 }
 0x102   : > { %v1248_v18 = vadd.f32 %v1175_v14, %v1026_v15  ;;  %v772_v55 = vadd.f32 %v771_v20, %v631_v19 }
 0x103   : > { %4184 = vmatmul.msk.bf16.gmra.mxu3 %vm194_vm1, %v1096_v17  ;;  %4135 = vmatmul.msk.bf16.gmra.mxu0 %vm194_vm1, %v1096_v17  ;;  %v861_v52 = vld [vmem:[#allocation2 + $0x180] sm:$0xff] }
 0x104   : > { %4167 = vmatmul.msk.bf16.gmra.mxu2 %vm194_vm1, %v874_v16  ;;  %1280 = vxpose.xlu0.b32.cont [6/16] (narrow) %v1248_v18, 8  ;;  %v862_v53 = vld [vmem:[#allocation2 + $0x188] sm:$0xff] }
 0x105   : > { %4151 = vmatmul.msk.bf16.gmra.mxu1 %vm194_vm1, %v874_v16  ;;  %v1083_v54 = vld [vmem:[#allocation2 + $0x181] sm:$0xff]  ;;  %v878_v0 = vpack.c.bf16 %v862_v53, %v861_v52 }
 0x106   : > { %v1178_v29 = vpop.f32.mrf.mxu3 }
 0x107   : > { %v956_v28 = vpop.f32.mrf.mxu2 }
 0x108   : > { %v1027_v33 = vadd.f32 %v956_v28, %v767_v24  ;;  %v633_v37 = vpop.f32.mrf.mxu0  ;;  %v1081_v24 = vld [vmem:[#allocation2 + $0x169] sm:$0xff] }
 0x109   : > { %v773_v38 = vpop.f32.mrf.mxu1 }
 0x10a   : > { %v1249_v36 = vadd.f32 %v1178_v29, %v1027_v33  ;;  %v774_v7 = vadd.f32 %v773_v38, %v633_v37  ;;  %v1099_v33 = vpack.c.bf16 %v1082_v25, %v1081_v24  ;;  %v4293_v38 = vld [vmem:[%s5340_s3 + $0x28] sm:$0xf] }
 0x10b   : > { %v2716_v39 = vsel %vm598_vm0, %v4293_v38, 0 }
 0x10c   : > { %1281 = vxpose.xlu0.b32.cont [7/16] (narrow) %v1249_v36, 8  ;;  %2725 = vmatpush.bf16.msra.mxu2 %v2716_v39 }
 0x10e   : > { %v1180_v45 = vpop.f32.mrf.mxu3 }
 0x10f   : > { %v958_v44 = vpop.f32.mrf.mxu2 }
 0x110   : > { %v1028_v46 = vadd.f32 %v958_v44, %v769_v43  ;;  %v636_v50 = vpop.f32.mrf.mxu0 }
 0x111   : > { %v776_v51 = vpop.f32.mrf.mxu1 }
 0x112   : > { %v1250_v49 = vadd.f32 %v1180_v45, %v1028_v46  ;;  %v777_v15 = vadd.f32 %v776_v51, %v636_v50  ;;  %v4260_v45 = vld [vmem:[%s5340_s3 + $0x24] sm:$0xf]  ;;  %v4259_v46 = vld [vmem:[%s5340_s3 + $0x20] sm:$0xf] }
 0x113   : > { %4185 = vmatmul.msk.bf16.gmra.mxu3 %vm194_vm1, %v1097_v48  ;;  %4136 = vmatmul.msk.bf16.gmra.mxu0 %vm194_vm1, %v1097_v48  ;;  %v2525_v48 = vsel %vm598_vm0, %v4259_v46, 0 }
 0x114   : > { %4168 = vmatmul.msk.bf16.gmra.mxu2 %vm194_vm1, %v875_v47  ;;  %1282 = vxpose.xlu0.b32.cont [8/16] (narrow) %v1250_v49, 8 }
 0x115   : > { %4152 = vmatmul.msk.bf16.gmra.mxu1 %vm194_vm1, %v875_v47  ;;  %v2385_v47 = vsel %vm598_vm0, %v4260_v45, 0 }
 0x116   : > { %v1183_v59 = vpop.f32.mrf.mxu3  ;;  %2394 = vmatpush.bf16.msra.mxu0 %v2385_v47  ;;  %2534 = vmatpush.bf16.msra.mxu1 %v2525_v48 }
 0x117   : > { %v961_v58 = vpop.f32.mrf.mxu2 }
 0x118   : > { %v1029_v62 = vadd.f32 %v961_v58, %v772_v55  ;;  %v638_v2 = vpop.f32.mrf.mxu0  ;;  %v1084_v55 = vld [vmem:[#allocation2 + $0x189] sm:$0xff] }
 0x119   : > { %v778_v3 = vpop.f32.mrf.mxu1  ;;  %v1394_v58 = vld [vmem:[#allocation2 + $0xa] sm:$0xff] }
 0x11a   : > { %v1251_v1 = vadd.f32 %v1183_v59, %v1029_v62  ;;  %v779_v27 = vadd.f32 %v778_v3, %v638_v2  ;;  %v1344_v62 = vld [vmem:[#allocation2 + $0x9] sm:$0xff]  ;;  %v1425_v2 = vpack.c.bf16 %v1394_v58, %v1393_v57  ;;  %v1950_v57 = vld [vmem:[#allocation2 + $0x52] sm:$0xff] }
 0x11b   : > { %v1375_v5 = vpack.c.bf16 %v1344_v62, %v1343_v61 }
 0x11c   : > { %1283 = vxpose.xlu0.b32.cont [9/16] (narrow) %v1251_v1, 8  ;;  %v1100_v1 = vpack.c.bf16 %v1084_v55, %v1083_v54  ;;  %v1727_v54 = vld [vmem:[#allocation2 + $0x49] sm:$0xff]  ;;  %v1728_v55 = vld [vmem:[#allocation2 + $0x51] sm:$0xff] }
 0x11d   : > { %v4970_v62 = vpack.c.bf16 %v1728_v55, %v1727_v54  ;;  %v1956_v54 = vld [vmem:[#allocation2 + $0x9a] sm:$0xff] }
 0x11e   : > { %v1185_v9 = vpop.f32.mrf.mxu3 }
 0x11f   : > { %v963_v8 = vpop.f32.mrf.mxu2 }
 0x120   : > { %v1030_v10 = vadd.f32 %v963_v8, %v774_v7  ;;  %v641_v13 = vpop.f32.mrf.mxu0 }
 0x121   : > { %v781_v14 = vpop.f32.mrf.mxu1 }
 0x122   : > { %v1252_v12 = vadd.f32 %v1185_v9, %v1030_v10  ;;  %v782_v37 = vadd.f32 %v781_v14, %v641_v13  ;;  %v1724_v13 = vld [vmem:[#allocation2 + $0x21] sm:$0xff] }
 0x123   : > { %4186 = vmatmul.msk.bf16.gmra.mxu3 %vm194_vm1, %v1098_v11  ;;  %4137 = vmatmul.msk.bf16.gmra.mxu0 %vm194_vm1, %v1098_v11  ;;  %v1945_v14 = vld [vmem:[#allocation2 + $0x1a] sm:$0xff] }
 0x124   : > { %4169 = vmatmul.msk.bf16.gmra.mxu2 %vm194_vm1, %v876_v31  ;;  %1284 = vxpose.xlu0.b32.cont [10/16] (narrow) %v1252_v12, 8  ;;  %v1723_v12 = vld [vmem:[#allocation2 + $0x19] sm:$0xff] }
 0x125   : > { %4153 = vmatmul.msk.bf16.gmra.mxu1 %vm194_vm1, %v876_v31 }
 0x126   : > { %v1188_v17 = vpop.f32.mrf.mxu3 }
 0x127   : > { %v966_v16 = vpop.f32.mrf.mxu2 }
 0x128   : > { %v1031_v18 = vadd.f32 %v966_v16, %v777_v15  ;;  %v643_v20 = vpop.f32.mrf.mxu0  ;;  %v1946_v15 = vld [vmem:[#allocation2 + $0x22] sm:$0xff] }
 0x129   : > { %v783_v21 = vpop.f32.mrf.mxu1 }
 0x12a   : > { %v1253_v19 = vadd.f32 %v1188_v17, %v1031_v18  ;;  %v784_v56 = vadd.f32 %v783_v21, %v643_v20  ;;  %v1755_v20 = vpack.c.bf16 %v1724_v13, %v1723_v12  ;;  %v1977_v21 = vpack.c.bf16 %v1946_v15, %v1945_v14 }
 0x12c   : > { %1285 = vxpose.xlu0.b32.cont [11/16] (narrow) %v1253_v19, 8 }
 0x12e   : > { %v1190_v29 = vpop.f32.mrf.mxu3 }
 0x12f   : > { %v968_v28 = vpop.f32.mrf.mxu2 }
 0x130   : > { %v1032_v30 = vadd.f32 %v968_v28, %v779_v27  ;;  %v646_v35 = vpop.f32.mrf.mxu0 }
 0x131   : > { %v786_v36 = vpop.f32.mrf.mxu1 }
 0x132   : > { %v1254_v34 = vadd.f32 %v1190_v29, %v1032_v30  ;;  %v787_v6 = vadd.f32 %v786_v36, %v646_v35  ;;  %v1726_v35 = vld [vmem:[#allocation2 + $0x39] sm:$0xff] }
 0x133   : > { %4187 = vmatmul.msk.bf16.gmra.mxu3 %vm194_vm1, %v1099_v33  ;;  %4138 = vmatmul.msk.bf16.gmra.mxu0 %vm194_vm1, %v1099_v33  ;;  %v1947_v36 = vld [vmem:[#allocation2 + $0x32] sm:$0xff] }
 0x134   : > { %4170 = vmatmul.msk.bf16.gmra.mxu2 %vm194_vm1, %v877_v32  ;;  %1286 = vxpose.xlu0.b32.cont [12/16] (narrow) %v1254_v34, 8  ;;  %v1725_v34 = vld [vmem:[#allocation2 + $0x31] sm:$0xff] }
 0x135   : > { %4154 = vmatmul.msk.bf16.gmra.mxu1 %vm194_vm1, %v877_v32 }
 0x136   : > { %v1193_v43 = vpop.f32.mrf.mxu3 }
 0x137   : > { %v971_v42 = vpop.f32.mrf.mxu2 }
 0x138   : > { %v1033_v44 = vadd.f32 %v971_v42, %v782_v37  ;;  %v648_v50 = vpop.f32.mrf.mxu0  ;;  %v1948_v37 = vld [vmem:[#allocation2 + $0x3a] sm:$0xff]  ;;  %v4962_v42 = vpack.c.bf16 %v1726_v35, %v1725_v34 }
 0x139   : > { %v788_v51 = vpop.f32.mrf.mxu1 }
 0x13a   : > { %v1255_v49 = vadd.f32 %v1193_v43, %v1033_v44  ;;  %v789_v16 = vadd.f32 %v788_v51, %v648_v50  ;;  %v1978_v43 = vpack.c.bf16 %v1948_v37, %v1947_v36 }
 0x13c   : > { %1287 = vxpose.xlu0.b32.cont [13/16] (narrow) %v1255_v49, 8 }
 0x13e   : > { %v1195_v60 = vpop.f32.mrf.mxu3 }
 0x13f   : > { %v973_v59 = vpop.f32.mrf.mxu2 }
 0x140   : > { %v1034_v63 = vadd.f32 %v973_v59, %v784_v56  ;;  %v651_v4 = vpop.f32.mrf.mxu0  ;;  %v1949_v56 = vld [vmem:[#allocation2 + $0x4a] sm:$0xff] }
 0x141   : > { %v791_v26 = vpop.f32.mrf.mxu1 }
 0x142   : > { %v1256_v3 = vadd.f32 %v1195_v60, %v1034_v63  ;;  %v792_v25 = vadd.f32 %v791_v26, %v651_v4  ;;  %v1979_v63 = vpack.c.bf16 %v1950_v57, %v1949_v56 }
 0x143   : > { %4188 = vmatmul.msk.bf16.gmra.mxu3 %vm194_vm1, %v1100_v1  ;;  %4191 = vmatmul.msk.bf16.vlgmr.msrb.gmra.mxu0 %vm194_vm1, %v1425_v2 }
 0x144   : > { %4171 = vmatmul.msk.bf16.gmra.mxu2 %vm194_vm1, %v878_v0  ;;  %1288 = vxpose.xlu0.b32.cont [14/16] (narrow) %v1256_v3, 8 }
 0x145   : > { %4207 = vmatmul.msk.bf16.vlgmr.msrb.gmra.mxu1 %vm194_vm1, %v1375_v5 }
 0x146   : > { %v1198_v8 = vpop.f32.mrf.mxu3 }
 0x147   : > { %v976_v7 = vpop.f32.mrf.mxu2 }
 0x148   : > { %v1035_v9 = vadd.f32 %v976_v7, %v787_v6  ;;  %v653_v31 = vpop.f32.mrf.mxu0 }
 0x149   : > { %v793_v11 = vpop.f32.mrf.mxu1 }
 0x14a   : > { %v1257_v10 = vadd.f32 %v1198_v8, %v1035_v9  ;;  %v794_v38 = vadd.f32 %v793_v11, %v653_v31  ;;  %v1729_v9 = vld [vmem:[#allocation2 + $0x61] sm:$0xff]  ;;  %v1952_v11 = vld [vmem:[#allocation2 + $0x6a] sm:$0xff] }
 0x14b   : > { %v1951_v31 = vld [vmem:[#allocation2 + $0x62] sm:$0xff] }
 0x14c   : > { %1289 = vxpose.xlu0.b32.cont [15/16] (narrow) %v1257_v10, 8  ;;  %v1730_v10 = vld [vmem:[#allocation2 + $0x69] sm:$0xff] }
 0x14e   : > { %v1200_v18 = vpop.f32.mrf.mxu3 }
 0x14f   : > { %v978_v17 = vpop.f32.mrf.mxu2 }
 0x150   : > { %v1036_v19 = vadd.f32 %v978_v17, %v789_v16  ;;  %v656_v23 = vpop.f32.mrf.mxu0  ;;  %v4978_v16 = vpack.c.bf16 %v1730_v10, %v1729_v9  ;;  %v1980_v17 = vpack.c.bf16 %v1952_v11, %v1951_v31  ;;  %v1957_v9 = vld [vmem:[#allocation2 + $0xaa] sm:$0xff]  ;;  %v1958_v10 = vld [vmem:[#allocation2 + $0xb2] sm:$0xff] }
 0x151   : > { %v796_v24 = vpop.f32.mrf.mxu1 }
 0x152   : > { %v1258_v22 = vadd.f32 %v1200_v18, %v1036_v19  ;;  %v797_v47 = vadd.f32 %v796_v24, %v656_v23 }
 0x153   : > { %4241 = vmatmul.msk.bf16.vlgmr.msrb.gmra.mxu3 %vm194_vm1, %v1977_v21  ;;  %4192 = vmatmul.msk.bf16.gmra.mxu0 %vm194_vm1, %v1977_v21 }
 0x154   : > { %4224 = vmatmul.msk.bf16.vlgmr.msrb.gmra.mxu2 %vm194_vm1, %v1755_v20  ;;  %1290 = vxpose.xlu0.b32.end [16/16] (narrow) %v1258_v22, 8 }
 0x155   : > { %4208 = vmatmul.msk.bf16.gmra.mxu1 %vm194_vm1, %v1755_v20 }
 0x156   : > { %v1203_v28 = vpop.f32.mrf.mxu3 }
 0x157   : > { %v981_v27 = vpop.f32.mrf.mxu2 }
 0x158   : > { %v1037_v29 = vadd.f32 %v981_v27, %v792_v25  ;;  %v658_v32 = vpop.f32.mrf.mxu0 }
 0x159   : > { %v798_v33 = vpop.f32.mrf.mxu1 }
 0x15a   : > { %v1259_v30 = vadd.f32 %v1203_v28, %v1037_v29  ;;  %v799_v58 = vadd.f32 %v798_v33, %v658_v32  ;;  %v1731_v29 = vld [vmem:[#allocation2 + $0x79] sm:$0xff]  ;;  %v1954_v33 = vld [vmem:[#allocation2 + $0x82] sm:$0xff] }
 0x15b   : > { %v1953_v32 = vld [vmem:[#allocation2 + $0x7a] sm:$0xff] }
 0x15c   : > { %1307 = vxpose.xlu1.b32.start [1/16] (narrow) %v1259_v30, 8  ;;  %v1732_v30 = vld [vmem:[#allocation2 + $0x81] sm:$0xff] }
 0x15e   : > { %v1205_v40 = vpop.f32.mrf.mxu3 }
 0x15f   : > { %v983_v39 = vpop.f32.mrf.mxu2 }
 0x160   : > { %v1038_v41 = vadd.f32 %v983_v39, %v794_v38  ;;  %v661_v45 = vpop.f32.mrf.mxu0  ;;  %v4986_v38 = vpack.c.bf16 %v1732_v30, %v1731_v29  ;;  %v1981_v39 = vpack.c.bf16 %v1954_v33, %v1953_v32  ;;  %v1738_v29 = vld [vmem:[#allocation2 + $0xc9] sm:$0xff] }
 0x161   : > { %v1959_v30 = vld [vmem:[#allocation2 + $0xc2] sm:$0xff]  ;;  %v1960_v32 = vld [vmem:[#allocation2 + $0xca] sm:$0xff] }
 0x162   : > { %v1260_v44 = vadd.f32 %v1205_v40, %v1038_v41  ;;  %v801_v46 = vpop.f32.mrf.mxu1 }
 0x163   : > { %4242 = vmatmul.msk.bf16.gmra.mxu3 %vm194_vm1, %v1978_v43  ;;  %4193 = vmatmul.msk.bf16.gmra.mxu0 %vm194_vm1, %v1978_v43  ;;  %v802_v3 = vadd.f32 %v801_v46, %v661_v45 }
 0x164   : > { %4225 = vmatmul.msk.bf16.gmra.mxu2 %vm194_vm1, %v4962_v42  ;;  %1308 = vxpose.xlu1.b32.cont [2/16] (narrow) %v1260_v44, 8 }
 0x165   : > { %4209 = vmatmul.msk.bf16.gmra.mxu1 %vm194_vm1, %v4962_v42 }
 0x166   : > { %v1208_v49 = vpop.f32.mrf.mxu3 }
 0x167   : > { %v986_v48 = vpop.f32.mrf.mxu2 }
 0x168   : > { %v1039_v50 = vadd.f32 %v986_v48, %v797_v47  ;;  %v663_v52 = vpop.f32.mrf.mxu0 }
 0x16a   : > { %v1261_v51 = vadd.f32 %v1208_v49, %v1039_v50  ;;  %v803_v53 = vpop.f32.mrf.mxu1 }
 0x16b   : > { %v804_v12 = vadd.f32 %v803_v53, %v663_v52  ;;  %v1734_v52 = vld [vmem:[#allocation2 + $0x99] sm:$0xff] }
 0x16c   : > { %1309 = vxpose.xlu1.b32.cont [3/16] (narrow) %v1261_v51, 8  ;;  %v1733_v51 = vld [vmem:[#allocation2 + $0x91] sm:$0xff] }
 0x16d   : > { %v1955_v53 = vld [vmem:[#allocation2 + $0x92] sm:$0xff] }
 0x16e   : > { %v1210_v60 = vpop.f32.mrf.mxu3 }
 0x16f   : > { %v988_v59 = vpop.f32.mrf.mxu2 }
 0x170   : > { %v1040_v61 = vadd.f32 %v988_v59, %v799_v58  ;;  %v666_v1 = vpop.f32.mrf.mxu0  ;;  %v4994_v59 = vpack.c.bf16 %v1734_v52, %v1733_v51  ;;  %v1739_v51 = vld [vmem:[#allocation2 + $0xd9] sm:$0xff]  ;;  %v1740_v52 = vld [vmem:[#allocation2 + $0xe1] sm:$0xff] }
 0x172   : > { %v1262_v0 = vadd.f32 %v1210_v60, %v1040_v61  ;;  %v806_v2 = vpop.f32.mrf.mxu1  ;;  %v1982_v60 = vpack.c.bf16 %v1956_v54, %v1955_v53  ;;  %v1961_v53 = vld [vmem:[#allocation2 + $0xda] sm:$0xff]  ;;  %v1962_v54 = vld [vmem:[#allocation2 + $0xe2] sm:$0xff] }
 0x173   : > { %4243 = vmatmul.msk.bf16.gmra.mxu3 %vm194_vm1, %v1979_v63  ;;  %4194 = vmatmul.msk.bf16.gmra.mxu0 %vm194_vm1, %v1979_v63  ;;  %v807_v21 = vadd.f32 %v806_v2, %v666_v1 }
 0x174   : > { %4226 = vmatmul.msk.bf16.gmra.mxu2 %vm194_vm1, %v4970_v62  ;;  %1310 = vxpose.xlu1.b32.cont [4/16] (narrow) %v1262_v0, 8 }
 0x175   : > { %4210 = vmatmul.msk.bf16.gmra.mxu1 %vm194_vm1, %v4970_v62 }
 0x176   : > { %v1213_v26 = vpop.f32.mrf.mxu3 }
 0x177   : > { %v991_v4 = vpop.f32.mrf.mxu2 }
 0x178   : > { %v1041_v5 = vadd.f32 %v991_v4, %v802_v3  ;;  %v668_v7 = vpop.f32.mrf.mxu0 }
 0x17a   : > { %v1263_v6 = vadd.f32 %v1213_v26, %v1041_v5  ;;  %v808_v8 = vpop.f32.mrf.mxu1 }
 0x17b   : > { %v809_v34 = vadd.f32 %v808_v8, %v668_v7  ;;  %v1735_v7 = vld [vmem:[#allocation2 + $0xa9] sm:$0xff]  ;;  %v1736_v8 = vld [vmem:[#allocation2 + $0xb1] sm:$0xff] }
 0x17c   : > { %1311 = vxpose.xlu1.b32.cont [5/16] (narrow) %v1263_v6, 8 }
 0x17e   : > { %v1215_v14 = vpop.f32.mrf.mxu3 }
 0x17f   : > { %v993_v13 = vpop.f32.mrf.mxu2 }
 0x180   : > { %v1042_v15 = vadd.f32 %v993_v13, %v804_v12  ;;  %v671_v19 = vpop.f32.mrf.mxu0 }
 0x182   : > { %v1264_v18 = vadd.f32 %v1215_v14, %v1042_v15  ;;  %v811_v20 = vpop.f32.mrf.mxu1  ;;  %v5002_v14 = vpack.c.bf16 %v1736_v8, %v1735_v7  ;;  %v1983_v15 = vpack.c.bf16 %v1958_v10, %v1957_v9  ;;  %v1741_v8 = vld [vmem:[#allocation2 + $0xf1] sm:$0xff]  ;;  %v1742_v9 = vld [vmem:[#allocation2 + $0xf9] sm:$0xff] }
 0x183   : > { %4244 = vmatmul.msk.bf16.gmra.mxu3 %vm194_vm1, %v1980_v17  ;;  %4195 = vmatmul.msk.bf16.gmra.mxu0 %vm194_vm1, %v1980_v17  ;;  %v812_v44 = vadd.f32 %v811_v20, %v671_v19  ;;  %v1963_v10 = vld [vmem:[#allocation2 + $0xf2] sm:$0xff] }
 0x184   : > { %4227 = vmatmul.msk.bf16.gmra.mxu2 %vm194_vm1, %v4978_v16  ;;  %1312 = vxpose.xlu1.b32.cont [6/16] (narrow) %v1264_v18, 8 }
 0x185   : > { %4211 = vmatmul.msk.bf16.gmra.mxu1 %vm194_vm1, %v4978_v16 }
 0x186   : > { %v1218_v23 = vpop.f32.mrf.mxu3 }
 0x187   : > { %v996_v22 = vpop.f32.mrf.mxu2 }
 0x188   : > { %v1043_v24 = vadd.f32 %v996_v22, %v807_v21  ;;  %v673_v27 = vpop.f32.mrf.mxu0 }
 0x18a   : > { %v1265_v25 = vadd.f32 %v1218_v23, %v1043_v24  ;;  %v813_v28 = vpop.f32.mrf.mxu1 }
 0x18b   : > { %v814_v55 = vadd.f32 %v813_v28, %v673_v27  ;;  %v1737_v28 = vld [vmem:[#allocation2 + $0xc1] sm:$0xff] }
 0x18c   : > { %1313 = vxpose.xlu1.b32.cont [7/16] (narrow) %v1265_v25, 8 }
 0x18e   : > { %v1220_v36 = vpop.f32.mrf.mxu3 }
 0x18f   : > { %v998_v35 = vpop.f32.mrf.mxu2 }
 0x190   : > { %v1044_v37 = vadd.f32 %v998_v35, %v809_v34  ;;  %v676_v41 = vpop.f32.mrf.mxu0 }
 0x192   : > { %v1266_v40 = vadd.f32 %v1220_v36, %v1044_v37  ;;  %v816_v43 = vpop.f32.mrf.mxu1  ;;  %v5010_v37 = vpack.c.bf16 %v1738_v29, %v1737_v28 }
 0x193   : > { %4245 = vmatmul.msk.bf16.gmra.mxu3 %vm194_vm1, %v1981_v39  ;;  %4196 = vmatmul.msk.bf16.gmra.mxu0 %vm194_vm1, %v1981_v39  ;;  %v817_v1 = vadd.f32 %v816_v43, %v676_v41  ;;  %v1984_v39 = vpack.c.bf16 %v1960_v32, %v1959_v30  ;;  %v1743_v30 = vld [vmem:[#allocation2 + $0x109] sm:$0xff]  ;;  %v1744_v32 = vld [vmem:[#allocation2 + $0x111] sm:$0xff] }
 0x194   : > { %4228 = vmatmul.msk.bf16.gmra.mxu2 %vm194_vm1, %v4986_v38  ;;  %1314 = vxpose.xlu1.b32.cont [8/16] (narrow) %v1266_v40, 8 }
 0x195   : > { %4212 = vmatmul.msk.bf16.gmra.mxu1 %vm194_vm1, %v4986_v38 }
 0x196   : > { %v1223_v46 = vpop.f32.mrf.mxu3 }
 0x197   : > { %v1001_v45 = vpop.f32.mrf.mxu2 }
 0x198   : > { %v1045_v47 = vadd.f32 %v1001_v45, %v812_v44  ;;  %v678_v49 = vpop.f32.mrf.mxu0 }
 0x19a   : > { %v1267_v48 = vadd.f32 %v1223_v46, %v1045_v47  ;;  %v818_v50 = vpop.f32.mrf.mxu1 }
 0x19b   : > { %v819_v31 = vadd.f32 %v818_v50, %v678_v49 }
 0x19c   : > { %1315 = vxpose.xlu1.b32.cont [9/16] (narrow) %v1267_v48, 8 }
 0x19e   : > { %v1225_v57 = vpop.f32.mrf.mxu3 }
 0x19f   : > { %v1003_v56 = vpop.f32.mrf.mxu2 }
 0x1a0   : > { %v1046_v58 = vadd.f32 %v1003_v56, %v814_v55  ;;  %v681_v63 = vpop.f32.mrf.mxu0 }
 0x1a2   : > { %v1268_v61 = vadd.f32 %v1225_v57, %v1046_v58  ;;  %v821_v0 = vpop.f32.mrf.mxu1 }
 0x1a3   : > { %4246 = vmatmul.msk.bf16.gmra.mxu3 %vm194_vm1, %v1982_v60  ;;  %4197 = vmatmul.msk.bf16.gmra.mxu0 %vm194_vm1, %v1982_v60  ;;  %v822_v20 = vadd.f32 %v821_v0, %v681_v63  ;;  %v5018_v60 = vpack.c.bf16 %v1740_v52, %v1739_v51 }
 0x1a4   : > { %4229 = vmatmul.msk.bf16.gmra.mxu2 %vm194_vm1, %v4994_v59  ;;  %1316 = vxpose.xlu1.b32.cont [10/16] (narrow) %v1268_v61, 8  ;;  %v1985_v61 = vpack.c.bf16 %v1962_v54, %v1961_v53  ;;  %v1745_v54 = vld [vmem:[#allocation2 + $0x121] sm:$0xff] }
 0x1a5   : > { %4213 = vmatmul.msk.bf16.gmra.mxu1 %vm194_vm1, %v4994_v59 }
 0x1a6   : > { %v1228_v3 = vpop.f32.mrf.mxu3 }
 0x1a7   : > { %v1006_v2 = vpop.f32.mrf.mxu2 }
 0x1a8   : > { %v1047_v4 = vadd.f32 %v1006_v2, %v817_v1  ;;  %v683_v5 = vpop.f32.mrf.mxu0 }
 0x1aa   : > { %v1269_v26 = vadd.f32 %v1228_v3, %v1047_v4  ;;  %v823_v6 = vpop.f32.mrf.mxu1 }
 0x1ab   : > { %v824_v33 = vadd.f32 %v823_v6, %v683_v5 }
 0x1ac   : > { %1317 = vxpose.xlu1.b32.cont [11/16] (narrow) %v1269_v26, 8 }
 0x1ae   : > { %v1230_v12 = vpop.f32.mrf.mxu3 }
 0x1af   : > { %v1008_v11 = vpop.f32.mrf.mxu2 }
 0x1b0   : > { %v1048_v13 = vadd.f32 %v1008_v11, %v819_v31  ;;  %v686_v18 = vpop.f32.mrf.mxu0  ;;  %v1964_v31 = vld [vmem:[#allocation2 + $0xfa] sm:$0xff] }
 0x1b2   : > { %v1270_v17 = vadd.f32 %v1230_v12, %v1048_v13  ;;  %v826_v19 = vpop.f32.mrf.mxu1 }
 0x1b3   : > { %4247 = vmatmul.msk.bf16.gmra.mxu3 %vm194_vm1, %v1983_v15  ;;  %4198 = vmatmul.msk.bf16.gmra.mxu0 %vm194_vm1, %v1983_v15  ;;  %v827_v44 = vadd.f32 %v826_v19, %v686_v18  ;;  %v1986_v18 = vpack.c.bf16 %v1964_v31, %v1963_v10 }
 0x1b4   : > { %4230 = vmatmul.msk.bf16.gmra.mxu2 %vm194_vm1, %v5002_v14  ;;  %1318 = vxpose.xlu1.b32.cont [12/16] (narrow) %v1270_v17, 8  ;;  %v5026_v17 = vpack.c.bf16 %v1742_v9, %v1741_v8 }
 0x1b5   : > { %4214 = vmatmul.msk.bf16.gmra.mxu1 %vm194_vm1, %v5002_v14 }
 0x1b6   : > { %v1233_v22 = vpop.f32.mrf.mxu3 }
 0x1b7   : > { %v1011_v21 = vpop.f32.mrf.mxu2 }
 0x1b8   : > { %v1049_v23 = vadd.f32 %v1011_v21, %v822_v20  ;;  %v688_v25 = vpop.f32.mrf.mxu0 }
 0x1ba   : > { %v1271_v24 = vadd.f32 %v1233_v22, %v1049_v23  ;;  %v828_v27 = vpop.f32.mrf.mxu1 }
 0x1bb   : > { %v829_v55 = vadd.f32 %v828_v27, %v688_v25 }
 0x1bc   : > { %1319 = vxpose.xlu1.b32.cont [13/16] (narrow) %v1271_v24, 8 }
 0x1be   : > { %v1235_v35 = vpop.f32.mrf.mxu3 }
 0x1bf   : > { %v1013_v34 = vpop.f32.mrf.mxu2 }
 0x1c0   : > { %v1050_v36 = vadd.f32 %v1013_v34, %v824_v33  ;;  %v1503_v41 = vpop.f32.mrf.mxu0  ;;  %v1965_v33 = vld [vmem:[#allocation2 + $0x10a] sm:$0xff]  ;;  %v1966_v34 = vld [vmem:[#allocation2 + $0x112] sm:$0xff] }
 0x1c2   : > { %v1272_v40 = vadd.f32 %v1235_v35, %v1050_v36  ;;  %v1643_v43 = vpop.f32.mrf.mxu1 }
 0x1c3   : > { %4248 = vmatmul.msk.bf16.gmra.mxu3 %vm194_vm1, %v1984_v39  ;;  %4199 = vmatmul.msk.bf16.gmra.mxu0 %vm194_vm1, %v1984_v39  ;;  %v1644_v2 = vadd.f32 %v1643_v43, %v1503_v41  ;;  %v5034_v41 = vpack.c.bf16 %v1744_v32, %v1743_v30  ;;  %v1987_v43 = vpack.c.bf16 %v1966_v34, %v1965_v33 }
 0x1c4   : > { %4231 = vmatmul.msk.bf16.gmra.mxu2 %vm194_vm1, %v5010_v37  ;;  %1320 = vxpose.xlu1.b32.cont [14/16] (narrow) %v1272_v40, 8 }
 0x1c5   : > { %4215 = vmatmul.msk.bf16.gmra.mxu1 %vm194_vm1, %v5010_v37 }
 0x1c6   : > { %v1238_v46 = vpop.f32.mrf.mxu3 }
 0x1c7   : > { %v1016_v45 = vpop.f32.mrf.mxu2 }
 0x1c8   : > { %v1051_v47 = vadd.f32 %v1016_v45, %v827_v44  ;;  %v1505_v49 = vpop.f32.mrf.mxu0 }
 0x1ca   : > { %v1273_v48 = vadd.f32 %v1238_v46, %v1051_v47  ;;  %v1645_v50 = vpop.f32.mrf.mxu1 }
 0x1cb   : > { %v1646_v11 = vadd.f32 %v1645_v50, %v1505_v49 }
 0x1cc   : > { %1321 = vxpose.xlu1.b32.cont [15/16] (narrow) %v1273_v48, 8 }
 0x1ce   : > { %v1240_v57 = vpop.f32.mrf.mxu3 }
 0x1cf   : > { %v1018_v56 = vpop.f32.mrf.mxu2 }
 0x1d0   : > { %v1052_v58 = vadd.f32 %v1018_v56, %v829_v55  ;;  %v1508_v0 = vpop.f32.mrf.mxu0  ;;  %v1746_v55 = vld [vmem:[#allocation2 + $0x129] sm:$0xff] }
 0x1d1   : > { %v1967_v56 = vld [vmem:[#allocation2 + $0x122] sm:$0xff] }
 0x1d2   : > { %v1274_v63 = vadd.f32 %v1240_v57, %v1052_v58  ;;  %v1648_v1 = vpop.f32.mrf.mxu1  ;;  %v1968_v57 = vld [vmem:[#allocation2 + $0x12a] sm:$0xff] }
 0x1d3   : > { %4249 = vmatmul.msk.bf16.gmra.mxu3 %vm194_vm1, %v1985_v61  ;;  %4200 = vmatmul.msk.bf16.gmra.mxu0 %vm194_vm1, %v1985_v61  ;;  %v1649_v22 = vadd.f32 %v1648_v1, %v1508_v0  ;;  %v5042_v1 = vpack.c.bf16 %v1746_v55, %v1745_v54 }
 0x1d4   : > { %4232 = vmatmul.msk.bf16.gmra.mxu2 %vm194_vm1, %v5018_v60  ;;  %1322 = vxpose.xlu1.b32.end [16/16] (narrow) %v1274_v63, 8 }
 0x1d5   : > { %4216 = vmatmul.msk.bf16.gmra.mxu1 %vm194_vm1, %v5018_v60 }
 0x1d6   : > { %v2055_v4 = vpop.f32.mrf.mxu3 }
 0x1d7   : > { %v1833_v3 = vpop.f32.mrf.mxu2 }
 0x1d8   : > { %v1913_v26 = vadd.f32 %v1833_v3, %v1644_v2  ;;  %v1510_v6 = vpop.f32.mrf.mxu0  ;;  %v1988_v2 = vpack.c.bf16 %v1968_v57, %v1967_v56 }
 0x1da   : > { %v2135_v5 = vadd.f32 %v2055_v4, %v1913_v26  ;;  %v1650_v7 = vpop.f32.mrf.mxu1 }
 0x1db   : > { %v1651_v35 = vadd.f32 %v1650_v7, %v1510_v6 }
 0x1dc   : > { %2167 = vxpose.xlu2.b32.start [1/16] (narrow) %v2135_v5, 8 }
 0x1de   : > { %v2057_v13 = vpop.f32.mrf.mxu3 }
 0x1df   : > { %v1835_v12 = vpop.f32.mrf.mxu2 }
 0x1e0   : > { %v1914_v15 = vadd.f32 %v1835_v12, %v1646_v11  ;;  %v1513_v20 = vpop.f32.mrf.mxu0  ;;  %v1747_v11 = vld [vmem:[#allocation2 + $0x139] sm:$0xff]  ;;  %v1748_v12 = vld [vmem:[#allocation2 + $0x141] sm:$0xff] }
 0x1e2   : > { %v2136_v19 = vadd.f32 %v2057_v13, %v1914_v15  ;;  %v1653_v21 = vpop.f32.mrf.mxu1  ;;  %v1969_v13 = vld [vmem:[#allocation2 + $0x13a] sm:$0xff]  ;;  %v1970_v15 = vld [vmem:[#allocation2 + $0x142] sm:$0xff] }
 0x1e3   : > { %4250 = vmatmul.msk.bf16.gmra.mxu3 %vm194_vm1, %v1986_v18  ;;  %4201 = vmatmul.msk.bf16.gmra.mxu0 %vm194_vm1, %v1986_v18  ;;  %v1654_v47 = vadd.f32 %v1653_v21, %v1513_v20 }
 0x1e4   : > { %4233 = vmatmul.msk.bf16.gmra.mxu2 %vm194_vm1, %v5026_v17  ;;  %2168 = vxpose.xlu2.b32.cont [2/16] (narrow) %v2136_v19, 8 }
 0x1e5   : > { %4217 = vmatmul.msk.bf16.gmra.mxu1 %vm194_vm1, %v5026_v17 }
 0x1e6   : > { %v2060_v24 = vpop.f32.mrf.mxu3 }
 0x1e7   : > { %v1838_v23 = vpop.f32.mrf.mxu2 }
 0x1e8   : > { %v1915_v25 = vadd.f32 %v1838_v23, %v1649_v22  ;;  %v1515_v28 = vpop.f32.mrf.mxu0  ;;  %v5050_v22 = vpack.c.bf16 %v1748_v12, %v1747_v11  ;;  %v1989_v23 = vpack.c.bf16 %v1970_v15, %v1969_v13  ;;  %v4363_v12 = vld [vmem:[%s5340_s3 + $0x38] sm:$0xf]  ;;  %v4380_v15 = vld [vmem:[%s5340_s3 + $0x3c] sm:$0xf] }
 0x1e9   : > { %v3609_v13 = vsel %vm598_vm0, %v4363_v12, 0 }
 0x1ea   : > { %v2137_v27 = vadd.f32 %v2060_v24, %v1915_v25  ;;  %v1655_v29 = vpop.f32.mrf.mxu1  ;;  %3618 = vmatpush.bf16.msrb.mxu2 %v3609_v13 }
 0x1eb   : > { %v1656_v58 = vadd.f32 %v1655_v29, %v1515_v28 }
 0x1ec   : > { %2169 = vxpose.xlu2.b32.cont [3/16] (narrow) %v2137_v27, 8 }
 0x1ee   : > { %v2062_v39 = vpop.f32.mrf.mxu3 }
 0x1ef   : > { %v1840_v36 = vpop.f32.mrf.mxu2 }
 0x1f0   : > { %v1916_v40 = vadd.f32 %v1840_v36, %v1651_v35  ;;  %v1518_v45 = vpop.f32.mrf.mxu0  ;;  %v1749_v36 = vld [vmem:[#allocation2 + $0x151] sm:$0xff] }
 0x1f2   : > { %v2138_v44 = vadd.f32 %v2062_v39, %v1916_v40  ;;  %v1658_v46 = vpop.f32.mrf.mxu1  ;;  %v1750_v39 = vld [vmem:[#allocation2 + $0x159] sm:$0xff] }
 0x1f3   : > { %4251 = vmatmul.msk.bf16.gmra.mxu3 %vm194_vm1, %v1987_v43  ;;  %4202 = vmatmul.msk.bf16.gmra.mxu0 %vm194_vm1, %v1987_v43  ;;  %v1659_v5 = vadd.f32 %v1658_v46, %v1518_v45  ;;  %v1971_v40 = vld [vmem:[#allocation2 + $0x152] sm:$0xff]  ;;  %v1972_v43 = vld [vmem:[#allocation2 + $0x15a] sm:$0xff] }
 0x1f4   : > { %4234 = vmatmul.msk.bf16.gmra.mxu2 %vm194_vm1, %v5034_v41  ;;  %2170 = vxpose.xlu2.b32.cont [4/16] (narrow) %v2138_v44, 8 }
 0x1f5   : > { %4218 = vmatmul.msk.bf16.gmra.mxu1 %vm194_vm1, %v5034_v41 }
 0x1f6   : > { %v2065_v49 = vpop.f32.mrf.mxu3 }
 0x1f7   : > { %v1843_v48 = vpop.f32.mrf.mxu2 }
 0x1f8   : > { %v1917_v50 = vadd.f32 %v1843_v48, %v1654_v47  ;;  %v1520_v52 = vpop.f32.mrf.mxu0  ;;  %v5058_v48 = vpack.c.bf16 %v1750_v39, %v1749_v36  ;;  %v2286_v39 = vld [vmem:[#allocation2 + $0x19] sm:$0xff] }
 0x1fa   : > { %v2139_v51 = vadd.f32 %v2065_v49, %v1917_v50  ;;  %v1660_v53 = vpop.f32.mrf.mxu1  ;;  %v1990_v49 = vpack.c.bf16 %v1972_v43, %v1971_v40  ;;  %v2287_v40 = vld [vmem:[#allocation2 + $0x21] sm:$0xff] }
 0x1fb   : > { %v1661_v18 = vadd.f32 %v1660_v53, %v1520_v52 }
 0x1fc   : > { %2171 = vxpose.xlu2.b32.cont [5/16] (narrow) %v2139_v51, 8 }
 0x1fe   : > { %v2067_v63 = vpop.f32.mrf.mxu3 }
 0x1ff   : > { %v1845_v61 = vpop.f32.mrf.mxu2 }
 0x200   : > { %v1918_v0 = vadd.f32 %v1845_v61, %v1656_v58  ;;  %v1523_v4 = vpop.f32.mrf.mxu0 }
 0x202   : > { %v2140_v3 = vadd.f32 %v2067_v63, %v1918_v0  ;;  %v1663_v26 = vpop.f32.mrf.mxu1  ;;  %v1751_v63 = vld [vmem:[#allocation2 + $0x169] sm:$0xff]  ;;  %v1752_v0 = vld [vmem:[#allocation2 + $0x171] sm:$0xff] }
 0x203   : > { %4252 = vmatmul.msk.bf16.gmra.mxu3 %vm194_vm1, %v1988_v2  ;;  %4203 = vmatmul.msk.bf16.gmra.mxu0 %vm194_vm1, %v1988_v2  ;;  %v1664_v28 = vadd.f32 %v1663_v26, %v1523_v4  ;;  %v1973_v2 = vld [vmem:[#allocation2 + $0x16a] sm:$0xff] }
 0x204   : > { %4235 = vmatmul.msk.bf16.gmra.mxu2 %vm194_vm1, %v5042_v1  ;;  %2172 = vxpose.xlu2.b32.cont [6/16] (narrow) %v2140_v3, 8  ;;  %v1974_v3 = vld [vmem:[#allocation2 + $0x172] sm:$0xff] }
 0x205   : > { %4219 = vmatmul.msk.bf16.gmra.mxu1 %vm194_vm1, %v5042_v1 }
 0x206   : > { %v2070_v7 = vpop.f32.mrf.mxu3 }
 0x207   : > { %v1848_v6 = vpop.f32.mrf.mxu2 }
 0x208   : > { %v1919_v8 = vadd.f32 %v1848_v6, %v1659_v5  ;;  %v1525_v10 = vpop.f32.mrf.mxu0 }
 0x20a   : > { %v2141_v9 = vadd.f32 %v2070_v7, %v1919_v8  ;;  %v1665_v31 = vpop.f32.mrf.mxu1  ;;  %v5066_v7 = vpack.c.bf16 %v1752_v0, %v1751_v63  ;;  %v1991_v8 = vpack.c.bf16 %v1974_v3, %v1973_v2  ;;  %v2617_v3 = vld [vmem:[#allocation2 + $0x30] sm:$0xff] }
 0x20b   : > { %v1666_v44 = vadd.f32 %v1665_v31, %v1525_v10 }
 0x20c   : > { %2173 = vxpose.xlu2.b32.cont [7/16] (narrow) %v2141_v9, 8 }
 0x20e   : > { %v2072_v20 = vpop.f32.mrf.mxu3 }
 0x20f   : > { %v1850_v19 = vpop.f32.mrf.mxu2 }
 0x210   : > { %v1920_v21 = vadd.f32 %v1850_v19, %v1661_v18  ;;  %v1528_v25 = vpop.f32.mrf.mxu0  ;;  %v3831_v18 = vsel %vm598_vm0, %v4380_v15, 0 }
 0x211   : > { %3840 = vmatpush.bf16.msrb.mxu3 %v3831_v18 }
 0x212   : > { %v2142_v24 = vadd.f32 %v2072_v20, %v1920_v21  ;;  %v1668_v27 = vpop.f32.mrf.mxu1 }
 0x213   : > { %4253 = vmatmul.msk.bf16.gmra.mxu3 %vm194_vm1, %v1989_v23  ;;  %4204 = vmatmul.msk.bf16.gmra.mxu0 %vm194_vm1, %v1989_v23  ;;  %v1669_v53 = vadd.f32 %v1668_v27, %v1528_v25  ;;  %v4330_v25 = vld [vmem:[%s5340_s3 + $0x34] sm:$0xf]  ;;  %v4329_v27 = vld [vmem:[%s5340_s3 + $0x30] sm:$0xf] }
 0x214   : > { %4236 = vmatmul.msk.bf16.gmra.mxu2 %vm194_vm1, %v5050_v22  ;;  %2174 = vxpose.xlu2.b32.cont [8/16] (narrow) %v2142_v24, 8 }
 0x215   : > { %4220 = vmatmul.msk.bf16.gmra.mxu1 %vm194_vm1, %v5050_v22 }
 0x216   : > { %v2075_v30 = vpop.f32.mrf.mxu3 }
 0x217   : > { %v1853_v29 = vpop.f32.mrf.mxu2 }
 0x218   : > { %v1921_v32 = vadd.f32 %v1853_v29, %v1664_v28  ;;  %v1530_v34 = vpop.f32.mrf.mxu0  ;;  %v3279_v29 = vsel %vm598_vm0, %v4330_v25, 0 }
 0x219   : > { %3288 = vmatpush.bf16.msrb.mxu0 %v3279_v29 }
 0x21a   : > { %v2143_v33 = vadd.f32 %v2075_v30, %v1921_v32  ;;  %v1670_v35 = vpop.f32.mrf.mxu1  ;;  %v3419_v30 = vsel %vm598_vm0, %v4329_v27, 0  ;;  %v1753_v32 = vld [vmem:[#allocation2 + $0x181] sm:$0xff] }
 0x21b   : > { %v1671_v4 = vadd.f32 %v1670_v35, %v1530_v34  ;;  %3428 = vmatpush.bf16.msrb.mxu1 %v3419_v30  ;;  %v1975_v34 = vld [vmem:[#allocation2 + $0x182] sm:$0xff]  ;;  %v1976_v35 = vld [vmem:[#allocation2 + $0x18a] sm:$0xff] }
 0x21c   : > { %2175 = vxpose.xlu2.b32.cont [9/16] (narrow) %v2143_v33, 8  ;;  %v1754_v33 = vld [vmem:[#allocation2 + $0x189] sm:$0xff] }
 0x21d   : > { %v2619_v27 = vld [vmem:[#allocation2 + $0x48] sm:$0xff] }
 0x21e   : > { %v2077_v46 = vpop.f32.mrf.mxu3  ;;  %v2290_v30 = vld [vmem:[#allocation2 + $0x49] sm:$0xff] }
 0x21f   : > { %v1855_v45 = vpop.f32.mrf.mxu2 }
 0x220   : > { %v1922_v47 = vadd.f32 %v1855_v45, %v1666_v44  ;;  %v1533_v51 = vpop.f32.mrf.mxu0  ;;  %v2236_v45 = vld [vmem:[#allocation2 + $0x18] sm:$0xff] }
 0x222   : > { %v2144_v50 = vadd.f32 %v2077_v46, %v1922_v47  ;;  %v1673_v52 = vpop.f32.mrf.mxu1  ;;  %v2237_v46 = vld [vmem:[#allocation2 + $0x20] sm:$0xff] }
 0x223   : > { %4254 = vmatmul.msk.bf16.gmra.mxu3 %vm194_vm1, %v1990_v49  ;;  %4205 = vmatmul.msk.bf16.gmra.mxu0 %vm194_vm1, %v1990_v49  ;;  %v1674_v11 = vadd.f32 %v1673_v52, %v1533_v51  ;;  %v5090_v49 = vpack.c.bf16 %v1754_v33, %v1753_v32  ;;  %v2318_v51 = vpack.c.bf16 %v2287_v40, %v2286_v39  ;;  %v2291_v32 = vld [vmem:[#allocation2 + $0x51] sm:$0xff] }
 0x224   : > { %4237 = vmatmul.msk.bf16.gmra.mxu2 %vm194_vm1, %v5058_v48  ;;  %2176 = vxpose.xlu2.b32.cont [10/16] (narrow) %v2144_v50, 8  ;;  %v1992_v50 = vpack.c.bf16 %v1976_v35, %v1975_v34 }
 0x225   : > { %4221 = vmatmul.msk.bf16.gmra.mxu1 %vm194_vm1, %v5058_v48 }
 0x226   : > { %v2080_v55 = vpop.f32.mrf.mxu3 }
 0x227   : > { %v1858_v54 = vpop.f32.mrf.mxu2 }
 0x228   : > { %v1923_v56 = vadd.f32 %v1858_v54, %v1669_v53  ;;  %v1535_v58 = vpop.f32.mrf.mxu0  ;;  %v2268_v54 = vpack.c.bf16 %v2237_v46, %v2236_v45 }
 0x22a   : > { %v2145_v57 = vadd.f32 %v2080_v55, %v1923_v56  ;;  %v1675_v61 = vpop.f32.mrf.mxu1 }
 0x22b   : > { %v1676_v36 = vadd.f32 %v1675_v61, %v1535_v58 }
 0x22c   : > { %2177 = vxpose.xlu2.b32.cont [11/16] (narrow) %v2145_v57, 8 }
 0x22e   : > { %v2082_v5 = vpop.f32.mrf.mxu3 }
 0x22f   : > { %v1860_v26 = vpop.f32.mrf.mxu2 }
 0x230   : > { %v1924_v6 = vadd.f32 %v1860_v26, %v1671_v4  ;;  %v1538_v10 = vpop.f32.mrf.mxu0  ;;  %v2618_v4 = vld [vmem:[#allocation2 + $0x38] sm:$0xff] }
 0x232   : > { %v2146_v9 = vadd.f32 %v2082_v5, %v1924_v6  ;;  %v1678_v31 = vpop.f32.mrf.mxu1  ;;  %v2288_v5 = vld [vmem:[#allocation2 + $0x31] sm:$0xff]  ;;  %v2289_v6 = vld [vmem:[#allocation2 + $0x39] sm:$0xff] }
 0x233   : > { %4255 = vmatmul.msk.bf16.gmra.mxu3 %vm194_vm1, %v1991_v8  ;;  %4206 = vmatmul.msk.bf16.gmra.mxu0 %vm194_vm1, %v1991_v8  ;;  %v1679_v56 = vadd.f32 %v1678_v31, %v1538_v10  ;;  %v2649_v31 = vpack.c.bf16 %v2618_v4, %v2617_v3 }
 0x234   : > { %4238 = vmatmul.msk.bf16.gmra.mxu2 %vm194_vm1, %v5066_v7  ;;  %2178 = vxpose.xlu2.b32.cont [12/16] (narrow) %v2146_v9, 8 }
 0x235   : > { %4222 = vmatmul.msk.bf16.gmra.mxu1 %vm194_vm1, %v5066_v7 }
 0x236   : > { %v2085_v20 = vpop.f32.mrf.mxu3 }
 0x237   : > { %v1863_v19 = vpop.f32.mrf.mxu2 }
 0x238   : > { %v1925_v21 = vadd.f32 %v1863_v19, %v1674_v11  ;;  %v1540_v24 = vpop.f32.mrf.mxu0  ;;  %v5097_v11 = vpack.c.bf16 %v2289_v6, %v2288_v5 }
 0x23a   : > { %v2147_v23 = vadd.f32 %v2085_v20, %v1925_v21  ;;  %v1680_v28 = vpop.f32.mrf.mxu1 }
 0x23b   : > { %v1681_v26 = vadd.f32 %v1680_v28, %v1540_v24  ;;  %v2620_v28 = vld [vmem:[#allocation2 + $0x50] sm:$0xff] }
 0x23c   : > { %2179 = vxpose.xlu2.b32.cont [13/16] (narrow) %v2147_v23, 8  ;;  %v2650_v35 = vpack.c.bf16 %v2620_v28, %v2619_v27 }
 0x23e   : > { %v2087_v44 = vpop.f32.mrf.mxu3 }
 0x23f   : > { %v1865_v43 = vpop.f32.mrf.mxu2 }
 0x240   : > { %v1926_v47 = vadd.f32 %v1865_v43, %v1676_v36  ;;  %v1543_v53 = vpop.f32.mrf.mxu0  ;;  %v5105_v36 = vpack.c.bf16 %v2291_v32, %v2290_v30 }
 0x242   : > { %v2148_v52 = vadd.f32 %v2087_v44, %v1926_v47  ;;  %v1683_v55 = vpop.f32.mrf.mxu1 }
 0x243   : > { %4256 = vmatmul.msk.bf16.gmra.mxu3 %vm194_vm1, %v1992_v50  ;;  %4261 = vmatmul.msk.bf16.vlgmr.msra.gmra.mxu0 %vm194_vm1, %v2318_v51  ;;  %v1684_v18 = vadd.f32 %v1683_v55, %v1543_v53  ;;  %v2621_v53 = vld [vmem:[#allocation2 + $0x60] sm:$0xff] }
 0x244   : > { %4239 = vmatmul.msk.bf16.gmra.mxu2 %vm194_vm1, %v5090_v49  ;;  %2180 = vxpose.xlu2.b32.cont [14/16] (narrow) %v2148_v52, 8 }
 0x245   : > { %4277 = vmatmul.msk.bf16.vlgmr.msra.gmra.mxu1 %vm194_vm1, %v2268_v54  ;;  %v2622_v54 = vld [vmem:[#allocation2 + $0x68] sm:$0xff] }
 0x246   : > { %v2090_v58 = vpop.f32.mrf.mxu3 }
 0x247   : > { %v1868_v57 = vpop.f32.mrf.mxu2 }
 0x248   : > { %v1927_v61 = vadd.f32 %v1868_v57, %v1679_v56  ;;  %v1545_v0 = vpop.f32.mrf.mxu0  ;;  %v2292_v56 = vld [vmem:[#allocation2 + $0x61] sm:$0xff]  ;;  %v2293_v57 = vld [vmem:[#allocation2 + $0x69] sm:$0xff] }
 0x24a   : > { %v2149_v63 = vadd.f32 %v2090_v58, %v1927_v61  ;;  %v1685_v2 = vpop.f32.mrf.mxu1 }
 0x24b   : > { %v1686_v29 = vadd.f32 %v1685_v2, %v1545_v0  ;;  %v5113_v0 = vpack.c.bf16 %v2293_v57, %v2292_v56 }
 0x24c   : > { %2181 = vxpose.xlu2.b32.cont [15/16] (narrow) %v2149_v63, 8  ;;  %v2651_v63 = vpack.c.bf16 %v2622_v54, %v2621_v53 }
 0x24e   : > { %v2092_v9 = vpop.f32.mrf.mxu3 }
 0x24f   : > { %v1870_v8 = vpop.f32.mrf.mxu2 }
 0x250   : > { %v1928_v10 = vadd.f32 %v1870_v8, %v1681_v26  ;;  %v1548_v13 = vpop.f32.mrf.mxu0 }
 0x252   : > { %v2150_v12 = vadd.f32 %v2092_v9, %v1928_v10  ;;  %v1688_v15 = vpop.f32.mrf.mxu1 }
 0x253   : > { %4311 = vmatmul.msk.bf16.vlgmr.msra.gmra.mxu3 %vm194_vm1, %v4962_v42  ;;  %4262 = vmatmul.msk.bf16.gmra.mxu0 %vm194_vm1, %v5097_v11  ;;  %v1689_v44 = vadd.f32 %v1688_v15, %v1548_v13  ;;  %v2624_v13 = vld [vmem:[#allocation2 + $0x80] sm:$0xff] }
 0x254   : > { %4294 = vmatmul.msk.bf16.vlgmr.msra.gmra.mxu2 %vm194_vm1, %v2649_v31  ;;  %2182 = vxpose.xlu2.b32.end [16/16] (narrow) %v2150_v12, 8  ;;  %v2623_v12 = vld [vmem:[#allocation2 + $0x78] sm:$0xff] }
 0x255   : > { %4278 = vmatmul.msk.bf16.gmra.mxu1 %vm194_vm1, %v2649_v31 }
 0x256   : > { %v2095_v20 = vpop.f32.mrf.mxu3 }
 0x257   : > { %v1873_v19 = vpop.f32.mrf.mxu2 }
 0x258   : > { %v1929_v21 = vadd.f32 %v1873_v19, %v1684_v18  ;;  %v1550_v24 = vpop.f32.mrf.mxu0  ;;  %v2294_v18 = vld [vmem:[#allocation2 + $0x79] sm:$0xff]  ;;  %v2295_v19 = vld [vmem:[#allocation2 + $0x81] sm:$0xff] }
 0x25a   : > { %v2151_v23 = vadd.f32 %v2095_v20, %v1929_v21  ;;  %v1690_v25 = vpop.f32.mrf.mxu1 }
 0x25b   : > { %v1691_v55 = vadd.f32 %v1690_v25, %v1550_v24  ;;  %v5121_v24 = vpack.c.bf16 %v2295_v19, %v2294_v18 }
 0x25c   : > { %2199 = vxpose.xlu0.b32.start [1/16] (narrow) %v2151_v23, 8  ;;  %v2652_v23 = vpack.c.bf16 %v2624_v13, %v2623_v12 }
 0x25e   : > { %v2097_v42 = vpop.f32.mrf.mxu3 }
 0x25f   : > { %v1875_v33 = vpop.f32.mrf.mxu2 }
 0x260   : > { %v1930_v34 = vadd.f32 %v1875_v33, %v1686_v29  ;;  %v1553_v40 = vpop.f32.mrf.mxu0 }
 0x262   : > { %v2152_v39 = vadd.f32 %v2097_v42, %v1930_v34  ;;  %v1693_v43 = vpop.f32.mrf.mxu1 }
 0x263   : > { %4312 = vmatmul.msk.bf16.gmra.mxu3 %vm194_vm1, %v4970_v62  ;;  %4263 = vmatmul.msk.bf16.gmra.mxu0 %vm194_vm1, %v5105_v36  ;;  %v1694_v26 = vadd.f32 %v1693_v43, %v1553_v40  ;;  %v2626_v40 = vld [vmem:[#allocation2 + $0x98] sm:$0xff] }
 0x264   : > { %4295 = vmatmul.msk.bf16.gmra.mxu2 %vm194_vm1, %v2650_v35  ;;  %2200 = vxpose.xlu0.b32.cont [2/16] (narrow) %v2152_v39, 8  ;;  %v2625_v39 = vld [vmem:[#allocation2 + $0x90] sm:$0xff] }
 0x265   : > { %4279 = vmatmul.msk.bf16.gmra.mxu1 %vm194_vm1, %v2650_v35 }
 0x266   : > { %v2100_v46 = vpop.f32.mrf.mxu3 }
 0x267   : > { %v1878_v45 = vpop.f32.mrf.mxu2 }
 0x268   : > { %v1931_v47 = vadd.f32 %v1878_v45, %v1689_v44  ;;  %v1555_v51 = vpop.f32.mrf.mxu0  ;;  %v2296_v44 = vld [vmem:[#allocation2 + $0x91] sm:$0xff]  ;;  %v2297_v45 = vld [vmem:[#allocation2 + $0x99] sm:$0xff] }
 0x26a   : > { %v2153_v50 = vadd.f32 %v2100_v46, %v1931_v47  ;;  %v1695_v52 = vpop.f32.mrf.mxu1 }
 0x26b   : > { %v1696_v15 = vadd.f32 %v1695_v52, %v1555_v51  ;;  %v5129_v51 = vpack.c.bf16 %v2297_v45, %v2296_v44 }
 0x26c   : > { %2201 = vxpose.xlu0.b32.cont [3/16] (narrow) %v2153_v50, 8  ;;  %v2653_v50 = vpack.c.bf16 %v2626_v40, %v2625_v39 }
 0x26e   : > { %v2102_v62 = vpop.f32.mrf.mxu3 }
 0x26f   : > { %v1880_v58 = vpop.f32.mrf.mxu2 }
 0x270   : > { %v1932_v61 = vadd.f32 %v1880_v58, %v1691_v55  ;;  %v1558_v3 = vpop.f32.mrf.mxu0 }
 0x272   : > { %v2154_v2 = vadd.f32 %v2102_v62, %v1932_v61  ;;  %v1698_v4 = vpop.f32.mrf.mxu1 }
 0x273   : > { %4313 = vmatmul.msk.bf16.gmra.mxu3 %vm194_vm1, %v4978_v16  ;;  %4264 = vmatmul.msk.bf16.gmra.mxu0 %vm194_vm1, %v5113_v0  ;;  %v1699_v29 = vadd.f32 %v1698_v4, %v1558_v3  ;;  %v2628_v3 = vld [vmem:[#allocation2 + $0xb0] sm:$0xff] }
 0x274   : > { %4296 = vmatmul.msk.bf16.gmra.mxu2 %vm194_vm1, %v2651_v63  ;;  %2202 = vxpose.xlu0.b32.cont [4/16] (narrow) %v2154_v2, 8  ;;  %v2627_v2 = vld [vmem:[#allocation2 + $0xa8] sm:$0xff] }
 0x275   : > { %4280 = vmatmul.msk.bf16.gmra.mxu1 %vm194_vm1, %v2651_v63 }
 0x276   : > { %v2105_v6 = vpop.f32.mrf.mxu3 }
 0x277   : > { %v1883_v5 = vpop.f32.mrf.mxu2 }
 0x278   : > { %v1933_v8 = vadd.f32 %v1883_v5, %v1694_v26  ;;  %v1560_v10 = vpop.f32.mrf.mxu0  ;;  %v2298_v26 = vld [vmem:[#allocation2 + $0xa9] sm:$0xff]  ;;  %v2299_v5 = vld [vmem:[#allocation2 + $0xb1] sm:$0xff] }
 0x27a   : > { %v2155_v9 = vadd.f32 %v2105_v6, %v1933_v8  ;;  %v1700_v31 = vpop.f32.mrf.mxu1 }
 0x27b   : > { %v1701_v43 = vadd.f32 %v1700_v31, %v1560_v10  ;;  %v5137_v10 = vpack.c.bf16 %v2299_v5, %v2298_v26 }
 0x27c   : > { %2203 = vxpose.xlu0.b32.cont [5/16] (narrow) %v2155_v9, 8  ;;  %v2654_v9 = vpack.c.bf16 %v2628_v3, %v2627_v2 }
 0x27e   : > { %v2107_v16 = vpop.f32.mrf.mxu3 }
 0x27f   : > { %v1885_v20 = vpop.f32.mrf.mxu2 }
 0x280   : > { %v1934_v21 = vadd.f32 %v1885_v20, %v1696_v15  ;;  %v1563_v27 = vpop.f32.mrf.mxu0 }
 0x282   : > { %v2156_v25 = vadd.f32 %v2107_v16, %v1934_v21  ;;  %v1703_v28 = vpop.f32.mrf.mxu1 }
 0x283   : > { %4314 = vmatmul.msk.bf16.gmra.mxu3 %vm194_vm1, %v4986_v38  ;;  %4265 = vmatmul.msk.bf16.gmra.mxu0 %vm194_vm1, %v5121_v24  ;;  %v1704_v55 = vadd.f32 %v1703_v28, %v1563_v27  ;;  %v2630_v27 = vld [vmem:[#allocation2 + $0xc8] sm:$0xff] }
 0x284   : > { %4297 = vmatmul.msk.bf16.gmra.mxu2 %vm194_vm1, %v2652_v23  ;;  %2204 = vxpose.xlu0.b32.cont [6/16] (narrow) %v2156_v25, 8  ;;  %v2629_v25 = vld [vmem:[#allocation2 + $0xc0] sm:$0xff] }
 0x285   : > { %4281 = vmatmul.msk.bf16.gmra.mxu1 %vm194_vm1, %v2652_v23 }
 0x286   : > { %v2110_v32 = vpop.f32.mrf.mxu3 }
 0x287   : > { %v1888_v30 = vpop.f32.mrf.mxu2 }
 0x288   : > { %v1935_v33 = vadd.f32 %v1888_v30, %v1699_v29  ;;  %v1565_v34 = vpop.f32.mrf.mxu0  ;;  %v2300_v29 = vld [vmem:[#allocation2 + $0xc1] sm:$0xff]  ;;  %v2301_v30 = vld [vmem:[#allocation2 + $0xc9] sm:$0xff] }
 0x28a   : > { %v2157_v42 = vadd.f32 %v2110_v32, %v1935_v33  ;;  %v1705_v35 = vpop.f32.mrf.mxu1 }
 0x28b   : > { %v1706_v4 = vadd.f32 %v1705_v35, %v1565_v34  ;;  %v5145_v34 = vpack.c.bf16 %v2301_v30, %v2300_v29 }
 0x28c   : > { %2205 = vxpose.xlu0.b32.cont [7/16] (narrow) %v2157_v42, 8  ;;  %v2655_v42 = vpack.c.bf16 %v2630_v27, %v2629_v25 }
 0x28e   : > { %v2112_v38 = vpop.f32.mrf.mxu3 }
 0x28f   : > { %v1890_v46 = vpop.f32.mrf.mxu2 }
 0x290   : > { %v1936_v47 = vadd.f32 %v1890_v46, %v1701_v43  ;;  %v1568_v53 = vpop.f32.mrf.mxu0 }
 0x292   : > { %v2158_v52 = vadd.f32 %v2112_v38, %v1936_v47  ;;  %v1708_v54 = vpop.f32.mrf.mxu1 }
 0x293   : > { %4315 = vmatmul.msk.bf16.gmra.mxu3 %vm194_vm1, %v4994_v59  ;;  %4266 = vmatmul.msk.bf16.gmra.mxu0 %vm194_vm1, %v5129_v51  ;;  %v1709_v15 = vadd.f32 %v1708_v54, %v1568_v53  ;;  %v2632_v53 = vld [vmem:[#allocation2 + $0xe0] sm:$0xff] }
 0x294   : > { %4298 = vmatmul.msk.bf16.gmra.mxu2 %vm194_vm1, %v2653_v50  ;;  %2206 = vxpose.xlu0.b32.cont [8/16] (narrow) %v2158_v52, 8  ;;  %v2631_v52 = vld [vmem:[#allocation2 + $0xd8] sm:$0xff] }
 0x295   : > { %4282 = vmatmul.msk.bf16.gmra.mxu1 %vm194_vm1, %v2653_v50 }
 0x296   : > { %v2115_v57 = vpop.f32.mrf.mxu3 }
 0x297   : > { %v1893_v56 = vpop.f32.mrf.mxu2 }
 0x298   : > { %v1937_v58 = vadd.f32 %v1893_v56, %v1704_v55  ;;  %v1570_v61 = vpop.f32.mrf.mxu0  ;;  %v2302_v55 = vld [vmem:[#allocation2 + $0xd9] sm:$0xff]  ;;  %v2303_v56 = vld [vmem:[#allocation2 + $0xe1] sm:$0xff] }
 0x29a   : > { %v2159_v62 = vadd.f32 %v2115_v57, %v1937_v58  ;;  %v1710_v63 = vpop.f32.mrf.mxu1 }
 0x29b   : > { %v1711_v28 = vadd.f32 %v1710_v63, %v1570_v61  ;;  %v5153_v61 = vpack.c.bf16 %v2303_v56, %v2302_v55 }
 0x29c   : > { %2207 = vxpose.xlu0.b32.cont [9/16] (narrow) %v2159_v62, 8  ;;  %v2656_v62 = vpack.c.bf16 %v2632_v53, %v2631_v52 }
 0x29e   : > { %v2117_v59 = vpop.f32.mrf.mxu3 }
 0x29f   : > { %v1895_v6 = vpop.f32.mrf.mxu2 }
 0x2a0   : > { %v1938_v8 = vadd.f32 %v1895_v6, %v1706_v4  ;;  %v1573_v12 = vpop.f32.mrf.mxu0 }
 0x2a2   : > { %v2160_v31 = vadd.f32 %v2117_v59, %v1938_v8  ;;  %v1713_v13 = vpop.f32.mrf.mxu1 }
 0x2a3   : > { %4316 = vmatmul.msk.bf16.gmra.mxu3 %vm194_vm1, %v5002_v14  ;;  %4267 = vmatmul.msk.bf16.gmra.mxu0 %vm194_vm1, %v5137_v10  ;;  %v1714_v43 = vadd.f32 %v1713_v13, %v1573_v12  ;;  %v2634_v12 = vld [vmem:[#allocation2 + $0xf8] sm:$0xff] }
 0x2a4   : > { %4299 = vmatmul.msk.bf16.gmra.mxu2 %vm194_vm1, %v2654_v9  ;;  %2208 = vxpose.xlu0.b32.cont [10/16] (narrow) %v2160_v31, 8  ;;  %v2633_v31 = vld [vmem:[#allocation2 + $0xf0] sm:$0xff] }
 0x2a5   : > { %4283 = vmatmul.msk.bf16.gmra.mxu1 %vm194_vm1, %v2654_v9 }
 0x2a6   : > { %v2120_v19 = vpop.f32.mrf.mxu3 }
 0x2a7   : > { %v1898_v18 = vpop.f32.mrf.mxu2 }
 0x2a8   : > { %v1939_v20 = vadd.f32 %v1898_v18, %v1709_v15  ;;  %v1575_v21 = vpop.f32.mrf.mxu0  ;;  %v2304_v15 = vld [vmem:[#allocation2 + $0xf1] sm:$0xff]  ;;  %v2305_v18 = vld [vmem:[#allocation2 + $0xf9] sm:$0xff] }
 0x2aa   : > { %v2161_v16 = vadd.f32 %v2120_v19, %v1939_v20  ;;  %v1715_v23 = vpop.f32.mrf.mxu1 }
 0x2ab   : > { %v1716_v54 = vadd.f32 %v1715_v23, %v1575_v21  ;;  %v5161_v21 = vpack.c.bf16 %v2305_v18, %v2304_v15 }
 0x2ac   : > { %2209 = vxpose.xlu0.b32.cont [11/16] (narrow) %v2161_v16, 8  ;;  %v2657_v16 = vpack.c.bf16 %v2634_v12, %v2633_v31 }
 0x2ae   : > { %v2122_v14 = vpop.f32.mrf.mxu3 }
 0x2af   : > { %v1900_v32 = vpop.f32.mrf.mxu2 }
 0x2b0   : > { %v1940_v33 = vadd.f32 %v1900_v32, %v1711_v28  ;;  %v1578_v39 = vpop.f32.mrf.mxu0 }
 0x2b2   : > { %v2162_v35 = vadd.f32 %v2122_v14, %v1940_v33  ;;  %v1718_v40 = vpop.f32.mrf.mxu1 }
 0x2b3   : > { %4317 = vmatmul.msk.bf16.gmra.mxu3 %vm194_vm1, %v5010_v37  ;;  %4268 = vmatmul.msk.bf16.gmra.mxu0 %vm194_vm1, %v5145_v34  ;;  %v1719_v4 = vadd.f32 %v1718_v40, %v1578_v39  ;;  %v2636_v39 = vld [vmem:[#allocation2 + $0x110] sm:$0xff] }
 0x2b4   : > { %4300 = vmatmul.msk.bf16.gmra.mxu2 %vm194_vm1, %v2655_v42  ;;  %2210 = vxpose.xlu0.b32.cont [12/16] (narrow) %v2162_v35, 8  ;;  %v2635_v35 = vld [vmem:[#allocation2 + $0x108] sm:$0xff] }
 0x2b5   : > { %4284 = vmatmul.msk.bf16.gmra.mxu1 %vm194_vm1, %v2655_v42 }
 0x2b6   : > { %v2125_v45 = vpop.f32.mrf.mxu3 }
 0x2b7   : > { %v1903_v44 = vpop.f32.mrf.mxu2 }
 0x2b8   : > { %v1941_v46 = vadd.f32 %v1903_v44, %v1714_v43  ;;  %v1580_v47 = vpop.f32.mrf.mxu0  ;;  %v2306_v43 = vld [vmem:[#allocation2 + $0x109] sm:$0xff]  ;;  %v2307_v44 = vld [vmem:[#allocation2 + $0x111] sm:$0xff] }
 0x2ba   : > { %v2163_v38 = vadd.f32 %v2125_v45, %v1941_v46  ;;  %v1720_v50 = vpop.f32.mrf.mxu1 }
 0x2bb   : > { %v1721_v13 = vadd.f32 %v1720_v50, %v1580_v47  ;;  %v5169_v47 = vpack.c.bf16 %v2307_v44, %v2306_v43 }
 0x2bc   : > { %2211 = vxpose.xlu0.b32.cont [13/16] (narrow) %v2163_v38, 8  ;;  %v2658_v38 = vpack.c.bf16 %v2636_v39, %v2635_v35 }
 0x2be   : > { %v2127_v37 = vpop.f32.mrf.mxu3 }
 0x2bf   : > { %v1905_v57 = vpop.f32.mrf.mxu2 }
 0x2c0   : > { %v1942_v58 = vadd.f32 %v1905_v57, %v1716_v54  ;;  %v2396_v2 = vpop.f32.mrf.mxu0 }
 0x2c2   : > { %v2164_v63 = vadd.f32 %v2127_v37, %v1942_v58  ;;  %v2536_v3 = vpop.f32.mrf.mxu1 }
 0x2c3   : > { %4318 = vmatmul.msk.bf16.gmra.mxu3 %vm194_vm1, %v5018_v60  ;;  %4269 = vmatmul.msk.bf16.gmra.mxu0 %vm194_vm1, %v5153_v61  ;;  %v2537_v28 = vadd.f32 %v2536_v3, %v2396_v2  ;;  %v2638_v2 = vld [vmem:[#allocation2 + $0x128] sm:$0xff] }
 0x2c4   : > { %4301 = vmatmul.msk.bf16.gmra.mxu2 %vm194_vm1, %v2656_v62  ;;  %2212 = vxpose.xlu0.b32.cont [14/16] (narrow) %v2164_v63, 8  ;;  %v2637_v63 = vld [vmem:[#allocation2 + $0x120] sm:$0xff] }
 0x2c5   : > { %4285 = vmatmul.msk.bf16.gmra.mxu1 %vm194_vm1, %v2656_v62 }
 0x2c6   : > { %v2130_v5 = vpop.f32.mrf.mxu3 }
 0x2c7   : > { %v1908_v26 = vpop.f32.mrf.mxu2 }
 0x2c8   : > { %v1943_v6 = vadd.f32 %v1908_v26, %v1719_v4  ;;  %v2398_v8 = vpop.f32.mrf.mxu0  ;;  %v2308_v4 = vld [vmem:[#allocation2 + $0x121] sm:$0xff]  ;;  %v2309_v26 = vld [vmem:[#allocation2 + $0x129] sm:$0xff] }
 0x2ca   : > { %v2165_v59 = vadd.f32 %v2130_v5, %v1943_v6  ;;  %v2538_v9 = vpop.f32.mrf.mxu1 }
 0x2cb   : > { %v2539_v40 = vadd.f32 %v2538_v9, %v2398_v8  ;;  %v5177_v8 = vpack.c.bf16 %v2309_v26, %v2308_v4 }
 0x2cc   : > { %2213 = vxpose.xlu0.b32.cont [15/16] (narrow) %v2165_v59, 8  ;;  %v2659_v59 = vpack.c.bf16 %v2638_v2, %v2637_v63 }
 0x2ce   : > { %v2132_v60 = vpop.f32.mrf.mxu3 }
 0x2cf   : > { %v1910_v19 = vpop.f32.mrf.mxu2 }
 0x2d0   : > { %v1944_v20 = vadd.f32 %v1910_v19, %v1721_v13  ;;  %v2401_v25 = vpop.f32.mrf.mxu0 }
 0x2d2   : > { %v2166_v23 = vadd.f32 %v2132_v60, %v1944_v20  ;;  %v2541_v27 = vpop.f32.mrf.mxu1 }
 0x2d3   : > { %4319 = vmatmul.msk.bf16.gmra.mxu3 %vm194_vm1, %v5026_v17  ;;  %4270 = vmatmul.msk.bf16.gmra.mxu0 %vm194_vm1, %v5161_v21  ;;  %v2542_v54 = vadd.f32 %v2541_v27, %v2401_v25  ;;  %v2640_v25 = vld [vmem:[#allocation2 + $0x140] sm:$0xff] }
 0x2d4   : > { %4302 = vmatmul.msk.bf16.gmra.mxu2 %vm194_vm1, %v2657_v16  ;;  %2214 = vxpose.xlu0.b32.end [16/16] (narrow) %v2166_v23, 8  ;;  %v2639_v23 = vld [vmem:[#allocation2 + $0x138] sm:$0xff] }
 0x2d5   : > { %4286 = vmatmul.msk.bf16.gmra.mxu1 %vm194_vm1, %v2657_v16 }
 0x2d6   : > { %v2949_v30 = vpop.f32.mrf.mxu3 }
 0x2d7   : > { %v2727_v29 = vpop.f32.mrf.mxu2 }
 0x2d8   : > { %v2807_v32 = vadd.f32 %v2727_v29, %v2537_v28  ;;  %v2403_v33 = vpop.f32.mrf.mxu0  ;;  %v2310_v28 = vld [vmem:[#allocation2 + $0x139] sm:$0xff]  ;;  %v2311_v29 = vld [vmem:[#allocation2 + $0x141] sm:$0xff] }
 0x2da   : > { %v3029_v14 = vadd.f32 %v2949_v30, %v2807_v32  ;;  %v2543_v42 = vpop.f32.mrf.mxu1 }
 0x2db   : > { %v2544_v3 = vadd.f32 %v2543_v42, %v2403_v33  ;;  %v5185_v33 = vpack.c.bf16 %v2311_v29, %v2310_v28 }
 0x2dc   : > { %3061 = vxpose.xlu1.b32.start [1/16] (narrow) %v3029_v14, 8  ;;  %v2660_v14 = vpack.c.bf16 %v2640_v25, %v2639_v23 }
 0x2de   : > { %v2951_v17 = vpop.f32.mrf.mxu3 }
 0x2df   : > { %v2729_v45 = vpop.f32.mrf.mxu2 }
 0x2e0   : > { %v2808_v46 = vadd.f32 %v2729_v45, %v2539_v40  ;;  %v2406_v52 = vpop.f32.mrf.mxu0 }
 0x2e2   : > { %v3030_v50 = vadd.f32 %v2951_v17, %v2808_v46  ;;  %v2546_v53 = vpop.f32.mrf.mxu1 }
 0x2e3   : > { %4320 = vmatmul.msk.bf16.gmra.mxu3 %vm194_vm1, %v5034_v41  ;;  %4271 = vmatmul.msk.bf16.gmra.mxu0 %vm194_vm1, %v5169_v47  ;;  %v2547_v13 = vadd.f32 %v2546_v53, %v2406_v52  ;;  %v2642_v52 = vld [vmem:[#allocation2 + $0x158] sm:$0xff] }
 0x2e4   : > { %4303 = vmatmul.msk.bf16.gmra.mxu2 %vm194_vm1, %v2658_v38  ;;  %3062 = vxpose.xlu1.b32.cont [2/16] (narrow) %v3030_v50, 8  ;;  %v2641_v50 = vld [vmem:[#allocation2 + $0x150] sm:$0xff] }
 0x2e5   : > { %4287 = vmatmul.msk.bf16.gmra.mxu1 %vm194_vm1, %v2658_v38 }
 0x2e6   : > { %v2954_v56 = vpop.f32.mrf.mxu3 }
 0x2e7   : > { %v2732_v55 = vpop.f32.mrf.mxu2 }
 0x2e8   : > { %v2809_v57 = vadd.f32 %v2732_v55, %v2542_v54  ;;  %v2408_v58 = vpop.f32.mrf.mxu0  ;;  %v2312_v54 = vld [vmem:[#allocation2 + $0x151] sm:$0xff]  ;;  %v2313_v55 = vld [vmem:[#allocation2 + $0x159] sm:$0xff] }
 0x2ea   : > { %v3031_v37 = vadd.f32 %v2954_v56, %v2809_v57  ;;  %v2548_v62 = vpop.f32.mrf.mxu1 }
 0x2eb   : > { %v2549_v27 = vadd.f32 %v2548_v62, %v2408_v58  ;;  %v5193_v58 = vpack.c.bf16 %v2313_v55, %v2312_v54 }
 0x2ec   : > { %3063 = vxpose.xlu1.b32.cont [3/16] (narrow) %v3031_v37, 8  ;;  %v2661_v37 = vpack.c.bf16 %v2642_v52, %v2641_v50 }
 0x2ee   : > { %v2956_v41 = vpop.f32.mrf.mxu3 }
 0x2ef   : > { %v2734_v5 = vpop.f32.mrf.mxu2 }
 0x2f0   : > { %v2810_v6 = vadd.f32 %v2734_v5, %v2544_v3  ;;  %v2411_v31 = vpop.f32.mrf.mxu0 }
 0x2f2   : > { %v3032_v9 = vadd.f32 %v2956_v41, %v2810_v6  ;;  %v2551_v12 = vpop.f32.mrf.mxu1 }
 0x2f3   : > { %4321 = vmatmul.msk.bf16.gmra.mxu3 %vm194_vm1, %v5042_v1  ;;  %4272 = vmatmul.msk.bf16.gmra.mxu0 %vm194_vm1, %v5177_v8  ;;  %v2552_v40 = vadd.f32 %v2551_v12, %v2411_v31  ;;  %v2644_v31 = vld [vmem:[#allocation2 + $0x170] sm:$0xff] }
 0x2f4   : > { %4304 = vmatmul.msk.bf16.gmra.mxu2 %vm194_vm1, %v2659_v59  ;;  %3064 = vxpose.xlu1.b32.cont [4/16] (narrow) %v3032_v9, 8  ;;  %v2643_v9 = vld [vmem:[#allocation2 + $0x168] sm:$0xff] }
 0x2f5   : > { %4288 = vmatmul.msk.bf16.gmra.mxu1 %vm194_vm1, %v2659_v59 }
 0x2f6   : > { %v2959_v18 = vpop.f32.mrf.mxu3 }
 0x2f7   : > { %v2737_v15 = vpop.f32.mrf.mxu2 }
 0x2f8   : > { %v2811_v19 = vadd.f32 %v2737_v15, %v2547_v13  ;;  %v2413_v20 = vpop.f32.mrf.mxu0  ;;  %v2314_v13 = vld [vmem:[#allocation2 + $0x169] sm:$0xff]  ;;  %v2315_v15 = vld [vmem:[#allocation2 + $0x171] sm:$0xff] }
 0x2fa   : > { %v3033_v60 = vadd.f32 %v2959_v18, %v2811_v19  ;;  %v2553_v16 = vpop.f32.mrf.mxu1 }
 0x2fb   : > { %v2554_v53 = vadd.f32 %v2553_v16, %v2413_v20  ;;  %v5201_v20 = vpack.c.bf16 %v2315_v15, %v2314_v13 }
 0x2fc   : > { %3065 = vxpose.xlu1.b32.cont [5/16] (narrow) %v3033_v60, 8  ;;  %v2662_v60 = vpack.c.bf16 %v2644_v31, %v2643_v9 }
 0x2fe   : > { %v2961_v1 = vpop.f32.mrf.mxu3 }
 0x2ff   : > { %v2739_v30 = vpop.f32.mrf.mxu2 }
 0x300   : > { %v2812_v32 = vadd.f32 %v2739_v30, %v2549_v27  ;;  %v2416_v35 = vpop.f32.mrf.mxu0 }
 0x302   : > { %v3034_v42 = vadd.f32 %v2961_v1, %v2812_v32  ;;  %v2556_v39 = vpop.f32.mrf.mxu1 }
 0x303   : > { %4322 = vmatmul.msk.bf16.gmra.mxu3 %vm194_vm1, %v5050_v22  ;;  %4273 = vmatmul.msk.bf16.gmra.mxu0 %vm194_vm1, %v5185_v33  ;;  %v2557_v3 = vadd.f32 %v2556_v39, %v2416_v35  ;;  %v2646_v35 = vld [vmem:[#allocation2 + $0x188] sm:$0xff] }
 0x304   : > { %4305 = vmatmul.msk.bf16.gmra.mxu2 %vm194_vm1, %v2660_v14  ;;  %3066 = vxpose.xlu1.b32.cont [6/16] (narrow) %v3034_v42, 8  ;;  %v2645_v42 = vld [vmem:[#allocation2 + $0x180] sm:$0xff] }
 0x305   : > { %4289 = vmatmul.msk.bf16.gmra.mxu1 %vm194_vm1, %v2660_v14 }
 0x306   : > { %v2964_v44 = vpop.f32.mrf.mxu3 }
 0x307   : > { %v2742_v43 = vpop.f32.mrf.mxu2 }
 0x308   : > { %v2813_v45 = vadd.f32 %v2742_v43, %v2552_v40  ;;  %v2418_v46 = vpop.f32.mrf.mxu0  ;;  %v2316_v40 = vld [vmem:[#allocation2 + $0x181] sm:$0xff]  ;;  %v2317_v43 = vld [vmem:[#allocation2 + $0x189] sm:$0xff] }
 0x30a   : > { %v3035_v17 = vadd.f32 %v2964_v44, %v2813_v45  ;;  %v2558_v38 = vpop.f32.mrf.mxu1 }
 0x30b   : > { %v2559_v12 = vadd.f32 %v2558_v38, %v2418_v46  ;;  %v5209_v46 = vpack.c.bf16 %v2317_v43, %v2316_v40 }
 0x30c   : > { %3067 = vxpose.xlu1.b32.cont [7/16] (narrow) %v3035_v17, 8  ;;  %v2663_v17 = vpack.c.bf16 %v2646_v35, %v2645_v42  ;;  %v3132_v35 = vld [vmem:[#allocation2 + $0x31] sm:$0xff] }
 0x30e   : > { %v2966_v22 = vpop.f32.mrf.mxu3 }
 0x30f   : > { %v2744_v56 = vpop.f32.mrf.mxu2 }
 0x310   : > { %v2814_v57 = vadd.f32 %v2744_v56, %v2554_v53  ;;  %v2421_v63 = vpop.f32.mrf.mxu0 }
 0x312   : > { %v3036_v62 = vadd.f32 %v2966_v22, %v2814_v57  ;;  %v2561_v2 = vpop.f32.mrf.mxu1 }
 0x313   : > { %4323 = vmatmul.msk.bf16.gmra.mxu3 %vm194_vm1, %v5058_v48  ;;  %4274 = vmatmul.msk.bf16.gmra.mxu0 %vm194_vm1, %v5193_v58  ;;  %v2562_v27 = vadd.f32 %v2561_v2, %v2421_v63  ;;  %v2648_v63 = vld [vmem:[#allocation2 + $0x1a0] sm:$0xff] }
 0x314   : > { %4306 = vmatmul.msk.bf16.gmra.mxu2 %vm194_vm1, %v2661_v37  ;;  %3068 = vxpose.xlu1.b32.cont [8/16] (narrow) %v3036_v62, 8  ;;  %v2647_v62 = vld [vmem:[#allocation2 + $0x198] sm:$0xff] }
 0x315   : > { %4290 = vmatmul.msk.bf16.gmra.mxu1 %vm194_vm1, %v2661_v37  ;;  %v2869_v2 = vld [vmem:[#allocation2 + $0x199] sm:$0xff]  ;;  %v2664_v31 = vpack.c.bf16 %v2648_v63, %v2647_v62 }
 0x316   : > { %v2969_v26 = vpop.f32.mrf.mxu3 }
 0x317   : > { %v2747_v4 = vpop.f32.mrf.mxu2 }
 0x318   : > { %v2815_v5 = vadd.f32 %v2747_v4, %v2557_v3  ;;  %v2423_v6 = vpop.f32.mrf.mxu0  ;;  %v2870_v3 = vld [vmem:[#allocation2 + $0x1a1] sm:$0xff] }
 0x31a   : > { %v3037_v41 = vadd.f32 %v2969_v26, %v2815_v5  ;;  %v2563_v59 = vpop.f32.mrf.mxu1  ;;  %v3180_v26 = vld [vmem:[#allocation2 + $0x1a] sm:$0xff] }
 0x31b   : > { %v2564_v39 = vadd.f32 %v2563_v59, %v2423_v6  ;;  %v3130_v6 = vld [vmem:[#allocation2 + $0x19] sm:$0xff]  ;;  %v3131_v59 = vld [vmem:[#allocation2 + $0x21] sm:$0xff] }
 0x31c   : > { %3069 = vxpose.xlu1.b32.cont [9/16] (narrow) %v3037_v41, 8 }
 0x31e   : > { %v2971_v48 = vpop.f32.mrf.mxu3 }
 0x31f   : > { %v2749_v18 = vpop.f32.mrf.mxu2 }
 0x320   : > { %v2816_v19 = vadd.f32 %v2749_v18, %v2559_v12  ;;  %v2426_v23 = vpop.f32.mrf.mxu0  ;;  %v5217_v12 = vpack.c.bf16 %v2870_v3, %v2869_v2  ;;  %v3135_v2 = vld [vmem:[#allocation2 + $0x51] sm:$0xff] }
 0x322   : > { %v3038_v16 = vadd.f32 %v2971_v48, %v2816_v19  ;;  %v2566_v25 = vpop.f32.mrf.mxu1  ;;  %v3162_v48 = vpack.c.bf16 %v3131_v59, %v3130_v6 }
 0x323   : > { %4324 = vmatmul.msk.bf16.gmra.mxu3 %vm194_vm1, %v5066_v7  ;;  %4275 = vmatmul.msk.bf16.gmra.mxu0 %vm194_vm1, %v5201_v20  ;;  %v2567_v53 = vadd.f32 %v2566_v25, %v2426_v23 }
 0x324   : > { %4307 = vmatmul.msk.bf16.gmra.mxu2 %vm194_vm1, %v2662_v60  ;;  %3070 = vxpose.xlu1.b32.cont [10/16] (narrow) %v3038_v16, 8 }
 0x325   : > { %4291 = vmatmul.msk.bf16.gmra.mxu1 %vm194_vm1, %v2662_v60 }
 0x326   : > { %v2974_v29 = vpop.f32.mrf.mxu3 }
 0x327   : > { %v2752_v28 = vpop.f32.mrf.mxu2 }
 0x328   : > { %v2817_v30 = vadd.f32 %v2752_v28, %v2562_v27  ;;  %v2428_v32 = vpop.f32.mrf.mxu0 }
 0x32a   : > { %v3039_v1 = vadd.f32 %v2974_v29, %v2817_v30  ;;  %v2568_v14 = vpop.f32.mrf.mxu1  ;;  %v3732_v30 = vld [vmem:[#allocation2 + $0x32] sm:$0xff] }
 0x32b   : > { %v2569_v4 = vadd.f32 %v2568_v14, %v2428_v32 }
 0x32c   : > { %3071 = vxpose.xlu1.b32.cont [11/16] (narrow) %v3039_v1, 8  ;;  %v3733_v1 = vld [vmem:[#allocation2 + $0x3a] sm:$0xff] }
 0x32d   : > { %v3764_v43 = vpack.c.bf16 %v3733_v1, %v3732_v30 }
 0x32e   : > { %v2976_v7 = vpop.f32.mrf.mxu3 }
 0x32f   : > { %v2754_v44 = vpop.f32.mrf.mxu2 }
 0x330   : > { %v2818_v45 = vadd.f32 %v2754_v44, %v2564_v39  ;;  %v2431_v50 = vpop.f32.mrf.mxu0  ;;  %v3133_v39 = vld [vmem:[#allocation2 + $0x39] sm:$0xff] }
 0x332   : > { %v3040_v38 = vadd.f32 %v2976_v7, %v2818_v45  ;;  %v2571_v52 = vpop.f32.mrf.mxu1  ;;  %v3163_v45 = vpack.c.bf16 %v3133_v39, %v3132_v35 }
 0x333   : > { %4325 = vmatmul.msk.bf16.gmra.mxu3 %vm194_vm1, %v5090_v49  ;;  %4276 = vmatmul.msk.bf16.gmra.mxu0 %vm194_vm1, %v5209_v46  ;;  %v3181_v49 = vld [vmem:[#allocation2 + $0x22] sm:$0xff]  ;;  %v2572_v60 = vadd.f32 %v2571_v52, %v2431_v50 }
 0x334   : > { %4308 = vmatmul.msk.bf16.gmra.mxu2 %vm194_vm1, %v2663_v17  ;;  %3072 = vxpose.xlu1.b32.cont [12/16] (narrow) %v3040_v38, 8  ;;  %v3212_v13 = vpack.c.bf16 %v3181_v49, %v3180_v26 }
 0x335   : > { %4292 = vmatmul.msk.bf16.gmra.mxu1 %vm194_vm1, %v2663_v17 }
 0x336   : > { %v2979_v55 = vpop.f32.mrf.mxu3 }
 0x337   : > { %v2757_v54 = vpop.f32.mrf.mxu2 }
 0x338   : > { %v2819_v56 = vadd.f32 %v2757_v54, %v2567_v53  ;;  %v2433_v57 = vpop.f32.mrf.mxu0 }
 0x33a   : > { %v3041_v22 = vadd.f32 %v2979_v55, %v2819_v56  ;;  %v2573_v37 = vpop.f32.mrf.mxu1 }
 0x33b   : > { %v2574_v32 = vadd.f32 %v2573_v37, %v2433_v57  ;;  %v3735_v57 = vld [vmem:[#allocation2 + $0x52] sm:$0xff] }
 0x33c   : > { %3073 = vxpose.xlu1.b32.cont [13/16] (narrow) %v3041_v22, 8  ;;  %v3734_v22 = vld [vmem:[#allocation2 + $0x4a] sm:$0xff] }
 0x33e   : > { %v2981_v41 = vpop.f32.mrf.mxu3 }
 0x33f   : > { %v2759_v5 = vpop.f32.mrf.mxu2 }
 0x340   : > { %v2820_v9 = vadd.f32 %v2759_v5, %v2569_v4  ;;  %v2436_v18 = vpop.f32.mrf.mxu0  ;;  %v3765_v4 = vpack.c.bf16 %v3735_v57, %v3734_v22 }
 0x342   : > { %v3042_v15 = vadd.f32 %v2981_v41, %v2820_v9  ;;  %v2576_v19 = vpop.f32.mrf.mxu1 }
 0x343   : > { %4326 = vmatmul.msk.bf16.gmra.mxu3 %vm194_vm1, %v5217_v12  ;;  %4331 = vmatmul.msk.bf16.vlgmr.msrb.gmra.mxu0 %vm194_vm1, %v3212_v13  ;;  %v2577_v38 = vadd.f32 %v2576_v19, %v2436_v18  ;;  %v3737_v19 = vld [vmem:[#allocation2 + $0x6a] sm:$0xff] }
 0x344   : > { %4309 = vmatmul.msk.bf16.gmra.mxu2 %vm194_vm1, %v2664_v31  ;;  %3074 = vxpose.xlu1.b32.cont [14/16] (narrow) %v3042_v15, 8 }
 0x345   : > { %4347 = vmatmul.msk.bf16.vlgmr.msrb.gmra.mxu1 %vm194_vm1, %v3162_v48  ;;  %v3736_v48 = vld [vmem:[#allocation2 + $0x62] sm:$0xff] }
 0x346   : > { %v2984_v23 = vpop.f32.mrf.mxu3 }
 0x347   : > { %v2762_v16 = vpop.f32.mrf.mxu2 }
 0x348   : > { %v2821_v25 = vadd.f32 %v2762_v16, %v2572_v60  ;;  %v2438_v28 = vpop.f32.mrf.mxu0 }
 0x34a   : > { %v3043_v27 = vadd.f32 %v2984_v23, %v2821_v25  ;;  %v2578_v29 = vpop.f32.mrf.mxu1  ;;  %v3137_v25 = vld [vmem:[#allocation2 + $0x69] sm:$0xff] }
 0x34b   : > { %v2579_v37 = vadd.f32 %v2578_v29, %v2438_v28  ;;  %v3766_v28 = vpack.c.bf16 %v3737_v19, %v3736_v48 }
 0x34c   : > { %3075 = vxpose.xlu1.b32.cont [15/16] (narrow) %v3043_v27, 8 }
 0x34e   : > { %v2986_v42 = vpop.f32.mrf.mxu3 }
 0x34f   : > { %v2764_v14 = vpop.f32.mrf.mxu2 }
 0x350   : > { %v2822_v40 = vadd.f32 %v2764_v14, %v2574_v32  ;;  %v2441_v7 = vpop.f32.mrf.mxu0 }
 0x352   : > { %v3044_v44 = vadd.f32 %v2986_v42, %v2822_v40  ;;  %v2581_v17 = vpop.f32.mrf.mxu1 }
 0x353   : > { %4381 = vmatmul.msk.bf16.vlgmr.msrb.gmra.mxu3 %vm194_vm1, %v3764_v43  ;;  %4332 = vmatmul.msk.bf16.gmra.mxu0 %vm194_vm1, %v3764_v43  ;;  %v2582_v6 = vadd.f32 %v2581_v17, %v2441_v7  ;;  %v3738_v7 = vld [vmem:[#allocation2 + $0x7a] sm:$0xff] }
 0x354   : > { %4364 = vmatmul.msk.bf16.vlgmr.msrb.gmra.mxu2 %vm194_vm1, %v5097_v11  ;;  %3076 = vxpose.xlu1.b32.end [16/16] (narrow) %v3044_v44, 8  ;;  %v3134_v11 = vld [vmem:[#allocation2 + $0x49] sm:$0xff] }
 0x355   : > { %4348 = vmatmul.msk.bf16.gmra.mxu1 %vm194_vm1, %v3163_v45  ;;  %v3164_v5 = vpack.c.bf16 %v3135_v2, %v3134_v11  ;;  %v3739_v45 = vld [vmem:[#allocation2 + $0x82] sm:$0xff] }
 0x356   : > { %v2989_v52 = vpop.f32.mrf.mxu3 }
 0x357   : > { %v2767_v50 = vpop.f32.mrf.mxu2 }
 0x358   : > { %v2823_v53 = vadd.f32 %v2767_v50, %v2577_v38  ;;  %v2443_v55 = vpop.f32.mrf.mxu0 }
 0x35a   : > { %v3045_v54 = vadd.f32 %v2989_v52, %v2823_v53  ;;  %v2583_v56 = vpop.f32.mrf.mxu1  ;;  %v3139_v52 = vld [vmem:[#allocation2 + $0x81] sm:$0xff] }
 0x35b   : > { %v2584_v60 = vadd.f32 %v2583_v56, %v2443_v55 }
 0x35c   : > { %3093 = vxpose.xlu2.b32.start [1/16] (narrow) %v3045_v54, 8  ;;  %v3767_v54 = vpack.c.bf16 %v3739_v45, %v3738_v7 }
 0x35e   : > { %v2991_v63 = vpop.f32.mrf.mxu3 }
 0x35f   : > { %v2769_v62 = vpop.f32.mrf.mxu2 }
 0x360   : > { %v2824_v3 = vadd.f32 %v2769_v62, %v2579_v37  ;;  %v2446_v49 = vpop.f32.mrf.mxu0 }
 0x362   : > { %v3046_v26 = vadd.f32 %v2991_v63, %v2824_v3  ;;  %v2586_v41 = vpop.f32.mrf.mxu1 }
 0x363   : > { %4382 = vmatmul.msk.bf16.gmra.mxu3 %vm194_vm1, %v3765_v4  ;;  %4333 = vmatmul.msk.bf16.gmra.mxu0 %vm194_vm1, %v3765_v4  ;;  %v2587_v14 = vadd.f32 %v2586_v41, %v2446_v49  ;;  %v3741_v49 = vld [vmem:[#allocation2 + $0x9a] sm:$0xff] }
 0x364   : > { %4365 = vmatmul.msk.bf16.gmra.mxu2 %vm194_vm1, %v5105_v36  ;;  %3094 = vxpose.xlu2.b32.cont [2/16] (narrow) %v3046_v26, 8  ;;  %v3136_v36 = vld [vmem:[#allocation2 + $0x61] sm:$0xff]  ;;  %v3740_v26 = vld [vmem:[#allocation2 + $0x92] sm:$0xff] }
 0x365   : > { %4349 = vmatmul.msk.bf16.gmra.mxu1 %vm194_vm1, %v3164_v5  ;;  %v3165_v1 = vpack.c.bf16 %v3137_v25, %v3136_v36 }
 0x366   : > { %v2994_v9 = vpop.f32.mrf.mxu3 }
 0x367   : > { %v2772_v59 = vpop.f32.mrf.mxu2 }
 0x368   : > { %v2825_v31 = vadd.f32 %v2772_v59, %v2582_v6  ;;  %v2448_v15 = vpop.f32.mrf.mxu0  ;;  %v3141_v59 = vld [vmem:[#allocation2 + $0x99] sm:$0xff] }
 0x36a   : > { %v3047_v13 = vadd.f32 %v2994_v9, %v2825_v31  ;;  %v2588_v18 = vpop.f32.mrf.mxu1  ;;  %v3768_v31 = vpack.c.bf16 %v3741_v49, %v3740_v26 }
 0x36b   : > { %v2589_v17 = vadd.f32 %v2588_v18, %v2448_v15 }
 0x36c   : > { %3095 = vxpose.xlu2.b32.cont [3/16] (narrow) %v3047_v13, 8 }
 0x36e   : > { %v2996_v23 = vpop.f32.mrf.mxu3 }
 0x36f   : > { %v2774_v16 = vpop.f32.mrf.mxu2 }
 0x370   : > { %v2826_v27 = vadd.f32 %v2774_v16, %v2584_v60  ;;  %v2451_v30 = vpop.f32.mrf.mxu0 }
 0x372   : > { %v3048_v29 = vadd.f32 %v2996_v23, %v2826_v27  ;;  %v2591_v32 = vpop.f32.mrf.mxu1 }
 0x373   : > { %4383 = vmatmul.msk.bf16.gmra.mxu3 %vm194_vm1, %v3766_v28  ;;  %4334 = vmatmul.msk.bf16.gmra.mxu0 %vm194_vm1, %v3766_v28  ;;  %v2592_v37 = vadd.f32 %v2591_v32, %v2451_v30  ;;  %v3742_v28 = vld [vmem:[#allocation2 + $0xaa] sm:$0xff] }
 0x374   : > { %4366 = vmatmul.msk.bf16.gmra.mxu2 %vm194_vm1, %v5113_v0  ;;  %3096 = vxpose.xlu2.b32.cont [4/16] (narrow) %v3048_v29, 8  ;;  %v3138_v0 = vld [vmem:[#allocation2 + $0x79] sm:$0xff] }
 0x375   : > { %4350 = vmatmul.msk.bf16.gmra.mxu1 %vm194_vm1, %v3165_v1  ;;  %v3166_v22 = vpack.c.bf16 %v3139_v52, %v3138_v0  ;;  %v3743_v29 = vld [vmem:[#allocation2 + $0xb2] sm:$0xff] }
 0x376   : > { %v2999_v35 = vpop.f32.mrf.mxu3 }
 0x377   : > { %v2777_v42 = vpop.f32.mrf.mxu2 }
 0x378   : > { %v2827_v39 = vadd.f32 %v2777_v42, %v2587_v14  ;;  %v2453_v43 = vpop.f32.mrf.mxu0  ;;  %v3143_v14 = vld [vmem:[#allocation2 + $0xb1] sm:$0xff] }
 0x37a   : > { %v3049_v40 = vadd.f32 %v2999_v35, %v2827_v39  ;;  %v2593_v44 = vpop.f32.mrf.mxu1  ;;  %v3769_v35 = vpack.c.bf16 %v3743_v29, %v3742_v28 }
 0x37b   : > { %v2594_v5 = vadd.f32 %v2593_v44, %v2453_v43 }
 0x37c   : > { %3097 = vxpose.xlu2.b32.cont [5/16] (narrow) %v3049_v40, 8 }
 0x37e   : > { %v3001_v50 = vpop.f32.mrf.mxu3 }
 0x37f   : > { %v2779_v38 = vpop.f32.mrf.mxu2 }
 0x380   : > { %v2828_v53 = vadd.f32 %v2779_v38, %v2589_v17  ;;  %v2456_v56 = vpop.f32.mrf.mxu0 }
 0x382   : > { %v3050_v55 = vadd.f32 %v3001_v50, %v2828_v53  ;;  %v2596_v57 = vpop.f32.mrf.mxu1  ;;  %v3744_v53 = vld [vmem:[#allocation2 + $0xc2] sm:$0xff] }
 0x383   : > { %4384 = vmatmul.msk.bf16.gmra.mxu3 %vm194_vm1, %v3767_v54  ;;  %4335 = vmatmul.msk.bf16.gmra.mxu0 %vm194_vm1, %v3767_v54  ;;  %v2597_v19 = vadd.f32 %v2596_v57, %v2456_v56  ;;  %v3745_v54 = vld [vmem:[#allocation2 + $0xca] sm:$0xff] }
 0x384   : > { %4367 = vmatmul.msk.bf16.gmra.mxu2 %vm194_vm1, %v5121_v24  ;;  %3098 = vxpose.xlu2.b32.cont [6/16] (narrow) %v3050_v55, 8  ;;  %v3140_v24 = vld [vmem:[#allocation2 + $0x91] sm:$0xff]  ;;  %v3145_v57 = vld [vmem:[#allocation2 + $0xc9] sm:$0xff] }
 0x385   : > { %4351 = vmatmul.msk.bf16.gmra.mxu1 %vm194_vm1, %v3166_v22  ;;  %v3167_v18 = vpack.c.bf16 %v3141_v59, %v3140_v24  ;;  %v3746_v59 = vld [vmem:[#allocation2 + $0xda] sm:$0xff] }
 0x386   : > { %v3004_v63 = vpop.f32.mrf.mxu3 }
 0x387   : > { %v2782_v62 = vpop.f32.mrf.mxu2 }
 0x388   : > { %v2829_v11 = vadd.f32 %v2782_v62, %v2592_v37  ;;  %v2458_v3 = vpop.f32.mrf.mxu0  ;;  %v3770_v62 = vpack.c.bf16 %v3745_v54, %v3744_v53 }
 0x38a   : > { %v3051_v2 = vadd.f32 %v3004_v63, %v2829_v11  ;;  %v2598_v4 = vpop.f32.mrf.mxu1 }
 0x38b   : > { %v2599_v30 = vadd.f32 %v2598_v4, %v2458_v3 }
 0x38c   : > { %3099 = vxpose.xlu2.b32.cont [7/16] (narrow) %v3051_v2, 8 }
 0x38e   : > { %v3006_v6 = vpop.f32.mrf.mxu3 }
 0x38f   : > { %v2784_v41 = vpop.f32.mrf.mxu2 }
 0x390   : > { %v2830_v9 = vadd.f32 %v2784_v41, %v2594_v5  ;;  %v2461_v15 = vpop.f32.mrf.mxu0 }
 0x392   : > { %v3052_v13 = vadd.f32 %v3006_v6, %v2830_v9  ;;  %v2601_v48 = vpop.f32.mrf.mxu1  ;;  %v3747_v9 = vld [vmem:[#allocation2 + $0xe2] sm:$0xff] }
 0x393   : > { %4385 = vmatmul.msk.bf16.gmra.mxu3 %vm194_vm1, %v3768_v31  ;;  %4336 = vmatmul.msk.bf16.gmra.mxu0 %vm194_vm1, %v3768_v31  ;;  %v2602_v7 = vadd.f32 %v2601_v48, %v2461_v15 }
 0x394   : > { %4368 = vmatmul.msk.bf16.gmra.mxu2 %vm194_vm1, %v5129_v51  ;;  %3100 = vxpose.xlu2.b32.cont [8/16] (narrow) %v3052_v13, 8  ;;  %v3142_v51 = vld [vmem:[#allocation2 + $0xa9] sm:$0xff] }
 0x395   : > { %4352 = vmatmul.msk.bf16.gmra.mxu1 %vm194_vm1, %v3167_v18  ;;  %v3168_v43 = vpack.c.bf16 %v3143_v14, %v3142_v51  ;;  %v3147_v18 = vld [vmem:[#allocation2 + $0xe1] sm:$0xff]  ;;  %v3748_v51 = vld [vmem:[#allocation2 + $0xf2] sm:$0xff] }
 0x396   : > { %v3009_v16 = vpop.f32.mrf.mxu3  ;;  %v3749_v14 = vld [vmem:[#allocation2 + $0xfa] sm:$0xff] }
 0x397   : > { %v2787_v60 = vpop.f32.mrf.mxu2 }
 0x398   : > { %v2831_v23 = vadd.f32 %v2787_v60, %v2597_v19  ;;  %v2463_v25 = vpop.f32.mrf.mxu0  ;;  %v3771_v19 = vpack.c.bf16 %v3747_v9, %v3746_v59 }
 0x39a   : > { %v3053_v36 = vadd.f32 %v3009_v16, %v2831_v23  ;;  %v2603_v27 = vpop.f32.mrf.mxu1 }
 0x39b   : > { %v2604_v55 = vadd.f32 %v2603_v27, %v2463_v25 }
 0x39c   : > { %3101 = vxpose.xlu2.b32.cont [9/16] (narrow) %v3053_v36, 8 }
 0x39e   : > { %v3011_v32 = vpop.f32.mrf.mxu3 }
 0x39f   : > { %v2789_v1 = vpop.f32.mrf.mxu2 }
 0x3a0   : > { %v2832_v42 = vadd.f32 %v2789_v1, %v2599_v30  ;;  %v2466_v40 = vpop.f32.mrf.mxu0 }
 0x3a2   : > { %v3054_v39 = vadd.f32 %v3011_v32, %v2832_v42  ;;  %v2606_v44 = vpop.f32.mrf.mxu1 }
 0x3a3   : > { %4386 = vmatmul.msk.bf16.gmra.mxu3 %vm194_vm1, %v3769_v35  ;;  %4337 = vmatmul.msk.bf16.gmra.mxu0 %vm194_vm1, %v3769_v35  ;;  %v2607_v4 = vadd.f32 %v2606_v44, %v2466_v40  ;;  %v3149_v40 = vld [vmem:[#allocation2 + $0xf9] sm:$0xff]  ;;  %v3772_v44 = vpack.c.bf16 %v3749_v14, %v3748_v51 }
 0x3a4   : > { %4369 = vmatmul.msk.bf16.gmra.mxu2 %vm194_vm1, %v5137_v10  ;;  %3102 = vxpose.xlu2.b32.cont [10/16] (narrow) %v3054_v39, 8  ;;  %v3144_v10 = vld [vmem:[#allocation2 + $0xc1] sm:$0xff] }
 0x3a5   : > { %4353 = vmatmul.msk.bf16.gmra.mxu1 %vm194_vm1, %v3168_v43  ;;  %v3169_v2 = vpack.c.bf16 %v3145_v57, %v3144_v10  ;;  %v3751_v10 = vld [vmem:[#allocation2 + $0x112] sm:$0xff] }
 0x3a6   : > { %v3014_v17 = vpop.f32.mrf.mxu3 }
 0x3a7   : > { %v2792_v45 = vpop.f32.mrf.mxu2 }
 0x3a8   : > { %v2833_v38 = vadd.f32 %v2792_v45, %v2602_v7  ;;  %v2468_v0 = vpop.f32.mrf.mxu0 }
 0x3aa   : > { %v3055_v50 = vadd.f32 %v3014_v17, %v2833_v38  ;;  %v2608_v52 = vpop.f32.mrf.mxu1 }
 0x3ab   : > { %v2609_v31 = vadd.f32 %v2608_v52, %v2468_v0 }
 0x3ac   : > { %3103 = vxpose.xlu2.b32.cont [11/16] (narrow) %v3055_v50, 8 }
 0x3ae   : > { %v3016_v22 = vpop.f32.mrf.mxu3 }
 0x3af   : > { %v2794_v56 = vpop.f32.mrf.mxu2 }
 0x3b0   : > { %v2834_v37 = vadd.f32 %v2794_v56, %v2604_v55  ;;  %v2471_v11 = vpop.f32.mrf.mxu0 }
 0x3b2   : > { %v3056_v63 = vadd.f32 %v3016_v22, %v2834_v37  ;;  %v2611_v3 = vpop.f32.mrf.mxu1  ;;  %v3750_v22 = vld [vmem:[#allocation2 + $0x10a] sm:$0xff] }
 0x3b3   : > { %4387 = vmatmul.msk.bf16.gmra.mxu3 %vm194_vm1, %v3770_v62  ;;  %4338 = vmatmul.msk.bf16.gmra.mxu0 %vm194_vm1, %v3770_v62  ;;  %v2612_v25 = vadd.f32 %v2611_v3, %v2471_v11 }
 0x3b4   : > { %4370 = vmatmul.msk.bf16.gmra.mxu2 %vm194_vm1, %v5145_v34  ;;  %3104 = vxpose.xlu2.b32.cont [12/16] (narrow) %v3056_v63, 8  ;;  %v3146_v34 = vld [vmem:[#allocation2 + $0xd9] sm:$0xff]  ;;  %v3151_v63 = vld [vmem:[#allocation2 + $0x111] sm:$0xff] }
 0x3b5   : > { %4354 = vmatmul.msk.bf16.gmra.mxu1 %vm194_vm1, %v3169_v2  ;;  %v3170_v23 = vpack.c.bf16 %v3147_v18, %v3146_v34  ;;  %v3773_v2 = vpack.c.bf16 %v3751_v10, %v3750_v22  ;;  %v3756_v10 = vld [vmem:[#allocation2 + $0x152] sm:$0xff] }
 0x3b6   : > { %v3019_v49 = vpop.f32.mrf.mxu3 }
 0x3b7   : > { %v2797_v26 = vpop.f32.mrf.mxu2 }
 0x3b8   : > { %v2835_v5 = vadd.f32 %v2797_v26, %v2607_v4  ;;  %v2473_v6 = vpop.f32.mrf.mxu0 }
 0x3ba   : > { %v3057_v41 = vadd.f32 %v3019_v49, %v2835_v5  ;;  %v2613_v24 = vpop.f32.mrf.mxu1 }
 0x3bb   : > { %v2614_v42 = vadd.f32 %v2613_v24, %v2473_v6 }
 0x3bc   : > { %3105 = vxpose.xlu2.b32.cont [13/16] (narrow) %v3057_v41, 8 }
 0x3be   : > { %v3021_v15 = vpop.f32.mrf.mxu3 }
 0x3bf   : > { %v2799_v13 = vpop.f32.mrf.mxu2 }
 0x3c0   : > { %v2836_v48 = vadd.f32 %v2799_v13, %v2609_v31  ;;  %v3290_v16 = vpop.f32.mrf.mxu0  ;;  %v3752_v13 = vld [vmem:[#allocation2 + $0x122] sm:$0xff] }
 0x3c2   : > { %v3058_v60 = vadd.f32 %v3021_v15, %v2836_v48  ;;  %v3430_v36 = vpop.f32.mrf.mxu1  ;;  %v3753_v15 = vld [vmem:[#allocation2 + $0x12a] sm:$0xff] }
 0x3c3   : > { %4388 = vmatmul.msk.bf16.gmra.mxu3 %vm194_vm1, %v3771_v19  ;;  %4339 = vmatmul.msk.bf16.gmra.mxu0 %vm194_vm1, %v3771_v19  ;;  %v3431_v50 = vadd.f32 %v3430_v36, %v3290_v16  ;;  %v3153_v19 = vld [vmem:[#allocation2 + $0x129] sm:$0xff]  ;;  %v3774_v16 = vpack.c.bf16 %v3753_v15, %v3752_v13  ;;  %v3759_v15 = vld [vmem:[#allocation2 + $0x172] sm:$0xff] }
 0x3c4   : > { %4371 = vmatmul.msk.bf16.gmra.mxu2 %vm194_vm1, %v5153_v61  ;;  %3106 = vxpose.xlu2.b32.cont [14/16] (narrow) %v3058_v60, 8  ;;  %v3148_v61 = vld [vmem:[#allocation2 + $0xf1] sm:$0xff] }
 0x3c5   : > { %4355 = vmatmul.msk.bf16.gmra.mxu1 %vm194_vm1, %v3170_v23  ;;  %v3171_v17 = vpack.c.bf16 %v3149_v40, %v3148_v61  ;;  %v3758_v13 = vld [vmem:[#allocation2 + $0x16a] sm:$0xff] }
 0x3c6   : > { %v3024_v28 = vpop.f32.mrf.mxu3 }
 0x3c7   : > { %v2802_v27 = vpop.f32.mrf.mxu2 }
 0x3c8   : > { %v2837_v29 = vadd.f32 %v2802_v27, %v2612_v25  ;;  %v3292_v1 = vpop.f32.mrf.mxu0 }
 0x3ca   : > { %v3059_v30 = vadd.f32 %v3024_v28, %v2837_v29  ;;  %v3432_v32 = vpop.f32.mrf.mxu1 }
 0x3cb   : > { %v3433_v57 = vadd.f32 %v3432_v32, %v3292_v1 }
 0x3cc   : > { %3107 = vxpose.xlu2.b32.cont [15/16] (narrow) %v3059_v30, 8 }
 0x3ce   : > { %v3026_v39 = vpop.f32.mrf.mxu3 }
 0x3cf   : > { %v2804_v35 = vpop.f32.mrf.mxu2 }
 0x3d0   : > { %v2838_v43 = vadd.f32 %v2804_v35, %v2614_v42  ;;  %v3295_v45 = vpop.f32.mrf.mxu0  ;;  %v3754_v42 = vld [vmem:[#allocation2 + $0x13a] sm:$0xff]  ;;  %v3755_v35 = vld [vmem:[#allocation2 + $0x142] sm:$0xff] }
 0x3d2   : > { %v3060_v7 = vadd.f32 %v3026_v39, %v2838_v43  ;;  %v3435_v38 = vpop.f32.mrf.mxu1  ;;  %v3155_v43 = vld [vmem:[#allocation2 + $0x141] sm:$0xff] }
 0x3d3   : > { %4389 = vmatmul.msk.bf16.gmra.mxu3 %vm194_vm1, %v3772_v44  ;;  %4340 = vmatmul.msk.bf16.gmra.mxu0 %vm194_vm1, %v3772_v44  ;;  %v3436_v5 = vadd.f32 %v3435_v38, %v3295_v45 }
 0x3d4   : > { %4372 = vmatmul.msk.bf16.gmra.mxu2 %vm194_vm1, %v5161_v21  ;;  %3108 = vxpose.xlu2.b32.end [16/16] (narrow) %v3060_v7, 8  ;;  %v3150_v21 = vld [vmem:[#allocation2 + $0x109] sm:$0xff]  ;;  %v3775_v7 = vpack.c.bf16 %v3755_v35, %v3754_v42 }
 0x3d5   : > { %4356 = vmatmul.msk.bf16.gmra.mxu1 %vm194_vm1, %v3171_v17  ;;  %v3172_v26 = vpack.c.bf16 %v3151_v63, %v3150_v21  ;;  %v3157_v63 = vld [vmem:[#allocation2 + $0x159] sm:$0xff]  ;;  %v3761_v42 = vld [vmem:[#allocation2 + $0x18a] sm:$0xff] }
 0x3d6   : > { %v3842_v52 = vpop.f32.mrf.mxu3 }
 0x3d7   : > { %v3620_v0 = vpop.f32.mrf.mxu2 }
 0x3d8   : > { %v3700_v53 = vadd.f32 %v3620_v0, %v3431_v50  ;;  %v3297_v55 = vpop.f32.mrf.mxu0 }
 0x3da   : > { %v3922_v54 = vadd.f32 %v3842_v52, %v3700_v53  ;;  %v3437_v56 = vpop.f32.mrf.mxu1 }
 0x3db   : > { %v3438_v34 = vadd.f32 %v3437_v56, %v3297_v55 }
 0x3dc   : > { %3954 = vxpose.xlu0.b32.start [1/16] (narrow) %v3922_v54, 8 }
 0x3de   : > { %v3844_v62 = vpop.f32.mrf.mxu3 }
 0x3df   : > { %v3622_v37 = vpop.f32.mrf.mxu2 }
 0x3e0   : > { %v3701_v11 = vadd.f32 %v3622_v37, %v3433_v57  ;;  %v3300_v4 = vpop.f32.mrf.mxu0  ;;  %v3757_v57 = vld [vmem:[#allocation2 + $0x15a] sm:$0xff] }
 0x3e2   : > { %v3923_v3 = vadd.f32 %v3844_v62, %v3701_v11  ;;  %v3440_v49 = vpop.f32.mrf.mxu1 }
 0x3e3   : > { %4390 = vmatmul.msk.bf16.gmra.mxu3 %vm194_vm1, %v3773_v2  ;;  %4341 = vmatmul.msk.bf16.gmra.mxu0 %vm194_vm1, %v3773_v2  ;;  %v3441_v28 = vadd.f32 %v3440_v49, %v3300_v4  ;;  %v3776_v2 = vpack.c.bf16 %v3757_v57, %v3756_v10 }
 0x3e4   : > { %4373 = vmatmul.msk.bf16.gmra.mxu2 %vm194_vm1, %v5169_v47  ;;  %3955 = vxpose.xlu0.b32.cont [2/16] (narrow) %v3923_v3, 8  ;;  %v3152_v47 = vld [vmem:[#allocation2 + $0x121] sm:$0xff] }
 0x3e5   : > { %4357 = vmatmul.msk.bf16.gmra.mxu1 %vm194_vm1, %v3172_v26  ;;  %v3173_v25 = vpack.c.bf16 %v3153_v19, %v3152_v47  ;;  %v3159_v47 = vld [vmem:[#allocation2 + $0x171] sm:$0xff] }
 0x3e6   : > { %v3847_v6 = vpop.f32.mrf.mxu3 }
 0x3e7   : > { %v3625_v41 = vpop.f32.mrf.mxu2 }
 0x3e8   : > { %v3702_v24 = vadd.f32 %v3625_v41, %v3436_v5  ;;  %v3302_v9 = vpop.f32.mrf.mxu0 }
 0x3ea   : > { %v3924_v59 = vadd.f32 %v3847_v6, %v3702_v24  ;;  %v3442_v31 = vpop.f32.mrf.mxu1 }
 0x3eb   : > { %v3443_v39 = vadd.f32 %v3442_v31, %v3302_v9 }
 0x3ec   : > { %3956 = vxpose.xlu0.b32.cont [3/16] (narrow) %v3924_v59, 8 }
 0x3ee   : > { %v3849_v48 = vpop.f32.mrf.mxu3 }
 0x3ef   : > { %v3627_v18 = vpop.f32.mrf.mxu2 }
 0x3f0   : > { %v3703_v60 = vadd.f32 %v3627_v18, %v3438_v34  ;;  %v3305_v36 = vpop.f32.mrf.mxu0 }
 0x3f2   : > { %v3925_v23 = vadd.f32 %v3849_v48, %v3703_v60  ;;  %v3445_v27 = vpop.f32.mrf.mxu1  ;;  %v3777_v60 = vpack.c.bf16 %v3759_v15, %v3758_v13 }
 0x3f3   : > { %4391 = vmatmul.msk.bf16.gmra.mxu3 %vm194_vm1, %v3774_v16  ;;  %4342 = vmatmul.msk.bf16.gmra.mxu0 %vm194_vm1, %v3774_v16  ;;  %v3446_v0 = vadd.f32 %v3445_v27, %v3305_v36 }
 0x3f4   : > { %4374 = vmatmul.msk.bf16.gmra.mxu2 %vm194_vm1, %v5177_v8  ;;  %3957 = vxpose.xlu0.b32.cont [4/16] (narrow) %v3925_v23, 8  ;;  %v3154_v8 = vld [vmem:[#allocation2 + $0x139] sm:$0xff] }
 0x3f5   : > { %4358 = vmatmul.msk.bf16.gmra.mxu1 %vm194_vm1, %v3173_v25  ;;  %v3174_v38 = vpack.c.bf16 %v3155_v43, %v3154_v8 }
 0x3f6   : > { %v3852_v30 = vpop.f32.mrf.mxu3 }
 0x3f7   : > { %v3630_v29 = vpop.f32.mrf.mxu2 }
 0x3f8   : > { %v3704_v1 = vadd.f32 %v3630_v29, %v3441_v28  ;;  %v3307_v51 = vpop.f32.mrf.mxu0 }
 0x3fa   : > { %v3926_v32 = vadd.f32 %v3852_v30, %v3704_v1  ;;  %v3447_v14 = vpop.f32.mrf.mxu1 }
 0x3fb   : > { %v3448_v37 = vadd.f32 %v3447_v14, %v3307_v51  ;;  %v3760_v14 = vld [vmem:[#allocation2 + $0x182] sm:$0xff] }
 0x3fc   : > { %3958 = vxpose.xlu0.b32.cont [5/16] (narrow) %v3926_v32, 8  ;;  %v3778_v43 = vpack.c.bf16 %v3761_v42, %v3760_v14 }
 0x3fe   : > { %v3854_v40 = vpop.f32.mrf.mxu3 }
 0x3ff   : > { %v3632_v61 = vpop.f32.mrf.mxu2 }
 0x400   : > { %v3705_v44 = vadd.f32 %v3632_v61, %v3443_v39  ;;  %v3310_v17 = vpop.f32.mrf.mxu0 }
 0x402   : > { %v3927_v45 = vadd.f32 %v3854_v40, %v3705_v44  ;;  %v3450_v50 = vpop.f32.mrf.mxu1  ;;  %v3161_v40 = vld [vmem:[#allocation2 + $0x189] sm:$0xff] }
 0x403   : > { %4392 = vmatmul.msk.bf16.gmra.mxu3 %vm194_vm1, %v3775_v7  ;;  %4343 = vmatmul.msk.bf16.gmra.mxu0 %vm194_vm1, %v3775_v7  ;;  %v3451_v5 = vadd.f32 %v3450_v50, %v3310_v17 }
 0x404   : > { %4375 = vmatmul.msk.bf16.gmra.mxu2 %vm194_vm1, %v5185_v33  ;;  %3959 = vxpose.xlu0.b32.cont [6/16] (narrow) %v3927_v45, 8  ;;  %v3156_v33 = vld [vmem:[#allocation2 + $0x151] sm:$0xff] }
 0x405   : > { %4359 = vmatmul.msk.bf16.gmra.mxu1 %vm194_vm1, %v3174_v38  ;;  %v3175_v26 = vpack.c.bf16 %v3157_v63, %v3156_v33 }
 0x406   : > { %v3857_v53 = vpop.f32.mrf.mxu3 }
 0x407   : > { %v3635_v52 = vpop.f32.mrf.mxu2 }
 0x408   : > { %v3706_v54 = vadd.f32 %v3635_v52, %v3446_v0  ;;  %v3312_v56 = vpop.f32.mrf.mxu0 }
 0x40a   : > { %v3928_v55 = vadd.f32 %v3857_v53, %v3706_v54  ;;  %v3452_v22 = vpop.f32.mrf.mxu1 }
 0x40b   : > { %v3453_v34 = vadd.f32 %v3452_v22, %v3312_v56  ;;  %v3762_v56 = vld [vmem:[#allocation2 + $0x19a] sm:$0xff]  ;;  %v3763_v22 = vld [vmem:[#allocation2 + $0x1a2] sm:$0xff] }
 0x40c   : > { %3960 = vxpose.xlu0.b32.cont [7/16] (narrow) %v3928_v55, 8 }
 0x40e   : > { %v3859_v21 = vpop.f32.mrf.mxu3 }
 0x40f   : > { %v3637_v62 = vpop.f32.mrf.mxu2 }
 0x410   : > { %v3707_v11 = vadd.f32 %v3637_v62, %v3448_v37  ;;  %v3315_v4 = vpop.f32.mrf.mxu0  ;;  %v3779_v62 = vpack.c.bf16 %v3763_v22, %v3762_v56 }
 0x412   : > { %v3929_v3 = vadd.f32 %v3859_v21, %v3707_v11  ;;  %v3455_v49 = vpop.f32.mrf.mxu1 }
 0x413   : > { %4393 = vmatmul.msk.bf16.gmra.mxu3 %vm194_vm1, %v3776_v2  ;;  %4344 = vmatmul.msk.bf16.gmra.mxu0 %vm194_vm1, %v3776_v2  ;;  %v3456_v27 = vadd.f32 %v3455_v49, %v3315_v4 }
 0x414   : > { %4376 = vmatmul.msk.bf16.gmra.mxu2 %vm194_vm1, %v5193_v58  ;;  %3961 = vxpose.xlu0.b32.cont [8/16] (narrow) %v3929_v3, 8  ;;  %v3158_v58 = vld [vmem:[#allocation2 + $0x169] sm:$0xff] }
 0x415   : > { %4360 = vmatmul.msk.bf16.gmra.mxu1 %vm194_vm1, %v3175_v26  ;;  %v3176_v36 = vpack.c.bf16 %v3159_v47, %v3158_v58 }
 0x416   : > { %v3862_v6 = vpop.f32.mrf.mxu3 }
 0x417   : > { %v3640_v41 = vpop.f32.mrf.mxu2 }
 0x418   : > { %v3708_v24 = vadd.f32 %v3640_v41, %v3451_v5  ;;  %v3317_v9 = vpop.f32.mrf.mxu0 }
 0x41a   : > { %v3930_v59 = vadd.f32 %v3862_v6, %v3708_v24  ;;  %v3457_v31 = vpop.f32.mrf.mxu1 }
 0x41b   : > { %v3458_v35 = vadd.f32 %v3457_v31, %v3317_v9 }
 0x41c   : > { %3962 = vxpose.xlu0.b32.cont [9/16] (narrow) %v3930_v59, 8 }
 0x41e   : > { %v3864_v48 = vpop.f32.mrf.mxu3 }
 0x41f   : > { %v3642_v18 = vpop.f32.mrf.mxu2 }
 0x420   : > { %v3709_v19 = vadd.f32 %v3642_v18, %v3453_v34  ;;  %v3320_v23 = vpop.f32.mrf.mxu0 }
 0x422   : > { %v3931_v16 = vadd.f32 %v3864_v48, %v3709_v19  ;;  %v3460_v25 = vpop.f32.mrf.mxu1 }
 0x423   : > { %4394 = vmatmul.msk.bf16.gmra.mxu3 %vm194_vm1, %v3777_v60  ;;  %4345 = vmatmul.msk.bf16.gmra.mxu0 %vm194_vm1, %v3777_v60  ;;  %v3461_v38 = vadd.f32 %v3460_v25, %v3320_v23 }
 0x424   : > { %4377 = vmatmul.msk.bf16.gmra.mxu2 %vm194_vm1, %v5201_v20  ;;  %3963 = vxpose.xlu0.b32.cont [10/16] (narrow) %v3931_v16, 8  ;;  %v3160_v20 = vld [vmem:[#allocation2 + $0x181] sm:$0xff] }
 0x425   : > { %4361 = vmatmul.msk.bf16.gmra.mxu1 %vm194_vm1, %v3176_v36  ;;  %v3177_v45 = vpack.c.bf16 %v3161_v40, %v3160_v20 }
 0x426   : > { %v3867_v29 = vpop.f32.mrf.mxu3 }
 0x427   : > { %v3645_v28 = vpop.f32.mrf.mxu2 }
 0x428   : > { %v3710_v30 = vadd.f32 %v3645_v28, %v3456_v27  ;;  %v3322_v32 = vpop.f32.mrf.mxu0 }
 0x42a   : > { %v3932_v1 = vadd.f32 %v3867_v29, %v3710_v30  ;;  %v3462_v51 = vpop.f32.mrf.mxu1 }
 0x42b   : > { %v3463_v10 = vadd.f32 %v3462_v51, %v3322_v32 }
 0x42c   : > { %3964 = vxpose.xlu0.b32.cont [11/16] (narrow) %v3932_v1, 8 }
 0x42e   : > { %v3869_v61 = vpop.f32.mrf.mxu3 }
 0x42f   : > { %v3647_v39 = vpop.f32.mrf.mxu2 }
 0x430   : > { %v3711_v8 = vadd.f32 %v3647_v39, %v3458_v35  ;;  %v3325_v7 = vpop.f32.mrf.mxu0 }
 0x432   : > { %v3933_v44 = vadd.f32 %v3869_v61, %v3711_v8  ;;  %v3465_v17 = vpop.f32.mrf.mxu1 }
 0x433   : > { %4395 = vmatmul.msk.bf16.gmra.mxu3 %vm194_vm1, %v3778_v43  ;;  %4346 = vmatmul.msk.bf16.gmra.mxu0 %vm194_vm1, %v3778_v43  ;;  %v3466_v11 = vadd.f32 %v3465_v17, %v3325_v7 }
 0x434   : > { %4378 = vmatmul.msk.bf16.gmra.mxu2 %vm194_vm1, %v5209_v46  ;;  %3965 = vxpose.xlu0.b32.cont [12/16] (narrow) %v3933_v44, 8 }
 0x435   : > { %4362 = vmatmul.msk.bf16.gmra.mxu1 %vm194_vm1, %v3177_v45 }
 0x436   : > { %v3872_v0 = vpop.f32.mrf.mxu3 }
 0x437   : > { %v3650_v50 = vpop.f32.mrf.mxu2 }
 0x438   : > { %v3712_v52 = vadd.f32 %v3650_v50, %v3461_v38  ;;  %v3327_v54 = vpop.f32.mrf.mxu0 }
 0x43a   : > { %v3934_v53 = vadd.f32 %v3872_v0, %v3712_v52  ;;  %v3467_v55 = vpop.f32.mrf.mxu1 }
 0x43b   : > { %v3468_v41 = vadd.f32 %v3467_v55, %v3327_v54 }
 0x43c   : > { %3966 = vxpose.xlu0.b32.cont [13/16] (narrow) %v3934_v53, 8 }
 0x43e   : > { %v3874_v37 = vpop.f32.mrf.mxu3 }
 0x43f   : > { %v3652_v57 = vpop.f32.mrf.mxu2 }
 0x440   : > { %v3713_v46 = vadd.f32 %v3652_v57, %v3463_v10  ;;  %v3330_v33 = vpop.f32.mrf.mxu0 }
 0x442   : > { %v3935_v21 = vadd.f32 %v3874_v37, %v3713_v46  ;;  %v3470_v63 = vpop.f32.mrf.mxu1 }
 0x443   : > { %4396 = vmatmul.msk.bf16.gmra.mxu3 %vm194_vm1, %v3779_v62  ;;  %v3471_v15 = vadd.f32 %v3470_v63, %v3330_v33 }
 0x444   : > { %4379 = vmatmul.msk.bf16.gmra.mxu2 %vm194_vm1, %v5217_v12  ;;  %3967 = vxpose.xlu0.b32.cont [14/16] (narrow) %v3935_v21, 8 }
 0x446   : > { %v3877_v3 = vpop.f32.mrf.mxu3 }
 0x447   : > { %v3655_v2 = vpop.f32.mrf.mxu2 }
 0x448   : > { %v3714_v4 = vadd.f32 %v3655_v2, %v3466_v11  ;;  %v3332_v49 = vpop.f32.mrf.mxu0 }
 0x44a   : > { %v3936_v26 = vadd.f32 %v3877_v3, %v3714_v4  ;;  %v3472_v5 = vpop.f32.mrf.mxu1 }
 0x44b   : > { %v3473_v19 = vadd.f32 %v3472_v5, %v3332_v49 }
 0x44c   : > { %3968 = vxpose.xlu0.b32.cont [15/16] (narrow) %v3936_v26, 8 }
 0x44e   : > { %v3879_v24 = vpop.f32.mrf.mxu3 }
 0x44f   : > { %v3657_v6 = vpop.f32.mrf.mxu2 }
 0x450   : > { %v3715_v59 = vadd.f32 %v3657_v6, %v3468_v41  ;;  %v3335_v31 = vpop.f32.mrf.mxu0 }
 0x452   : > { %v3937_v9 = vadd.f32 %v3879_v24, %v3715_v59  ;;  %v3475_v13 = vpop.f32.mrf.mxu1 }
 0x453   : > { %v3476_v28 = vadd.f32 %v3475_v13, %v3335_v31 }
 0x454   : > { %3969 = vxpose.xlu0.b32.end [16/16] (narrow) %v3937_v9, 8 }
 0x456   : > { %v3882_v34 = vpop.f32.mrf.mxu3 }
 0x457   : > { %v3660_v12 = vpop.f32.mrf.mxu2 }
 0x458   : > { %v3716_v18 = vadd.f32 %v3660_v12, %v3471_v15  ;;  %v3337_v58 = vpop.f32.mrf.mxu0 }
 0x45a   : > { %v3938_v48 = vadd.f32 %v3882_v34, %v3716_v18  ;;  %v3477_v47 = vpop.f32.mrf.mxu1 }
 0x45b   : > { %v3478_v42 = vadd.f32 %v3477_v47, %v3337_v58 }
 0x45c   : > { %3986 = vxpose.xlu1.b32.start [1/16] (narrow) %v3938_v48, 8 }
 0x45e   : > { %v3884_v16 = vpop.f32.mrf.mxu3 }
 0x45f   : > { %v3662_v60 = vpop.f32.mrf.mxu2 }
 0x460   : > { %v3717_v23 = vadd.f32 %v3662_v60, %v3473_v19  ;;  %v3340_v25 = vpop.f32.mrf.mxu0 }
 0x462   : > { %v3939_v36 = vadd.f32 %v3884_v16, %v3717_v23  ;;  %v3480_v27 = vpop.f32.mrf.mxu1 }
 0x463   : > { %v3481_v43 = vadd.f32 %v3480_v27, %v3340_v25 }
 0x464   : > { %3987 = vxpose.xlu1.b32.cont [2/16] (narrow) %v3939_v36, 8 }
 0x466   : > { %v3887_v30 = vpop.f32.mrf.mxu3 }
 0x467   : > { %v3665_v29 = vpop.f32.mrf.mxu2 }
 0x468   : > { %v3718_v1 = vadd.f32 %v3665_v29, %v3476_v28  ;;  %v3342_v51 = vpop.f32.mrf.mxu0 }
 0x46a   : > { %v3940_v32 = vadd.f32 %v3887_v30, %v3718_v1  ;;  %v3482_v14 = vpop.f32.mrf.mxu1  ;;  %v1323_v1 = vpop.trf.xlu1 }
 0x46b   : > { %v3483_v0 = vadd.f32 %v3482_v14, %v3342_v51  ;;  %4512 = vtanh.f32 %v1323_v1  ;;  %v2183_v51 = vpop.trf.xlu2 }
 0x46c   : > { %3988 = vxpose.xlu1.b32.cont [3/16] (narrow) %v3940_v32, 8  ;;  %v1291_v32 = vpop.trf.xlu0 }
 0x46d   : > { %4514 = vtanh.f32 %v1291_v32 }
 0x46e   : > { %v3889_v39 = vpop.f32.mrf.mxu3  ;;  %4516 = vtanh.f32 %v2183_v51 }
 0x46f   : > { %v3667_v35 = vpop.f32.mrf.mxu2 }
 0x470   : > { %v3719_v61 = vadd.f32 %v3667_v35, %v3478_v42  ;;  %v3345_v40 = vpop.f32.mrf.mxu0 }
 0x472   : > { %v3941_v20 = vadd.f32 %v3889_v39, %v3719_v61  ;;  %v3485_v8 = vpop.f32.mrf.mxu1 }
 0x473   : > { %v3486_v56 = vadd.f32 %v3485_v8, %v3345_v40  ;;  %v4513_v40 = vpop.eup %4512 }
 0x474   : > { %3989 = vxpose.xlu1.b32.cont [4/16] (narrow) %v3941_v20, 8  ;;  %v4515_v8 = vpop.eup %4514  ;;  %1342 = vst [vmem:[%s5303_s27 + $0x8] sm:$0xff] %v4513_v40 }
 0x475   : > { %1341 = vst [vmem:[%s5303_s27] sm:$0xff] %v4515_v8 }
 0x476   : > { %v3892_v7 = vpop.f32.mrf.mxu3 }
 0x477   : > { %v3670_v44 = vpop.f32.mrf.mxu2 }
 0x478   : > { %v3720_v45 = vadd.f32 %v3670_v44, %v3481_v43  ;;  %v3347_v38 = vpop.f32.mrf.mxu0  ;;  %v3077_v43 = vpop.trf.xlu1 }
 0x479   : > { %v2215_v44 = vpop.trf.xlu0  ;;  %4518 = vtanh.f32 %v3077_v43 }
 0x47a   : > { %v3942_v17 = vadd.f32 %v3892_v7, %v3720_v45  ;;  %v3487_v50 = vpop.f32.mrf.mxu1  ;;  %v4517_v7 = vpop.eup %4516  ;;  %4520 = vtanh.f32 %v2215_v44 }
 0x47b   : > { %v3488_v21 = vadd.f32 %v3487_v50, %v3347_v38  ;;  %v3109_v45 = vpop.trf.xlu2  ;;  %4257 = vst [vmem:[%s5303_s27 + $0x10] sm:$0xff] %v4517_v7 }
 0x47c   : > { %3990 = vxpose.xlu1.b32.cont [5/16] (narrow) %v3942_v17, 8  ;;  %4522 = vtanh.f32 %v3109_v45 }
 0x47e   : > { %v3894_v53 = vpop.f32.mrf.mxu3 }
 0x47f   : > { %v3672_v52 = vpop.f32.mrf.mxu2 }
 0x480   : > { %v3721_v54 = vadd.f32 %v3672_v52, %v3483_v0  ;;  %v3350_v22 = vpop.f32.mrf.mxu0 }
 0x482   : > { %v3943_v55 = vadd.f32 %v3894_v53, %v3721_v54  ;;  %v3490_v10 = vpop.f32.mrf.mxu1 }
 0x483   : > { %v3491_v26 = vadd.f32 %v3490_v10, %v3350_v22 }
 0x484   : > { %3991 = vxpose.xlu1.b32.cont [6/16] (narrow) %v3943_v55, 8  ;;  %v4519_v55 = vpop.eup %4518 }
 0x485   : > { %4327 = vst [vmem:[%s5303_s27 + $0x20] sm:$0xff] %v4519_v55 }
 0x486   : > { %v3897_v37 = vpop.f32.mrf.mxu3 }
 0x487   : > { %v3675_v57 = vpop.f32.mrf.mxu2 }
 0x488   : > { %v3722_v46 = vadd.f32 %v3675_v57, %v3486_v56  ;;  %v3352_v33 = vpop.f32.mrf.mxu0  ;;  %v4521_v56 = vpop.eup %4520 }
 0x489   : > { %v4523_v10 = vpop.eup %4522  ;;  %4258 = vst [vmem:[%s5303_s27 + $0x18] sm:$0xff] %v4521_v56 }
 0x48a   : > { %v3944_v62 = vadd.f32 %v3897_v37, %v3722_v46  ;;  %v3492_v63 = vpop.f32.mrf.mxu1  ;;  %4328 = vst [vmem:[%s5303_s27 + $0x28] sm:$0xff] %v4523_v10 }
 0x48b   : > { %v3493_v9 = vadd.f32 %v3492_v63, %v3352_v33 }
 0x48c   : > { %3992 = vxpose.xlu1.b32.cont [7/16] (narrow) %v3944_v62, 8 }
 0x48e   : > { %v3899_v2 = vpop.f32.mrf.mxu3 }
 0x48f   : > { %v3677_v11 = vpop.f32.mrf.mxu2 }
 0x490   : > { %v3723_v3 = vadd.f32 %v3677_v11, %v3488_v21  ;;  %v3355_v6 = vpop.f32.mrf.mxu0 }
 0x492   : > { %v3945_v4 = vadd.f32 %v3899_v2, %v3723_v3  ;;  %v3495_v24 = vpop.f32.mrf.mxu1 }
 0x493   : > { %v3496_v48 = vadd.f32 %v3495_v24, %v3355_v6  ;;  %v4045_v6 = vld [vmem:[%s5303_s27] sm:$0xff] (%p4603_p4)  ;;  %v4047_v24 = vld [vmem:[%s5303_s27 + $0x8] sm:$0xff] (%p4603_p4) }
 0x494   : > { %3993 = vxpose.xlu1.b32.cont [8/16] (narrow) %v3945_v4, 8  ;;  %4046 = vst [vmem:[%s4032_s30] sm:$0xff] (%p4603_p4), %v4045_v6 }
 0x495   : > { %4048 = vst [vmem:[%s4032_s30 + $0x8] sm:$0xff] (%p4603_p4), %v4047_v24 }
 0x496   : > { %v3902_v5 = vpop.f32.mrf.mxu3 }
 0x497   : > { %v3680_v49 = vpop.f32.mrf.mxu2 }
 0x498   : > { %v3724_v41 = vadd.f32 %v3680_v49, %v3491_v26  ;;  %v3357_v34 = vpop.f32.mrf.mxu0  ;;  %v3970_v26 = vpop.trf.xlu0 }
 0x499   : > { %4524 = vtanh.f32 %v3970_v26 }
 0x49a   : > { %v3946_v59 = vadd.f32 %v3902_v5, %v3724_v41  ;;  %v3497_v18 = vpop.f32.mrf.mxu1 }
 0x49b   : > { %v3498_v36 = vadd.f32 %v3497_v18, %v3357_v34 }
 0x49c   : > { %3994 = vxpose.xlu1.b32.cont [9/16] (narrow) %v3946_v59, 8  ;;  %v4049_v59 = vld [vmem:[%s5303_s27 + $0x10] sm:$0xff] (%p4603_p4) }
 0x49d   : > { %4050 = vst [vmem:[%s4032_s30 + $0x20] sm:$0xff] (%p4603_p4), %v4049_v59 }
 0x49e   : > { %v3904_v13 = vpop.f32.mrf.mxu3 }
 0x49f   : > { %v3682_v31 = vpop.f32.mrf.mxu2  ;;  %v4525_v49 = vpop.eup %4524 }
 0x4a0   : > { %v3725_v15 = vadd.f32 %v3682_v31, %v3493_v9  ;;  %v3360_v16 = vpop.f32.mrf.mxu0  ;;  %4397 = vst [vmem:[%s5303_s27 + $0x30] sm:$0xff] %v4525_v49  ;;  %v4051_v9 = vld [vmem:[%s5303_s27 + $0x18] sm:$0xff] (%p4603_p4)  ;;  %v4053_v31 = vld [vmem:[%s5303_s27 + $0x20] sm:$0xff] (%p4603_p4) }
 0x4a1   : > { %4052 = vst [vmem:[%s4032_s30 + $0x28] sm:$0xff] (%p4603_p4), %v4051_v9 }
 0x4a2   : > { %v3947_v12 = vadd.f32 %v3904_v13, %v3725_v15  ;;  %v3500_v23 = vpop.f32.mrf.mxu1  ;;  %v4055_v13 = vld [vmem:[%s5303_s27 + $0x28] sm:$0xff] (%p4603_p4)  ;;  %4054 = vst [vmem:[%s4032_s30 + $0x40] sm:$0xff] (%p4603_p4), %v4053_v31 }
 0x4a3   : > { %v3501_v30 = vadd.f32 %v3500_v23, %v3360_v16  ;;  %4056 = vst [vmem:[%s4032_s30 + $0x48] sm:$0xff] (%p4603_p4), %v4055_v13 }
 0x4a4   : > { %3995 = vxpose.xlu1.b32.cont [10/16] (narrow) %v3947_v12, 8 }
 0x4a6   : > { %v3907_v47 = vpop.f32.mrf.mxu3 }
 0x4a7   : > { %v3685_v58 = vpop.f32.mrf.mxu2  ;;  %v4057_v15 = vld [vmem:[%s5303_s27 + $0x30] sm:$0xff] (%p4603_p4) }
 0x4a8   : > { %v3726_v19 = vadd.f32 %v3685_v58, %v3496_v48  ;;  %v3362_v14 = vpop.f32.mrf.mxu0  ;;  %4058 = vst [vmem:[%s4032_s30 + $0x60] sm:$0xff] (%p4603_p4), %v4057_v15 }
 0x4aa   : > { %v3948_v60 = vadd.f32 %v3907_v47, %v3726_v19  ;;  %v3502_v42 = vpop.f32.mrf.mxu1 }
 0x4ab   : > { %v3503_v17 = vadd.f32 %v3502_v42, %v3362_v14 }
 0x4ac   : > { %3996 = vxpose.xlu1.b32.cont [11/16] (narrow) %v3948_v60, 8 }
 0x4ae   : > { %v3909_v27 = vpop.f32.mrf.mxu3 }
 0x4af   : > { %v3687_v25 = vpop.f32.mrf.mxu2 }
 0x4b0   : > { %v3727_v28 = vadd.f32 %v3687_v25, %v3498_v36  ;;  %v3365_v52 = vpop.f32.mrf.mxu0 }
 0x4b2   : > { %v3949_v29 = vadd.f32 %v3909_v27, %v3727_v28  ;;  %v3505_v53 = vpop.f32.mrf.mxu1 }
 0x4b3   : > { %v3506_v22 = vadd.f32 %v3505_v53, %v3365_v52 }
 0x4b4   : > { %3997 = vxpose.xlu1.b32.cont [12/16] (narrow) %v3949_v29, 8 }
 0x4b6   : > { %v3912_v39 = vpop.f32.mrf.mxu3 }
 0x4b7   : > { %v3690_v35 = vpop.f32.mrf.mxu2 }
 0x4b8   : > { %v3728_v61 = vadd.f32 %v3690_v35, %v3501_v30  ;;  %v3367_v21 = vpop.f32.mrf.mxu0 }
 0x4ba   : > { %v3950_v20 = vadd.f32 %v3912_v39, %v3728_v61  ;;  %v3507_v33 = vpop.f32.mrf.mxu1 }
 0x4bb   : > { %v3508_v63 = vadd.f32 %v3507_v33, %v3367_v21 }
 0x4bc   : > { %3998 = vxpose.xlu1.b32.cont [13/16] (narrow) %v3950_v20, 8 }
 0x4be   : > { %v3914_v50 = vpop.f32.mrf.mxu3 }
 0x4bf   : > { %v3692_v38 = vpop.f32.mrf.mxu2 }
 0x4c0   : > { %v3729_v0 = vadd.f32 %v3692_v38, %v3503_v17 }
 0x4c2   : > { %v3951_v54 = vadd.f32 %v3914_v50, %v3729_v0 }
 0x4c4   : > { %3999 = vxpose.xlu1.b32.cont [14/16] (narrow) %v3951_v54, 8 }
 0x4c6   : > { %v3917_v37 = vpop.f32.mrf.mxu3 }
 0x4c7   : > { %v3695_v57 = vpop.f32.mrf.mxu2 }
 0x4c8   : > { %v3730_v46 = vadd.f32 %v3695_v57, %v3506_v22 }
 0x4ca   : > { %v3952_v62 = vadd.f32 %v3917_v37, %v3730_v46 }
 0x4cc   : > { %4000 = vxpose.xlu1.b32.cont [15/16] (narrow) %v3952_v62, 8 }
 0x4ce   : > { %v3919_v3 = vpop.f32.mrf.mxu3 }
 0x4cf   : > { %v3697_v11 = vpop.f32.mrf.mxu2 }
 0x4d0   : > { %v3731_v2 = vadd.f32 %v3697_v11, %v3508_v63 }
 0x4d2   : > { %v3953_v4 = vadd.f32 %v3919_v3, %v3731_v2 }
 0x4d4   : > { %4001 = vxpose.xlu1.b32.end [16/16] (narrow) %v3953_v4, 8 }
 0x500   : > { %v4002_v5 = vpop.trf.xlu1 }
 0x501   : > { %4526 = vtanh.f32 %v4002_v5 }
 0x504   : > { %4029 = sbr.rel (!%p4603_p4) target bundleno = 1297 (0x511), region = 40 }
 0x507   : > { %v4527_v41 = vpop.eup %4526 }
 0x508   : > { %4398 = vst [vmem:[%s5303_s27 + $0x38] sm:$0xff] %v4527_v41 }
 0x50f   : > { %v4059_v12 = vld [vmem:[%s5303_s27 + $0x38] sm:$0xff] }
 0x510   : > { %4060 = vst [vmem:[%s4032_s30 + $0x68] sm:$0xff] %v4059_v12 }
 0x511 PF: > { %p11_p8 = scmp.ge.s32.totalorder %s4593_s19, 4   ;;  %s5343_s15 = smov %s4546_s16 }
 0x512   : > { %s5344_s16 = smov %s4601_s22  ;;  %s5345_s17 = smov %s4593_s19 }
 0x513   :  { %13 = sbr.rel (!%p11_p8) target bundleno = 2 (0x2), region = 109 }

</bundles_post_ra>
